<compile_context>
chip_gen: v5e
topology: v5e:2x2
jax: 0.10.0
libtpu: 0.0.40
codegen_flags: <defaults>
</compile_context>

<pallas_src>
import functools

import jax
import jax.numpy as jnp
from jax.experimental import pallas as pl
from jax.experimental.pallas import tpu as pltpu

EMBEDDING_LENGTH = 10


def _round_up(x, m):
    return (x + m - 1) // m * m


# --------------------------------------------------------------------------
# Fused kernel: 2-layer bi-LSTM + MLP tagger + log_softmax, all in VMEM.
# --------------------------------------------------------------------------
def _fused_kernel(x_ref, m_ref,
                  wihc0_ref, whh0f_ref, whh0b_ref, b0_ref,
                  wih1t_ref, wih1bot_ref, whh1f_ref, whh1b_ref, b1_ref,
                  w1t_ref, w1bot_ref, c1_ref, w2_ref, c2_ref,
                  out_ref,
                  gin_ref, seqf_ref, seqb_ref,
                  *, T, BP, H, GP):
    f32 = jnp.float32
    bf16 = jnp.bfloat16
    G4 = 4 * GP                      # per-direction gate width (GP-pitched)

    def lstm_gates(g, c):
        # gate order [i, f, o, g]; every slice starts on a 128-lane boundary
        # (gate pitch GP) -> no cross-lane relayouts inside the recurrence.
        sig = jax.nn.sigmoid(g[:, :3 * GP])
        gi = sig[:, 0 * GP:0 * GP + H]
        gf = sig[:, 1 * GP:1 * GP + H]
        go = sig[:, 2 * GP:2 * GP + H]
        gc = jnp.tanh(g[:, 3 * GP:3 * GP + H])
        c_new = gf * c + gi * gc
        h_new = go * jnp.tanh(c_new)
        return h_new, c_new

    def run_layer(whhf_ref, whhb_ref):
        whhf = whhf_ref[...]          # (H, 4*GP) bf16
        whhb = whhb_ref[...]

        def step(t, carry):
            hf, cf, hb, cb = carry
            rf = pl.multiple_of(t * BP, BP)              # fwd time index t
            rb = pl.multiple_of((T - 1 - t) * BP, BP)    # bwd time index T-1-t
            # fwd / bwd are independent chains in the same body -> the LLO
            # scheduler interleaves their MXU / EUP / VPU latency bubbles.
            g_f = gin_ref[pl.ds(rf, BP), :G4] + jnp.dot(
                hf.astype(bf16), whhf, preferred_element_type=f32)
            g_b = gin_ref[pl.ds(rb, BP), G4:] + jnp.dot(
                hb.astype(bf16), whhb, preferred_element_type=f32)
            hf_n, cf_n = lstm_gates(g_f, cf)
            hb_n, cb_n = lstm_gates(g_b, cb)
            # packed-sequence emulation: zero state & output at padded steps
            # (mask is lane-dense -> one plain vreg multiply, no broadcast).
            mf = m_ref[pl.ds(rf, BP), :]
            mb = m_ref[pl.ds(rb, BP), :]
            hf_n = hf_n * mf
            cf_n = cf_n * mf
            hb_n = hb_n * mb
            cb_n = cb_n * mb
            seqf_ref[pl.ds(rf, BP), :] = hf_n
            seqb_ref[pl.ds(rb, BP), :] = hb_n
            return hf_n, cf_n, hb_n, cb_n

        z = jnp.zeros((BP, H), f32)
        jax.lax.fori_loop(0, T, step, (z, z, z, z),
                          unroll=True if T <= 32 else 8)

    # ---- layer 0: ONE merged fwd|bwd hoisted input projection --------------
    gin_ref[...] = jnp.dot(x_ref[...], wihc0_ref[...],
                           preferred_element_type=f32) + b0_ref[...]
    run_layer(whh0f_ref, whh0b_ref)

    # ---- layer 1: projection of layer-0 fwd/bwd outputs (two summed dots) --
    s0f = seqf_ref[...].astype(bf16)
    s0b = seqb_ref[...].astype(bf16)
    gin_ref[...] = (jnp.dot(s0f, wih1t_ref[...], preferred_element_type=f32)
                    + jnp.dot(s0b, wih1bot_ref[...], preferred_element_type=f32)
                    + b1_ref[...])
    run_layer(whh1f_ref, whh1b_ref)          # overwrites seqf/seqb in place

    # ---- MLP head: Linear(2H,H) -> tanh -> Linear(H,TAG) -> log_softmax ----
    hdn = jnp.tanh(jnp.dot(seqf_ref[...], w1t_ref[...],
                           preferred_element_type=f32)
                   + jnp.dot(seqb_ref[...], w1bot_ref[...],
                             preferred_element_type=f32)
                   + c1_ref[...])
    logits = jnp.dot(hdn, w2_ref[...], preferred_element_type=f32) + c2_ref[...]
    z = logits - jnp.max(logits, axis=-1, keepdims=True)
    out_ref[...] = z - jnp.log(jnp.sum(jnp.exp(z), axis=-1, keepdims=True))


def fused_bilstm_tagger(x2, m2, kp, *, T, BP):
    """x2: (T*BP, E) bf16 summed embeddings (time-major, batch sublane-padded),
    m2: (T*BP, H) f32 lane-dense validity mask."""
    H, GP, TAG = kp["H"], kp["GP"], kp["TAG"]
    kernel = functools.partial(_fused_kernel, T=T, BP=BP, H=H, GP=GP)
    args = (x2, m2,
            kp["wihc0"], kp["whh0f"], kp["whh0b"], kp["b0"],
            kp["wih1_top"], kp["wih1_bot"], kp["whh1f"], kp["whh1b"], kp["b1"],
            kp["w1_top"], kp["w1_bot"], kp["c1"], kp["w2"], kp["c2"])
    # TODO(synk): on v7x, add a parallel batch grid once B grows beyond a few
    # sequences (the recurrence is independent across batch).
    return pl.pallas_call(
        kernel,
        out_shape=jax.ShapeDtypeStruct((T * BP, TAG), jnp.float32),
        scratch_shapes=[
            pltpu.VMEM((T * BP, 8 * GP), jnp.float32),   # merged fwd|bwd gates
            pltpu.VMEM((T * BP, H), jnp.float32),        # fwd hidden sequence
            pltpu.VMEM((T * BP, H), jnp.float32),        # bwd hidden sequence
        ],
        compiler_params=pltpu.CompilerParams(
            vmem_limit_bytes=32 * 1024 * 1024),
    )(*args)


# --------------------------------------------------------------------------
# Parameters (deterministic synthetic init; shapes per the PyTorch __init__).
# --------------------------------------------------------------------------
def init_params(key, vocab_size, hidden_size, prefix_size, suffix_size,
                tagging_size):
    E, H = EMBEDDING_LENGTH, hidden_size
    keys = iter(jax.random.split(key, 40))

    def w(shape, scale=0.1):
        return (scale * jax.random.normal(next(keys), shape)).astype(jnp.float32)

    def lstm_dir(in_dim):
        # pre-transposed (in, 4H), gate order [i, f, o, g], bias = b_ih + b_hh.
        return {"w_ih": w((in_dim, 4 * H)), "w_hh": w((H, 4 * H)),
                "b": w((4 * H,))}

    return {
        "emb": w((vocab_size, E)),
        "emb_pre": w((prefix_size, E)),
        "emb_suf": w((suffix_size, E)),
        # nn.LSTM(E, H, 2, bidirectional=True)
        "cell": [
            {"fwd": lstm_dir(E), "bwd": lstm_dir(E)},
            {"fwd": lstm_dir(2 * H), "bwd": lstm_dir(2 * H)},
        ],
        "linear": {"w": w((2 * H, H)), "b": w((H,))},
        "linear2": {"w": w((H, tagging_size)), "b": w((tagging_size,))},
    }


def prepare_kernel_params(params):
    """Pad / merge the true-size parameters into the kernel layout:
       gate blocks at a 128-lane pitch (tile-aligned in-kernel slices),
       fwd|bwd input projections merged to one (in, 8*GP) matrix,
       layer-1 / MLP weights split into fwd-half / bwd-half row blocks,
       MXU inputs cast to bf16 (accumulation stays f32)."""
    H = params["cell"][0]["fwd"]["w_hh"].shape[0]
    TAG = params["linear2"]["w"].shape[1]
    GP = _round_up(H, 128)
    bf16 = jnp.bfloat16

    def pad_gate_cols(w):
        out = jnp.zeros((w.shape[0], 4 * GP), jnp.float32)
        for k in range(4):
            out = out.at[:, k * GP:k * GP + H].set(w[:, k * H:(k + 1) * H])
        return out

    def pad_gate_bias(b):
        out = jnp.zeros((1, 4 * GP), jnp.float32)
        for k in range(4):
            out = out.at[:, k * GP:k * GP + H].set(b[None, k * H:(k + 1) * H])
        return out

    l0, l1 = params["cell"]
    wihc0 = jnp.concatenate([pad_gate_cols(l0["fwd"]["w_ih"]),
                             pad_gate_cols(l0["bwd"]["w_ih"])], axis=1)
    wih1_top = jnp.concatenate([pad_gate_cols(l1["fwd"]["w_ih"][:H]),
                                pad_gate_cols(l1["bwd"]["w_ih"][:H])], axis=1)
    wih1_bot = jnp.concatenate([pad_gate_cols(l1["fwd"]["w_ih"][H:]),
                                pad_gate_cols(l1["bwd"]["w_ih"][H:])], axis=1)
    return {
        "H": H, "GP": GP, "TAG": TAG,
        "wihc0": wihc0.astype(bf16),                       # (E, 8*GP)
        "b0": jnp.concatenate([pad_gate_bias(l0["fwd"]["b"]),
                               pad_gate_bias(l0["bwd"]["b"])], axis=1),
        "whh0f": pad_gate_cols(l0["fwd"]["w_hh"]).astype(bf16),
        "whh0b": pad_gate_cols(l0["bwd"]["w_hh"]).astype(bf16),
        "wih1_top": wih1_top.astype(bf16),                 # (H, 8*GP)
        "wih1_bot": wih1_bot.astype(bf16),
        "b1": jnp.concatenate([pad_gate_bias(l1["fwd"]["b"]),
                               pad_gate_bias(l1["bwd"]["b"])], axis=1),
        "whh1f": pad_gate_cols(l1["fwd"]["w_hh"]).astype(bf16),
        "whh1b": pad_gate_cols(l1["bwd"]["w_hh"]).astype(bf16),
        "w1_top": params["linear"]["w"][:H],
        "w1_bot": params["linear"]["w"][H:],
        "c1": params["linear"]["b"].reshape(1, H),
        "w2": params["linear2"]["w"],
        "c2": params["linear2"]["b"].reshape(1, TAG),
    }


# --------------------------------------------------------------------------
# Forward pass (mirrors c.forward).
# --------------------------------------------------------------------------
def c_forward(params, inputs, input_lens):
    """inputs = (prefix_ids, word_ids, suffix_ids), each (B, S) int32.
    input_lens: python list of true sentence lengths (host metadata)."""
    pre_ids, word_ids, suf_ids = inputs
    B, S = word_ids.shape
    E = EMBEDDING_LENGTH
    H = params["cell"][0]["fwd"]["w_hh"].shape[0]

    # embedding gathers + sum are glue (plain JAX); the hot path is the kernel.
    emb = (jnp.take(params["emb_pre"], pre_ids.T, axis=0)
           + jnp.take(params["emb"], word_ids.T, axis=0)
           + jnp.take(params["emb_suf"], suf_ids.T, axis=0))     # (S, B, E)

    # pack_padded/pad_packed emulation with static-shape hygiene:
    #  * T bucketed to a power of two -> no Mosaic recompile per new max length
    #  * batch padded to a sublane multiple (8) -> aligned per-step accesses
    #  * validity mask pre-broadcast to H lanes (lane-dense)
    T = int(max(input_lens))
    T_run = 1 << max(0, (T - 1).bit_length())
    if T_run <= S:
        x = emb[:T_run]
    else:
        x = jnp.pad(emb, ((0, T_run - S), (0, 0), (0, 0)))
    BP = _round_up(B, 8)
    x = jnp.pad(x, ((0, 0), (0, BP - B), (0, 0)))                # (T_run, BP, E)

    lens = jnp.asarray(list(input_lens) + [0] * (BP - B), jnp.int32)
    mask = (jnp.arange(T_run)[:, None] < lens[None, :]).astype(jnp.float32)
    m2 = jnp.broadcast_to(mask[:, :, None], (T_run, BP, H)).reshape(T_run * BP, H)
    x2 = x.reshape(T_run * BP, E).astype(jnp.bfloat16)           # time-major rows

    kp = prepare_kernel_params(params)    # cheap; cache it in a real loop
    out = fused_bilstm_tagger(x2, m2, kp, T=T_run, BP=BP)        # (T_run*BP, TAG)
    return out.reshape(T_run, BP, -1)[:T, :B]                    # log-probs (T,B,TAG)


if __name__ == "__main__":
    key = jax.random.PRNGKey(0)
    VOCAB, PREFIX, SUFFIX, HIDDEN, TAG = 50, 30, 30, 32, 5
    B, S = 2, 8

    pkey, k1, k2, k3 = jax.random.split(key, 4)
    params = init_params(pkey, VOCAB, HIDDEN, PREFIX, SUFFIX, TAG)

    word_ids = jax.random.randint(k1, (B, S), 0, VOCAB, dtype=jnp.int32)
    pre_ids = jax.random.randint(k2, (B, S), 0, PREFIX, dtype=jnp.int32)
    suf_ids = jax.random.randint(k3, (B, S), 0, SUFFIX, dtype=jnp.int32)
    input_lens = [8, 5]            # per-sentence word counts (unsorted OK)

    out = c_forward(params, (pre_ids, word_ids, suf_ids), input_lens)
    jax.block_until_ready(out)

    assert out.shape == (max(input_lens), B, TAG), out.shape
    assert bool(jnp.all(jnp.isfinite(out)))
    # log_softmax rows must normalize to 1
    assert bool(jnp.all(jnp.abs(jnp.exp(out).sum(-1) - 1.0) < 1e-4))
    print("KERNEL_OK")
</pallas_src>

<mosaic_0001>
module attributes {stable_mosaic.version = 11 : i64} {
  func.func @_fused_kernel(%arg0: memref<64x10xbf16, #tpu.memory_space<vmem>>, %arg1: memref<64x32xf32, #tpu.memory_space<vmem>>, %arg2: memref<10x1024xbf16, #tpu.memory_space<vmem>>, %arg3: memref<32x512xbf16, #tpu.memory_space<vmem>>, %arg4: memref<32x512xbf16, #tpu.memory_space<vmem>>, %arg5: memref<1x1024xf32, #tpu.memory_space<vmem>>, %arg6: memref<32x1024xbf16, #tpu.memory_space<vmem>>, %arg7: memref<32x1024xbf16, #tpu.memory_space<vmem>>, %arg8: memref<32x512xbf16, #tpu.memory_space<vmem>>, %arg9: memref<32x512xbf16, #tpu.memory_space<vmem>>, %arg10: memref<1x1024xf32, #tpu.memory_space<vmem>>, %arg11: memref<32x32xf32, #tpu.memory_space<vmem>>, %arg12: memref<32x32xf32, #tpu.memory_space<vmem>>, %arg13: memref<1x32xf32, #tpu.memory_space<vmem>>, %arg14: memref<32x5xf32, #tpu.memory_space<vmem>>, %arg15: memref<1x5xf32, #tpu.memory_space<vmem>>, %arg16: memref<64x5xf32, #tpu.memory_space<vmem>>, %arg17: memref<64x1024xf32, #tpu.memory_space<vmem>>, %arg18: memref<64x32xf32, #tpu.memory_space<vmem>>, %arg19: memref<64x32xf32, #tpu.memory_space<vmem>>) attributes {dimension_semantics = [], scalar_prefetch = 0 : i64, scratch_operands = 3 : i64, tpu.core_type = #tpu.core_type<tc>} {
    %c0 = arith.constant 0 : index
    %c0_0 = arith.constant 0 : index
    %0 = vector.load %arg0[%c0, %c0_0] : memref<64x10xbf16, #tpu.memory_space<vmem>>, vector<64x10xbf16>
    %c0_1 = arith.constant 0 : index
    %c0_2 = arith.constant 0 : index
    %1 = vector.load %arg2[%c0_1, %c0_2] : memref<10x1024xbf16, #tpu.memory_space<vmem>>, vector<10x1024xbf16>
    %cst = arith.constant dense<0.000000e+00> : vector<64x1024xf32>
    %2 = tpu.matmul %0, %1, %cst {dimension_numbers = #tpu.dot_dimension_numbers<[1], [0], [0], [1], [0, 0, 1, 1], [], []>} : vector<64x10xbf16>, vector<10x1024xbf16>, vector<64x1024xf32> -> vector<64x1024xf32>
    %c0_3 = arith.constant 0 : index
    %c0_4 = arith.constant 0 : index
    %3 = vector.load %arg5[%c0_3, %c0_4] : memref<1x1024xf32, #tpu.memory_space<vmem>>, vector<1x1024xf32>
    %4 = vector.broadcast %3 : vector<1x1024xf32> to vector<64x1024xf32>
    %5 = arith.addf %2, %4 : vector<64x1024xf32>
    %c0_5 = arith.constant 0 : index
    %c0_6 = arith.constant 0 : index
    %6 = vector.load %arg17[%c0_5, %c0_6] : memref<64x1024xf32, #tpu.memory_space<vmem>>, vector<64x1024xf32>
    tpu.vector_store %arg17[%c0_5, %c0_6], %5 {strides = array<i32>} : memref<64x1024xf32, #tpu.memory_space<vmem>>, vector<64x1024xf32>,
    %c0_7 = arith.constant 0 : index
    %c0_8 = arith.constant 0 : index
    %7 = vector.load %arg3[%c0_7, %c0_8] : memref<32x512xbf16, #tpu.memory_space<vmem>>, vector<32x512xbf16>
    %c0_9 = arith.constant 0 : index
    %c0_10 = arith.constant 0 : index
    %8 = vector.load %arg4[%c0_9, %c0_10] : memref<32x512xbf16, #tpu.memory_space<vmem>>, vector<32x512xbf16>
    %cst_11 = arith.constant 0.000000e+00 : f32
    %9 = vector.broadcast %cst_11 : f32 to vector<8x32xf32>
    %c0_i32 = arith.constant 0 : i32
    %c8_i32 = arith.constant 8 : i32
    %10 = arith.muli %c0_i32, %c8_i32 : i32
    %11 = tpu.assume_multiple %10, 8 : i32
    %c7_i32 = arith.constant 7 : i32
    %12 = arith.subi %c7_i32, %c0_i32 : i32
    %c8_i32_12 = arith.constant 8 : i32
    %13 = arith.muli %12, %c8_i32_12 : i32
    %14 = tpu.assume_multiple %13, 8 : i32
    %15 = arith.index_cast %11 : i32 to index
    %c0_13 = arith.constant 0 : index
    %16 = vector.load %arg17[%15, %c0_13] : memref<64x1024xf32, #tpu.memory_space<vmem>>, vector<8x512xf32>
    %17 = arith.truncf %9 : vector<8x32xf32> to vector<8x32xbf16>
    %cst_14 = arith.constant dense<0.000000e+00> : vector<8x512xf32>
    %18 = tpu.matmul %17, %7, %cst_14 {dimension_numbers = #tpu.dot_dimension_numbers<[1], [0], [0], [1], [0, 0, 1, 1], [], []>} : vector<8x32xbf16>, vector<32x512xbf16>, vector<8x512xf32> -> vector<8x512xf32>
    %19 = arith.addf %16, %18 : vector<8x512xf32>
    %20 = arith.index_cast %14 : i32 to index
    %c512 = arith.constant 512 : index
    %21 = vector.load %arg17[%20, %c512] : memref<64x1024xf32, #tpu.memory_space<vmem>>, vector<8x512xf32>
    %22 = arith.truncf %9 : vector<8x32xf32> to vector<8x32xbf16>
    %cst_15 = arith.constant dense<0.000000e+00> : vector<8x512xf32>
    %23 = tpu.matmul %22, %8, %cst_15 {dimension_numbers = #tpu.dot_dimension_numbers<[1], [0], [0], [1], [0, 0, 1, 1], [], []>} : vector<8x32xbf16>, vector<32x512xbf16>, vector<8x512xf32> -> vector<8x512xf32>
    %24 = arith.addf %21, %23 : vector<8x512xf32>
    %25 = vector.extract_strided_slice %19 {offsets = [0, 0], sizes = [8, 384], strides = [1, 1]} : vector<8x512xf32> to vector<8x384xf32>
    %26 = arith.negf %25 : vector<8x384xf32>
    %27 = math.exp %26 : vector<8x384xf32>
    %cst_16 = arith.constant 1.000000e+00 : f32
    %28 = vector.broadcast %cst_16 : f32 to vector<8x384xf32>
    %29 = arith.addf %28, %27 : vector<8x384xf32>
    %30 = arith.divf %28, %29 : vector<8x384xf32>
    %31 = vector.extract_strided_slice %30 {offsets = [0, 0], sizes = [8, 32], strides = [1, 1]} : vector<8x384xf32> to vector<8x32xf32>
    %32 = vector.extract_strided_slice %30 {offsets = [0, 128], sizes = [8, 32], strides = [1, 1]} : vector<8x384xf32> to vector<8x32xf32>
    %33 = vector.extract_strided_slice %30 {offsets = [0, 256], sizes = [8, 32], strides = [1, 1]} : vector<8x384xf32> to vector<8x32xf32>
    %34 = vector.extract_strided_slice %19 {offsets = [0, 384], sizes = [8, 32], strides = [1, 1]} : vector<8x512xf32> to vector<8x32xf32>
    %35 = math.tanh %34 : vector<8x32xf32>
    %36 = arith.mulf %32, %9 : vector<8x32xf32>
    %37 = arith.mulf %31, %35 : vector<8x32xf32>
    %38 = arith.addf %36, %37 : vector<8x32xf32>
    %39 = math.tanh %38 : vector<8x32xf32>
    %40 = arith.mulf %33, %39 : vector<8x32xf32>
    %41 = vector.extract_strided_slice %24 {offsets = [0, 0], sizes = [8, 384], strides = [1, 1]} : vector<8x512xf32> to vector<8x384xf32>
    %42 = arith.negf %41 : vector<8x384xf32>
    %43 = math.exp %42 : vector<8x384xf32>
    %cst_17 = arith.constant 1.000000e+00 : f32
    %44 = vector.broadcast %cst_17 : f32 to vector<8x384xf32>
    %45 = arith.addf %44, %43 : vector<8x384xf32>
    %46 = arith.divf %44, %45 : vector<8x384xf32>
    %47 = vector.extract_strided_slice %46 {offsets = [0, 0], sizes = [8, 32], strides = [1, 1]} : vector<8x384xf32> to vector<8x32xf32>
    %48 = vector.extract_strided_slice %46 {offsets = [0, 128], sizes = [8, 32], strides = [1, 1]} : vector<8x384xf32> to vector<8x32xf32>
    %49 = vector.extract_strided_slice %46 {offsets = [0, 256], sizes = [8, 32], strides = [1, 1]} : vector<8x384xf32> to vector<8x32xf32>
    %50 = vector.extract_strided_slice %24 {offsets = [0, 384], sizes = [8, 32], strides = [1, 1]} : vector<8x512xf32> to vector<8x32xf32>
    %51 = math.tanh %50 : vector<8x32xf32>
    %52 = arith.mulf %48, %9 : vector<8x32xf32>
    %53 = arith.mulf %47, %51 : vector<8x32xf32>
    %54 = arith.addf %52, %53 : vector<8x32xf32>
    %55 = math.tanh %54 : vector<8x32xf32>
    %56 = arith.mulf %49, %55 : vector<8x32xf32>
    %57 = arith.index_cast %11 : i32 to index
    %c0_18 = arith.constant 0 : index
    %58 = vector.load %arg1[%57, %c0_18] : memref<64x32xf32, #tpu.memory_space<vmem>>, vector<8x32xf32>
    %59 = arith.index_cast %14 : i32 to index
    %c0_19 = arith.constant 0 : index
    %60 = vector.load %arg1[%59, %c0_19] : memref<64x32xf32, #tpu.memory_space<vmem>>, vector<8x32xf32>
    %61 = arith.mulf %40, %58 : vector<8x32xf32>
    %62 = arith.mulf %38, %58 : vector<8x32xf32>
    %63 = arith.mulf %56, %60 : vector<8x32xf32>
    %64 = arith.mulf %54, %60 : vector<8x32xf32>
    %65 = arith.index_cast %11 : i32 to index
    %c0_20 = arith.constant 0 : index
    %66 = vector.load %arg18[%65, %c0_20] : memref<64x32xf32, #tpu.memory_space<vmem>>, vector<8x32xf32>
    tpu.vector_store %arg18[%65, %c0_20], %61 {strides = array<i32>} : memref<64x32xf32, #tpu.memory_space<vmem>>, vector<8x32xf32>,
    %67 = arith.index_cast %14 : i32 to index
    %c0_21 = arith.constant 0 : index
    %68 = vector.load %arg19[%67, %c0_21] : memref<64x32xf32, #tpu.memory_space<vmem>>, vector<8x32xf32>
    tpu.vector_store %arg19[%67, %c0_21], %63 {strides = array<i32>} : memref<64x32xf32, #tpu.memory_space<vmem>>, vector<8x32xf32>,
    %c1_i32 = arith.constant 1 : i32
    %c8_i32_22 = arith.constant 8 : i32
    %69 = arith.muli %c1_i32, %c8_i32_22 : i32
    %70 = tpu.assume_multiple %69, 8 : i32
    %c7_i32_23 = arith.constant 7 : i32
    %71 = arith.subi %c7_i32_23, %c1_i32 : i32
    %c8_i32_24 = arith.constant 8 : i32
    %72 = arith.muli %71, %c8_i32_24 : i32
    %73 = tpu.assume_multiple %72, 8 : i32
    %74 = arith.index_cast %70 : i32 to index
    %c0_25 = arith.constant 0 : index
    %75 = vector.load %arg17[%74, %c0_25] : memref<64x1024xf32, #tpu.memory_space<vmem>>, vector<8x512xf32>
    %76 = arith.truncf %61 : vector<8x32xf32> to vector<8x32xbf16>
    %cst_26 = arith.constant dense<0.000000e+00> : vector<8x512xf32>
    %77 = tpu.matmul %76, %7, %cst_26 {dimension_numbers = #tpu.dot_dimension_numbers<[1], [0], [0], [1], [0, 0, 1, 1], [], []>} : vector<8x32xbf16>, vector<32x512xbf16>, vector<8x512xf32> -> vector<8x512xf32>
    %78 = arith.addf %75, %77 : vector<8x512xf32>
    %79 = arith.index_cast %73 : i32 to index
    %c512_27 = arith.constant 512 : index
    %80 = vector.load %arg17[%79, %c512_27] : memref<64x1024xf32, #tpu.memory_space<vmem>>, vector<8x512xf32>
    %81 = arith.truncf %63 : vector<8x32xf32> to vector<8x32xbf16>
    %cst_28 = arith.constant dense<0.000000e+00> : vector<8x512xf32>
    %82 = tpu.matmul %81, %8, %cst_28 {dimension_numbers = #tpu.dot_dimension_numbers<[1], [0], [0], [1], [0, 0, 1, 1], [], []>} : vector<8x32xbf16>, vector<32x512xbf16>, vector<8x512xf32> -> vector<8x512xf32>
    %83 = arith.addf %80, %82 : vector<8x512xf32>
    %84 = vector.extract_strided_slice %78 {offsets = [0, 0], sizes = [8, 384], strides = [1, 1]} : vector<8x512xf32> to vector<8x384xf32>
    %85 = arith.negf %84 : vector<8x384xf32>
    %86 = math.exp %85 : vector<8x384xf32>
    %cst_29 = arith.constant 1.000000e+00 : f32
    %87 = vector.broadcast %cst_29 : f32 to vector<8x384xf32>
    %88 = arith.addf %87, %86 : vector<8x384xf32>
    %89 = arith.divf %87, %88 : vector<8x384xf32>
    %90 = vector.extract_strided_slice %89 {offsets = [0, 0], sizes = [8, 32], strides = [1, 1]} : vector<8x384xf32> to vector<8x32xf32>
    %91 = vector.extract_strided_slice %89 {offsets = [0, 128], sizes = [8, 32], strides = [1, 1]} : vector<8x384xf32> to vector<8x32xf32>
    %92 = vector.extract_strided_slice %89 {offsets = [0, 256], sizes = [8, 32], strides = [1, 1]} : vector<8x384xf32> to vector<8x32xf32>
    %93 = vector.extract_strided_slice %78 {offsets = [0, 384], sizes = [8, 32], strides = [1, 1]} : vector<8x512xf32> to vector<8x32xf32>
    %94 = math.tanh %93 : vector<8x32xf32>
    %95 = arith.mulf %91, %62 : vector<8x32xf32>
    %96 = arith.mulf %90, %94 : vector<8x32xf32>
    %97 = arith.addf %95, %96 : vector<8x32xf32>
    %98 = math.tanh %97 : vector<8x32xf32>
    %99 = arith.mulf %92, %98 : vector<8x32xf32>
    %100 = vector.extract_strided_slice %83 {offsets = [0, 0], sizes = [8, 384], strides = [1, 1]} : vector<8x512xf32> to vector<8x384xf32>
    %101 = arith.negf %100 : vector<8x384xf32>
    %102 = math.exp %101 : vector<8x384xf32>
    %cst_30 = arith.constant 1.000000e+00 : f32
    %103 = vector.broadcast %cst_30 : f32 to vector<8x384xf32>
    %104 = arith.addf %103, %102 : vector<8x384xf32>
    %105 = arith.divf %103, %104 : vector<8x384xf32>
    %106 = vector.extract_strided_slice %105 {offsets = [0, 0], sizes = [8, 32], strides = [1, 1]} : vector<8x384xf32> to vector<8x32xf32>
    %107 = vector.extract_strided_slice %105 {offsets = [0, 128], sizes = [8, 32], strides = [1, 1]} : vector<8x384xf32> to vector<8x32xf32>
    %108 = vector.extract_strided_slice %105 {offsets = [0, 256], sizes = [8, 32], strides = [1, 1]} : vector<8x384xf32> to vector<8x32xf32>
    %109 = vector.extract_strided_slice %83 {offsets = [0, 384], sizes = [8, 32], strides = [1, 1]} : vector<8x512xf32> to vector<8x32xf32>
    %110 = math.tanh %109 : vector<8x32xf32>
    %111 = arith.mulf %107, %64 : vector<8x32xf32>
    %112 = arith.mulf %106, %110 : vector<8x32xf32>
    %113 = arith.addf %111, %112 : vector<8x32xf32>
    %114 = math.tanh %113 : vector<8x32xf32>
    %115 = arith.mulf %108, %114 : vector<8x32xf32>
    %116 = arith.index_cast %70 : i32 to index
    %c0_31 = arith.constant 0 : index
    %117 = vector.load %arg1[%116, %c0_31] : memref<64x32xf32, #tpu.memory_space<vmem>>, vector<8x32xf32>
    %118 = arith.index_cast %73 : i32 to index
    %c0_32 = arith.constant 0 : index
    %119 = vector.load %arg1[%118, %c0_32] : memref<64x32xf32, #tpu.memory_space<vmem>>, vector<8x32xf32>
    %120 = arith.mulf %99, %117 : vector<8x32xf32>
    %121 = arith.mulf %97, %117 : vector<8x32xf32>
    %122 = arith.mulf %115, %119 : vector<8x32xf32>
    %123 = arith.mulf %113, %119 : vector<8x32xf32>
    %124 = arith.index_cast %70 : i32 to index
    %c0_33 = arith.constant 0 : index
    %125 = vector.load %arg18[%124, %c0_33] : memref<64x32xf32, #tpu.memory_space<vmem>>, vector<8x32xf32>
    tpu.vector_store %arg18[%124, %c0_33], %120 {strides = array<i32>} : memref<64x32xf32, #tpu.memory_space<vmem>>, vector<8x32xf32>,
    %126 = arith.index_cast %73 : i32 to index
    %c0_34 = arith.constant 0 : index
    %127 = vector.load %arg19[%126, %c0_34] : memref<64x32xf32, #tpu.memory_space<vmem>>, vector<8x32xf32>
    tpu.vector_store %arg19[%126, %c0_34], %122 {strides = array<i32>} : memref<64x32xf32, #tpu.memory_space<vmem>>, vector<8x32xf32>,
    %c2_i32 = arith.constant 2 : i32
    %c8_i32_35 = arith.constant 8 : i32
    %128 = arith.muli %c2_i32, %c8_i32_35 : i32
    %129 = tpu.assume_multiple %128, 8 : i32
    %c7_i32_36 = arith.constant 7 : i32
    %130 = arith.subi %c7_i32_36, %c2_i32 : i32
    %c8_i32_37 = arith.constant 8 : i32
    %131 = arith.muli %130, %c8_i32_37 : i32
    %132 = tpu.assume_multiple %131, 8 : i32
    %133 = arith.index_cast %129 : i32 to index
    %c0_38 = arith.constant 0 : index
    %134 = vector.load %arg17[%133, %c0_38] : memref<64x1024xf32, #tpu.memory_space<vmem>>, vector<8x512xf32>
    %135 = arith.truncf %120 : vector<8x32xf32> to vector<8x32xbf16>
    %cst_39 = arith.constant dense<0.000000e+00> : vector<8x512xf32>
    %136 = tpu.matmul %135, %7, %cst_39 {dimension_numbers = #tpu.dot_dimension_numbers<[1], [0], [0], [1], [0, 0, 1, 1], [], []>} : vector<8x32xbf16>, vector<32x512xbf16>, vector<8x512xf32> -> vector<8x512xf32>
    %137 = arith.addf %134, %136 : vector<8x512xf32>
    %138 = arith.index_cast %132 : i32 to index
    %c512_40 = arith.constant 512 : index
    %139 = vector.load %arg17[%138, %c512_40] : memref<64x1024xf32, #tpu.memory_space<vmem>>, vector<8x512xf32>
    %140 = arith.truncf %122 : vector<8x32xf32> to vector<8x32xbf16>
    %cst_41 = arith.constant dense<0.000000e+00> : vector<8x512xf32>
    %141 = tpu.matmul %140, %8, %cst_41 {dimension_numbers = #tpu.dot_dimension_numbers<[1], [0], [0], [1], [0, 0, 1, 1], [], []>} : vector<8x32xbf16>, vector<32x512xbf16>, vector<8x512xf32> -> vector<8x512xf32>
    %142 = arith.addf %139, %141 : vector<8x512xf32>
    %143 = vector.extract_strided_slice %137 {offsets = [0, 0], sizes = [8, 384], strides = [1, 1]} : vector<8x512xf32> to vector<8x384xf32>
    %144 = arith.negf %143 : vector<8x384xf32>
    %145 = math.exp %144 : vector<8x384xf32>
    %cst_42 = arith.constant 1.000000e+00 : f32
    %146 = vector.broadcast %cst_42 : f32 to vector<8x384xf32>
    %147 = arith.addf %146, %145 : vector<8x384xf32>
    %148 = arith.divf %146, %147 : vector<8x384xf32>
    %149 = vector.extract_strided_slice %148 {offsets = [0, 0], sizes = [8, 32], strides = [1, 1]} : vector<8x384xf32> to vector<8x32xf32>
    %150 = vector.extract_strided_slice %148 {offsets = [0, 128], sizes = [8, 32], strides = [1, 1]} : vector<8x384xf32> to vector<8x32xf32>
    %151 = vector.extract_strided_slice %148 {offsets = [0, 256], sizes = [8, 32], strides = [1, 1]} : vector<8x384xf32> to vector<8x32xf32>
    %152 = vector.extract_strided_slice %137 {offsets = [0, 384], sizes = [8, 32], strides = [1, 1]} : vector<8x512xf32> to vector<8x32xf32>
    %153 = math.tanh %152 : vector<8x32xf32>
    %154 = arith.mulf %150, %121 : vector<8x32xf32>
    %155 = arith.mulf %149, %153 : vector<8x32xf32>
    %156 = arith.addf %154, %155 : vector<8x32xf32>
    %157 = math.tanh %156 : vector<8x32xf32>
    %158 = arith.mulf %151, %157 : vector<8x32xf32>
    %159 = vector.extract_strided_slice %142 {offsets = [0, 0], sizes = [8, 384], strides = [1, 1]} : vector<8x512xf32> to vector<8x384xf32>
    %160 = arith.negf %159 : vector<8x384xf32>
    %161 = math.exp %160 : vector<8x384xf32>
    %cst_43 = arith.constant 1.000000e+00 : f32
    %162 = vector.broadcast %cst_43 : f32 to vector<8x384xf32>
    %163 = arith.addf %162, %161 : vector<8x384xf32>
    %164 = arith.divf %162, %163 : vector<8x384xf32>
    %165 = vector.extract_strided_slice %164 {offsets = [0, 0], sizes = [8, 32], strides = [1, 1]} : vector<8x384xf32> to vector<8x32xf32>
    %166 = vector.extract_strided_slice %164 {offsets = [0, 128], sizes = [8, 32], strides = [1, 1]} : vector<8x384xf32> to vector<8x32xf32>
    %167 = vector.extract_strided_slice %164 {offsets = [0, 256], sizes = [8, 32], strides = [1, 1]} : vector<8x384xf32> to vector<8x32xf32>
    %168 = vector.extract_strided_slice %142 {offsets = [0, 384], sizes = [8, 32], strides = [1, 1]} : vector<8x512xf32> to vector<8x32xf32>
    %169 = math.tanh %168 : vector<8x32xf32>
    %170 = arith.mulf %166, %123 : vector<8x32xf32>
    %171 = arith.mulf %165, %169 : vector<8x32xf32>
    %172 = arith.addf %170, %171 : vector<8x32xf32>
    %173 = math.tanh %172 : vector<8x32xf32>
    %174 = arith.mulf %167, %173 : vector<8x32xf32>
    %175 = arith.index_cast %129 : i32 to index
    %c0_44 = arith.constant 0 : index
    %176 = vector.load %arg1[%175, %c0_44] : memref<64x32xf32, #tpu.memory_space<vmem>>, vector<8x32xf32>
    %177 = arith.index_cast %132 : i32 to index
    %c0_45 = arith.constant 0 : index
    %178 = vector.load %arg1[%177, %c0_45] : memref<64x32xf32, #tpu.memory_space<vmem>>, vector<8x32xf32>
    %179 = arith.mulf %158, %176 : vector<8x32xf32>
    %180 = arith.mulf %156, %176 : vector<8x32xf32>
    %181 = arith.mulf %174, %178 : vector<8x32xf32>
    %182 = arith.mulf %172, %178 : vector<8x32xf32>
    %183 = arith.index_cast %129 : i32 to index
    %c0_46 = arith.constant 0 : index
    %184 = vector.load %arg18[%183, %c0_46] : memref<64x32xf32, #tpu.memory_space<vmem>>, vector<8x32xf32>
    tpu.vector_store %arg18[%183, %c0_46], %179 {strides = array<i32>} : memref<64x32xf32, #tpu.memory_space<vmem>>, vector<8x32xf32>,
    %185 = arith.index_cast %132 : i32 to index
    %c0_47 = arith.constant 0 : index
    %186 = vector.load %arg19[%185, %c0_47] : memref<64x32xf32, #tpu.memory_space<vmem>>, vector<8x32xf32>
    tpu.vector_store %arg19[%185, %c0_47], %181 {strides = array<i32>} : memref<64x32xf32, #tpu.memory_space<vmem>>, vector<8x32xf32>,
    %c3_i32 = arith.constant 3 : i32
    %c8_i32_48 = arith.constant 8 : i32
    %187 = arith.muli %c3_i32, %c8_i32_48 : i32
    %188 = tpu.assume_multiple %187, 8 : i32
    %c7_i32_49 = arith.constant 7 : i32
    %189 = arith.subi %c7_i32_49, %c3_i32 : i32
    %c8_i32_50 = arith.constant 8 : i32
    %190 = arith.muli %189, %c8_i32_50 : i32
    %191 = tpu.assume_multiple %190, 8 : i32
    %192 = arith.index_cast %188 : i32 to index
    %c0_51 = arith.constant 0 : index
    %193 = vector.load %arg17[%192, %c0_51] : memref<64x1024xf32, #tpu.memory_space<vmem>>, vector<8x512xf32>
    %194 = arith.truncf %179 : vector<8x32xf32> to vector<8x32xbf16>
    %cst_52 = arith.constant dense<0.000000e+00> : vector<8x512xf32>
    %195 = tpu.matmul %194, %7, %cst_52 {dimension_numbers = #tpu.dot_dimension_numbers<[1], [0], [0], [1], [0, 0, 1, 1], [], []>} : vector<8x32xbf16>, vector<32x512xbf16>, vector<8x512xf32> -> vector<8x512xf32>
    %196 = arith.addf %193, %195 : vector<8x512xf32>
    %197 = arith.index_cast %191 : i32 to index
    %c512_53 = arith.constant 512 : index
    %198 = vector.load %arg17[%197, %c512_53] : memref<64x1024xf32, #tpu.memory_space<vmem>>, vector<8x512xf32>
    %199 = arith.truncf %181 : vector<8x32xf32> to vector<8x32xbf16>
    %cst_54 = arith.constant dense<0.000000e+00> : vector<8x512xf32>
    %200 = tpu.matmul %199, %8, %cst_54 {dimension_numbers = #tpu.dot_dimension_numbers<[1], [0], [0], [1], [0, 0, 1, 1], [], []>} : vector<8x32xbf16>, vector<32x512xbf16>, vector<8x512xf32> -> vector<8x512xf32>
    %201 = arith.addf %198, %200 : vector<8x512xf32>
    %202 = vector.extract_strided_slice %196 {offsets = [0, 0], sizes = [8, 384], strides = [1, 1]} : vector<8x512xf32> to vector<8x384xf32>
    %203 = arith.negf %202 : vector<8x384xf32>
    %204 = math.exp %203 : vector<8x384xf32>
    %cst_55 = arith.constant 1.000000e+00 : f32
    %205 = vector.broadcast %cst_55 : f32 to vector<8x384xf32>
    %206 = arith.addf %205, %204 : vector<8x384xf32>
    %207 = arith.divf %205, %206 : vector<8x384xf32>
    %208 = vector.extract_strided_slice %207 {offsets = [0, 0], sizes = [8, 32], strides = [1, 1]} : vector<8x384xf32> to vector<8x32xf32>
    %209 = vector.extract_strided_slice %207 {offsets = [0, 128], sizes = [8, 32], strides = [1, 1]} : vector<8x384xf32> to vector<8x32xf32>
    %210 = vector.extract_strided_slice %207 {offsets = [0, 256], sizes = [8, 32], strides = [1, 1]} : vector<8x384xf32> to vector<8x32xf32>
    %211 = vector.extract_strided_slice %196 {offsets = [0, 384], sizes = [8, 32], strides = [1, 1]} : vector<8x512xf32> to vector<8x32xf32>
    %212 = math.tanh %211 : vector<8x32xf32>
    %213 = arith.mulf %209, %180 : vector<8x32xf32>
    %214 = arith.mulf %208, %212 : vector<8x32xf32>
    %215 = arith.addf %213, %214 : vector<8x32xf32>
    %216 = math.tanh %215 : vector<8x32xf32>
    %217 = arith.mulf %210, %216 : vector<8x32xf32>
    %218 = vector.extract_strided_slice %201 {offsets = [0, 0], sizes = [8, 384], strides = [1, 1]} : vector<8x512xf32> to vector<8x384xf32>
    %219 = arith.negf %218 : vector<8x384xf32>
    %220 = math.exp %219 : vector<8x384xf32>
    %cst_56 = arith.constant 1.000000e+00 : f32
    %221 = vector.broadcast %cst_56 : f32 to vector<8x384xf32>
    %222 = arith.addf %221, %220 : vector<8x384xf32>
    %223 = arith.divf %221, %222 : vector<8x384xf32>
    %224 = vector.extract_strided_slice %223 {offsets = [0, 0], sizes = [8, 32], strides = [1, 1]} : vector<8x384xf32> to vector<8x32xf32>
    %225 = vector.extract_strided_slice %223 {offsets = [0, 128], sizes = [8, 32], strides = [1, 1]} : vector<8x384xf32> to vector<8x32xf32>
    %226 = vector.extract_strided_slice %223 {offsets = [0, 256], sizes = [8, 32], strides = [1, 1]} : vector<8x384xf32> to vector<8x32xf32>
    %227 = vector.extract_strided_slice %201 {offsets = [0, 384], sizes = [8, 32], strides = [1, 1]} : vector<8x512xf32> to vector<8x32xf32>
    %228 = math.tanh %227 : vector<8x32xf32>
    %229 = arith.mulf %225, %182 : vector<8x32xf32>
    %230 = arith.mulf %224, %228 : vector<8x32xf32>
    %231 = arith.addf %229, %230 : vector<8x32xf32>
    %232 = math.tanh %231 : vector<8x32xf32>
    %233 = arith.mulf %226, %232 : vector<8x32xf32>
    %234 = arith.index_cast %188 : i32 to index
    %c0_57 = arith.constant 0 : index
    %235 = vector.load %arg1[%234, %c0_57] : memref<64x32xf32, #tpu.memory_space<vmem>>, vector<8x32xf32>
    %236 = arith.index_cast %191 : i32 to index
    %c0_58 = arith.constant 0 : index
    %237 = vector.load %arg1[%236, %c0_58] : memref<64x32xf32, #tpu.memory_space<vmem>>, vector<8x32xf32>
    %238 = arith.mulf %217, %235 : vector<8x32xf32>
    %239 = arith.mulf %215, %235 : vector<8x32xf32>
    %240 = arith.mulf %233, %237 : vector<8x32xf32>
    %241 = arith.mulf %231, %237 : vector<8x32xf32>
    %242 = arith.index_cast %188 : i32 to index
    %c0_59 = arith.constant 0 : index
    %243 = vector.load %arg18[%242, %c0_59] : memref<64x32xf32, #tpu.memory_space<vmem>>, vector<8x32xf32>
    tpu.vector_store %arg18[%242, %c0_59], %238 {strides = array<i32>} : memref<64x32xf32, #tpu.memory_space<vmem>>, vector<8x32xf32>,
    %244 = arith.index_cast %191 : i32 to index
    %c0_60 = arith.constant 0 : index
    %245 = vector.load %arg19[%244, %c0_60] : memref<64x32xf32, #tpu.memory_space<vmem>>, vector<8x32xf32>
    tpu.vector_store %arg19[%244, %c0_60], %240 {strides = array<i32>} : memref<64x32xf32, #tpu.memory_space<vmem>>, vector<8x32xf32>,
    %c4_i32 = arith.constant 4 : i32
    %c8_i32_61 = arith.constant 8 : i32
    %246 = arith.muli %c4_i32, %c8_i32_61 : i32
    %247 = tpu.assume_multiple %246, 8 : i32
    %c7_i32_62 = arith.constant 7 : i32
    %248 = arith.subi %c7_i32_62, %c4_i32 : i32
    %c8_i32_63 = arith.constant 8 : i32
    %249 = arith.muli %248, %c8_i32_63 : i32
    %250 = tpu.assume_multiple %249, 8 : i32
    %251 = arith.index_cast %247 : i32 to index
    %c0_64 = arith.constant 0 : index
    %252 = vector.load %arg17[%251, %c0_64] : memref<64x1024xf32, #tpu.memory_space<vmem>>, vector<8x512xf32>
    %253 = arith.truncf %238 : vector<8x32xf32> to vector<8x32xbf16>
    %cst_65 = arith.constant dense<0.000000e+00> : vector<8x512xf32>
    %254 = tpu.matmul %253, %7, %cst_65 {dimension_numbers = #tpu.dot_dimension_numbers<[1], [0], [0], [1], [0, 0, 1, 1], [], []>} : vector<8x32xbf16>, vector<32x512xbf16>, vector<8x512xf32> -> vector<8x512xf32>
    %255 = arith.addf %252, %254 : vector<8x512xf32>
    %256 = arith.index_cast %250 : i32 to index
    %c512_66 = arith.constant 512 : index
    %257 = vector.load %arg17[%256, %c512_66] : memref<64x1024xf32, #tpu.memory_space<vmem>>, vector<8x512xf32>
    %258 = arith.truncf %240 : vector<8x32xf32> to vector<8x32xbf16>
    %cst_67 = arith.constant dense<0.000000e+00> : vector<8x512xf32>
    %259 = tpu.matmul %258, %8, %cst_67 {dimension_numbers = #tpu.dot_dimension_numbers<[1], [0], [0], [1], [0, 0, 1, 1], [], []>} : vector<8x32xbf16>, vector<32x512xbf16>, vector<8x512xf32> -> vector<8x512xf32>
    %260 = arith.addf %257, %259 : vector<8x512xf32>
    %261 = vector.extract_strided_slice %255 {offsets = [0, 0], sizes = [8, 384], strides = [1, 1]} : vector<8x512xf32> to vector<8x384xf32>
    %262 = arith.negf %261 : vector<8x384xf32>
    %263 = math.exp %262 : vector<8x384xf32>
    %cst_68 = arith.constant 1.000000e+00 : f32
    %264 = vector.broadcast %cst_68 : f32 to vector<8x384xf32>
    %265 = arith.addf %264, %263 : vector<8x384xf32>
    %266 = arith.divf %264, %265 : vector<8x384xf32>
    %267 = vector.extract_strided_slice %266 {offsets = [0, 0], sizes = [8, 32], strides = [1, 1]} : vector<8x384xf32> to vector<8x32xf32>
    %268 = vector.extract_strided_slice %266 {offsets = [0, 128], sizes = [8, 32], strides = [1, 1]} : vector<8x384xf32> to vector<8x32xf32>
    %269 = vector.extract_strided_slice %266 {offsets = [0, 256], sizes = [8, 32], strides = [1, 1]} : vector<8x384xf32> to vector<8x32xf32>
    %270 = vector.extract_strided_slice %255 {offsets = [0, 384], sizes = [8, 32], strides = [1, 1]} : vector<8x512xf32> to vector<8x32xf32>
    %271 = math.tanh %270 : vector<8x32xf32>
    %272 = arith.mulf %268, %239 : vector<8x32xf32>
    %273 = arith.mulf %267, %271 : vector<8x32xf32>
    %274 = arith.addf %272, %273 : vector<8x32xf32>
    %275 = math.tanh %274 : vector<8x32xf32>
    %276 = arith.mulf %269, %275 : vector<8x32xf32>
    %277 = vector.extract_strided_slice %260 {offsets = [0, 0], sizes = [8, 384], strides = [1, 1]} : vector<8x512xf32> to vector<8x384xf32>
    %278 = arith.negf %277 : vector<8x384xf32>
    %279 = math.exp %278 : vector<8x384xf32>
    %cst_69 = arith.constant 1.000000e+00 : f32
    %280 = vector.broadcast %cst_69 : f32 to vector<8x384xf32>
    %281 = arith.addf %280, %279 : vector<8x384xf32>
    %282 = arith.divf %280, %281 : vector<8x384xf32>
    %283 = vector.extract_strided_slice %282 {offsets = [0, 0], sizes = [8, 32], strides = [1, 1]} : vector<8x384xf32> to vector<8x32xf32>
    %284 = vector.extract_strided_slice %282 {offsets = [0, 128], sizes = [8, 32], strides = [1, 1]} : vector<8x384xf32> to vector<8x32xf32>
    %285 = vector.extract_strided_slice %282 {offsets = [0, 256], sizes = [8, 32], strides = [1, 1]} : vector<8x384xf32> to vector<8x32xf32>
    %286 = vector.extract_strided_slice %260 {offsets = [0, 384], sizes = [8, 32], strides = [1, 1]} : vector<8x512xf32> to vector<8x32xf32>
    %287 = math.tanh %286 : vector<8x32xf32>
    %288 = arith.mulf %284, %241 : vector<8x32xf32>
    %289 = arith.mulf %283, %287 : vector<8x32xf32>
    %290 = arith.addf %288, %289 : vector<8x32xf32>
    %291 = math.tanh %290 : vector<8x32xf32>
    %292 = arith.mulf %285, %291 : vector<8x32xf32>
    %293 = arith.index_cast %247 : i32 to index
    %c0_70 = arith.constant 0 : index
    %294 = vector.load %arg1[%293, %c0_70] : memref<64x32xf32, #tpu.memory_space<vmem>>, vector<8x32xf32>
    %295 = arith.index_cast %250 : i32 to index
    %c0_71 = arith.constant 0 : index
    %296 = vector.load %arg1[%295, %c0_71] : memref<64x32xf32, #tpu.memory_space<vmem>>, vector<8x32xf32>
    %297 = arith.mulf %276, %294 : vector<8x32xf32>
    %298 = arith.mulf %274, %294 : vector<8x32xf32>
    %299 = arith.mulf %292, %296 : vector<8x32xf32>
    %300 = arith.mulf %290, %296 : vector<8x32xf32>
    %301 = arith.index_cast %247 : i32 to index
    %c0_72 = arith.constant 0 : index
    %302 = vector.load %arg18[%301, %c0_72] : memref<64x32xf32, #tpu.memory_space<vmem>>, vector<8x32xf32>
    tpu.vector_store %arg18[%301, %c0_72], %297 {strides = array<i32>} : memref<64x32xf32, #tpu.memory_space<vmem>>, vector<8x32xf32>,
    %303 = arith.index_cast %250 : i32 to index
    %c0_73 = arith.constant 0 : index
    %304 = vector.load %arg19[%303, %c0_73] : memref<64x32xf32, #tpu.memory_space<vmem>>, vector<8x32xf32>
    tpu.vector_store %arg19[%303, %c0_73], %299 {strides = array<i32>} : memref<64x32xf32, #tpu.memory_space<vmem>>, vector<8x32xf32>,
    %c5_i32 = arith.constant 5 : i32
    %c8_i32_74 = arith.constant 8 : i32
    %305 = arith.muli %c5_i32, %c8_i32_74 : i32
    %306 = tpu.assume_multiple %305, 8 : i32
    %c7_i32_75 = arith.constant 7 : i32
    %307 = arith.subi %c7_i32_75, %c5_i32 : i32
    %c8_i32_76 = arith.constant 8 : i32
    %308 = arith.muli %307, %c8_i32_76 : i32
    %309 = tpu.assume_multiple %308, 8 : i32
    %310 = arith.index_cast %306 : i32 to index
    %c0_77 = arith.constant 0 : index
    %311 = vector.load %arg17[%310, %c0_77] : memref<64x1024xf32, #tpu.memory_space<vmem>>, vector<8x512xf32>
    %312 = arith.truncf %297 : vector<8x32xf32> to vector<8x32xbf16>
    %cst_78 = arith.constant dense<0.000000e+00> : vector<8x512xf32>
    %313 = tpu.matmul %312, %7, %cst_78 {dimension_numbers = #tpu.dot_dimension_numbers<[1], [0], [0], [1], [0, 0, 1, 1], [], []>} : vector<8x32xbf16>, vector<32x512xbf16>, vector<8x512xf32> -> vector<8x512xf32>
    %314 = arith.addf %311, %313 : vector<8x512xf32>
    %315 = arith.index_cast %309 : i32 to index
    %c512_79 = arith.constant 512 : index
    %316 = vector.load %arg17[%315, %c512_79] : memref<64x1024xf32, #tpu.memory_space<vmem>>, vector<8x512xf32>
    %317 = arith.truncf %299 : vector<8x32xf32> to vector<8x32xbf16>
    %cst_80 = arith.constant dense<0.000000e+00> : vector<8x512xf32>
    %318 = tpu.matmul %317, %8, %cst_80 {dimension_numbers = #tpu.dot_dimension_numbers<[1], [0], [0], [1], [0, 0, 1, 1], [], []>} : vector<8x32xbf16>, vector<32x512xbf16>, vector<8x512xf32> -> vector<8x512xf32>
    %319 = arith.addf %316, %318 : vector<8x512xf32>
    %320 = vector.extract_strided_slice %314 {offsets = [0, 0], sizes = [8, 384], strides = [1, 1]} : vector<8x512xf32> to vector<8x384xf32>
    %321 = arith.negf %320 : vector<8x384xf32>
    %322 = math.exp %321 : vector<8x384xf32>
    %cst_81 = arith.constant 1.000000e+00 : f32
    %323 = vector.broadcast %cst_81 : f32 to vector<8x384xf32>
    %324 = arith.addf %323, %322 : vector<8x384xf32>
    %325 = arith.divf %323, %324 : vector<8x384xf32>
    %326 = vector.extract_strided_slice %325 {offsets = [0, 0], sizes = [8, 32], strides = [1, 1]} : vector<8x384xf32> to vector<8x32xf32>
    %327 = vector.extract_strided_slice %325 {offsets = [0, 128], sizes = [8, 32], strides = [1, 1]} : vector<8x384xf32> to vector<8x32xf32>
    %328 = vector.extract_strided_slice %325 {offsets = [0, 256], sizes = [8, 32], strides = [1, 1]} : vector<8x384xf32> to vector<8x32xf32>
    %329 = vector.extract_strided_slice %314 {offsets = [0, 384], sizes = [8, 32], strides = [1, 1]} : vector<8x512xf32> to vector<8x32xf32>
    %330 = math.tanh %329 : vector<8x32xf32>
    %331 = arith.mulf %327, %298 : vector<8x32xf32>
    %332 = arith.mulf %326, %330 : vector<8x32xf32>
    %333 = arith.addf %331, %332 : vector<8x32xf32>
    %334 = math.tanh %333 : vector<8x32xf32>
    %335 = arith.mulf %328, %334 : vector<8x32xf32>
    %336 = vector.extract_strided_slice %319 {offsets = [0, 0], sizes = [8, 384], strides = [1, 1]} : vector<8x512xf32> to vector<8x384xf32>
    %337 = arith.negf %336 : vector<8x384xf32>
    %338 = math.exp %337 : vector<8x384xf32>
    %cst_82 = arith.constant 1.000000e+00 : f32
    %339 = vector.broadcast %cst_82 : f32 to vector<8x384xf32>
    %340 = arith.addf %339, %338 : vector<8x384xf32>
    %341 = arith.divf %339, %340 : vector<8x384xf32>
    %342 = vector.extract_strided_slice %341 {offsets = [0, 0], sizes = [8, 32], strides = [1, 1]} : vector<8x384xf32> to vector<8x32xf32>
    %343 = vector.extract_strided_slice %341 {offsets = [0, 128], sizes = [8, 32], strides = [1, 1]} : vector<8x384xf32> to vector<8x32xf32>
    %344 = vector.extract_strided_slice %341 {offsets = [0, 256], sizes = [8, 32], strides = [1, 1]} : vector<8x384xf32> to vector<8x32xf32>
    %345 = vector.extract_strided_slice %319 {offsets = [0, 384], sizes = [8, 32], strides = [1, 1]} : vector<8x512xf32> to vector<8x32xf32>
    %346 = math.tanh %345 : vector<8x32xf32>
    %347 = arith.mulf %343, %300 : vector<8x32xf32>
    %348 = arith.mulf %342, %346 : vector<8x32xf32>
    %349 = arith.addf %347, %348 : vector<8x32xf32>
    %350 = math.tanh %349 : vector<8x32xf32>
    %351 = arith.mulf %344, %350 : vector<8x32xf32>
    %352 = arith.index_cast %306 : i32 to index
    %c0_83 = arith.constant 0 : index
    %353 = vector.load %arg1[%352, %c0_83] : memref<64x32xf32, #tpu.memory_space<vmem>>, vector<8x32xf32>
    %354 = arith.index_cast %309 : i32 to index
    %c0_84 = arith.constant 0 : index
    %355 = vector.load %arg1[%354, %c0_84] : memref<64x32xf32, #tpu.memory_space<vmem>>, vector<8x32xf32>
    %356 = arith.mulf %335, %353 : vector<8x32xf32>
    %357 = arith.mulf %333, %353 : vector<8x32xf32>
    %358 = arith.mulf %351, %355 : vector<8x32xf32>
    %359 = arith.mulf %349, %355 : vector<8x32xf32>
    %360 = arith.index_cast %306 : i32 to index
    %c0_85 = arith.constant 0 : index
    %361 = vector.load %arg18[%360, %c0_85] : memref<64x32xf32, #tpu.memory_space<vmem>>, vector<8x32xf32>
    tpu.vector_store %arg18[%360, %c0_85], %356 {strides = array<i32>} : memref<64x32xf32, #tpu.memory_space<vmem>>, vector<8x32xf32>,
    %362 = arith.index_cast %309 : i32 to index
    %c0_86 = arith.constant 0 : index
    %363 = vector.load %arg19[%362, %c0_86] : memref<64x32xf32, #tpu.memory_space<vmem>>, vector<8x32xf32>
    tpu.vector_store %arg19[%362, %c0_86], %358 {strides = array<i32>} : memref<64x32xf32, #tpu.memory_space<vmem>>, vector<8x32xf32>,
    %c6_i32 = arith.constant 6 : i32
    %c8_i32_87 = arith.constant 8 : i32
    %364 = arith.muli %c6_i32, %c8_i32_87 : i32
    %365 = tpu.assume_multiple %364, 8 : i32
    %c7_i32_88 = arith.constant 7 : i32
    %366 = arith.subi %c7_i32_88, %c6_i32 : i32
    %c8_i32_89 = arith.constant 8 : i32
    %367 = arith.muli %366, %c8_i32_89 : i32
    %368 = tpu.assume_multiple %367, 8 : i32
    %369 = arith.index_cast %365 : i32 to index
    %c0_90 = arith.constant 0 : index
    %370 = vector.load %arg17[%369, %c0_90] : memref<64x1024xf32, #tpu.memory_space<vmem>>, vector<8x512xf32>
    %371 = arith.truncf %356 : vector<8x32xf32> to vector<8x32xbf16>
    %cst_91 = arith.constant dense<0.000000e+00> : vector<8x512xf32>
    %372 = tpu.matmul %371, %7, %cst_91 {dimension_numbers = #tpu.dot_dimension_numbers<[1], [0], [0], [1], [0, 0, 1, 1], [], []>} : vector<8x32xbf16>, vector<32x512xbf16>, vector<8x512xf32> -> vector<8x512xf32>
    %373 = arith.addf %370, %372 : vector<8x512xf32>
    %374 = arith.index_cast %368 : i32 to index
    %c512_92 = arith.constant 512 : index
    %375 = vector.load %arg17[%374, %c512_92] : memref<64x1024xf32, #tpu.memory_space<vmem>>, vector<8x512xf32>
    %376 = arith.truncf %358 : vector<8x32xf32> to vector<8x32xbf16>
    %cst_93 = arith.constant dense<0.000000e+00> : vector<8x512xf32>
    %377 = tpu.matmul %376, %8, %cst_93 {dimension_numbers = #tpu.dot_dimension_numbers<[1], [0], [0], [1], [0, 0, 1, 1], [], []>} : vector<8x32xbf16>, vector<32x512xbf16>, vector<8x512xf32> -> vector<8x512xf32>
    %378 = arith.addf %375, %377 : vector<8x512xf32>
    %379 = vector.extract_strided_slice %373 {offsets = [0, 0], sizes = [8, 384], strides = [1, 1]} : vector<8x512xf32> to vector<8x384xf32>
    %380 = arith.negf %379 : vector<8x384xf32>
    %381 = math.exp %380 : vector<8x384xf32>
    %cst_94 = arith.constant 1.000000e+00 : f32
    %382 = vector.broadcast %cst_94 : f32 to vector<8x384xf32>
    %383 = arith.addf %382, %381 : vector<8x384xf32>
    %384 = arith.divf %382, %383 : vector<8x384xf32>
    %385 = vector.extract_strided_slice %384 {offsets = [0, 0], sizes = [8, 32], strides = [1, 1]} : vector<8x384xf32> to vector<8x32xf32>
    %386 = vector.extract_strided_slice %384 {offsets = [0, 128], sizes = [8, 32], strides = [1, 1]} : vector<8x384xf32> to vector<8x32xf32>
    %387 = vector.extract_strided_slice %384 {offsets = [0, 256], sizes = [8, 32], strides = [1, 1]} : vector<8x384xf32> to vector<8x32xf32>
    %388 = vector.extract_strided_slice %373 {offsets = [0, 384], sizes = [8, 32], strides = [1, 1]} : vector<8x512xf32> to vector<8x32xf32>
    %389 = math.tanh %388 : vector<8x32xf32>
    %390 = arith.mulf %386, %357 : vector<8x32xf32>
    %391 = arith.mulf %385, %389 : vector<8x32xf32>
    %392 = arith.addf %390, %391 : vector<8x32xf32>
    %393 = math.tanh %392 : vector<8x32xf32>
    %394 = arith.mulf %387, %393 : vector<8x32xf32>
    %395 = vector.extract_strided_slice %378 {offsets = [0, 0], sizes = [8, 384], strides = [1, 1]} : vector<8x512xf32> to vector<8x384xf32>
    %396 = arith.negf %395 : vector<8x384xf32>
    %397 = math.exp %396 : vector<8x384xf32>
    %cst_95 = arith.constant 1.000000e+00 : f32
    %398 = vector.broadcast %cst_95 : f32 to vector<8x384xf32>
    %399 = arith.addf %398, %397 : vector<8x384xf32>
    %400 = arith.divf %398, %399 : vector<8x384xf32>
    %401 = vector.extract_strided_slice %400 {offsets = [0, 0], sizes = [8, 32], strides = [1, 1]} : vector<8x384xf32> to vector<8x32xf32>
    %402 = vector.extract_strided_slice %400 {offsets = [0, 128], sizes = [8, 32], strides = [1, 1]} : vector<8x384xf32> to vector<8x32xf32>
    %403 = vector.extract_strided_slice %400 {offsets = [0, 256], sizes = [8, 32], strides = [1, 1]} : vector<8x384xf32> to vector<8x32xf32>
    %404 = vector.extract_strided_slice %378 {offsets = [0, 384], sizes = [8, 32], strides = [1, 1]} : vector<8x512xf32> to vector<8x32xf32>
    %405 = math.tanh %404 : vector<8x32xf32>
    %406 = arith.mulf %402, %359 : vector<8x32xf32>
    %407 = arith.mulf %401, %405 : vector<8x32xf32>
    %408 = arith.addf %406, %407 : vector<8x32xf32>
    %409 = math.tanh %408 : vector<8x32xf32>
    %410 = arith.mulf %403, %409 : vector<8x32xf32>
    %411 = arith.index_cast %365 : i32 to index
    %c0_96 = arith.constant 0 : index
    %412 = vector.load %arg1[%411, %c0_96] : memref<64x32xf32, #tpu.memory_space<vmem>>, vector<8x32xf32>
    %413 = arith.index_cast %368 : i32 to index
    %c0_97 = arith.constant 0 : index
    %414 = vector.load %arg1[%413, %c0_97] : memref<64x32xf32, #tpu.memory_space<vmem>>, vector<8x32xf32>
    %415 = arith.mulf %394, %412 : vector<8x32xf32>
    %416 = arith.mulf %392, %412 : vector<8x32xf32>
    %417 = arith.mulf %410, %414 : vector<8x32xf32>
    %418 = arith.mulf %408, %414 : vector<8x32xf32>
    %419 = arith.index_cast %365 : i32 to index
    %c0_98 = arith.constant 0 : index
    %420 = vector.load %arg18[%419, %c0_98] : memref<64x32xf32, #tpu.memory_space<vmem>>, vector<8x32xf32>
    tpu.vector_store %arg18[%419, %c0_98], %415 {strides = array<i32>} : memref<64x32xf32, #tpu.memory_space<vmem>>, vector<8x32xf32>,
    %421 = arith.index_cast %368 : i32 to index
    %c0_99 = arith.constant 0 : index
    %422 = vector.load %arg19[%421, %c0_99] : memref<64x32xf32, #tpu.memory_space<vmem>>, vector<8x32xf32>
    tpu.vector_store %arg19[%421, %c0_99], %417 {strides = array<i32>} : memref<64x32xf32, #tpu.memory_space<vmem>>, vector<8x32xf32>,
    %c7_i32_100 = arith.constant 7 : i32
    %c8_i32_101 = arith.constant 8 : i32
    %423 = arith.muli %c7_i32_100, %c8_i32_101 : i32
    %424 = tpu.assume_multiple %423, 8 : i32
    %c7_i32_102 = arith.constant 7 : i32
    %425 = arith.subi %c7_i32_102, %c7_i32_100 : i32
    %c8_i32_103 = arith.constant 8 : i32
    %426 = arith.muli %425, %c8_i32_103 : i32
    %427 = tpu.assume_multiple %426, 8 : i32
    %428 = arith.index_cast %424 : i32 to index
    %c0_104 = arith.constant 0 : index
    %429 = vector.load %arg17[%428, %c0_104] : memref<64x1024xf32, #tpu.memory_space<vmem>>, vector<8x512xf32>
    %430 = arith.truncf %415 : vector<8x32xf32> to vector<8x32xbf16>
    %cst_105 = arith.constant dense<0.000000e+00> : vector<8x512xf32>
    %431 = tpu.matmul %430, %7, %cst_105 {dimension_numbers = #tpu.dot_dimension_numbers<[1], [0], [0], [1], [0, 0, 1, 1], [], []>} : vector<8x32xbf16>, vector<32x512xbf16>, vector<8x512xf32> -> vector<8x512xf32>
    %432 = arith.addf %429, %431 : vector<8x512xf32>
    %433 = arith.index_cast %427 : i32 to index
    %c512_106 = arith.constant 512 : index
    %434 = vector.load %arg17[%433, %c512_106] : memref<64x1024xf32, #tpu.memory_space<vmem>>, vector<8x512xf32>
    %435 = arith.truncf %417 : vector<8x32xf32> to vector<8x32xbf16>
    %cst_107 = arith.constant dense<0.000000e+00> : vector<8x512xf32>
    %436 = tpu.matmul %435, %8, %cst_107 {dimension_numbers = #tpu.dot_dimension_numbers<[1], [0], [0], [1], [0, 0, 1, 1], [], []>} : vector<8x32xbf16>, vector<32x512xbf16>, vector<8x512xf32> -> vector<8x512xf32>
    %437 = arith.addf %434, %436 : vector<8x512xf32>
    %438 = vector.extract_strided_slice %432 {offsets = [0, 0], sizes = [8, 384], strides = [1, 1]} : vector<8x512xf32> to vector<8x384xf32>
    %439 = arith.negf %438 : vector<8x384xf32>
    %440 = math.exp %439 : vector<8x384xf32>
    %cst_108 = arith.constant 1.000000e+00 : f32
    %441 = vector.broadcast %cst_108 : f32 to vector<8x384xf32>
    %442 = arith.addf %441, %440 : vector<8x384xf32>
    %443 = arith.divf %441, %442 : vector<8x384xf32>
    %444 = vector.extract_strided_slice %443 {offsets = [0, 0], sizes = [8, 32], strides = [1, 1]} : vector<8x384xf32> to vector<8x32xf32>
    %445 = vector.extract_strided_slice %443 {offsets = [0, 128], sizes = [8, 32], strides = [1, 1]} : vector<8x384xf32> to vector<8x32xf32>
    %446 = vector.extract_strided_slice %443 {offsets = [0, 256], sizes = [8, 32], strides = [1, 1]} : vector<8x384xf32> to vector<8x32xf32>
    %447 = vector.extract_strided_slice %432 {offsets = [0, 384], sizes = [8, 32], strides = [1, 1]} : vector<8x512xf32> to vector<8x32xf32>
    %448 = math.tanh %447 : vector<8x32xf32>
    %449 = arith.mulf %445, %416 : vector<8x32xf32>
    %450 = arith.mulf %444, %448 : vector<8x32xf32>
    %451 = arith.addf %449, %450 : vector<8x32xf32>
    %452 = math.tanh %451 : vector<8x32xf32>
    %453 = arith.mulf %446, %452 : vector<8x32xf32>
    %454 = vector.extract_strided_slice %437 {offsets = [0, 0], sizes = [8, 384], strides = [1, 1]} : vector<8x512xf32> to vector<8x384xf32>
    %455 = arith.negf %454 : vector<8x384xf32>
    %456 = math.exp %455 : vector<8x384xf32>
    %cst_109 = arith.constant 1.000000e+00 : f32
    %457 = vector.broadcast %cst_109 : f32 to vector<8x384xf32>
    %458 = arith.addf %457, %456 : vector<8x384xf32>
    %459 = arith.divf %457, %458 : vector<8x384xf32>
    %460 = vector.extract_strided_slice %459 {offsets = [0, 0], sizes = [8, 32], strides = [1, 1]} : vector<8x384xf32> to vector<8x32xf32>
    %461 = vector.extract_strided_slice %459 {offsets = [0, 128], sizes = [8, 32], strides = [1, 1]} : vector<8x384xf32> to vector<8x32xf32>
    %462 = vector.extract_strided_slice %459 {offsets = [0, 256], sizes = [8, 32], strides = [1, 1]} : vector<8x384xf32> to vector<8x32xf32>
    %463 = vector.extract_strided_slice %437 {offsets = [0, 384], sizes = [8, 32], strides = [1, 1]} : vector<8x512xf32> to vector<8x32xf32>
    %464 = math.tanh %463 : vector<8x32xf32>
    %465 = arith.mulf %461, %418 : vector<8x32xf32>
    %466 = arith.mulf %460, %464 : vector<8x32xf32>
    %467 = arith.addf %465, %466 : vector<8x32xf32>
    %468 = math.tanh %467 : vector<8x32xf32>
    %469 = arith.mulf %462, %468 : vector<8x32xf32>
    %470 = arith.index_cast %424 : i32 to index
    %c0_110 = arith.constant 0 : index
    %471 = vector.load %arg1[%470, %c0_110] : memref<64x32xf32, #tpu.memory_space<vmem>>, vector<8x32xf32>
    %472 = arith.index_cast %427 : i32 to index
    %c0_111 = arith.constant 0 : index
    %473 = vector.load %arg1[%472, %c0_111] : memref<64x32xf32, #tpu.memory_space<vmem>>, vector<8x32xf32>
    %474 = arith.mulf %453, %471 : vector<8x32xf32>
    %475 = arith.mulf %451, %471 : vector<8x32xf32>
    %476 = arith.mulf %469, %473 : vector<8x32xf32>
    %477 = arith.mulf %467, %473 : vector<8x32xf32>
    %478 = arith.index_cast %424 : i32 to index
    %c0_112 = arith.constant 0 : index
    %479 = vector.load %arg18[%478, %c0_112] : memref<64x32xf32, #tpu.memory_space<vmem>>, vector<8x32xf32>
    tpu.vector_store %arg18[%478, %c0_112], %474 {strides = array<i32>} : memref<64x32xf32, #tpu.memory_space<vmem>>, vector<8x32xf32>,
    %480 = arith.index_cast %427 : i32 to index
    %c0_113 = arith.constant 0 : index
    %481 = vector.load %arg19[%480, %c0_113] : memref<64x32xf32, #tpu.memory_space<vmem>>, vector<8x32xf32>
    tpu.vector_store %arg19[%480, %c0_113], %476 {strides = array<i32>} : memref<64x32xf32, #tpu.memory_space<vmem>>, vector<8x32xf32>,
    %c8_i32_114 = arith.constant 8 : i32
    %c0_115 = arith.constant 0 : index
    %c0_116 = arith.constant 0 : index
    %482 = vector.load %arg18[%c0_115, %c0_116] : memref<64x32xf32, #tpu.memory_space<vmem>>, vector<64x32xf32>
    %483 = arith.truncf %482 : vector<64x32xf32> to vector<64x32xbf16>
    %c0_117 = arith.constant 0 : index
    %c0_118 = arith.constant 0 : index
    %484 = vector.load %arg19[%c0_117, %c0_118] : memref<64x32xf32, #tpu.memory_space<vmem>>, vector<64x32xf32>
    %485 = arith.truncf %484 : vector<64x32xf32> to vector<64x32xbf16>
    %c0_119 = arith.constant 0 : index
    %c0_120 = arith.constant 0 : index
    %486 = vector.load %arg6[%c0_119, %c0_120] : memref<32x1024xbf16, #tpu.memory_space<vmem>>, vector<32x1024xbf16>
    %cst_121 = arith.constant dense<0.000000e+00> : vector<64x1024xf32>
    %487 = tpu.matmul %483, %486, %cst_121 {dimension_numbers = #tpu.dot_dimension_numbers<[1], [0], [0], [1], [0, 0, 1, 1], [], []>} : vector<64x32xbf16>, vector<32x1024xbf16>, vector<64x1024xf32> -> vector<64x1024xf32>
    %c0_122 = arith.constant 0 : index
    %c0_123 = arith.constant 0 : index
    %488 = vector.load %arg7[%c0_122, %c0_123] : memref<32x1024xbf16, #tpu.memory_space<vmem>>, vector<32x1024xbf16>
    %cst_124 = arith.constant dense<0.000000e+00> : vector<64x1024xf32>
    %489 = tpu.matmul %485, %488, %cst_124 {dimension_numbers = #tpu.dot_dimension_numbers<[1], [0], [0], [1], [0, 0, 1, 1], [], []>} : vector<64x32xbf16>, vector<32x1024xbf16>, vector<64x1024xf32> -> vector<64x1024xf32>
    %490 = arith.addf %487, %489 : vector<64x1024xf32>
    %c0_125 = arith.constant 0 : index
    %c0_126 = arith.constant 0 : index
    %491 = vector.load %arg10[%c0_125, %c0_126] : memref<1x1024xf32, #tpu.memory_space<vmem>>, vector<1x1024xf32>
    %492 = vector.broadcast %491 : vector<1x1024xf32> to vector<64x1024xf32>
    %493 = arith.addf %490, %492 : vector<64x1024xf32>
    %c0_127 = arith.constant 0 : index
    %c0_128 = arith.constant 0 : index
    %494 = vector.load %arg17[%c0_127, %c0_128] : memref<64x1024xf32, #tpu.memory_space<vmem>>, vector<64x1024xf32>
    tpu.vector_store %arg17[%c0_127, %c0_128], %493 {strides = array<i32>} : memref<64x1024xf32, #tpu.memory_space<vmem>>, vector<64x1024xf32>,
    %c0_129 = arith.constant 0 : index
    %c0_130 = arith.constant 0 : index
    %495 = vector.load %arg8[%c0_129, %c0_130] : memref<32x512xbf16, #tpu.memory_space<vmem>>, vector<32x512xbf16>
    %c0_131 = arith.constant 0 : index
    %c0_132 = arith.constant 0 : index
    %496 = vector.load %arg9[%c0_131, %c0_132] : memref<32x512xbf16, #tpu.memory_space<vmem>>, vector<32x512xbf16>
    %cst_133 = arith.constant 0.000000e+00 : f32
    %497 = vector.broadcast %cst_133 : f32 to vector<8x32xf32>
    %c0_i32_134 = arith.constant 0 : i32
    %c8_i32_135 = arith.constant 8 : i32
    %498 = arith.muli %c0_i32_134, %c8_i32_135 : i32
    %499 = tpu.assume_multiple %498, 8 : i32
    %c7_i32_136 = arith.constant 7 : i32
    %500 = arith.subi %c7_i32_136, %c0_i32_134 : i32
    %c8_i32_137 = arith.constant 8 : i32
    %501 = arith.muli %500, %c8_i32_137 : i32
    %502 = tpu.assume_multiple %501, 8 : i32
    %503 = arith.index_cast %499 : i32 to index
    %c0_138 = arith.constant 0 : index
    %504 = vector.load %arg17[%503, %c0_138] : memref<64x1024xf32, #tpu.memory_space<vmem>>, vector<8x512xf32>
    %505 = arith.truncf %497 : vector<8x32xf32> to vector<8x32xbf16>
    %cst_139 = arith.constant dense<0.000000e+00> : vector<8x512xf32>
    %506 = tpu.matmul %505, %495, %cst_139 {dimension_numbers = #tpu.dot_dimension_numbers<[1], [0], [0], [1], [0, 0, 1, 1], [], []>} : vector<8x32xbf16>, vector<32x512xbf16>, vector<8x512xf32> -> vector<8x512xf32>
    %507 = arith.addf %504, %506 : vector<8x512xf32>
    %508 = arith.index_cast %502 : i32 to index
    %c512_140 = arith.constant 512 : index
    %509 = vector.load %arg17[%508, %c512_140] : memref<64x1024xf32, #tpu.memory_space<vmem>>, vector<8x512xf32>
    %510 = arith.truncf %497 : vector<8x32xf32> to vector<8x32xbf16>
    %cst_141 = arith.constant dense<0.000000e+00> : vector<8x512xf32>
    %511 = tpu.matmul %510, %496, %cst_141 {dimension_numbers = #tpu.dot_dimension_numbers<[1], [0], [0], [1], [0, 0, 1, 1], [], []>} : vector<8x32xbf16>, vector<32x512xbf16>, vector<8x512xf32> -> vector<8x512xf32>
    %512 = arith.addf %509, %511 : vector<8x512xf32>
    %513 = vector.extract_strided_slice %507 {offsets = [0, 0], sizes = [8, 384], strides = [1, 1]} : vector<8x512xf32> to vector<8x384xf32>
    %514 = arith.negf %513 : vector<8x384xf32>
    %515 = math.exp %514 : vector<8x384xf32>
    %cst_142 = arith.constant 1.000000e+00 : f32
    %516 = vector.broadcast %cst_142 : f32 to vector<8x384xf32>
    %517 = arith.addf %516, %515 : vector<8x384xf32>
    %518 = arith.divf %516, %517 : vector<8x384xf32>
    %519 = vector.extract_strided_slice %518 {offsets = [0, 0], sizes = [8, 32], strides = [1, 1]} : vector<8x384xf32> to vector<8x32xf32>
    %520 = vector.extract_strided_slice %518 {offsets = [0, 128], sizes = [8, 32], strides = [1, 1]} : vector<8x384xf32> to vector<8x32xf32>
    %521 = vector.extract_strided_slice %518 {offsets = [0, 256], sizes = [8, 32], strides = [1, 1]} : vector<8x384xf32> to vector<8x32xf32>
    %522 = vector.extract_strided_slice %507 {offsets = [0, 384], sizes = [8, 32], strides = [1, 1]} : vector<8x512xf32> to vector<8x32xf32>
    %523 = math.tanh %522 : vector<8x32xf32>
    %524 = arith.mulf %520, %497 : vector<8x32xf32>
    %525 = arith.mulf %519, %523 : vector<8x32xf32>
    %526 = arith.addf %524, %525 : vector<8x32xf32>
    %527 = math.tanh %526 : vector<8x32xf32>
    %528 = arith.mulf %521, %527 : vector<8x32xf32>
    %529 = vector.extract_strided_slice %512 {offsets = [0, 0], sizes = [8, 384], strides = [1, 1]} : vector<8x512xf32> to vector<8x384xf32>
    %530 = arith.negf %529 : vector<8x384xf32>
    %531 = math.exp %530 : vector<8x384xf32>
    %cst_143 = arith.constant 1.000000e+00 : f32
    %532 = vector.broadcast %cst_143 : f32 to vector<8x384xf32>
    %533 = arith.addf %532, %531 : vector<8x384xf32>
    %534 = arith.divf %532, %533 : vector<8x384xf32>
    %535 = vector.extract_strided_slice %534 {offsets = [0, 0], sizes = [8, 32], strides = [1, 1]} : vector<8x384xf32> to vector<8x32xf32>
    %536 = vector.extract_strided_slice %534 {offsets = [0, 128], sizes = [8, 32], strides = [1, 1]} : vector<8x384xf32> to vector<8x32xf32>
    %537 = vector.extract_strided_slice %534 {offsets = [0, 256], sizes = [8, 32], strides = [1, 1]} : vector<8x384xf32> to vector<8x32xf32>
    %538 = vector.extract_strided_slice %512 {offsets = [0, 384], sizes = [8, 32], strides = [1, 1]} : vector<8x512xf32> to vector<8x32xf32>
    %539 = math.tanh %538 : vector<8x32xf32>
    %540 = arith.mulf %536, %497 : vector<8x32xf32>
    %541 = arith.mulf %535, %539 : vector<8x32xf32>
    %542 = arith.addf %540, %541 : vector<8x32xf32>
    %543 = math.tanh %542 : vector<8x32xf32>
    %544 = arith.mulf %537, %543 : vector<8x32xf32>
    %545 = arith.index_cast %499 : i32 to index
    %c0_144 = arith.constant 0 : index
    %546 = vector.load %arg1[%545, %c0_144] : memref<64x32xf32, #tpu.memory_space<vmem>>, vector<8x32xf32>
    %547 = arith.index_cast %502 : i32 to index
    %c0_145 = arith.constant 0 : index
    %548 = vector.load %arg1[%547, %c0_145] : memref<64x32xf32, #tpu.memory_space<vmem>>, vector<8x32xf32>
    %549 = arith.mulf %528, %546 : vector<8x32xf32>
    %550 = arith.mulf %526, %546 : vector<8x32xf32>
    %551 = arith.mulf %544, %548 : vector<8x32xf32>
    %552 = arith.mulf %542, %548 : vector<8x32xf32>
    %553 = arith.index_cast %499 : i32 to index
    %c0_146 = arith.constant 0 : index
    %554 = vector.load %arg18[%553, %c0_146] : memref<64x32xf32, #tpu.memory_space<vmem>>, vector<8x32xf32>
    tpu.vector_store %arg18[%553, %c0_146], %549 {strides = array<i32>} : memref<64x32xf32, #tpu.memory_space<vmem>>, vector<8x32xf32>,
    %555 = arith.index_cast %502 : i32 to index
    %c0_147 = arith.constant 0 : index
    %556 = vector.load %arg19[%555, %c0_147] : memref<64x32xf32, #tpu.memory_space<vmem>>, vector<8x32xf32>
    tpu.vector_store %arg19[%555, %c0_147], %551 {strides = array<i32>} : memref<64x32xf32, #tpu.memory_space<vmem>>, vector<8x32xf32>,
    %c1_i32_148 = arith.constant 1 : i32
    %c8_i32_149 = arith.constant 8 : i32
    %557 = arith.muli %c1_i32_148, %c8_i32_149 : i32
    %558 = tpu.assume_multiple %557, 8 : i32
    %c7_i32_150 = arith.constant 7 : i32
    %559 = arith.subi %c7_i32_150, %c1_i32_148 : i32
    %c8_i32_151 = arith.constant 8 : i32
    %560 = arith.muli %559, %c8_i32_151 : i32
    %561 = tpu.assume_multiple %560, 8 : i32
    %562 = arith.index_cast %558 : i32 to index
    %c0_152 = arith.constant 0 : index
    %563 = vector.load %arg17[%562, %c0_152] : memref<64x1024xf32, #tpu.memory_space<vmem>>, vector<8x512xf32>
    %564 = arith.truncf %549 : vector<8x32xf32> to vector<8x32xbf16>
    %cst_153 = arith.constant dense<0.000000e+00> : vector<8x512xf32>
    %565 = tpu.matmul %564, %495, %cst_153 {dimension_numbers = #tpu.dot_dimension_numbers<[1], [0], [0], [1], [0, 0, 1, 1], [], []>} : vector<8x32xbf16>, vector<32x512xbf16>, vector<8x512xf32> -> vector<8x512xf32>
    %566 = arith.addf %563, %565 : vector<8x512xf32>
    %567 = arith.index_cast %561 : i32 to index
    %c512_154 = arith.constant 512 : index
    %568 = vector.load %arg17[%567, %c512_154] : memref<64x1024xf32, #tpu.memory_space<vmem>>, vector<8x512xf32>
    %569 = arith.truncf %551 : vector<8x32xf32> to vector<8x32xbf16>
    %cst_155 = arith.constant dense<0.000000e+00> : vector<8x512xf32>
    %570 = tpu.matmul %569, %496, %cst_155 {dimension_numbers = #tpu.dot_dimension_numbers<[1], [0], [0], [1], [0, 0, 1, 1], [], []>} : vector<8x32xbf16>, vector<32x512xbf16>, vector<8x512xf32> -> vector<8x512xf32>
    %571 = arith.addf %568, %570 : vector<8x512xf32>
    %572 = vector.extract_strided_slice %566 {offsets = [0, 0], sizes = [8, 384], strides = [1, 1]} : vector<8x512xf32> to vector<8x384xf32>
    %573 = arith.negf %572 : vector<8x384xf32>
    %574 = math.exp %573 : vector<8x384xf32>
    %cst_156 = arith.constant 1.000000e+00 : f32
    %575 = vector.broadcast %cst_156 : f32 to vector<8x384xf32>
    %576 = arith.addf %575, %574 : vector<8x384xf32>
    %577 = arith.divf %575, %576 : vector<8x384xf32>
    %578 = vector.extract_strided_slice %577 {offsets = [0, 0], sizes = [8, 32], strides = [1, 1]} : vector<8x384xf32> to vector<8x32xf32>
    %579 = vector.extract_strided_slice %577 {offsets = [0, 128], sizes = [8, 32], strides = [1, 1]} : vector<8x384xf32> to vector<8x32xf32>
    %580 = vector.extract_strided_slice %577 {offsets = [0, 256], sizes = [8, 32], strides = [1, 1]} : vector<8x384xf32> to vector<8x32xf32>
    %581 = vector.extract_strided_slice %566 {offsets = [0, 384], sizes = [8, 32], strides = [1, 1]} : vector<8x512xf32> to vector<8x32xf32>
    %582 = math.tanh %581 : vector<8x32xf32>
    %583 = arith.mulf %579, %550 : vector<8x32xf32>
    %584 = arith.mulf %578, %582 : vector<8x32xf32>
    %585 = arith.addf %583, %584 : vector<8x32xf32>
    %586 = math.tanh %585 : vector<8x32xf32>
    %587 = arith.mulf %580, %586 : vector<8x32xf32>
    %588 = vector.extract_strided_slice %571 {offsets = [0, 0], sizes = [8, 384], strides = [1, 1]} : vector<8x512xf32> to vector<8x384xf32>
    %589 = arith.negf %588 : vector<8x384xf32>
    %590 = math.exp %589 : vector<8x384xf32>
    %cst_157 = arith.constant 1.000000e+00 : f32
    %591 = vector.broadcast %cst_157 : f32 to vector<8x384xf32>
    %592 = arith.addf %591, %590 : vector<8x384xf32>
    %593 = arith.divf %591, %592 : vector<8x384xf32>
    %594 = vector.extract_strided_slice %593 {offsets = [0, 0], sizes = [8, 32], strides = [1, 1]} : vector<8x384xf32> to vector<8x32xf32>
    %595 = vector.extract_strided_slice %593 {offsets = [0, 128], sizes = [8, 32], strides = [1, 1]} : vector<8x384xf32> to vector<8x32xf32>
    %596 = vector.extract_strided_slice %593 {offsets = [0, 256], sizes = [8, 32], strides = [1, 1]} : vector<8x384xf32> to vector<8x32xf32>
    %597 = vector.extract_strided_slice %571 {offsets = [0, 384], sizes = [8, 32], strides = [1, 1]} : vector<8x512xf32> to vector<8x32xf32>
    %598 = math.tanh %597 : vector<8x32xf32>
    %599 = arith.mulf %595, %552 : vector<8x32xf32>
    %600 = arith.mulf %594, %598 : vector<8x32xf32>
    %601 = arith.addf %599, %600 : vector<8x32xf32>
    %602 = math.tanh %601 : vector<8x32xf32>
    %603 = arith.mulf %596, %602 : vector<8x32xf32>
    %604 = arith.index_cast %558 : i32 to index
    %c0_158 = arith.constant 0 : index
    %605 = vector.load %arg1[%604, %c0_158] : memref<64x32xf32, #tpu.memory_space<vmem>>, vector<8x32xf32>
    %606 = arith.index_cast %561 : i32 to index
    %c0_159 = arith.constant 0 : index
    %607 = vector.load %arg1[%606, %c0_159] : memref<64x32xf32, #tpu.memory_space<vmem>>, vector<8x32xf32>
    %608 = arith.mulf %587, %605 : vector<8x32xf32>
    %609 = arith.mulf %585, %605 : vector<8x32xf32>
    %610 = arith.mulf %603, %607 : vector<8x32xf32>
    %611 = arith.mulf %601, %607 : vector<8x32xf32>
    %612 = arith.index_cast %558 : i32 to index
    %c0_160 = arith.constant 0 : index
    %613 = vector.load %arg18[%612, %c0_160] : memref<64x32xf32, #tpu.memory_space<vmem>>, vector<8x32xf32>
    tpu.vector_store %arg18[%612, %c0_160], %608 {strides = array<i32>} : memref<64x32xf32, #tpu.memory_space<vmem>>, vector<8x32xf32>,
    %614 = arith.index_cast %561 : i32 to index
    %c0_161 = arith.constant 0 : index
    %615 = vector.load %arg19[%614, %c0_161] : memref<64x32xf32, #tpu.memory_space<vmem>>, vector<8x32xf32>
    tpu.vector_store %arg19[%614, %c0_161], %610 {strides = array<i32>} : memref<64x32xf32, #tpu.memory_space<vmem>>, vector<8x32xf32>,
    %c2_i32_162 = arith.constant 2 : i32
    %c8_i32_163 = arith.constant 8 : i32
    %616 = arith.muli %c2_i32_162, %c8_i32_163 : i32
    %617 = tpu.assume_multiple %616, 8 : i32
    %c7_i32_164 = arith.constant 7 : i32
    %618 = arith.subi %c7_i32_164, %c2_i32_162 : i32
    %c8_i32_165 = arith.constant 8 : i32
    %619 = arith.muli %618, %c8_i32_165 : i32
    %620 = tpu.assume_multiple %619, 8 : i32
    %621 = arith.index_cast %617 : i32 to index
    %c0_166 = arith.constant 0 : index
    %622 = vector.load %arg17[%621, %c0_166] : memref<64x1024xf32, #tpu.memory_space<vmem>>, vector<8x512xf32>
    %623 = arith.truncf %608 : vector<8x32xf32> to vector<8x32xbf16>
    %cst_167 = arith.constant dense<0.000000e+00> : vector<8x512xf32>
    %624 = tpu.matmul %623, %495, %cst_167 {dimension_numbers = #tpu.dot_dimension_numbers<[1], [0], [0], [1], [0, 0, 1, 1], [], []>} : vector<8x32xbf16>, vector<32x512xbf16>, vector<8x512xf32> -> vector<8x512xf32>
    %625 = arith.addf %622, %624 : vector<8x512xf32>
    %626 = arith.index_cast %620 : i32 to index
    %c512_168 = arith.constant 512 : index
    %627 = vector.load %arg17[%626, %c512_168] : memref<64x1024xf32, #tpu.memory_space<vmem>>, vector<8x512xf32>
    %628 = arith.truncf %610 : vector<8x32xf32> to vector<8x32xbf16>
    %cst_169 = arith.constant dense<0.000000e+00> : vector<8x512xf32>
    %629 = tpu.matmul %628, %496, %cst_169 {dimension_numbers = #tpu.dot_dimension_numbers<[1], [0], [0], [1], [0, 0, 1, 1], [], []>} : vector<8x32xbf16>, vector<32x512xbf16>, vector<8x512xf32> -> vector<8x512xf32>
    %630 = arith.addf %627, %629 : vector<8x512xf32>
    %631 = vector.extract_strided_slice %625 {offsets = [0, 0], sizes = [8, 384], strides = [1, 1]} : vector<8x512xf32> to vector<8x384xf32>
    %632 = arith.negf %631 : vector<8x384xf32>
    %633 = math.exp %632 : vector<8x384xf32>
    %cst_170 = arith.constant 1.000000e+00 : f32
    %634 = vector.broadcast %cst_170 : f32 to vector<8x384xf32>
    %635 = arith.addf %634, %633 : vector<8x384xf32>
    %636 = arith.divf %634, %635 : vector<8x384xf32>
    %637 = vector.extract_strided_slice %636 {offsets = [0, 0], sizes = [8, 32], strides = [1, 1]} : vector<8x384xf32> to vector<8x32xf32>
    %638 = vector.extract_strided_slice %636 {offsets = [0, 128], sizes = [8, 32], strides = [1, 1]} : vector<8x384xf32> to vector<8x32xf32>
    %639 = vector.extract_strided_slice %636 {offsets = [0, 256], sizes = [8, 32], strides = [1, 1]} : vector<8x384xf32> to vector<8x32xf32>
    %640 = vector.extract_strided_slice %625 {offsets = [0, 384], sizes = [8, 32], strides = [1, 1]} : vector<8x512xf32> to vector<8x32xf32>
    %641 = math.tanh %640 : vector<8x32xf32>
    %642 = arith.mulf %638, %609 : vector<8x32xf32>
    %643 = arith.mulf %637, %641 : vector<8x32xf32>
    %644 = arith.addf %642, %643 : vector<8x32xf32>
    %645 = math.tanh %644 : vector<8x32xf32>
    %646 = arith.mulf %639, %645 : vector<8x32xf32>
    %647 = vector.extract_strided_slice %630 {offsets = [0, 0], sizes = [8, 384], strides = [1, 1]} : vector<8x512xf32> to vector<8x384xf32>
    %648 = arith.negf %647 : vector<8x384xf32>
    %649 = math.exp %648 : vector<8x384xf32>
    %cst_171 = arith.constant 1.000000e+00 : f32
    %650 = vector.broadcast %cst_171 : f32 to vector<8x384xf32>
    %651 = arith.addf %650, %649 : vector<8x384xf32>
    %652 = arith.divf %650, %651 : vector<8x384xf32>
    %653 = vector.extract_strided_slice %652 {offsets = [0, 0], sizes = [8, 32], strides = [1, 1]} : vector<8x384xf32> to vector<8x32xf32>
    %654 = vector.extract_strided_slice %652 {offsets = [0, 128], sizes = [8, 32], strides = [1, 1]} : vector<8x384xf32> to vector<8x32xf32>
    %655 = vector.extract_strided_slice %652 {offsets = [0, 256], sizes = [8, 32], strides = [1, 1]} : vector<8x384xf32> to vector<8x32xf32>
    %656 = vector.extract_strided_slice %630 {offsets = [0, 384], sizes = [8, 32], strides = [1, 1]} : vector<8x512xf32> to vector<8x32xf32>
    %657 = math.tanh %656 : vector<8x32xf32>
    %658 = arith.mulf %654, %611 : vector<8x32xf32>
    %659 = arith.mulf %653, %657 : vector<8x32xf32>
    %660 = arith.addf %658, %659 : vector<8x32xf32>
    %661 = math.tanh %660 : vector<8x32xf32>
    %662 = arith.mulf %655, %661 : vector<8x32xf32>
    %663 = arith.index_cast %617 : i32 to index
    %c0_172 = arith.constant 0 : index
    %664 = vector.load %arg1[%663, %c0_172] : memref<64x32xf32, #tpu.memory_space<vmem>>, vector<8x32xf32>
    %665 = arith.index_cast %620 : i32 to index
    %c0_173 = arith.constant 0 : index
    %666 = vector.load %arg1[%665, %c0_173] : memref<64x32xf32, #tpu.memory_space<vmem>>, vector<8x32xf32>
    %667 = arith.mulf %646, %664 : vector<8x32xf32>
    %668 = arith.mulf %644, %664 : vector<8x32xf32>
    %669 = arith.mulf %662, %666 : vector<8x32xf32>
    %670 = arith.mulf %660, %666 : vector<8x32xf32>
    %671 = arith.index_cast %617 : i32 to index
    %c0_174 = arith.constant 0 : index
    %672 = vector.load %arg18[%671, %c0_174] : memref<64x32xf32, #tpu.memory_space<vmem>>, vector<8x32xf32>
    tpu.vector_store %arg18[%671, %c0_174], %667 {strides = array<i32>} : memref<64x32xf32, #tpu.memory_space<vmem>>, vector<8x32xf32>,
    %673 = arith.index_cast %620 : i32 to index
    %c0_175 = arith.constant 0 : index
    %674 = vector.load %arg19[%673, %c0_175] : memref<64x32xf32, #tpu.memory_space<vmem>>, vector<8x32xf32>
    tpu.vector_store %arg19[%673, %c0_175], %669 {strides = array<i32>} : memref<64x32xf32, #tpu.memory_space<vmem>>, vector<8x32xf32>,
    %c3_i32_176 = arith.constant 3 : i32
    %c8_i32_177 = arith.constant 8 : i32
    %675 = arith.muli %c3_i32_176, %c8_i32_177 : i32
    %676 = tpu.assume_multiple %675, 8 : i32
    %c7_i32_178 = arith.constant 7 : i32
    %677 = arith.subi %c7_i32_178, %c3_i32_176 : i32
    %c8_i32_179 = arith.constant 8 : i32
    %678 = arith.muli %677, %c8_i32_179 : i32
    %679 = tpu.assume_multiple %678, 8 : i32
    %680 = arith.index_cast %676 : i32 to index
    %c0_180 = arith.constant 0 : index
    %681 = vector.load %arg17[%680, %c0_180] : memref<64x1024xf32, #tpu.memory_space<vmem>>, vector<8x512xf32>
    %682 = arith.truncf %667 : vector<8x32xf32> to vector<8x32xbf16>
    %cst_181 = arith.constant dense<0.000000e+00> : vector<8x512xf32>
    %683 = tpu.matmul %682, %495, %cst_181 {dimension_numbers = #tpu.dot_dimension_numbers<[1], [0], [0], [1], [0, 0, 1, 1], [], []>} : vector<8x32xbf16>, vector<32x512xbf16>, vector<8x512xf32> -> vector<8x512xf32>
    %684 = arith.addf %681, %683 : vector<8x512xf32>
    %685 = arith.index_cast %679 : i32 to index
    %c512_182 = arith.constant 512 : index
    %686 = vector.load %arg17[%685, %c512_182] : memref<64x1024xf32, #tpu.memory_space<vmem>>, vector<8x512xf32>
    %687 = arith.truncf %669 : vector<8x32xf32> to vector<8x32xbf16>
    %cst_183 = arith.constant dense<0.000000e+00> : vector<8x512xf32>
    %688 = tpu.matmul %687, %496, %cst_183 {dimension_numbers = #tpu.dot_dimension_numbers<[1], [0], [0], [1], [0, 0, 1, 1], [], []>} : vector<8x32xbf16>, vector<32x512xbf16>, vector<8x512xf32> -> vector<8x512xf32>
    %689 = arith.addf %686, %688 : vector<8x512xf32>
    %690 = vector.extract_strided_slice %684 {offsets = [0, 0], sizes = [8, 384], strides = [1, 1]} : vector<8x512xf32> to vector<8x384xf32>
    %691 = arith.negf %690 : vector<8x384xf32>
    %692 = math.exp %691 : vector<8x384xf32>
    %cst_184 = arith.constant 1.000000e+00 : f32
    %693 = vector.broadcast %cst_184 : f32 to vector<8x384xf32>
    %694 = arith.addf %693, %692 : vector<8x384xf32>
    %695 = arith.divf %693, %694 : vector<8x384xf32>
    %696 = vector.extract_strided_slice %695 {offsets = [0, 0], sizes = [8, 32], strides = [1, 1]} : vector<8x384xf32> to vector<8x32xf32>
    %697 = vector.extract_strided_slice %695 {offsets = [0, 128], sizes = [8, 32], strides = [1, 1]} : vector<8x384xf32> to vector<8x32xf32>
    %698 = vector.extract_strided_slice %695 {offsets = [0, 256], sizes = [8, 32], strides = [1, 1]} : vector<8x384xf32> to vector<8x32xf32>
    %699 = vector.extract_strided_slice %684 {offsets = [0, 384], sizes = [8, 32], strides = [1, 1]} : vector<8x512xf32> to vector<8x32xf32>
    %700 = math.tanh %699 : vector<8x32xf32>
    %701 = arith.mulf %697, %668 : vector<8x32xf32>
    %702 = arith.mulf %696, %700 : vector<8x32xf32>
    %703 = arith.addf %701, %702 : vector<8x32xf32>
    %704 = math.tanh %703 : vector<8x32xf32>
    %705 = arith.mulf %698, %704 : vector<8x32xf32>
    %706 = vector.extract_strided_slice %689 {offsets = [0, 0], sizes = [8, 384], strides = [1, 1]} : vector<8x512xf32> to vector<8x384xf32>
    %707 = arith.negf %706 : vector<8x384xf32>
    %708 = math.exp %707 : vector<8x384xf32>
    %cst_185 = arith.constant 1.000000e+00 : f32
    %709 = vector.broadcast %cst_185 : f32 to vector<8x384xf32>
    %710 = arith.addf %709, %708 : vector<8x384xf32>
    %711 = arith.divf %709, %710 : vector<8x384xf32>
    %712 = vector.extract_strided_slice %711 {offsets = [0, 0], sizes = [8, 32], strides = [1, 1]} : vector<8x384xf32> to vector<8x32xf32>
    %713 = vector.extract_strided_slice %711 {offsets = [0, 128], sizes = [8, 32], strides = [1, 1]} : vector<8x384xf32> to vector<8x32xf32>
    %714 = vector.extract_strided_slice %711 {offsets = [0, 256], sizes = [8, 32], strides = [1, 1]} : vector<8x384xf32> to vector<8x32xf32>
    %715 = vector.extract_strided_slice %689 {offsets = [0, 384], sizes = [8, 32], strides = [1, 1]} : vector<8x512xf32> to vector<8x32xf32>
    %716 = math.tanh %715 : vector<8x32xf32>
    %717 = arith.mulf %713, %670 : vector<8x32xf32>
    %718 = arith.mulf %712, %716 : vector<8x32xf32>
    %719 = arith.addf %717, %718 : vector<8x32xf32>
    %720 = math.tanh %719 : vector<8x32xf32>
    %721 = arith.mulf %714, %720 : vector<8x32xf32>
    %722 = arith.index_cast %676 : i32 to index
    %c0_186 = arith.constant 0 : index
    %723 = vector.load %arg1[%722, %c0_186] : memref<64x32xf32, #tpu.memory_space<vmem>>, vector<8x32xf32>
    %724 = arith.index_cast %679 : i32 to index
    %c0_187 = arith.constant 0 : index
    %725 = vector.load %arg1[%724, %c0_187] : memref<64x32xf32, #tpu.memory_space<vmem>>, vector<8x32xf32>
    %726 = arith.mulf %705, %723 : vector<8x32xf32>
    %727 = arith.mulf %703, %723 : vector<8x32xf32>
    %728 = arith.mulf %721, %725 : vector<8x32xf32>
    %729 = arith.mulf %719, %725 : vector<8x32xf32>
    %730 = arith.index_cast %676 : i32 to index
    %c0_188 = arith.constant 0 : index
    %731 = vector.load %arg18[%730, %c0_188] : memref<64x32xf32, #tpu.memory_space<vmem>>, vector<8x32xf32>
    tpu.vector_store %arg18[%730, %c0_188], %726 {strides = array<i32>} : memref<64x32xf32, #tpu.memory_space<vmem>>, vector<8x32xf32>,
    %732 = arith.index_cast %679 : i32 to index
    %c0_189 = arith.constant 0 : index
    %733 = vector.load %arg19[%732, %c0_189] : memref<64x32xf32, #tpu.memory_space<vmem>>, vector<8x32xf32>
    tpu.vector_store %arg19[%732, %c0_189], %728 {strides = array<i32>} : memref<64x32xf32, #tpu.memory_space<vmem>>, vector<8x32xf32>,
    %c4_i32_190 = arith.constant 4 : i32
    %c8_i32_191 = arith.constant 8 : i32
    %734 = arith.muli %c4_i32_190, %c8_i32_191 : i32
    %735 = tpu.assume_multiple %734, 8 : i32
    %c7_i32_192 = arith.constant 7 : i32
    %736 = arith.subi %c7_i32_192, %c4_i32_190 : i32
    %c8_i32_193 = arith.constant 8 : i32
    %737 = arith.muli %736, %c8_i32_193 : i32
    %738 = tpu.assume_multiple %737, 8 : i32
    %739 = arith.index_cast %735 : i32 to index
    %c0_194 = arith.constant 0 : index
    %740 = vector.load %arg17[%739, %c0_194] : memref<64x1024xf32, #tpu.memory_space<vmem>>, vector<8x512xf32>
    %741 = arith.truncf %726 : vector<8x32xf32> to vector<8x32xbf16>
    %cst_195 = arith.constant dense<0.000000e+00> : vector<8x512xf32>
    %742 = tpu.matmul %741, %495, %cst_195 {dimension_numbers = #tpu.dot_dimension_numbers<[1], [0], [0], [1], [0, 0, 1, 1], [], []>} : vector<8x32xbf16>, vector<32x512xbf16>, vector<8x512xf32> -> vector<8x512xf32>
    %743 = arith.addf %740, %742 : vector<8x512xf32>
    %744 = arith.index_cast %738 : i32 to index
    %c512_196 = arith.constant 512 : index
    %745 = vector.load %arg17[%744, %c512_196] : memref<64x1024xf32, #tpu.memory_space<vmem>>, vector<8x512xf32>
    %746 = arith.truncf %728 : vector<8x32xf32> to vector<8x32xbf16>
    %cst_197 = arith.constant dense<0.000000e+00> : vector<8x512xf32>
    %747 = tpu.matmul %746, %496, %cst_197 {dimension_numbers = #tpu.dot_dimension_numbers<[1], [0], [0], [1], [0, 0, 1, 1], [], []>} : vector<8x32xbf16>, vector<32x512xbf16>, vector<8x512xf32> -> vector<8x512xf32>
    %748 = arith.addf %745, %747 : vector<8x512xf32>
    %749 = vector.extract_strided_slice %743 {offsets = [0, 0], sizes = [8, 384], strides = [1, 1]} : vector<8x512xf32> to vector<8x384xf32>
    %750 = arith.negf %749 : vector<8x384xf32>
    %751 = math.exp %750 : vector<8x384xf32>
    %cst_198 = arith.constant 1.000000e+00 : f32
    %752 = vector.broadcast %cst_198 : f32 to vector<8x384xf32>
    %753 = arith.addf %752, %751 : vector<8x384xf32>
    %754 = arith.divf %752, %753 : vector<8x384xf32>
    %755 = vector.extract_strided_slice %754 {offsets = [0, 0], sizes = [8, 32], strides = [1, 1]} : vector<8x384xf32> to vector<8x32xf32>
    %756 = vector.extract_strided_slice %754 {offsets = [0, 128], sizes = [8, 32], strides = [1, 1]} : vector<8x384xf32> to vector<8x32xf32>
    %757 = vector.extract_strided_slice %754 {offsets = [0, 256], sizes = [8, 32], strides = [1, 1]} : vector<8x384xf32> to vector<8x32xf32>
    %758 = vector.extract_strided_slice %743 {offsets = [0, 384], sizes = [8, 32], strides = [1, 1]} : vector<8x512xf32> to vector<8x32xf32>
    %759 = math.tanh %758 : vector<8x32xf32>
    %760 = arith.mulf %756, %727 : vector<8x32xf32>
    %761 = arith.mulf %755, %759 : vector<8x32xf32>
    %762 = arith.addf %760, %761 : vector<8x32xf32>
    %763 = math.tanh %762 : vector<8x32xf32>
    %764 = arith.mulf %757, %763 : vector<8x32xf32>
    %765 = vector.extract_strided_slice %748 {offsets = [0, 0], sizes = [8, 384], strides = [1, 1]} : vector<8x512xf32> to vector<8x384xf32>
    %766 = arith.negf %765 : vector<8x384xf32>
    %767 = math.exp %766 : vector<8x384xf32>
    %cst_199 = arith.constant 1.000000e+00 : f32
    %768 = vector.broadcast %cst_199 : f32 to vector<8x384xf32>
    %769 = arith.addf %768, %767 : vector<8x384xf32>
    %770 = arith.divf %768, %769 : vector<8x384xf32>
    %771 = vector.extract_strided_slice %770 {offsets = [0, 0], sizes = [8, 32], strides = [1, 1]} : vector<8x384xf32> to vector<8x32xf32>
    %772 = vector.extract_strided_slice %770 {offsets = [0, 128], sizes = [8, 32], strides = [1, 1]} : vector<8x384xf32> to vector<8x32xf32>
    %773 = vector.extract_strided_slice %770 {offsets = [0, 256], sizes = [8, 32], strides = [1, 1]} : vector<8x384xf32> to vector<8x32xf32>
    %774 = vector.extract_strided_slice %748 {offsets = [0, 384], sizes = [8, 32], strides = [1, 1]} : vector<8x512xf32> to vector<8x32xf32>
    %775 = math.tanh %774 : vector<8x32xf32>
    %776 = arith.mulf %772, %729 : vector<8x32xf32>
    %777 = arith.mulf %771, %775 : vector<8x32xf32>
    %778 = arith.addf %776, %777 : vector<8x32xf32>
    %779 = math.tanh %778 : vector<8x32xf32>
    %780 = arith.mulf %773, %779 : vector<8x32xf32>
    %781 = arith.index_cast %735 : i32 to index
    %c0_200 = arith.constant 0 : index
    %782 = vector.load %arg1[%781, %c0_200] : memref<64x32xf32, #tpu.memory_space<vmem>>, vector<8x32xf32>
    %783 = arith.index_cast %738 : i32 to index
    %c0_201 = arith.constant 0 : index
    %784 = vector.load %arg1[%783, %c0_201] : memref<64x32xf32, #tpu.memory_space<vmem>>, vector<8x32xf32>
    %785 = arith.mulf %764, %782 : vector<8x32xf32>
    %786 = arith.mulf %762, %782 : vector<8x32xf32>
    %787 = arith.mulf %780, %784 : vector<8x32xf32>
    %788 = arith.mulf %778, %784 : vector<8x32xf32>
    %789 = arith.index_cast %735 : i32 to index
    %c0_202 = arith.constant 0 : index
    %790 = vector.load %arg18[%789, %c0_202] : memref<64x32xf32, #tpu.memory_space<vmem>>, vector<8x32xf32>
    tpu.vector_store %arg18[%789, %c0_202], %785 {strides = array<i32>} : memref<64x32xf32, #tpu.memory_space<vmem>>, vector<8x32xf32>,
    %791 = arith.index_cast %738 : i32 to index
    %c0_203 = arith.constant 0 : index
    %792 = vector.load %arg19[%791, %c0_203] : memref<64x32xf32, #tpu.memory_space<vmem>>, vector<8x32xf32>
    tpu.vector_store %arg19[%791, %c0_203], %787 {strides = array<i32>} : memref<64x32xf32, #tpu.memory_space<vmem>>, vector<8x32xf32>,
    %c5_i32_204 = arith.constant 5 : i32
    %c8_i32_205 = arith.constant 8 : i32
    %793 = arith.muli %c5_i32_204, %c8_i32_205 : i32
    %794 = tpu.assume_multiple %793, 8 : i32
    %c7_i32_206 = arith.constant 7 : i32
    %795 = arith.subi %c7_i32_206, %c5_i32_204 : i32
    %c8_i32_207 = arith.constant 8 : i32
    %796 = arith.muli %795, %c8_i32_207 : i32
    %797 = tpu.assume_multiple %796, 8 : i32
    %798 = arith.index_cast %794 : i32 to index
    %c0_208 = arith.constant 0 : index
    %799 = vector.load %arg17[%798, %c0_208] : memref<64x1024xf32, #tpu.memory_space<vmem>>, vector<8x512xf32>
    %800 = arith.truncf %785 : vector<8x32xf32> to vector<8x32xbf16>
    %cst_209 = arith.constant dense<0.000000e+00> : vector<8x512xf32>
    %801 = tpu.matmul %800, %495, %cst_209 {dimension_numbers = #tpu.dot_dimension_numbers<[1], [0], [0], [1], [0, 0, 1, 1], [], []>} : vector<8x32xbf16>, vector<32x512xbf16>, vector<8x512xf32> -> vector<8x512xf32>
    %802 = arith.addf %799, %801 : vector<8x512xf32>
    %803 = arith.index_cast %797 : i32 to index
    %c512_210 = arith.constant 512 : index
    %804 = vector.load %arg17[%803, %c512_210] : memref<64x1024xf32, #tpu.memory_space<vmem>>, vector<8x512xf32>
    %805 = arith.truncf %787 : vector<8x32xf32> to vector<8x32xbf16>
    %cst_211 = arith.constant dense<0.000000e+00> : vector<8x512xf32>
    %806 = tpu.matmul %805, %496, %cst_211 {dimension_numbers = #tpu.dot_dimension_numbers<[1], [0], [0], [1], [0, 0, 1, 1], [], []>} : vector<8x32xbf16>, vector<32x512xbf16>, vector<8x512xf32> -> vector<8x512xf32>
    %807 = arith.addf %804, %806 : vector<8x512xf32>
    %808 = vector.extract_strided_slice %802 {offsets = [0, 0], sizes = [8, 384], strides = [1, 1]} : vector<8x512xf32> to vector<8x384xf32>
    %809 = arith.negf %808 : vector<8x384xf32>
    %810 = math.exp %809 : vector<8x384xf32>
    %cst_212 = arith.constant 1.000000e+00 : f32
    %811 = vector.broadcast %cst_212 : f32 to vector<8x384xf32>
    %812 = arith.addf %811, %810 : vector<8x384xf32>
    %813 = arith.divf %811, %812 : vector<8x384xf32>
    %814 = vector.extract_strided_slice %813 {offsets = [0, 0], sizes = [8, 32], strides = [1, 1]} : vector<8x384xf32> to vector<8x32xf32>
    %815 = vector.extract_strided_slice %813 {offsets = [0, 128], sizes = [8, 32], strides = [1, 1]} : vector<8x384xf32> to vector<8x32xf32>
    %816 = vector.extract_strided_slice %813 {offsets = [0, 256], sizes = [8, 32], strides = [1, 1]} : vector<8x384xf32> to vector<8x32xf32>
    %817 = vector.extract_strided_slice %802 {offsets = [0, 384], sizes = [8, 32], strides = [1, 1]} : vector<8x512xf32> to vector<8x32xf32>
    %818 = math.tanh %817 : vector<8x32xf32>
    %819 = arith.mulf %815, %786 : vector<8x32xf32>
    %820 = arith.mulf %814, %818 : vector<8x32xf32>
    %821 = arith.addf %819, %820 : vector<8x32xf32>
    %822 = math.tanh %821 : vector<8x32xf32>
    %823 = arith.mulf %816, %822 : vector<8x32xf32>
    %824 = vector.extract_strided_slice %807 {offsets = [0, 0], sizes = [8, 384], strides = [1, 1]} : vector<8x512xf32> to vector<8x384xf32>
    %825 = arith.negf %824 : vector<8x384xf32>
    %826 = math.exp %825 : vector<8x384xf32>
    %cst_213 = arith.constant 1.000000e+00 : f32
    %827 = vector.broadcast %cst_213 : f32 to vector<8x384xf32>
    %828 = arith.addf %827, %826 : vector<8x384xf32>
    %829 = arith.divf %827, %828 : vector<8x384xf32>
    %830 = vector.extract_strided_slice %829 {offsets = [0, 0], sizes = [8, 32], strides = [1, 1]} : vector<8x384xf32> to vector<8x32xf32>
    %831 = vector.extract_strided_slice %829 {offsets = [0, 128], sizes = [8, 32], strides = [1, 1]} : vector<8x384xf32> to vector<8x32xf32>
    %832 = vector.extract_strided_slice %829 {offsets = [0, 256], sizes = [8, 32], strides = [1, 1]} : vector<8x384xf32> to vector<8x32xf32>
    %833 = vector.extract_strided_slice %807 {offsets = [0, 384], sizes = [8, 32], strides = [1, 1]} : vector<8x512xf32> to vector<8x32xf32>
    %834 = math.tanh %833 : vector<8x32xf32>
    %835 = arith.mulf %831, %788 : vector<8x32xf32>
    %836 = arith.mulf %830, %834 : vector<8x32xf32>
    %837 = arith.addf %835, %836 : vector<8x32xf32>
    %838 = math.tanh %837 : vector<8x32xf32>
    %839 = arith.mulf %832, %838 : vector<8x32xf32>
    %840 = arith.index_cast %794 : i32 to index
    %c0_214 = arith.constant 0 : index
    %841 = vector.load %arg1[%840, %c0_214] : memref<64x32xf32, #tpu.memory_space<vmem>>, vector<8x32xf32>
    %842 = arith.index_cast %797 : i32 to index
    %c0_215 = arith.constant 0 : index
    %843 = vector.load %arg1[%842, %c0_215] : memref<64x32xf32, #tpu.memory_space<vmem>>, vector<8x32xf32>
    %844 = arith.mulf %823, %841 : vector<8x32xf32>
    %845 = arith.mulf %821, %841 : vector<8x32xf32>
    %846 = arith.mulf %839, %843 : vector<8x32xf32>
    %847 = arith.mulf %837, %843 : vector<8x32xf32>
    %848 = arith.index_cast %794 : i32 to index
    %c0_216 = arith.constant 0 : index
    %849 = vector.load %arg18[%848, %c0_216] : memref<64x32xf32, #tpu.memory_space<vmem>>, vector<8x32xf32>
    tpu.vector_store %arg18[%848, %c0_216], %844 {strides = array<i32>} : memref<64x32xf32, #tpu.memory_space<vmem>>, vector<8x32xf32>,
    %850 = arith.index_cast %797 : i32 to index
    %c0_217 = arith.constant 0 : index
    %851 = vector.load %arg19[%850, %c0_217] : memref<64x32xf32, #tpu.memory_space<vmem>>, vector<8x32xf32>
    tpu.vector_store %arg19[%850, %c0_217], %846 {strides = array<i32>} : memref<64x32xf32, #tpu.memory_space<vmem>>, vector<8x32xf32>,
    %c6_i32_218 = arith.constant 6 : i32
    %c8_i32_219 = arith.constant 8 : i32
    %852 = arith.muli %c6_i32_218, %c8_i32_219 : i32
    %853 = tpu.assume_multiple %852, 8 : i32
    %c7_i32_220 = arith.constant 7 : i32
    %854 = arith.subi %c7_i32_220, %c6_i32_218 : i32
    %c8_i32_221 = arith.constant 8 : i32
    %855 = arith.muli %854, %c8_i32_221 : i32
    %856 = tpu.assume_multiple %855, 8 : i32
    %857 = arith.index_cast %853 : i32 to index
    %c0_222 = arith.constant 0 : index
    %858 = vector.load %arg17[%857, %c0_222] : memref<64x1024xf32, #tpu.memory_space<vmem>>, vector<8x512xf32>
    %859 = arith.truncf %844 : vector<8x32xf32> to vector<8x32xbf16>
    %cst_223 = arith.constant dense<0.000000e+00> : vector<8x512xf32>
    %860 = tpu.matmul %859, %495, %cst_223 {dimension_numbers = #tpu.dot_dimension_numbers<[1], [0], [0], [1], [0, 0, 1, 1], [], []>} : vector<8x32xbf16>, vector<32x512xbf16>, vector<8x512xf32> -> vector<8x512xf32>
    %861 = arith.addf %858, %860 : vector<8x512xf32>
    %862 = arith.index_cast %856 : i32 to index
    %c512_224 = arith.constant 512 : index
    %863 = vector.load %arg17[%862, %c512_224] : memref<64x1024xf32, #tpu.memory_space<vmem>>, vector<8x512xf32>
    %864 = arith.truncf %846 : vector<8x32xf32> to vector<8x32xbf16>
    %cst_225 = arith.constant dense<0.000000e+00> : vector<8x512xf32>
    %865 = tpu.matmul %864, %496, %cst_225 {dimension_numbers = #tpu.dot_dimension_numbers<[1], [0], [0], [1], [0, 0, 1, 1], [], []>} : vector<8x32xbf16>, vector<32x512xbf16>, vector<8x512xf32> -> vector<8x512xf32>
    %866 = arith.addf %863, %865 : vector<8x512xf32>
    %867 = vector.extract_strided_slice %861 {offsets = [0, 0], sizes = [8, 384], strides = [1, 1]} : vector<8x512xf32> to vector<8x384xf32>
    %868 = arith.negf %867 : vector<8x384xf32>
    %869 = math.exp %868 : vector<8x384xf32>
    %cst_226 = arith.constant 1.000000e+00 : f32
    %870 = vector.broadcast %cst_226 : f32 to vector<8x384xf32>
    %871 = arith.addf %870, %869 : vector<8x384xf32>
    %872 = arith.divf %870, %871 : vector<8x384xf32>
    %873 = vector.extract_strided_slice %872 {offsets = [0, 0], sizes = [8, 32], strides = [1, 1]} : vector<8x384xf32> to vector<8x32xf32>
    %874 = vector.extract_strided_slice %872 {offsets = [0, 128], sizes = [8, 32], strides = [1, 1]} : vector<8x384xf32> to vector<8x32xf32>
    %875 = vector.extract_strided_slice %872 {offsets = [0, 256], sizes = [8, 32], strides = [1, 1]} : vector<8x384xf32> to vector<8x32xf32>
    %876 = vector.extract_strided_slice %861 {offsets = [0, 384], sizes = [8, 32], strides = [1, 1]} : vector<8x512xf32> to vector<8x32xf32>
    %877 = math.tanh %876 : vector<8x32xf32>
    %878 = arith.mulf %874, %845 : vector<8x32xf32>
    %879 = arith.mulf %873, %877 : vector<8x32xf32>
    %880 = arith.addf %878, %879 : vector<8x32xf32>
    %881 = math.tanh %880 : vector<8x32xf32>
    %882 = arith.mulf %875, %881 : vector<8x32xf32>
    %883 = vector.extract_strided_slice %866 {offsets = [0, 0], sizes = [8, 384], strides = [1, 1]} : vector<8x512xf32> to vector<8x384xf32>
    %884 = arith.negf %883 : vector<8x384xf32>
    %885 = math.exp %884 : vector<8x384xf32>
    %cst_227 = arith.constant 1.000000e+00 : f32
    %886 = vector.broadcast %cst_227 : f32 to vector<8x384xf32>
    %887 = arith.addf %886, %885 : vector<8x384xf32>
    %888 = arith.divf %886, %887 : vector<8x384xf32>
    %889 = vector.extract_strided_slice %888 {offsets = [0, 0], sizes = [8, 32], strides = [1, 1]} : vector<8x384xf32> to vector<8x32xf32>
    %890 = vector.extract_strided_slice %888 {offsets = [0, 128], sizes = [8, 32], strides = [1, 1]} : vector<8x384xf32> to vector<8x32xf32>
    %891 = vector.extract_strided_slice %888 {offsets = [0, 256], sizes = [8, 32], strides = [1, 1]} : vector<8x384xf32> to vector<8x32xf32>
    %892 = vector.extract_strided_slice %866 {offsets = [0, 384], sizes = [8, 32], strides = [1, 1]} : vector<8x512xf32> to vector<8x32xf32>
    %893 = math.tanh %892 : vector<8x32xf32>
    %894 = arith.mulf %890, %847 : vector<8x32xf32>
    %895 = arith.mulf %889, %893 : vector<8x32xf32>
    %896 = arith.addf %894, %895 : vector<8x32xf32>
    %897 = math.tanh %896 : vector<8x32xf32>
    %898 = arith.mulf %891, %897 : vector<8x32xf32>
    %899 = arith.index_cast %853 : i32 to index
    %c0_228 = arith.constant 0 : index
    %900 = vector.load %arg1[%899, %c0_228] : memref<64x32xf32, #tpu.memory_space<vmem>>, vector<8x32xf32>
    %901 = arith.index_cast %856 : i32 to index
    %c0_229 = arith.constant 0 : index
    %902 = vector.load %arg1[%901, %c0_229] : memref<64x32xf32, #tpu.memory_space<vmem>>, vector<8x32xf32>
    %903 = arith.mulf %882, %900 : vector<8x32xf32>
    %904 = arith.mulf %880, %900 : vector<8x32xf32>
    %905 = arith.mulf %898, %902 : vector<8x32xf32>
    %906 = arith.mulf %896, %902 : vector<8x32xf32>
    %907 = arith.index_cast %853 : i32 to index
    %c0_230 = arith.constant 0 : index
    %908 = vector.load %arg18[%907, %c0_230] : memref<64x32xf32, #tpu.memory_space<vmem>>, vector<8x32xf32>
    tpu.vector_store %arg18[%907, %c0_230], %903 {strides = array<i32>} : memref<64x32xf32, #tpu.memory_space<vmem>>, vector<8x32xf32>,
    %909 = arith.index_cast %856 : i32 to index
    %c0_231 = arith.constant 0 : index
    %910 = vector.load %arg19[%909, %c0_231] : memref<64x32xf32, #tpu.memory_space<vmem>>, vector<8x32xf32>
    tpu.vector_store %arg19[%909, %c0_231], %905 {strides = array<i32>} : memref<64x32xf32, #tpu.memory_space<vmem>>, vector<8x32xf32>,
    %c7_i32_232 = arith.constant 7 : i32
    %c8_i32_233 = arith.constant 8 : i32
    %911 = arith.muli %c7_i32_232, %c8_i32_233 : i32
    %912 = tpu.assume_multiple %911, 8 : i32
    %c7_i32_234 = arith.constant 7 : i32
    %913 = arith.subi %c7_i32_234, %c7_i32_232 : i32
    %c8_i32_235 = arith.constant 8 : i32
    %914 = arith.muli %913, %c8_i32_235 : i32
    %915 = tpu.assume_multiple %914, 8 : i32
    %916 = arith.index_cast %912 : i32 to index
    %c0_236 = arith.constant 0 : index
    %917 = vector.load %arg17[%916, %c0_236] : memref<64x1024xf32, #tpu.memory_space<vmem>>, vector<8x512xf32>
    %918 = arith.truncf %903 : vector<8x32xf32> to vector<8x32xbf16>
    %cst_237 = arith.constant dense<0.000000e+00> : vector<8x512xf32>
    %919 = tpu.matmul %918, %495, %cst_237 {dimension_numbers = #tpu.dot_dimension_numbers<[1], [0], [0], [1], [0, 0, 1, 1], [], []>} : vector<8x32xbf16>, vector<32x512xbf16>, vector<8x512xf32> -> vector<8x512xf32>
    %920 = arith.addf %917, %919 : vector<8x512xf32>
    %921 = arith.index_cast %915 : i32 to index
    %c512_238 = arith.constant 512 : index
    %922 = vector.load %arg17[%921, %c512_238] : memref<64x1024xf32, #tpu.memory_space<vmem>>, vector<8x512xf32>
    %923 = arith.truncf %905 : vector<8x32xf32> to vector<8x32xbf16>
    %cst_239 = arith.constant dense<0.000000e+00> : vector<8x512xf32>
    %924 = tpu.matmul %923, %496, %cst_239 {dimension_numbers = #tpu.dot_dimension_numbers<[1], [0], [0], [1], [0, 0, 1, 1], [], []>} : vector<8x32xbf16>, vector<32x512xbf16>, vector<8x512xf32> -> vector<8x512xf32>
    %925 = arith.addf %922, %924 : vector<8x512xf32>
    %926 = vector.extract_strided_slice %920 {offsets = [0, 0], sizes = [8, 384], strides = [1, 1]} : vector<8x512xf32> to vector<8x384xf32>
    %927 = arith.negf %926 : vector<8x384xf32>
    %928 = math.exp %927 : vector<8x384xf32>
    %cst_240 = arith.constant 1.000000e+00 : f32
    %929 = vector.broadcast %cst_240 : f32 to vector<8x384xf32>
    %930 = arith.addf %929, %928 : vector<8x384xf32>
    %931 = arith.divf %929, %930 : vector<8x384xf32>
    %932 = vector.extract_strided_slice %931 {offsets = [0, 0], sizes = [8, 32], strides = [1, 1]} : vector<8x384xf32> to vector<8x32xf32>
    %933 = vector.extract_strided_slice %931 {offsets = [0, 128], sizes = [8, 32], strides = [1, 1]} : vector<8x384xf32> to vector<8x32xf32>
    %934 = vector.extract_strided_slice %931 {offsets = [0, 256], sizes = [8, 32], strides = [1, 1]} : vector<8x384xf32> to vector<8x32xf32>
    %935 = vector.extract_strided_slice %920 {offsets = [0, 384], sizes = [8, 32], strides = [1, 1]} : vector<8x512xf32> to vector<8x32xf32>
    %936 = math.tanh %935 : vector<8x32xf32>
    %937 = arith.mulf %933, %904 : vector<8x32xf32>
    %938 = arith.mulf %932, %936 : vector<8x32xf32>
    %939 = arith.addf %937, %938 : vector<8x32xf32>
    %940 = math.tanh %939 : vector<8x32xf32>
    %941 = arith.mulf %934, %940 : vector<8x32xf32>
    %942 = vector.extract_strided_slice %925 {offsets = [0, 0], sizes = [8, 384], strides = [1, 1]} : vector<8x512xf32> to vector<8x384xf32>
    %943 = arith.negf %942 : vector<8x384xf32>
    %944 = math.exp %943 : vector<8x384xf32>
    %cst_241 = arith.constant 1.000000e+00 : f32
    %945 = vector.broadcast %cst_241 : f32 to vector<8x384xf32>
    %946 = arith.addf %945, %944 : vector<8x384xf32>
    %947 = arith.divf %945, %946 : vector<8x384xf32>
    %948 = vector.extract_strided_slice %947 {offsets = [0, 0], sizes = [8, 32], strides = [1, 1]} : vector<8x384xf32> to vector<8x32xf32>
    %949 = vector.extract_strided_slice %947 {offsets = [0, 128], sizes = [8, 32], strides = [1, 1]} : vector<8x384xf32> to vector<8x32xf32>
    %950 = vector.extract_strided_slice %947 {offsets = [0, 256], sizes = [8, 32], strides = [1, 1]} : vector<8x384xf32> to vector<8x32xf32>
    %951 = vector.extract_strided_slice %925 {offsets = [0, 384], sizes = [8, 32], strides = [1, 1]} : vector<8x512xf32> to vector<8x32xf32>
    %952 = math.tanh %951 : vector<8x32xf32>
    %953 = arith.mulf %949, %906 : vector<8x32xf32>
    %954 = arith.mulf %948, %952 : vector<8x32xf32>
    %955 = arith.addf %953, %954 : vector<8x32xf32>
    %956 = math.tanh %955 : vector<8x32xf32>
    %957 = arith.mulf %950, %956 : vector<8x32xf32>
    %958 = arith.index_cast %912 : i32 to index
    %c0_242 = arith.constant 0 : index
    %959 = vector.load %arg1[%958, %c0_242] : memref<64x32xf32, #tpu.memory_space<vmem>>, vector<8x32xf32>
    %960 = arith.index_cast %915 : i32 to index
    %c0_243 = arith.constant 0 : index
    %961 = vector.load %arg1[%960, %c0_243] : memref<64x32xf32, #tpu.memory_space<vmem>>, vector<8x32xf32>
    %962 = arith.mulf %941, %959 : vector<8x32xf32>
    %963 = arith.mulf %939, %959 : vector<8x32xf32>
    %964 = arith.mulf %957, %961 : vector<8x32xf32>
    %965 = arith.mulf %955, %961 : vector<8x32xf32>
    %966 = arith.index_cast %912 : i32 to index
    %c0_244 = arith.constant 0 : index
    %967 = vector.load %arg18[%966, %c0_244] : memref<64x32xf32, #tpu.memory_space<vmem>>, vector<8x32xf32>
    tpu.vector_store %arg18[%966, %c0_244], %962 {strides = array<i32>} : memref<64x32xf32, #tpu.memory_space<vmem>>, vector<8x32xf32>,
    %968 = arith.index_cast %915 : i32 to index
    %c0_245 = arith.constant 0 : index
    %969 = vector.load %arg19[%968, %c0_245] : memref<64x32xf32, #tpu.memory_space<vmem>>, vector<8x32xf32>
    tpu.vector_store %arg19[%968, %c0_245], %964 {strides = array<i32>} : memref<64x32xf32, #tpu.memory_space<vmem>>, vector<8x32xf32>,
    %c8_i32_246 = arith.constant 8 : i32
    %c0_247 = arith.constant 0 : index
    %c0_248 = arith.constant 0 : index
    %970 = vector.load %arg18[%c0_247, %c0_248] : memref<64x32xf32, #tpu.memory_space<vmem>>, vector<64x32xf32>
    %c0_249 = arith.constant 0 : index
    %c0_250 = arith.constant 0 : index
    %971 = vector.load %arg11[%c0_249, %c0_250] : memref<32x32xf32, #tpu.memory_space<vmem>>, vector<32x32xf32>
    %cst_251 = arith.constant dense<0.000000e+00> : vector<64x32xf32>
    %972 = tpu.matmul %970, %971, %cst_251 {dimension_numbers = #tpu.dot_dimension_numbers<[1], [0], [0], [1], [0, 0, 1, 1], [], []>} : vector<64x32xf32>, vector<32x32xf32>, vector<64x32xf32> -> vector<64x32xf32>
    %c0_252 = arith.constant 0 : index
    %c0_253 = arith.constant 0 : index
    %973 = vector.load %arg19[%c0_252, %c0_253] : memref<64x32xf32, #tpu.memory_space<vmem>>, vector<64x32xf32>
    %c0_254 = arith.constant 0 : index
    %c0_255 = arith.constant 0 : index
    %974 = vector.load %arg12[%c0_254, %c0_255] : memref<32x32xf32, #tpu.memory_space<vmem>>, vector<32x32xf32>
    %cst_256 = arith.constant dense<0.000000e+00> : vector<64x32xf32>
    %975 = tpu.matmul %973, %974, %cst_256 {dimension_numbers = #tpu.dot_dimension_numbers<[1], [0], [0], [1], [0, 0, 1, 1], [], []>} : vector<64x32xf32>, vector<32x32xf32>, vector<64x32xf32> -> vector<64x32xf32>
    %976 = arith.addf %972, %975 : vector<64x32xf32>
    %c0_257 = arith.constant 0 : index
    %c0_258 = arith.constant 0 : index
    %977 = vector.load %arg13[%c0_257, %c0_258] : memref<1x32xf32, #tpu.memory_space<vmem>>, vector<1x32xf32>
    %978 = vector.broadcast %977 : vector<1x32xf32> to vector<64x32xf32>
    %979 = arith.addf %976, %978 : vector<64x32xf32>
    %980 = math.tanh %979 : vector<64x32xf32>
    %c0_259 = arith.constant 0 : index
    %c0_260 = arith.constant 0 : index
    %981 = vector.load %arg14[%c0_259, %c0_260] : memref<32x5xf32, #tpu.memory_space<vmem>>, vector<32x5xf32>
    %cst_261 = arith.constant dense<0.000000e+00> : vector<64x5xf32>
    %982 = tpu.matmul %980, %981, %cst_261 {dimension_numbers = #tpu.dot_dimension_numbers<[1], [0], [0], [1], [0, 0, 1, 1], [], []>} : vector<64x32xf32>, vector<32x5xf32>, vector<64x5xf32> -> vector<64x5xf32>
    %c0_262 = arith.constant 0 : index
    %c0_263 = arith.constant 0 : index
    %983 = vector.load %arg15[%c0_262, %c0_263] : memref<1x5xf32, #tpu.memory_space<vmem>>, vector<1x5xf32>
    %984 = vector.broadcast %983 : vector<1x5xf32> to vector<64x5xf32>
    %985 = arith.addf %982, %984 : vector<64x5xf32>
    %cst_264 = arith.constant dense<0xFF800000> : vector<64xf32>
    %986 = vector.multi_reduction <maximumf>, %985, %cst_264 [1] : vector<64x5xf32> to vector<64xf32>
    %987 = vector.shape_cast %986 : vector<64xf32> to vector<64x1xf32>
    %988 = vector.broadcast %987 : vector<64x1xf32> to vector<64x5xf32>
    %989 = arith.subf %985, %988 : vector<64x5xf32>
    %990 = math.exp %989 : vector<64x5xf32>
    %cst_265 = arith.constant dense<0.000000e+00> : vector<64xf32>
    %991 = vector.multi_reduction <add>, %990, %cst_265 [1] : vector<64x5xf32> to vector<64xf32>
    %992 = vector.shape_cast %991 : vector<64xf32> to vector<64x1xf32>
    %993 = math.log %992 : vector<64x1xf32>
    %994 = vector.broadcast %993 : vector<64x1xf32> to vector<64x5xf32>
    %995 = arith.subf %989, %994 : vector<64x5xf32>
    %c0_266 = arith.constant 0 : index
    %c0_267 = arith.constant 0 : index
    %996 = vector.load %arg16[%c0_266, %c0_267] : memref<64x5xf32, #tpu.memory_space<vmem>>, vector<64x5xf32>
    tpu.vector_store %arg16[%c0_266, %c0_267], %995 {strides = array<i32>} : memref<64x5xf32, #tpu.memory_space<vmem>>, vector<64x5xf32>,
    return
  }
}

</mosaic_0001>

<bundles_post_ra>
// kernel: tpu_custom_call.1
= control target key start
LH: loop header
LB: loop body
LE: loop exit
PB: predicated region body
PF: predicated region fallthrough
CT: control target
= control target key end

     0   :  { %s10150_s0 = inlined_call_operand.vmem [shape: bf16[64,10], index: 0, kind: input, shape index: {}]   ;;  %s10151_s1 = inlined_call_operand.vmem [shape: f32[64,32], index: 1, kind: input, shape index: {}]   ;;  %s10152_s2 = inlined_call_operand.hbm [shape: bf16[10,1024], index: 2, kind: input, shape index: {}]   ;;  %s10153_s3 = inlined_call_operand.hbm [shape: bf16[32,512], index: 3, kind: input, shape index: {}]   ;;  %s10154_s4 = inlined_call_operand.hbm [shape: bf16[32,512], index: 4, kind: input, shape index: {}]   ;;  %s10155_s5 = inlined_call_operand.vmem [shape: f32[1,1024], index: 5, kind: input, shape index: {}]   ;;  %s10156_s6 = inlined_call_operand.vmem [shape: bf16[32,1024], index: 6, kind: input, shape index: {}]   ;;  %s10157_s7 = inlined_call_operand.hbm [shape: bf16[32,1024], index: 7, kind: input, shape index: {}]   ;;  %s10158_s8 = inlined_call_operand.hbm [shape: bf16[32,512], index: 8, kind: input, shape index: {}]   ;;  %s10159_s9 = inlined_call_operand.hbm [shape: bf16[32,512], index: 9, kind: input, shape index: {}]   ;;  %s10160_s10 = inlined_call_operand.vmem [shape: f32[1,1024], index: 10, kind: input, shape index: {}]   ;;  %s10161_s11 = inlined_call_operand.hbm [shape: f32[32,32], index: 11, kind: input, shape index: {}]   ;;  %s10162_s12 = inlined_call_operand.hbm [shape: f32[32,32], index: 12, kind: input, shape index: {}]   ;;  %s10163_s13 = inlined_call_operand.vmem [shape: f32[1,32], index: 13, kind: input, shape index: {}]   ;;  %s10164_s14 = inlined_call_operand.vmem [shape: f32[32,5], index: 14, kind: input, shape index: {}]   ;;  %s10165_s15 = inlined_call_operand.vmem [shape: f32[1,5], index: 15, kind: input, shape index: {}]   ;;  %s10166_s16 = inlined_call_operand.vmem [shape: f32[64,5], index: 16, kind: output, shape index: {}]  }
   0x1   :  { %10186 = sst [smem:[#allocation98_spill]] %s10150_s0 }
   0x2   :  { %21 = vsyncpa [#allocation6], 0 }
   0x3   :  { %22 = vsyncpa [#allocation8], 0 }
   0x4   :  { %23 = vsyncpa [#allocation11], 0 }
   0x5   :  { %24 = vsyncpa [#allocation14], 0  ;;  %s47_s23 = sshll.u32 %s10153_s3, 4  ;;  %s48_s23 = int_to_ptr.hbm [resolvable:$true] %s47_s23 }
   0x6   :  { %25 = vsyncpa [#allocation17], 0  ;;  %s7750_s24 = smov [#allocation7]   ;;  %s10168_s26 = smov 256  }
   0x7   :  { %s49_s25 = sshll.u32 %s7750_s24, 4  ;;  %s7752_s27 = smov 16   ;;  %s50_s25 = int_to_ptr.vmem [resolvable:$true] %s49_s25 }
   0x8   :  { %55 = dma.hbm_to_vmem [thread:$0]  %s48_s23, 1024, %s50_s25, [#allocation8], %s10168_s26, %s10168_s26, %s7752_s27  }
   0x9   :  { %s77_s30 = sshll.u32 %s10157_s7, 4  ;;  %s7753_s0 = smov [#allocation10]   ;;  %s78_s30 = int_to_ptr.hbm [resolvable:$true] %s77_s30 }
   0xa   :  { %s79_s17 = sshll.u32 %s7753_s0, 4  ;;  %s103_s19 = sshll.u32 %s10159_s9, 4  ;;  %s80_s17 = int_to_ptr.vmem [resolvable:$true] %s79_s17  ;;  %s104_s19 = int_to_ptr.hbm [resolvable:$true] %s103_s19 }
   0xb   :  { %s7754_s20 = smov 512   ;;  %s7755_s21 = smov 32  }
   0xc   :  { %85 = dma.hbm_to_vmem [thread:$0]  %s78_s30, 2048, %s80_s17, [#allocation11], %s7754_s20, %s7754_s20, %s7755_s21  }
   0xd   :  { %s34_s23 = sshll.u32 %s10152_s2, 4  ;;  %s7756_s25 = smov [#allocation13]   ;;  %s35_s23 = int_to_ptr.hbm [resolvable:$true] %s34_s23 }
   0xe   :  { %s105_s26 = sshll.u32 %s7756_s25, 4  ;;  %s10187_s7 = smov 256   ;;  %s106_s26 = int_to_ptr.vmem [resolvable:$true] %s105_s26 }
   0xf   :  { %111 = dma.hbm_to_vmem [thread:$0]  %s104_s19, 1024, %s106_s26, [#allocation14], %s10187_s7, %s10187_s7, %s7752_s27  }
  0x10   :  { %s7757_s28 = smov [#allocation5]   ;;  %s60_s18 = sshll.u32 %s10154_s4, 4  ;;  %s61_s18 = int_to_ptr.hbm [resolvable:$true] %s60_s18 }
  0x11   :  { %s36_s29 = sshll.u32 %s7757_s28, 4  ;;  %s90_s2 = sshll.u32 %s10158_s8, 4  ;;  %s37_s29 = int_to_ptr.vmem [resolvable:$true] %s36_s29  ;;  %s91_s2 = int_to_ptr.hbm [resolvable:$true] %s90_s2 }
  0x12   :  { %42 = dma.hbm_to_vmem [thread:$0]  %s35_s23, 1024, %s37_s29, [#allocation6], %s7754_s20, %s7754_s20, %s7755_s21  }
  0x13   :  { %s7758_s3 = smov [#allocation9]   ;;  %s7759_s26 = smov [#allocation12]  }
  0x14   :  { %s62_s22 = sshll.u32 %s7758_s3, 4  ;;  %s92_s19 = sshll.u32 %s7759_s26, 4  ;;  %s63_s22 = int_to_ptr.vmem [resolvable:$true] %s62_s22  ;;  %s93_s19 = int_to_ptr.vmem [resolvable:$true] %s92_s19 }
  0x15   :  { %68 = dma.hbm_to_vmem [thread:$0]  %s61_s18, 1024, %s63_s22, [#allocation8], %s10187_s7, %s10187_s7, %s7752_s27  }
  0x16   :  { %s118_s4 = sshll.u32 %s10161_s11, 4  ;;  %s7760_s8 = smov [#allocation15]   ;;  %s119_s4 = int_to_ptr.hbm [resolvable:$true] %s118_s4 }
  0x17   :  { %98 = dma.hbm_to_vmem [thread:$0]  %s91_s2, 1024, %s93_s19, [#allocation11], %s10187_s7, %s10187_s7, %s7752_s27  }
  0x18   :  { %s120_s20 = sshll.u32 %s7760_s8, 4  ;;  %s131_s28 = sshll.u32 %s10162_s12, 4  ;;  %s121_s20 = int_to_ptr.vmem [resolvable:$true] %s120_s20  ;;  %s132_s28 = int_to_ptr.hbm [resolvable:$true] %s131_s28 }
  0x19   :  { %s7761_s29 = smov 128   ;;  %s7762_s9 = smov 8  }
  0x1a   :  { %126 = dma.hbm_to_vmem [thread:$0]  %s119_s4, 512, %s121_s20, [#allocation14], %s7761_s29, %s7761_s29, %s7762_s9  }
  0x1b   :  { %s7763_s0 = smov [#allocation16]  }
  0x1c   :  { %s133_s18 = sshll.u32 %s7763_s0, 4  ;;  %s134_s18 = int_to_ptr.vmem [resolvable:$true] %s133_s18 }
  0x1d   :  { %139 = dma.hbm_to_vmem [thread:$0]  %s132_s28, 512, %s134_s18, [#allocation17], %s7761_s29, %s7761_s29, %s7762_s9  }
  0x1e   :  { %7740 = dma.done.wait [#allocation6], 1024  }
  0x1f   :  { %7741 = vsyncadd [#allocation6], 4294966272 }
  0x20   :  { %7742 = dma.done.wait [#allocation8], 2048  }
  0x21   :  { %7743 = vsyncadd [#allocation8], 4294965248 }
  0x22   :  { %7744 = dma.done.wait [#allocation11], 3072  }
  0x23   :  { %7745 = vsyncadd [#allocation11], 4294964224 }
  0x24   :  { %7746 = dma.done.wait [#allocation14], 1536  }
  0x25   :  { %7747 = vsyncadd [#allocation14], 4294965760 }
  0x26   :  { %7748 = dma.done.wait [#allocation17], 512  }
  0x27   :  { %7749 = vsyncadd [#allocation17], 4294966784  ;;  %vm278_vm0 = vcmask 1044480   ;;  %v6248_v0 = vld [vmem:[#allocation5] sm:$0xf]  ;;  %s10188_s27 = sld [smem:[#allocation98_spill]] }
  0x28   :  { %v6898_v1 = vld [vmem:[#allocation5 + $0x1c] sm:$0x10]  ;;  %v6894_v2 = vld [vmem:[#allocation5 + $0x4] sm:$0xf]  ;;  %v6256_v5 = vld [vmem:[#allocation5 + $0x8] sm:$0xf] }
  0x29   :  { %v6249_v3 = vor.u32 %v6898_v1, %v6248_v0  ;;  %v6250_v4 = vld [vmem:[#allocation5 + $0x20] sm:$0x10]  ;;  %v6899_v6 = vld [vmem:[#allocation5 + $0x24] sm:$0x10]  ;;  %v6895_v9 = vld [vmem:[#allocation5 + $0xc] sm:$0xf] }
  0x2a   :  { %v6253_v7 = vor.u32 %v6894_v2, %v6250_v4  ;;  %v6257_v8 = vor.u32 %v6899_v6, %v6256_v5  ;;  %vm265_vm1 = vcmask 80896   ;;  %v6258_v13 = vld [vmem:[#allocation5 + $0x28] sm:$0x10]  ;;  %v6896_v18 = vld [vmem:[#allocation5 + $0x14] sm:$0xf] }
  0x2b   :  { %v280_v10 = vsel %vm278_vm0, %v6249_v3, 0  ;;  %v6261_v16 = vor.u32 %v6895_v9, %v6258_v13  ;;  %v6266_v19 = vld [vmem:[#allocation5 + $0x30] sm:$0x10]  ;;  %v6272_v20 = vld [vmem:[#allocation5 + $0x18] sm:$0xf]  ;;  %v10170_v13 = vmov 0  }
  0x2c   :  { %310 = vmatpush.bf16.msra.mxu0 %v280_v10  ;;  %6966 = vmatpush.bf16.msra.mxu3 %v280_v10  ;;  %v283_v14 = vsel %vm278_vm0, %v6253_v7, 0  ;;  %v286_v15 = vsel %vm278_vm0, %v6257_v8, 0  ;;  %v6901_v21 = vld [vmem:[#allocation5 + $0x34] sm:$0x10]  ;;  %v6269_v22 = vor.u32 %v6896_v18, %v6266_v19  ;;  %v6264_v26 = vld [vmem:[#allocation5 + $0x10] sm:$0xf] }
  0x2d   :  { %v7890_v11 = vld [vmem:[%s10188_s27] sm:$0xff]  ;;  %v7895_v12 = vld [vmem:[%s10188_s27 + $0x8] sm:$0xff]  ;;  %6967 = vmatpush.bf16.msra.mxu1 %v283_v14  ;;  %6968 = vmatpush.bf16.msra.mxu2 %v286_v15  ;;  %v289_v17 = vsel %vm278_vm0, %v6261_v16, 0  ;;  %v6273_v23 = vor.u32 %v6901_v21, %v6272_v20  ;;  %v6900_v27 = vld [vmem:[#allocation5 + $0x2c] sm:$0x10] }
  0x2e   :  { %v295_v24 = vsel %vm278_vm0, %v6269_v22, 0  ;;  %v6265_v28 = vor.u32 %v6900_v27, %v6264_v26  ;;  %v7913_v29 = vld [vmem:[%s10188_s27 + $0x10] sm:$0xff]  ;;  %v6897_v31 = vld [vmem:[#allocation5 + $0x1c] sm:$0xf]  ;;  %v6328_v36 = vld [vmem:[#allocation7 + $0x20] sm:$0xf] }
  0x2f   :  { %6278 = vmatmul.msk.bf16.vlgmr.msra.gmra.mxu0 %vm265_vm1, %v7890_v11  ;;  %6279 = vmatmul.msk.bf16.vlgmr.msra.gmra.mxu3 %vm265_vm1, %v7895_v12  ;;  %v298_v25 = vsel %vm278_vm0, %v6273_v23, 0  ;;  %v6274_v32 = vld [vmem:[#allocation5 + $0x38] sm:$0x10]  ;;  %v6908_v37 = vld [vmem:[#allocation7 + $0x2c] sm:$0xf0] }
  0x30   :  { %339 = vmatpush.bf16.msrb.mxu0 %v283_v14  ;;  %6283 = vmatmul.msk.bf16.vlgmr.msra.gmra.mxu1 %vm265_vm1, %v7895_v12  ;;  %v292_v30 = vsel %vm278_vm0, %v6265_v28, 0  ;;  %v6277_v33 = vor.u32 %v6897_v31, %v6274_v32  ;;  %v7928_v35 = vld [vmem:[%s10188_s27 + $0x18] sm:$0xff]  ;;  %v6906_v38 = vld [vmem:[#allocation7 + $0x24] sm:$0xf]  ;;  %v7954_v39 = vor.u32 %v6908_v37, %v6328_v36  ;;  %v6330_v40 = vld [vmem:[#allocation7 + $0x30] sm:$0xf0] }
  0x31   :  { %6287 = vmatmul.msk.bf16.vlgmr.msra.gmra.mxu2 %vm265_vm1, %v7895_v12  ;;  %397 = vmatpush.bf16.msrb.mxu3 %v289_v17  ;;  %v6336_v41 = vld [vmem:[#allocation7 + $0x28] sm:$0xf]  ;;  %v6909_v42 = vld [vmem:[#allocation7 + $0x34] sm:$0xf0]  ;;  %v7956_v43 = vor.u32 %v6906_v38, %v6330_v40  ;;  %v6312_v45 = vld [vmem:[#allocation7] sm:$0xf] }
  0x32   :  { %455 = vmatpush.bf16.msrb.mxu1 %v295_v24  ;;  %484 = vmatpush.bf16.msrb.mxu2 %v298_v25  ;;  %v301_v34 = vsel %vm278_vm0, %v6277_v33, 0  ;;  %v7958_v44 = vor.u32 %v6909_v42, %v6336_v41  ;;  %v6904_v46 = vld [vmem:[#allocation7 + $0xc] sm:$0xf0]  ;;  %v6902_v47 = vld [vmem:[#allocation7 + $0x4] sm:$0xf] }
  0x33   :  { %v7961_v48 = vor.u32 %v6904_v46, %v6312_v45  ;;  %v6314_v49 = vld [vmem:[#allocation7 + $0x10] sm:$0xf0]  ;;  %v6320_v50 = vld [vmem:[#allocation7 + $0x8] sm:$0xf]  ;;  %v6905_v51 = vld [vmem:[#allocation7 + $0x14] sm:$0xf0] }
  0x34   :  { %368 = vmatpush.bf16.msra.mxu0 %v286_v15  ;;  %v7965_v52 = vor.u32 %v6902_v47, %v6314_v49  ;;  %v7967_v53 = vor.u32 %v6905_v51, %v6320_v50  ;;  %v6907_v54 = vld [vmem:[#allocation7 + $0x2c] sm:$0xf]  ;;  %v6338_v55 = vld [vmem:[#allocation7 + $0x38] sm:$0xf0]  ;;  %v6360_v57 = vld [vmem:[#allocation9 + $0x20] sm:$0xf] }
  0x35   :  { %513 = vmatpush.bf16.msra.mxu3 %v301_v34  ;;  %v7980_v56 = vor.u32 %v6907_v54, %v6338_v55  ;;  %v6916_v58 = vld [vmem:[#allocation9 + $0x2c] sm:$0xf0]  ;;  %v6914_v59 = vld [vmem:[#allocation9 + $0x24] sm:$0xf]  ;;  %v6362_v61 = vld [vmem:[#allocation9 + $0x30] sm:$0xf0] }
  0x36   :  { %685 = vmatpush.bf16.msra.mxu1 %v7956_v43  ;;  %698 = vmatpush.bf16.msra.mxu2 %v7958_v44  ;;  %v7983_v60 = vor.u32 %v6916_v58, %v6360_v57  ;;  %v7985_v62 = vor.u32 %v6914_v59, %v6362_v61  ;;  %v6344_v63 = vld [vmem:[#allocation9] sm:$0xf]  ;;  %v6912_v0 = vld [vmem:[#allocation9 + $0xc] sm:$0xf0]  ;;  %v6910_v1 = vld [vmem:[#allocation9 + $0x4] sm:$0xf] }
  0x37   :  { %v7997_v2 = vor.u32 %v6912_v0, %v6344_v63  ;;  %v6346_v3 = vld [vmem:[#allocation9 + $0x10] sm:$0xf0]  ;;  %v6368_v4 = vld [vmem:[#allocation9 + $0x28] sm:$0xf]  ;;  %v6917_v5 = vld [vmem:[#allocation9 + $0x34] sm:$0xf0] }
  0x38   :  { %v7999_v6 = vor.u32 %v6910_v1, %v6346_v3  ;;  %v8001_v7 = vor.u32 %v6917_v5, %v6368_v4  ;;  %v6352_v8 = vld [vmem:[#allocation9 + $0x8] sm:$0xf]  ;;  %v6913_v9 = vld [vmem:[#allocation9 + $0x14] sm:$0xf0]  ;;  %v6903_v14 = vld [vmem:[#allocation7 + $0xc] sm:$0xf] }
  0x39   :  { %v8006_v10 = vor.u32 %v6913_v9, %v6352_v8  ;;  %v6322_v15 = vld [vmem:[#allocation7 + $0x18] sm:$0xf0]  ;;  %v6915_v36 = vld [vmem:[#allocation9 + $0x2c] sm:$0xf] }
  0x3a   :  { %686 = vmatpush.bf16.msra.mxu1 %v7965_v52  ;;  %699 = vmatpush.bf16.msra.mxu2 %v7967_v53  ;;  %v8014_v16 = vor.u32 %v6903_v14, %v6322_v15  ;;  %v6370_v37 = vld [vmem:[#allocation9 + $0x38] sm:$0xf0]  ;;  %v6911_v49 = vld [vmem:[#allocation9 + $0xc] sm:$0xf] }
  0x3b   :  { %v8075_v38 = vor.u32 %v6915_v36, %v6370_v37 }
  0x3f   :  { %6280 = vmatmul.msk.bf16.gmra.mxu3 %vm265_vm1, %v7913_v29  ;;  %6282 = vmatmul.msk.bf16.vlgmr.msrb.gmra.mxu0 %vm265_vm1, %v7890_v11 }
  0x40   :  { %6284 = vmatmul.msk.bf16.gmra.mxu1 %vm265_vm1, %v7913_v29  ;;  %426 = vmatpush.bf16.msrb.mxu0 %v292_v30 }
  0x41   :  { %6288 = vmatmul.msk.bf16.gmra.mxu2 %vm265_vm1, %v7913_v29 }
  0x4f   :  { %6281 = vmatmul.msk.bf16.gmra.mxu3 %vm265_vm1, %v7928_v35  ;;  %6286 = vmatmul.msk.bf16.vlgmr.msra.gmra.mxu0 %vm265_vm1, %v7890_v11 }
  0x50   :  { %6285 = vmatmul.msk.bf16.gmra.mxu1 %vm265_vm1, %v7928_v35  ;;  %672 = vmatpush.bf16.msra.mxu0 %v7954_v39 }
  0x51   :  { %6289 = vmatmul.msk.bf16.gmra.mxu2 %vm265_vm1, %v7928_v35 }
  0x54   :  { %673 = vmatpush.bf16.msra.mxu0 %v7961_v48 }
  0x5f   :  { %6290 = vmatmul.msk.bf16.vlgmr.msrb.gmra.mxu3 %vm265_vm1, %v7890_v11  ;;  %6294 = vmatmul.msk.bf16.vlgmr.msrb.gmra.mxu0 %vm265_vm1, %v7890_v11 }
  0x60   :  { %6298 = vmatmul.msk.bf16.vlgmr.msrb.gmra.mxu1 %vm265_vm1, %v7890_v11  ;;  %711 = vmatpush.bf16.msrb.mxu3 %v7980_v56 }
  0x61   :  { %6302 = vmatmul.msk.bf16.vlgmr.msrb.gmra.mxu2 %vm265_vm1, %v7890_v11  ;;  %775 = vmatpush.bf16.msrb.mxu0 %v7983_v60 }
  0x62   :  { %788 = vmatpush.bf16.msrb.mxu1 %v7985_v62  ;;  %801 = vmatpush.bf16.msrb.mxu2 %v8001_v7 }
  0x64   :  { %712 = vmatpush.bf16.msrb.mxu3 %v8014_v16 }
  0x65   :  { %776 = vmatpush.bf16.msrb.mxu0 %v7997_v2 }
  0x66   :  { %789 = vmatpush.bf16.msrb.mxu1 %v7999_v6  ;;  %802 = vmatpush.bf16.msrb.mxu2 %v8006_v10 }
  0x6f   :  { %6291 = vmatmul.msk.bf16.gmra.mxu3 %vm265_vm1, %v7895_v12  ;;  %6295 = vmatmul.msk.bf16.gmra.mxu0 %vm265_vm1, %v7895_v12 }
  0x70   :  { %6299 = vmatmul.msk.bf16.gmra.mxu1 %vm265_vm1, %v7895_v12 }
  0x71   :  { %6303 = vmatmul.msk.bf16.gmra.mxu2 %vm265_vm1, %v7895_v12 }
  0x7f   :  { %6292 = vmatmul.msk.bf16.gmra.mxu3 %vm265_vm1, %v7913_v29  ;;  %6296 = vmatmul.msk.bf16.gmra.mxu0 %vm265_vm1, %v7913_v29 }
  0x80   :  { %6300 = vmatmul.msk.bf16.gmra.mxu1 %vm265_vm1, %v7913_v29 }
  0x81   :  { %6304 = vmatmul.msk.bf16.gmra.mxu2 %vm265_vm1, %v7913_v29 }
  0x8f   :  { %6293 = vmatmul.msk.bf16.gmra.mxu3 %vm265_vm1, %v7928_v35  ;;  %6297 = vmatmul.msk.bf16.gmra.mxu0 %vm265_vm1, %v7928_v35 }
  0x90   :  { %6301 = vmatmul.msk.bf16.gmra.mxu1 %vm265_vm1, %v7928_v35 }
  0x91   :  { %6305 = vmatmul.msk.bf16.gmra.mxu2 %vm265_vm1, %v7928_v35 }
  0x9f   :  { %6306 = vmatmul.msk.bf16.vlgmr.msra.gmra.mxu3 %vm265_vm1, %v7890_v11  ;;  %674 = vmatmul.bf16.vlgmr.msra.gmra.mxu0 %v10170_v13  ;;  %v8026_v11 = vld [vmem:[%s10155_s5] sm:$0xff] }
  0xa0   :  { %687 = vmatmul.bf16.vlgmr.msra.gmra.mxu1 %v10170_v13  ;;  %978 = vmatpush.bf16.msra.mxu0 %v7954_v39  ;;  %v8029_v17 = vperm.slane %v8026_v11, 1  ;;  %v8037_v21 = vperm.slane %v8026_v11, 0  ;;  %v8043_v22 = vperm.slane %v8026_v11, 2  ;;  %v8113_v4 = vperm.slane %v8026_v11, 4 }
  0xa1   :  { %700 = vmatmul.bf16.vlgmr.msra.gmra.mxu2 %v10170_v13  ;;  %991 = vmatpush.bf16.msra.mxu1 %v7956_v43  ;;  %v8118_v8 = vperm.slane %v8026_v11, 5 }
  0xa2   :  { %1004 = vmatpush.bf16.msra.mxu2 %v7958_v44  ;;  %814 = vmatpush.bf16.msra.mxu3 %v8075_v38 }
  0xa3   :  { %10203 = vst [vmem:[#allocation37_spill] sm:$0xff] %v8118_v8 }
  0xa4   :  { %979 = vmatpush.bf16.msra.mxu0 %v7961_v48 }
  0xa5   :  { %992 = vmatpush.bf16.msra.mxu1 %v7965_v52 }
  0xa6   :  { %1005 = vmatpush.bf16.msra.mxu2 %v7967_v53 }
  0xac   :  { %v8031_v18 = vpop.f32.mrf.mxu0 }
  0xad   :  { %v346_v19 = vpop.f32.mrf.mxu1 }
  0xae   :  { %v8034_v20 = vadd.f32 %v346_v19, %v8029_v17 }
  0xaf   :  { %6307 = vmatmul.msk.bf16.gmra.mxu3 %vm265_vm1, %v7895_v12  ;;  %777 = vmatmul.bf16.vlgmr.msrb.gmra.mxu0 %v10170_v13 }
  0xb0   :  { %790 = vmatmul.bf16.vlgmr.msrb.gmra.mxu1 %v10170_v13  ;;  %1045 = vmatpush.bf16.msrb.mxu0 %v7983_v60 }
  0xb1   :  { %803 = vmatmul.bf16.vlgmr.msrb.gmra.mxu2 %v10170_v13  ;;  %1058 = vmatpush.bf16.msrb.mxu1 %v7985_v62 }
  0xb2   :  { %v317_v23 = vpop.f32.mrf.mxu3  ;;  %1071 = vmatpush.bf16.msrb.mxu2 %v8001_v7 }
  0xb3   :  { %v8051_v24 = vadd.f32 %v317_v23, %v8037_v21  ;;  %v8130_v23 = vperm.slane %v8026_v11, 6 }
  0xb4   :  { %v375_v12 = vpop.f32.mrf.mxu2  ;;  %v8056_v26 = vpop.f32.mrf.mxu0  ;;  %1046 = vmatpush.bf16.msrb.mxu0 %v7997_v2 }
  0xb5   :  { %v8054_v25 = vadd.f32 %v375_v12, %v8043_v22  ;;  %v8058_v27 = vpop.f32.mrf.mxu1  ;;  %1059 = vmatpush.bf16.msrb.mxu1 %v7999_v6  ;;  %10207 = vst [vmem:[#allocation41_spill] sm:$0xff] %v8130_v23 }
  0xb6   :  { %10189 = vst [vmem:[#allocation23_spill] sm:$0xff] %v8058_v27  ;;  %1072 = vmatpush.bf16.msrb.mxu2 %v8006_v10 }
  0xba   :  { %v319_v28 = vpop.f32.mrf.mxu3 }
  0xbb   :  { %v8064_v30 = vadd.f32 %v319_v28, %v8037_v21 }
  0xbc   :  { %v8066_v31 = vpop.f32.mrf.mxu2  ;;  %v8068_v32 = vpop.f32.mrf.mxu0 }
  0xbd   :  { %10190 = vst [vmem:[#allocation24_spill] sm:$0xff] %v8064_v30  ;;  %v351_v33 = vpop.f32.mrf.mxu1 }
  0xbe   :  { %10191 = vst [vmem:[#allocation25_spill] sm:$0xff] %v8066_v31  ;;  %v8071_v34 = vadd.f32 %v351_v33, %v8029_v17  ;;  %v342_v31 = vadd.f32 %v8068_v32, %v8029_v17 }
  0xbf   :  { %6308 = vmatmul.msk.bf16.gmra.mxu3 %vm265_vm1, %v7913_v29  ;;  %v6354_v29 = vld [vmem:[#allocation9 + $0x18] sm:$0xf0] }
  0xc0   :  { %10192 = vst [vmem:[#allocation26_spill] sm:$0xff] %v8071_v34  ;;  %v8088_v50 = vor.u32 %v6911_v49, %v6354_v29 }
  0xc2   :  { %v322_v40 = vpop.f32.mrf.mxu3  ;;  %815 = vmatpush.bf16.msra.mxu3 %v8088_v50 }
  0xc3   :  { %v8079_v41 = vadd.f32 %v322_v40, %v8037_v21 }
  0xc4   :  { %v380_v42 = vpop.f32.mrf.mxu2  ;;  %v8084_v46 = vpop.f32.mrf.mxu0 }
  0xc5   :  { %10193 = vst [vmem:[#allocation27_spill] sm:$0xff] %v8079_v41  ;;  %v8082_v45 = vadd.f32 %v380_v42, %v8043_v22  ;;  %v8086_v47 = vpop.f32.mrf.mxu1 }
  0xc6   :  { %10195 = vst [vmem:[#allocation29_spill] sm:$0xff] %v8086_v47 }
  0xc7   :  { %10194 = vst [vmem:[#allocation28_spill] sm:$0xff] %v8082_v45 }
  0xca   :  { %v8091_v51 = vpop.f32.mrf.mxu3 }
  0xcb   :  { %10196 = vst [vmem:[#allocation30_spill] sm:$0xff] %v8091_v51 }
  0xcc   :  { %v8093_v54 = vpop.f32.mrf.mxu2  ;;  %v8095_v55 = vpop.f32.mrf.mxu0 }
  0xcd   :  { %10197 = vst [vmem:[#allocation31_spill] sm:$0xff] %v8093_v54  ;;  %v356_v57 = vpop.f32.mrf.mxu1 }
  0xce   :  { %v8098_v58 = vadd.f32 %v356_v57, %v8029_v17 }
  0xcf   :  { %6309 = vmatmul.msk.bf16.gmra.mxu3 %vm265_vm1, %v7928_v35 }
  0xd0   :  { %10198 = vst [vmem:[#allocation32_spill] sm:$0xff] %v8098_v58 }
  0xd2   :  { %v327_v59 = vpop.f32.mrf.mxu3 }
  0xd3   :  { %v8103_v61 = vadd.f32 %v327_v59, %v8037_v21 }
  0xd4   :  { %v385_v63 = vpop.f32.mrf.mxu2  ;;  %v8108_v1 = vpop.f32.mrf.mxu0 }
  0xd5   :  { %10199 = vst [vmem:[#allocation33_spill] sm:$0xff] %v8103_v61  ;;  %v8106_v0 = vadd.f32 %v385_v63, %v8043_v22  ;;  %v8110_v3 = vpop.f32.mrf.mxu1  ;;  %v8156_v63 = vperm.slane %v8026_v11, 3 }
  0xd6   :  { %10201 = vst [vmem:[#allocation35_spill] sm:$0xff] %v8110_v3 }
  0xd7   :  { %10200 = vst [vmem:[#allocation34_spill] sm:$0xff] %v8106_v0 }
  0xda   :  { %v8115_v5 = vpop.f32.mrf.mxu3 }
  0xdb   :  { %10202 = vst [vmem:[#allocation36_spill] sm:$0xff] %v8115_v5 }
  0xdc   :  { %v8120_v35 = vpop.f32.mrf.mxu2  ;;  %v428_v9 = vpop.f32.mrf.mxu0 }
  0xdd   :  { %10204 = vst [vmem:[#allocation38_spill] sm:$0xff] %v8120_v35  ;;  %v8123_v14 = vadd.f32 %v428_v9, %v8113_v4  ;;  %v457_v15 = vpop.f32.mrf.mxu1 }
  0xde   :  { %v8126_v19 = vadd.f32 %v457_v15, %v8118_v8 }
  0xdf   :  { %10205 = vst [vmem:[#allocation39_spill] sm:$0xff] %v8123_v14  ;;  %713 = vmatmul.bf16.vlgmr.msrb.gmra.mxu3 %v10170_v13 }
  0xe0   :  { %10206 = vst [vmem:[#allocation40_spill] sm:$0xff] %v8126_v19  ;;  %1017 = vmatpush.bf16.msrb.mxu3 %v7980_v56 }
  0xe2   :  { %v8133_v12 = vpop.f32.mrf.mxu3 }
  0xe4   :  { %v486_v28 = vpop.f32.mrf.mxu2  ;;  %v8138_v36 = vpop.f32.mrf.mxu0  ;;  %1018 = vmatpush.bf16.msrb.mxu3 %v8014_v16 }
  0xe5   :  { %v8136_v33 = vadd.f32 %v486_v28, %v8130_v23  ;;  %10209 = vst [vmem:[#allocation43_spill] sm:$0xff] %v8138_v36  ;;  %v8141_v37 = vpop.f32.mrf.mxu1 }
  0xe6   :  { %10210 = vst [vmem:[#allocation44_spill] sm:$0xff] %v8141_v37 }
  0xe7   :  { %10208 = vst [vmem:[#allocation42_spill] sm:$0xff] %v8136_v33 }
  0xea   :  { %v8143_v40 = vpop.f32.mrf.mxu3 }
  0xec   :  { %v8145_v42 = vpop.f32.mrf.mxu2  ;;  %v433_v49 = vpop.f32.mrf.mxu0 }
  0xed   :  { %10211 = vst [vmem:[#allocation45_spill] sm:$0xff] %v8145_v42  ;;  %v8148_v29 = vadd.f32 %v433_v49, %v8113_v4  ;;  %v462_v57 = vpop.f32.mrf.mxu1 }
  0xee   :  { %v8151_v59 = vadd.f32 %v462_v57, %v8118_v8 }
  0xef   :  { %10212 = vst [vmem:[#allocation46_spill] sm:$0xff] %v8148_v29  ;;  %816 = vmatmul.bf16.vlgmr.msra.gmra.mxu3 %v10170_v13 }
  0xf0   :  { %10213 = vst [vmem:[#allocation47_spill] sm:$0xff] %v8151_v59  ;;  %1084 = vmatpush.bf16.msra.mxu3 %v8075_v38 }
  0xf2   :  { %v404_v9 = vpop.f32.mrf.mxu3 }
  0xf3   :  { %v8159_v15 = vadd.f32 %v404_v9, %v8156_v63 }
  0xf4   :  { %v491_v28 = vpop.f32.mrf.mxu2  ;;  %v8164_v49 = vpop.f32.mrf.mxu0  ;;  %1085 = vmatpush.bf16.msra.mxu3 %v8088_v50 }
  0xf5   :  { %10214 = vst [vmem:[#allocation48_spill] sm:$0xff] %v8159_v15  ;;  %v8162_v33 = vadd.f32 %v491_v28, %v8130_v23  ;;  %v8167_v57 = vpop.f32.mrf.mxu1 }
  0xf6   :  { %10216 = vst [vmem:[#allocation50_spill] sm:$0xff] %v8164_v49  ;;  %v8208_v49 = vperm.slane %v8026_v11, 7 }
  0xf7   :  { %10215 = vst [vmem:[#allocation49_spill] sm:$0xff] %v8162_v33 }
  0xf8   :  { %10217 = vst [vmem:[#allocation51_spill] sm:$0xff] %v8167_v57 }
  0xfa   :  { %v8169_v13 = vpop.f32.mrf.mxu3 }
  0xfb   :  { %10218 = vst [vmem:[#allocation52_spill] sm:$0xff] %v8169_v13 }
  0xfc   :  { %v8171_v19 = vpop.f32.mrf.mxu2  ;;  %v438_v14 = vpop.f32.mrf.mxu0 }
  0xfd   :  { %10219 = vst [vmem:[#allocation53_spill] sm:$0xff] %v8171_v19  ;;  %v8174_v35 = vadd.f32 %v438_v14, %v8113_v4  ;;  %v467_v9 = vpop.f32.mrf.mxu1 }
  0xfe   :  { %v8177_v5 = vadd.f32 %v467_v9, %v8118_v8 }
  0xff   :  { %10220 = vst [vmem:[#allocation54_spill] sm:$0xff] %v8174_v35 }
 0x100   :  { %10221 = vst [vmem:[#allocation55_spill] sm:$0xff] %v8177_v5 }
 0x102   :  { %v409_v28 = vpop.f32.mrf.mxu3 }
 0x103   :  { %v8180_v3 = vadd.f32 %v409_v28, %v8156_v63 }
 0x104   :  { %v496_v42 = vpop.f32.mrf.mxu2  ;;  %v8185_v36 = vpop.f32.mrf.mxu0 }
 0x105   :  { %10222 = vst [vmem:[#allocation56_spill] sm:$0xff] %v8180_v3  ;;  %v8183_v37 = vadd.f32 %v496_v42, %v8130_v23  ;;  %v8187_v0 = vpop.f32.mrf.mxu1 }
 0x106   :  { %10224 = vst [vmem:[#allocation58_spill] sm:$0xff] %v8187_v0 }
 0x107   :  { %10223 = vst [vmem:[#allocation57_spill] sm:$0xff] %v8183_v37 }
 0x10a   :  { %v8189_v58 = vpop.f32.mrf.mxu3 }
 0x10b   :  { %10225 = vst [vmem:[#allocation59_spill] sm:$0xff] %v8189_v58 }
 0x10c   :  { %v8191_v14 = vpop.f32.mrf.mxu2  ;;  %v443_v61 = vpop.f32.mrf.mxu0 }
 0x10d   :  { %10226 = vst [vmem:[#allocation60_spill] sm:$0xff] %v8191_v14  ;;  %v8194_v9 = vadd.f32 %v443_v61, %v8113_v4  ;;  %v472_v33 = vpop.f32.mrf.mxu1 }
 0x10e   :  { %v8197_v28 = vadd.f32 %v472_v33, %v8118_v8 }
 0x112   :  { %v414_v59 = vpop.f32.mrf.mxu3 }
 0x113   :  { %v8200_v42 = vadd.f32 %v414_v59, %v8156_v63 }
 0x114   :  { %v501_v29 = vpop.f32.mrf.mxu2  ;;  %v445_v51 = vpop.f32.mrf.mxu0 }
 0x115   :  { %10227 = vst [vmem:[#allocation61_spill] sm:$0xff] %v8200_v42  ;;  %v8203_v54 = vadd.f32 %v501_v29, %v8130_v23  ;;  %v474_v58 = vpop.f32.mrf.mxu1 }
 0x116   :  { %v475_v32 = vadd.f32 %v474_v58, %v8118_v8 }
 0x11a   :  { %v8205_v47 = vpop.f32.mrf.mxu3 }
 0x11b   :  { %10228 = vst [vmem:[#allocation62_spill] sm:$0xff] %v8205_v47 }
 0x11c   :  { %v503_v19 = vpop.f32.mrf.mxu2  ;;  %v675_v57 = vpop.f32.mrf.mxu0 }
 0x11d   :  { %v688_v61 = vpop.f32.mrf.mxu1  ;;  %v504_v58 = vadd.f32 %v503_v19, %v8130_v23 }
 0x122   :  { %v515_v33 = vpop.f32.mrf.mxu3 }
 0x123   :  { %v8211_v3 = vadd.f32 %v515_v33, %v8208_v49  ;;  %v313_v33 = vadd.f32 %v8031_v18, %v8037_v21 }
 0x124   :  { %v701_v59 = vpop.f32.mrf.mxu2  ;;  %v677_v42 = vpop.f32.mrf.mxu0 }
 0x125   :  { %10229 = vst [vmem:[#allocation63_spill] sm:$0xff] %v8211_v3  ;;  %v690_v45 = vpop.f32.mrf.mxu1  ;;  %v719_v42 = vadd.f32 %v688_v61, %v342_v31  ;;  %v446_v31 = vadd.f32 %v445_v51, %v8113_v4 }
 0x126   :  { %v718_v45 = vadd.f32 %v675_v57, %v313_v33 }
 0x128   :  { %v6374_v30 = vmul.f32 -1.442695, %v718_v45 }
 0x12a   :  { %v8213_v34 = vpop.f32.mrf.mxu3 }
 0x12b   :  { %10230 = vst [vmem:[#allocation64_spill] sm:$0xff] %v8213_v34  ;;  %v6375_v34 = vmul.f32 -1.442695, %v719_v42 }
 0x12c   :  { %v703_v29 = vpop.f32.mrf.mxu2  ;;  %v778_v41 = vpop.f32.mrf.mxu0 }
 0x12d   :  { %v791_v37 = vpop.f32.mrf.mxu1  ;;  %6986 = vpow2.f32 %v6375_v34  ;;  %v821_v34 = vadd.f32 %v778_v41, %v446_v31 }
 0x12e   :  { %6988 = vpow2.f32 %v6374_v30  ;;  %v822_v33 = vadd.f32 %v791_v37, %v475_v32 }
 0x130   :  { %v6378_v30 = vmul.f32 -1.442695, %v822_v33 }
 0x132   :  { %v520_v5 = vpop.f32.mrf.mxu3 }
 0x133   :  { %v8216_v47 = vadd.f32 %v520_v5, %v8208_v49  ;;  %v371_v5 = vadd.f32 %v8095_v55, %v8043_v22  ;;  %v6987_v18 = vpop.eup %6986 }
 0x134   :  { %v804_v35 = vpop.f32.mrf.mxu2  ;;  %v780_v13 = vpop.f32.mrf.mxu0  ;;  %v8231_v42 = vadd.f32 1.0, %v6987_v18 }
 0x135   :  { %10231 = vst [vmem:[#allocation65_spill] sm:$0xff] %v8216_v47  ;;  %v793_v11 = vpop.f32.mrf.mxu1  ;;  %v720_v47 = vadd.f32 %v701_v59, %v371_v5  ;;  %v6989_v57 = vpop.eup %6988  ;;  %v823_v59 = vadd.f32 %v804_v35, %v504_v58 }
 0x136   :  { %v8235_v55 = vadd.f32 1.0, %v6989_v57  ;;  %vm857_vm3 = vweird.f32 %v8231_v42 }
 0x137   :  { %v6376_v61 = vmul.f32 -1.442695, %v720_v47 }
 0x138   :  { %vm842_vm5 = vweird.f32 %v8235_v55 }
 0x139   :  { %6990 = vpow2.f32 %v6376_v61  ;;  %v6379_v61 = vmul.f32 -1.442695, %v823_v59 }
 0x13a   :  { %v8222_v3 = vpop.f32.mrf.mxu3  ;;  %6992 = vrcp.f32 %v8231_v42 }
 0x13b   :  { %10232 = vst [vmem:[#allocation66_spill] sm:$0xff] %v8222_v3  ;;  %6994 = vrcp.f32 %v8235_v55 }
 0x13c   :  { %v806_v29 = vpop.f32.mrf.mxu2  ;;  %6996 = vpow2.f32 %v6378_v30 }
 0x13d   :  { %v6377_v29 = vmul.f32 -1.442695, %v821_v34 }
 0x13f   :  { %v6991_v51 = vpop.eup %6990  ;;  %6998 = vpow2.f32 %v6377_v29 }
 0x140   :  { %v6993_v37 = vpop.eup %6992  ;;  %v8244_v18 = vadd.f32 1.0, %v6991_v51 }
 0x141   :  { %v6995_v5 = vpop.eup %6994  ;;  %v853_v32 = vmul.f32 %v6993_v37, %v8231_v42  ;;  %vm858_vm2 = vweird.f32 %v6993_v37 }
 0x142   :  { %v525_v13 = vpop.f32.mrf.mxu3  ;;  %v838_v57 = vmul.f32 %v6995_v5, %v8235_v55  ;;  %7000 = vrcp.f32 %v8244_v18  ;;  %vm843_vm4 = vweird.f32 %v6995_v5  ;;  %vm859_vm6 = vmor %vm857_vm3, %vm858_vm2  ;;  %vm872_vm13 = vweird.f32 %v8244_v18 }
 0x143   :  { %v8227_v11 = vadd.f32 %v525_v13, %v8208_v49  ;;  %v6997_v13 = vpop.eup %6996  ;;  %v854_v33 = vsub.f32 1.0, %v853_v32  ;;  %7002 = vpow2.f32 %v6379_v61  ;;  %vm844_vm7 = vmor %vm842_vm5, %vm843_vm4 }
 0x144   :  { %v8247_v19 = vadd.f32 1.0, %v6997_v13  ;;  %v839_v35 = vsub.f32 1.0, %v838_v57 }
 0x145   :  { %10233 = vst [vmem:[#allocation67_spill] sm:$0xff] %v8227_v11  ;;  %v6999_v31 = vpop.eup %6998  ;;  %v855_v29 = vmul.f32 %v6993_v37, %v854_v33 }
 0x146   :  { %v8252_v30 = vadd.f32 1.0, %v6999_v31  ;;  %7004 = vrcp.f32 %v8247_v19  ;;  %v840_v51 = vmul.f32 %v6995_v5, %v839_v35  ;;  %v863_v31 = vand.u32 2147483648, %v8231_v42 }
 0x147   :  { %v856_v32 = vadd.f32 %v6993_v37, %v855_v29  ;;  %v861_v35 = vand.u32 2147483647, %v8231_v42  ;;  %vm920_vm11 = vweird.f32 %v8247_v19 }
 0x148   :  { %7006 = vrcp.f32 %v8252_v30  ;;  %v8256_v58 = vpop.eup %7000  ;;  %v841_v33 = vadd.f32 %v6995_v5, %v840_v51  ;;  %v864_v51 = vor.u32 1.1754944e-38, %v863_v31  ;;  %vm905_vm15 = vweird.f32 %v8252_v30 }
 0x149   :  { %v7003_v59 = vpop.eup %7002  ;;  %v868_v57 = vmul.f32 %v8256_v58, %v8244_v18  ;;  %vm862_vm8 = vcmp.eq.f32.partialorder %v861_v35, 8.507059e+37  ;;  %vm873_vm10 = vweird.f32 %v8256_v58 }
 0x14a   :  { %v8233_v45 = vpop.f32.mrf.mxu3  ;;  %v8273_v27 = vadd.f32 1.0, %v7003_v59  ;;  %v845_v14 = vsel %vm844_vm7, %v6995_v5, %v841_v33  ;;  %vm8299_vm14 = vmor %vm872_vm13, %vm873_vm10 }
 0x14b   :  { %10234 = vst [vmem:[#allocation68_spill] sm:$0xff] %v8233_v45  ;;  %v869_v45 = vsub.f32 1.0, %v868_v57  ;;  %v951_v57 = vld [vmem:[%s10151_s1] sm:$0xff] }
 0x14c   :  { %v8260_v3 = vpop.eup %7004  ;;  %vm935_vm7 = vweird.f32 %v8273_v27 }
 0x14d   :  { %v916_v29 = vmul.f32 %v8260_v3, %v8247_v19  ;;  %v870_v8 = vmul.f32 %v8256_v58, %v869_v45  ;;  %vm921_vm12 = vweird.f32 %v8260_v3 }
 0x14e   :  { %v8267_v11 = vpop.eup %7006  ;;  %vm8317_vm1 = vmor %vm920_vm11, %vm921_vm12 }
 0x14f   :  { %v901_v42 = vmul.f32 %v8267_v11, %v8252_v30  ;;  %v917_v0 = vsub.f32 1.0, %v916_v29  ;;  %v871_v35 = vadd.f32 %v8256_v58, %v870_v8  ;;  %v926_v8 = vand.u32 2147483648, %v8247_v19 }
 0x150   :  { %vm906_vm0 = vweird.f32 %v8267_v11 }
 0x151   :  { %v918_v5 = vmul.f32 %v8260_v3, %v917_v0  ;;  %v876_v0 = vand.u32 2147483647, %v8244_v18  ;;  %vm8323_vm3 = vmor %vm905_vm15, %vm906_vm0 }
 0x152   :  { %v530_v47 = vpop.f32.mrf.mxu3 }
 0x153   :  { %v8241_v41 = vadd.f32 %v530_v47, %v8208_v49  ;;  %v400_v47 = vadd.f32 %v8133_v12, %v8156_v63  ;;  %v848_v12 = vand.u32 2147483648, %v8235_v55  ;;  %vm877_vm2 = vcmp.eq.f32.partialorder %v876_v0, 8.507059e+37 }
 0x155   :  { %v849_v23 = vor.u32 1.1754944e-38, %v848_v12  ;;  %v878_v12 = vand.u32 2147483648, %v8244_v18  ;;  %v875_v18 = vsel %vm8299_vm14, %v8256_v58, %v871_v35  ;;  %v927_v58 = vor.u32 1.1754944e-38, %v926_v8 }
 0x15a   :  { %v8250_v34 = vpop.f32.mrf.mxu3 }
 0x162   :  { %v714_v13 = vpop.f32.mrf.mxu3 }
 0x163   :  { %v721_v61 = vadd.f32 %v714_v13, %v400_v47  ;;  %v846_v47 = vand.u32 2147483647, %v8235_v55  ;;  %v860_v13 = vsel %vm859_vm6, %v6993_v37, %v856_v32  ;;  %v902_v37 = vsub.f32 1.0, %v901_v42 }
 0x164   :  { %v865_v15 = vsel %vm862_vm8, %v864_v51, %v860_v13  ;;  %v919_v13 = vadd.f32 %v8260_v3, %v918_v5  ;;  %v924_v51 = vand.u32 2147483647, %v8247_v19  ;;  %vm662_vm6 = vcmask 261120  }
 0x165   :  { %7008 = vtanh.f32 %v721_v61  ;;  %vm847_vm9 = vcmp.eq.f32.partialorder %v846_v47, 8.507059e+37  ;;  %v883_v32 = vmul.f32 0.0, %v865_v15  ;;  %v903_v15 = vmul.f32 %v8267_v11, %v902_v37 }
 0x166   :  { %7010 = vrcp.f32 %v8273_v27  ;;  %v850_v55 = vsel %vm847_vm9, %v849_v23, %v845_v14  ;;  %v533_v14 = vadd.f32 %v8250_v34, %v8208_v49  ;;  %v923_v19 = vsel %vm8317_vm1, %v8260_v3, %v919_v13 }
 0x167   :  { %v904_v37 = vadd.f32 %v8267_v11, %v903_v15  ;;  %vm925_vm4 = vcmp.eq.f32.partialorder %v924_v51, 8.507059e+37 }
 0x168   :  { %v928_v15 = vsel %vm925_vm4, %v927_v58, %v923_v19  ;;  %v344_v19 = vadd.f32 %v8084_v46, %v8029_v17 }
 0x169   :  { %v946_v13 = vmul.f32 0.0, %v928_v15 }
 0x16a   :  { %v716_v61 = vpop.f32.mrf.mxu3 }
 0x16b   :  { %v7009_v59 = vpop.eup %7008  ;;  %v911_v61 = vand.u32 2147483648, %v8252_v30 }
 0x16c   :  { %v884_v31 = vmul.f32 %v7009_v59, %v850_v55  ;;  %v8288_v45 = vpop.eup %7010  ;;  %v879_v55 = vor.u32 1.1754944e-38, %v878_v12 }
 0x16d   :  { %v931_v34 = vmul.f32 %v8288_v45, %v8273_v27  ;;  %v912_v12 = vor.u32 1.1754944e-38, %v911_v61  ;;  %vm936_vm8 = vweird.f32 %v8288_v45  ;;  %v939_v61 = vand.u32 2147483647, %v8273_v27 }
 0x16e   :  { %v885_v33 = vadd.f32 %v884_v31, %v883_v32  ;;  %v909_v32 = vand.u32 2147483647, %v8252_v30  ;;  %v908_v30 = vsel %vm8323_vm3, %v8267_v11, %v904_v37  ;;  %v6380_v11 = vld [vmem:[%s10151_s1 + $0x38] sm:$0xff]  ;;  %vm937_vm9 = vmor %vm935_vm7, %vm936_vm8 }
 0x16f   :  { %v932_v35 = vsub.f32 1.0, %v931_v34  ;;  %vm940_vm10 = vcmp.eq.f32.partialorder %v939_v61, 8.507059e+37 }
 0x170   :  { %7012 = vtanh.f32 %v885_v33  ;;  %v8290_v23 = vmul.f32 %v951_v57, %v885_v33  ;;  %v880_v33 = vsel %vm877_vm2, %v879_v55, %v875_v18  ;;  %vm910_vm5 = vcmp.eq.f32.partialorder %v909_v32, 8.507059e+37 }
 0x172   :  { %v817_v47 = vpop.f32.mrf.mxu3 }
 0x173   :  { %v824_v42 = vadd.f32 %v817_v47, %v533_v14  ;;  %v933_v47 = vmul.f32 %v8288_v45, %v932_v35 }
 0x175   :  { %7014 = vtanh.f32 %v824_v42  ;;  %v913_v42 = vsel %vm910_vm5, %v912_v12, %v908_v30  ;;  %v934_v34 = vadd.f32 %v8288_v45, %v933_v47 }
 0x176   :  { %v7013_v5 = vpop.eup %7012 }
 0x177   :  { %v887_v14 = vmul.f32 %v7013_v5, %v880_v33  ;;  %v938_v37 = vsel %vm937_vm9, %v8288_v45, %v934_v34  ;;  %v315_v45 = vadd.f32 %v8056_v26, %v8037_v21  ;;  %v402_v34 = vadd.f32 %v8143_v40, %v8156_v63 }
 0x179   :  { %v954_v0 = vmul.f32 %v951_v57, %v887_v14  ;;  %v941_v57 = vand.u32 2147483648, %v8273_v27 }
 0x17a   :  { %v819_v8 = vpop.f32.mrf.mxu3 }
 0x17b   :  { %v7015_v29 = vpop.eup %7014  ;;  %958 = vst.msk [vmem:[#allocation3] sm:$0xff] %vm662_vm6, %v954_v0  ;;  %v968_v3 = vpack.c.bf16 %v954_v0, %v954_v0  ;;  %v942_v55 = vor.u32 1.1754944e-38, %v941_v57  ;;  %v373_v0 = vadd.f32 %v8108_v1, %v8043_v22 }
 0x17c   :  { %v947_v51 = vmul.f32 %v7015_v29, %v913_v42 }
 0x17d   :  { %6381 = vmatmul.msk.bf16.vlgmr.msra.gmra.mxu0 %vm662_vm6, %v968_v3  ;;  %6382 = vmatmul.msk.bf16.vlgmr.msra.gmra.mxu1 %vm662_vm6, %v968_v3  ;;  %v943_v32 = vsel %vm940_vm10, %v942_v55, %v938_v37 }
 0x17e   :  { %v948_v18 = vadd.f32 %v947_v51, %v946_v13  ;;  %6383 = vmatmul.msk.bf16.vlgmr.msra.gmra.mxu2 %vm662_vm6, %v968_v3  ;;  %6384 = vmatmul.msk.bf16.vlgmr.msrb.gmra.mxu3 %vm662_vm6, %v968_v3 }
 0x17f   :  { %1250 = vmatpush.bf16.msra.mxu0 %v7954_v39  ;;  %1263 = vmatpush.bf16.msra.mxu1 %v7956_v43 }
 0x180   :  { %7016 = vtanh.f32 %v948_v18  ;;  %v8349_v59 = vmul.f32 %v6380_v11, %v948_v18  ;;  %1276 = vmatpush.bf16.msra.mxu2 %v7958_v44  ;;  %1289 = vmatpush.bf16.msrb.mxu3 %v7980_v56 }
 0x183   :  { %1251 = vmatpush.bf16.msra.mxu0 %v7961_v48  ;;  %1264 = vmatpush.bf16.msra.mxu1 %v7965_v52 }
 0x184   :  { %1277 = vmatpush.bf16.msra.mxu2 %v7967_v53  ;;  %1290 = vmatpush.bf16.msrb.mxu3 %v8014_v16 }
 0x186   :  { %v7017_v27 = vpop.eup %7016 }
 0x187   :  { %v950_v58 = vmul.f32 %v7017_v27, %v943_v32 }
 0x189   :  { %v956_v31 = vmul.f32 %v6380_v11, %v950_v58 }
 0x18b   :  { %960 = vst.msk [vmem:[#allocation4 + $0x38] sm:$0xff] %vm662_vm6, %v956_v31  ;;  %v1035_v5 = vpack.c.bf16 %v956_v31, %v956_v31 }
 0x18d   :  { %6385 = vmatmul.msk.bf16.vlgmr.msrb.gmra.mxu0 %vm662_vm6, %v1035_v5  ;;  %6386 = vmatmul.msk.bf16.vlgmr.msrb.gmra.mxu1 %vm662_vm6, %v1035_v5 }
 0x18e   :  { %6387 = vmatmul.msk.bf16.vlgmr.msrb.gmra.mxu2 %vm662_vm6, %v1035_v5  ;;  %6388 = vmatmul.msk.bf16.vlgmr.msra.gmra.mxu3 %vm662_vm6, %v1035_v5 }
 0x18f   :  { %1317 = vmatpush.bf16.msrb.mxu0 %v7983_v60  ;;  %1330 = vmatpush.bf16.msrb.mxu1 %v7985_v62 }
 0x190   :  { %1343 = vmatpush.bf16.msrb.mxu2 %v8001_v7  ;;  %1356 = vmatpush.bf16.msra.mxu3 %v8075_v38 }
 0x193   :  { %1318 = vmatpush.bf16.msrb.mxu0 %v7997_v2  ;;  %1331 = vmatpush.bf16.msrb.mxu1 %v7999_v6 }
 0x194   :  { %1344 = vmatpush.bf16.msrb.mxu2 %v8006_v10  ;;  %1357 = vmatpush.bf16.msra.mxu3 %v8088_v50 }
 0x1fa   :  { %v981_v33 = vpop.f32.mrf.mxu0  ;;  %v994_v35 = vpop.f32.mrf.mxu1 }
 0x1fb   :  { %v1024_v12 = vadd.f32 %v981_v33, %v315_v45  ;;  %v1025_v14 = vadd.f32 %v994_v35, %v344_v19 }
 0x1fd   :  { %v6389_v30 = vmul.f32 -1.442695, %v1024_v12  ;;  %v6390_v15 = vmul.f32 -1.442695, %v1025_v14 }
 0x1ff   :  { %7018 = vpow2.f32 %v6389_v30 }
 0x200   :  { %7020 = vpow2.f32 %v6390_v15 }
 0x201   :  { %v1007_v8 = vpop.f32.mrf.mxu2  ;;  %v1020_v29 = vpop.f32.mrf.mxu3 }
 0x202   :  { %v1026_v47 = vadd.f32 %v1007_v8, %v373_v0  ;;  %v983_v42 = vpop.f32.mrf.mxu0  ;;  %v996_v3 = vpop.f32.mrf.mxu1  ;;  %v1027_v32 = vadd.f32 %v1020_v29, %v402_v34 }
 0x204   :  { %v6391_v26 = vmul.f32 -1.442695, %v1026_v47 }
 0x205   :  { %v7019_v13 = vpop.eup %7018 }
 0x206   :  { %v7021_v51 = vpop.eup %7020  ;;  %v1104_v46 = vadd.f32 1.0, %v7019_v13  ;;  %7022 = vpow2.f32 %v6391_v26 }
 0x207   :  { %v1105_v11 = vadd.f32 1.0, %v7021_v51 }
 0x208   :  { %7024 = vrcp.f32 %v1104_v46  ;;  %v1116_v12 = vand.u32 2147483647, %v1104_v46  ;;  %vm1112_vm14 = vweird.f32 %v1104_v46 }
 0x209   :  { %7026 = vrcp.f32 %v1105_v11  ;;  %v1009_v57 = vpop.f32.mrf.mxu2  ;;  %v1022_v18 = vpop.f32.mrf.mxu3  ;;  %v1133_v29 = vand.u32 2147483648, %v1105_v11  ;;  %v1131_v42 = vand.u32 2147483647, %v1105_v11  ;;  %vm1127_vm13 = vweird.f32 %v1105_v11 }
 0x20a   :  { %v1048_v1 = vpop.f32.mrf.mxu0  ;;  %v1061_v61 = vpop.f32.mrf.mxu1  ;;  %vm1117_vm1 = vcmp.eq.f32.partialorder %v1116_v12, 8.507059e+37 }
 0x20b   :  { %v1091_v55 = vadd.f32 %v1048_v1, %v8194_v9  ;;  %v1092_v37 = vadd.f32 %v1061_v61, %v8197_v28  ;;  %v1118_v28 = vand.u32 2147483648, %v1104_v46  ;;  %v1134_v61 = vor.u32 1.1754944e-38, %v1133_v29 }
 0x20c   :  { %v7023_v27 = vpop.eup %7022  ;;  %vm1132_vm2 = vcmp.eq.f32.partialorder %v1131_v42, 8.507059e+37 }
 0x20d   :  { %v8381_v58 = vadd.f32 1.0, %v7023_v27  ;;  %v6392_v31 = vmul.f32 -1.442695, %v1091_v55  ;;  %v6393_v45 = vmul.f32 -1.442695, %v1092_v37  ;;  %v1119_v34 = vor.u32 1.1754944e-38, %v1118_v28 }
 0x20e   :  { %v7025_v5 = vpop.eup %7024 }
 0x20f   :  { %v7027_v19 = vpop.eup %7026  ;;  %v1108_v33 = vmul.f32 %v7025_v5, %v1104_v46  ;;  %7028 = vrcp.f32 %v8381_v58  ;;  %vm1113_vm11 = vweird.f32 %v7025_v5  ;;  %vm1142_vm4 = vweird.f32 %v8381_v58 }
 0x210   :  { %v1123_v35 = vmul.f32 %v7027_v19, %v1105_v11  ;;  %7030 = vtanh.f32 %v1027_v32  ;;  %vm1128_vm12 = vweird.f32 %v7027_v19  ;;  %vm1114_vm15 = vmor %vm1112_vm14, %vm1113_vm11 }
 0x211   :  { %v1109_v40 = vsub.f32 1.0, %v1108_v33  ;;  %7032 = vpow2.f32 %v6392_v31  ;;  %v1074_v14 = vpop.f32.mrf.mxu2  ;;  %v1087_v9 = vpop.f32.mrf.mxu3  ;;  %vm1129_vm0 = vmor %vm1127_vm13, %vm1128_vm12 }
 0x212   :  { %v1124_v30 = vsub.f32 1.0, %v1123_v35  ;;  %7034 = vpow2.f32 %v6393_v45  ;;  %v1093_v15 = vadd.f32 %v1074_v14, %v8203_v54  ;;  %v1050_v0 = vpop.f32.mrf.mxu0  ;;  %v1063_v8 = vpop.f32.mrf.mxu1  ;;  %v1094_v29 = vadd.f32 %v1087_v9, %v8241_v41 }
 0x213   :  { %v1110_v47 = vmul.f32 %v7025_v5, %v1109_v40  ;;  %v1148_v0 = vand.u32 2147483648, %v8381_v58 }
 0x214   :  { %v1125_v3 = vmul.f32 %v7027_v19, %v1124_v30  ;;  %v6394_v26 = vmul.f32 -1.442695, %v1093_v15 }
 0x215   :  { %v7029_v13 = vpop.eup %7028  ;;  %v1111_v51 = vadd.f32 %v7025_v5, %v1110_v47 }
 0x216   :  { %v7031_v57 = vpop.eup %7030  ;;  %v1138_v18 = vmul.f32 %v7029_v13, %v8381_v58  ;;  %v1126_v1 = vadd.f32 %v7027_v19, %v1125_v3  ;;  %7036 = vpow2.f32 %v6394_v26  ;;  %vm1143_vm3 = vweird.f32 %v7029_v13 }
 0x217   :  { %v7033_v54 = vpop.eup %7032  ;;  %v1115_v55 = vsel %vm1114_vm15, %v7025_v5, %v1111_v51  ;;  %v6395_v5 = vld [vmem:[%s10151_s1 + $0x8] sm:$0xff]  ;;  %vm1144_vm5 = vmor %vm1142_vm4, %vm1143_vm3  ;;  %v1149_v51 = vor.u32 1.1754944e-38, %v1148_v0 }
 0x218   :  { %v7035_v37 = vpop.eup %7034  ;;  %v1139_v27 = vsub.f32 1.0, %v1138_v18  ;;  %v1120_v32 = vsel %vm1117_vm1, %v1119_v34, %v1115_v55  ;;  %v1130_v31 = vsel %vm1129_vm0, %v7027_v19, %v1126_v1  ;;  %v1167_v11 = vadd.f32 1.0, %v7033_v54 }
 0x219   :  { %v1135_v45 = vsel %vm1132_vm2, %v1134_v61, %v1130_v31  ;;  %v1154_v46 = vmul.f32 %v7031_v57, %v1120_v32  ;;  %v1168_v33 = vadd.f32 1.0, %v7035_v37  ;;  %v1076_v35 = vpop.f32.mrf.mxu2  ;;  %v1089_v40 = vpop.f32.mrf.mxu3 }
 0x21a   :  { %v1140_v14 = vmul.f32 %v7029_v13, %v1139_v27  ;;  %v1153_v30 = vmul.f32 %v1135_v45, %v8290_v23  ;;  %7038 = vrcp.f32 %v1167_v11  ;;  %v1146_v23 = vand.u32 2147483647, %v8381_v58 }
 0x21b   :  { %7040 = vrcp.f32 %v1168_v33  ;;  %v1196_v54 = vand.u32 2147483648, %v1168_v33  ;;  %v1181_v61 = vand.u32 2147483648, %v1167_v11  ;;  %v1179_v27 = vand.u32 2147483647, %v1167_v11 }
 0x21c   :  { %v7037_v12 = vpop.eup %7036  ;;  %v1155_v28 = vadd.f32 %v1154_v46, %v1153_v30  ;;  %v1141_v15 = vadd.f32 %v7029_v13, %v1140_v14  ;;  %vm1147_vm7 = vcmp.eq.f32.partialorder %v1146_v23, 8.507059e+37  ;;  %v1194_v32 = vand.u32 2147483647, %v1168_v33 }
 0x21d   :  { %v8390_v19 = vadd.f32 1.0, %v7037_v12  ;;  %vm1175_vm10 = vweird.f32 %v1167_v11  ;;  %vm1190_vm11 = vweird.f32 %v1168_v33  ;;  %v1182_v35 = vor.u32 1.1754944e-38, %v1181_v61 }
 0x21e   :  { %7042 = vtanh.f32 %v1155_v28  ;;  %v8393_v8 = vmul.f32 %v6395_v5, %v1155_v28  ;;  %v1145_v3 = vsel %vm1144_vm5, %v7029_v13, %v1141_v15  ;;  %v1197_v30 = vor.u32 1.1754944e-38, %v1196_v54 }
 0x21f   :  { %7044 = vrcp.f32 %v8390_v19  ;;  %v1150_v55 = vsel %vm1147_vm7, %v1149_v51, %v1145_v3  ;;  %vm1180_vm14 = vcmp.eq.f32.partialorder %v1179_v27, 8.507059e+37  ;;  %vm1195_vm15 = vcmp.eq.f32.partialorder %v1194_v32, 8.507059e+37 }
 0x220   :  { %v7039_v47 = vpop.eup %7038  ;;  %7046 = vtanh.f32 %v1094_v29  ;;  %vm1205_vm1 = vweird.f32 %v8390_v19 }
 0x221   :  { %v7041_v42 = vpop.eup %7040  ;;  %v1171_v26 = vmul.f32 %v7039_v47, %v1167_v11  ;;  %vm1176_vm8 = vweird.f32 %v7039_v47 }
 0x222   :  { %v1186_v57 = vmul.f32 %v7041_v42, %v1168_v33  ;;  %vm1191_vm9 = vweird.f32 %v7041_v42  ;;  %vm1177_vm12 = vmor %vm1175_vm10, %vm1176_vm8 }
 0x223   :  { %v1172_v18 = vsub.f32 1.0, %v1171_v26  ;;  %vm1192_vm13 = vmor %vm1190_vm11, %vm1191_vm9  ;;  %v1209_v26 = vand.u32 2147483647, %v8390_v19 }
 0x224   :  { %v7043_v34 = vpop.eup %7042  ;;  %v1187_v1 = vsub.f32 1.0, %v1186_v57 }
 0x225   :  { %v7045_v58 = vpop.eup %7044  ;;  %v1173_v37 = vmul.f32 %v7039_v47, %v1172_v18  ;;  %v1157_v41 = vmul.f32 %v7043_v34, %v1150_v55  ;;  %vm1210_vm3 = vcmp.eq.f32.partialorder %v1209_v26, 8.507059e+37 }
 0x226   :  { %v1188_v9 = vmul.f32 %v7041_v42, %v1187_v1  ;;  %v1201_v13 = vmul.f32 %v7045_v58, %v8390_v19  ;;  %v7047_v14 = vpop.eup %7046  ;;  %vm1206_vm0 = vweird.f32 %v7045_v58 }
 0x227   :  { %v1174_v31 = vadd.f32 %v7039_v47, %v1173_v37  ;;  %v1225_v45 = vmul.f32 %v6395_v5, %v1157_v41  ;;  %v6396_v5 = vld [vmem:[%s10151_s1 + $0x30] sm:$0xff]  ;;  %vm1207_vm2 = vmor %vm1205_vm1, %vm1206_vm0 }
 0x228   :  { %v1202_v46 = vsub.f32 1.0, %v1201_v13  ;;  %v1189_v40 = vadd.f32 %v7041_v42, %v1188_v9 }
 0x229   :  { %v1178_v12 = vsel %vm1177_vm12, %v7039_v47, %v1174_v31  ;;  %1230 = vst.msk [vmem:[#allocation3 + $0x8] sm:$0xff] %vm662_vm6, %v1225_v45  ;;  %v1240_v28 = vpack.c.bf16 %v1225_v45, %v1225_v45 }
 0x22a   :  { %v1183_v15 = vsel %vm1180_vm14, %v1182_v35, %v1178_v12  ;;  %v1193_v0 = vsel %vm1192_vm13, %v7041_v42, %v1189_v40  ;;  %v1203_v23 = vmul.f32 %v7045_v58, %v1202_v46  ;;  %v441_v12 = vadd.f32 %v8185_v36, %v8113_v4 }
 0x22b   :  { %v1198_v29 = vsel %vm1195_vm15, %v1197_v30, %v1193_v0  ;;  %v1217_v11 = vmul.f32 %v7047_v14, %v1183_v15  ;;  %6397 = vmatmul.msk.bf16.vlgmr.msra.gmra.mxu0 %vm662_vm6, %v1240_v28  ;;  %6398 = vmatmul.msk.bf16.vlgmr.msra.gmra.mxu1 %vm662_vm6, %v1240_v28  ;;  %v10242_v15 = vld [vmem:[#allocation58_spill] sm:$0xff] }
 0x22c   :  { %v1216_v33 = vmul.f32 %v1198_v29, %v8349_v59  ;;  %6399 = vmatmul.msk.bf16.vlgmr.msra.gmra.mxu2 %vm662_vm6, %v1240_v28  ;;  %6400 = vmatmul.msk.bf16.vlgmr.msrb.gmra.mxu3 %vm662_vm6, %v1240_v28  ;;  %v1204_v42 = vadd.f32 %v7045_v58, %v1203_v23  ;;  %v1211_v59 = vand.u32 2147483648, %v8390_v19  ;;  %v10241_v28 = vld [vmem:[#allocation37_spill] sm:$0xff] }
 0x22d   :  { %1522 = vmatpush.bf16.msra.mxu0 %v7954_v39  ;;  %1535 = vmatpush.bf16.msra.mxu1 %v7956_v43  ;;  %v470_v0 = vadd.f32 %v10242_v15, %v10241_v28 }
 0x22e   :  { %v1218_v47 = vadd.f32 %v1217_v11, %v1216_v33  ;;  %1548 = vmatpush.bf16.msra.mxu2 %v7958_v44  ;;  %1561 = vmatpush.bf16.msrb.mxu3 %v7980_v56  ;;  %v1208_v51 = vsel %vm1207_vm2, %v7045_v58, %v1204_v42  ;;  %v1212_v57 = vor.u32 1.1754944e-38, %v1211_v59  ;;  %v10243_v33 = vld [vmem:[#allocation48_spill] sm:$0xff] }
 0x230   :  { %7048 = vtanh.f32 %v1218_v47  ;;  %v8414_v3 = vmul.f32 %v6396_v5, %v1218_v47  ;;  %v1213_v34 = vsel %vm1210_vm3, %v1212_v57, %v1208_v51  ;;  %v10244_v57 = vld [vmem:[#allocation41_spill] sm:$0xff] }
 0x231   :  { %1523 = vmatpush.bf16.msra.mxu0 %v7961_v48  ;;  %1536 = vmatpush.bf16.msra.mxu1 %v7965_v52 }
 0x232   :  { %1549 = vmatpush.bf16.msra.mxu2 %v7967_v53  ;;  %1562 = vmatpush.bf16.msrb.mxu3 %v8014_v16 }
 0x236   :  { %v7049_v18 = vpop.eup %7048 }
 0x237   :  { %v1220_v1 = vmul.f32 %v7049_v18, %v1213_v34  ;;  %v10245_v18 = vld [vmem:[#allocation60_spill] sm:$0xff] }
 0x238   :  { %v499_v36 = vadd.f32 %v10245_v18, %v10244_v57 }
 0x239   :  { %v1227_v54 = vmul.f32 %v6396_v5, %v1220_v1 }
 0x23b   :  { %1232 = vst.msk [vmem:[#allocation4 + $0x30] sm:$0xff] %vm662_vm6, %v1227_v54  ;;  %v1307_v61 = vpack.c.bf16 %v1227_v54, %v1227_v54 }
 0x23d   :  { %6401 = vmatmul.msk.bf16.vlgmr.msrb.gmra.mxu0 %vm662_vm6, %v1307_v61  ;;  %6402 = vmatmul.msk.bf16.vlgmr.msrb.gmra.mxu1 %vm662_vm6, %v1307_v61 }
 0x23e   :  { %6403 = vmatmul.msk.bf16.vlgmr.msrb.gmra.mxu2 %vm662_vm6, %v1307_v61  ;;  %6404 = vmatmul.msk.bf16.vlgmr.msra.gmra.mxu3 %vm662_vm6, %v1307_v61 }
 0x23f   :  { %1589 = vmatpush.bf16.msrb.mxu0 %v7983_v60  ;;  %1602 = vmatpush.bf16.msrb.mxu1 %v7985_v62 }
 0x240   :  { %1615 = vmatpush.bf16.msrb.mxu2 %v8001_v7  ;;  %1628 = vmatpush.bf16.msra.mxu3 %v8075_v38 }
 0x243   :  { %1590 = vmatpush.bf16.msrb.mxu0 %v7997_v2  ;;  %1603 = vmatpush.bf16.msrb.mxu1 %v7999_v6 }
 0x244   :  { %1616 = vmatpush.bf16.msrb.mxu2 %v8006_v10  ;;  %1629 = vmatpush.bf16.msra.mxu3 %v8088_v50 }
 0x2a8   :  { %v1253_v19 = vpop.f32.mrf.mxu0  ;;  %v1266_v55 = vpop.f32.mrf.mxu1 }
 0x2a9   :  { %v1296_v58 = vadd.f32 %v1253_v19, %v8051_v24  ;;  %v1297_v37 = vadd.f32 %v1266_v55, %v8034_v20 }
 0x2ab   :  { %v6405_v27 = vmul.f32 -1.442695, %v1296_v58  ;;  %v6406_v41 = vmul.f32 -1.442695, %v1297_v37 }
 0x2ad   :  { %7050 = vpow2.f32 %v6405_v27 }
 0x2ae   :  { %7052 = vpow2.f32 %v6406_v41 }
 0x2af   :  { %v1279_v9 = vpop.f32.mrf.mxu2  ;;  %v1292_v13 = vpop.f32.mrf.mxu3 }
 0x2b0   :  { %v1298_v32 = vadd.f32 %v1279_v9, %v8054_v25  ;;  %v1255_v31 = vpop.f32.mrf.mxu0  ;;  %v1268_v45 = vpop.f32.mrf.mxu1  ;;  %v1299_v5 = vadd.f32 %v1292_v13, %v10243_v33 }
 0x2b2   :  { %v6407_v46 = vmul.f32 -1.442695, %v1298_v32 }
 0x2b3   :  { %v7051_v35 = vpop.eup %7050 }
 0x2b4   :  { %v7053_v40 = vpop.eup %7052  ;;  %v1376_v14 = vadd.f32 1.0, %v7051_v35  ;;  %7054 = vpow2.f32 %v6407_v46 }
 0x2b5   :  { %v1377_v30 = vadd.f32 1.0, %v7053_v40 }
 0x2b6   :  { %7056 = vrcp.f32 %v1376_v14  ;;  %v1388_v58 = vand.u32 2147483647, %v1376_v14  ;;  %v1390_v37 = vand.u32 2147483648, %v1376_v14  ;;  %vm1384_vm8 = vweird.f32 %v1376_v14 }
 0x2b7   :  { %7058 = vrcp.f32 %v1377_v30  ;;  %v1281_v24 = vpop.f32.mrf.mxu2  ;;  %v1294_v20 = vpop.f32.mrf.mxu3  ;;  %v1405_v55 = vand.u32 2147483648, %v1377_v30  ;;  %v1403_v41 = vand.u32 2147483647, %v1377_v30  ;;  %vm1399_vm7 = vweird.f32 %v1377_v30 }
 0x2b8   :  { %v1391_v20 = vor.u32 1.1754944e-38, %v1390_v37  ;;  %vm1389_vm11 = vcmp.eq.f32.partialorder %v1388_v58, 8.507059e+37 }
 0x2b9   :  { %vm1404_vm12 = vcmp.eq.f32.partialorder %v1403_v41, 8.507059e+37 }
 0x2ba   :  { %v7055_v23 = vpop.eup %7054  ;;  %v1320_v25 = vpop.f32.mrf.mxu0 }
 0x2bb   :  { %v1333_v29 = vpop.f32.mrf.mxu1  ;;  %v8442_v11 = vadd.f32 1.0, %v7055_v23  ;;  %v1363_v47 = vadd.f32 %v1320_v25, %v441_v12  ;;  %v1406_v23 = vor.u32 1.1754944e-38, %v1405_v55 }
 0x2bc   :  { %v1364_v42 = vadd.f32 %v1333_v29, %v470_v0  ;;  %v7057_v59 = vpop.eup %7056 }
 0x2bd   :  { %v7059_v26 = vpop.eup %7058  ;;  %v1380_v51 = vmul.f32 %v7057_v59, %v1376_v14  ;;  %7060 = vrcp.f32 %v8442_v11  ;;  %v6408_v54 = vmul.f32 -1.442695, %v1363_v47  ;;  %vm1385_vm4 = vweird.f32 %v7057_v59 }
 0x2be   :  { %v1395_v34 = vmul.f32 %v7059_v26, %v1377_v30  ;;  %7062 = vtanh.f32 %v1299_v5  ;;  %v6409_v61 = vmul.f32 -1.442695, %v1364_v42  ;;  %vm1400_vm5 = vweird.f32 %v7059_v26  ;;  %vm1386_vm9 = vmor %vm1384_vm8, %vm1385_vm4 }
 0x2bf   :  { %v1381_v1 = vsub.f32 1.0, %v1380_v51  ;;  %7064 = vpow2.f32 %v6408_v54  ;;  %vm1401_vm10 = vmor %vm1399_vm7, %vm1400_vm5  ;;  %v1420_v55 = vand.u32 2147483648, %v8442_v11  ;;  %vm1414_vm14 = vweird.f32 %v8442_v11 }
 0x2c0   :  { %v1396_v19 = vsub.f32 1.0, %v1395_v34  ;;  %7066 = vpow2.f32 %v6409_v61  ;;  %v6411_v34 = vld [vmem:[%s10151_s1 + $0x10] sm:$0xff] }
 0x2c1   :  { %v1382_v27 = vmul.f32 %v7057_v59, %v1381_v1  ;;  %v1346_v9 = vpop.f32.mrf.mxu2  ;;  %v1359_v13 = vpop.f32.mrf.mxu3 }
 0x2c2   :  { %v1397_v32 = vmul.f32 %v7059_v26, %v1396_v19  ;;  %v1365_v31 = vadd.f32 %v1346_v9, %v499_v36  ;;  %v1322_v45 = vpop.f32.mrf.mxu0 }
 0x2c3   :  { %v1335_v46 = vpop.f32.mrf.mxu1  ;;  %v7061_v35 = vpop.eup %7060  ;;  %v1383_v40 = vadd.f32 %v7057_v59, %v1382_v27  ;;  %v10246_v27 = vld [vmem:[#allocation68_spill] sm:$0xff] }
 0x2c4   :  { %v1410_v24 = vmul.f32 %v7061_v35, %v8442_v11  ;;  %v1398_v12 = vadd.f32 %v7059_v26, %v1397_v32  ;;  %v6410_v15 = vmul.f32 -1.442695, %v1365_v31  ;;  %v7063_v0 = vpop.eup %7062  ;;  %vm1415_vm13 = vweird.f32 %v7061_v35 }
 0x2c5   :  { %v1387_v25 = vsel %vm1386_vm9, %v7057_v59, %v1383_v40  ;;  %v7065_v30 = vpop.eup %7064  ;;  %v528_v41 = vadd.f32 %v10246_v27, %v8208_v49  ;;  %vm1416_vm15 = vmor %vm1414_vm14, %vm1415_vm13  ;;  %v1421_v31 = vor.u32 1.1754944e-38, %v1420_v55 }
 0x2c6   :  { %v1411_v29 = vsub.f32 1.0, %v1410_v24  ;;  %v1392_v33 = vsel %vm1389_vm11, %v1391_v20, %v1387_v25  ;;  %v1402_v5 = vsel %vm1401_vm10, %v7059_v26, %v1398_v12  ;;  %7068 = vpow2.f32 %v6410_v15  ;;  %v7067_v42 = vpop.eup %7066 }
 0x2c7   :  { %v1407_v14 = vsel %vm1404_vm12, %v1406_v23, %v1402_v5  ;;  %v1426_v47 = vmul.f32 %v7063_v0, %v1392_v33  ;;  %v1439_v36 = vadd.f32 1.0, %v7065_v30  ;;  %v1440_v1 = vadd.f32 1.0, %v7067_v42 }
 0x2c8   :  { %v1412_v51 = vmul.f32 %v7061_v35, %v1411_v29  ;;  %v1425_v18 = vmul.f32 %v1407_v14, %v8393_v8  ;;  %v1418_v8 = vand.u32 2147483647, %v8442_v11  ;;  %v1366_v45 = vadd.f32 %v1359_v13, %v528_v41 }
 0x2c9   :  { %v1348_v59 = vpop.f32.mrf.mxu2  ;;  %v1361_v54 = vpop.f32.mrf.mxu3  ;;  %7070 = vrcp.f32 %v1439_v36  ;;  %v1468_v23 = vand.u32 2147483648, %v1440_v1  ;;  %v1453_v25 = vand.u32 2147483648, %v1439_v36  ;;  %v1451_v5 = vand.u32 2147483647, %v1439_v36 }
 0x2ca   :  { %v1427_v61 = vadd.f32 %v1426_v47, %v1425_v18  ;;  %v1413_v19 = vadd.f32 %v7061_v35, %v1412_v51  ;;  %7072 = vrcp.f32 %v1440_v1  ;;  %vm1419_vm0 = vcmp.eq.f32.partialorder %v1418_v8, 8.507059e+37 }
 0x2cb   :  { %v1466_v14 = vand.u32 2147483647, %v1440_v1  ;;  %vm1447_vm3 = vweird.f32 %v1439_v36  ;;  %vm1462_vm4 = vweird.f32 %v1440_v1  ;;  %v1454_v18 = vor.u32 1.1754944e-38, %v1453_v25 }
 0x2cc   :  { %v7069_v26 = vpop.eup %7068  ;;  %7074 = vtanh.f32 %v1427_v61  ;;  %v8456_v58 = vmul.f32 %v6411_v34, %v1427_v61  ;;  %v1417_v9 = vsel %vm1416_vm15, %v7061_v35, %v1413_v19  ;;  %vm1452_vm8 = vcmp.eq.f32.partialorder %v1451_v5, 8.507059e+37  ;;  %v10249_v5 = vld [vmem:[#allocation25_spill] sm:$0xff] }
 0x2cd   :  { %v8460_v37 = vadd.f32 1.0, %v7069_v26  ;;  %v1422_v20 = vsel %vm1419_vm0, %v1421_v31, %v1417_v9  ;;  %vm1467_vm9 = vcmp.eq.f32.partialorder %v1466_v14, 8.507059e+37 }
 0x2cf   :  { %7076 = vrcp.f32 %v8460_v37  ;;  %v7071_v32 = vpop.eup %7070  ;;  %v1483_v9 = vand.u32 2147483648, %v8460_v37  ;;  %vm1477_vm11 = vweird.f32 %v8460_v37 }
 0x2d0   :  { %v7073_v46 = vpop.eup %7072  ;;  %v1443_v40 = vmul.f32 %v7071_v32, %v1439_v36  ;;  %7078 = vtanh.f32 %v1366_v45  ;;  %vm1448_vm1 = vweird.f32 %v7071_v32 }
 0x2d1   :  { %v1458_v12 = vmul.f32 %v7073_v46, %v1440_v1  ;;  %vm1463_vm2 = vweird.f32 %v7073_v46  ;;  %vm1449_vm5 = vmor %vm1447_vm3, %vm1448_vm1  ;;  %v1484_v31 = vor.u32 1.1754944e-38, %v1483_v9 }
 0x2d2   :  { %v7075_v24 = vpop.eup %7074  ;;  %v1444_v11 = vsub.f32 1.0, %v1443_v40  ;;  %vm1464_vm7 = vmor %vm1462_vm4, %vm1463_vm2 }
 0x2d3   :  { %v1429_v15 = vmul.f32 %v7075_v24, %v1422_v20  ;;  %v1459_v0 = vsub.f32 1.0, %v1458_v12  ;;  %v8489_v24 = vld [vmem:[%s10151_s1 + $0x28] sm:$0xff] }
 0x2d4   :  { %v1445_v35 = vmul.f32 %v7071_v32, %v1444_v11 }
 0x2d5   :  { %v7077_v29 = vpop.eup %7076  ;;  %v1497_v33 = vmul.f32 %v6411_v34, %v1429_v15  ;;  %v1460_v30 = vmul.f32 %v7073_v46, %v1459_v0  ;;  %v1469_v34 = vor.u32 1.1754944e-38, %v1468_v23  ;;  %v10248_v23 = vld [vmem:[#allocation24_spill] sm:$0xff] }
 0x2d6   :  { %v1473_v13 = vmul.f32 %v7077_v29, %v8460_v37  ;;  %v1446_v42 = vadd.f32 %v7071_v32, %v1445_v35  ;;  %v7079_v61 = vpop.eup %7078  ;;  %vm1478_vm10 = vweird.f32 %v7077_v29 }
 0x2d7   :  { %1502 = vst.msk [vmem:[#allocation3 + $0x10] sm:$0xff] %vm662_vm6, %v1497_v33  ;;  %v1512_v47 = vpack.c.bf16 %v1497_v33, %v1497_v33  ;;  %v1461_v59 = vadd.f32 %v7073_v46, %v1460_v30  ;;  %vm1479_vm12 = vmor %vm1477_vm11, %vm1478_vm10  ;;  %v378_v30 = vadd.f32 %v10249_v5, %v8043_v22 }
 0x2d8   :  { %v1474_v51 = vsub.f32 1.0, %v1473_v13  ;;  %v1450_v54 = vsel %vm1449_vm5, %v7071_v32, %v1446_v42 }
 0x2d9   :  { %6413 = vmatmul.msk.bf16.vlgmr.msra.gmra.mxu0 %vm662_vm6, %v1512_v47  ;;  %6414 = vmatmul.msk.bf16.vlgmr.msra.gmra.mxu1 %vm662_vm6, %v1512_v47  ;;  %v1455_v19 = vsel %vm1452_vm8, %v1454_v18, %v1450_v54  ;;  %v1465_v26 = vsel %vm1464_vm7, %v7073_v46, %v1461_v59 }
 0x2da   :  { %6415 = vmatmul.msk.bf16.vlgmr.msra.gmra.mxu2 %vm662_vm6, %v1512_v47  ;;  %6416 = vmatmul.msk.bf16.vlgmr.msrb.gmra.mxu3 %vm662_vm6, %v1512_v47  ;;  %v1475_v36 = vmul.f32 %v7077_v29, %v1474_v51  ;;  %v1470_v1 = vsel %vm1467_vm9, %v1469_v34, %v1465_v26  ;;  %v1489_v55 = vmul.f32 %v7079_v61, %v1455_v19 }
 0x2db   :  { %1791 = vmatpush.bf16.msra.mxu0 %v7954_v39  ;;  %1804 = vmatpush.bf16.msra.mxu1 %v7956_v43  ;;  %v1488_v8 = vmul.f32 %v1470_v1, %v8414_v3  ;;  %v1481_v3 = vand.u32 2147483647, %v8460_v37  ;;  %v10247_v37 = vld [vmem:[#allocation23_spill] sm:$0xff] }
 0x2dc   :  { %1817 = vmatpush.bf16.msra.mxu2 %v7958_v44  ;;  %1830 = vmatpush.bf16.msrb.mxu3 %v7980_v56  ;;  %v1476_v41 = vadd.f32 %v7077_v29, %v1475_v36  ;;  %v349_v15 = vadd.f32 %v10247_v37, %v8029_v17  ;;  %v10250_v36 = vld [vmem:[#allocation52_spill] sm:$0xff]  ;;  %v10252_v37 = vld [vmem:[#allocation55_spill] sm:$0xff] }
 0x2dd   :  { %v8476_v27 = vadd.f32 %v1489_v55, %v1488_v8  ;;  %vm1482_vm13 = vcmp.eq.f32.partialorder %v1481_v3, 8.507059e+37  ;;  %v407_v1 = vadd.f32 %v10250_v36, %v8156_v63 }
 0x2de   :  { %v1480_v32 = vsel %vm1479_vm12, %v7077_v29, %v1476_v41 }
 0x2df   :  { %1792 = vmatpush.bf16.msra.mxu0 %v7961_v48  ;;  %1805 = vmatpush.bf16.msra.mxu1 %v7965_v52  ;;  %7080 = vtanh.f32 %v8476_v27  ;;  %v1485_v46 = vsel %vm1482_vm13, %v1484_v31, %v1480_v32 }
 0x2e0   :  { %1818 = vmatpush.bf16.msra.mxu2 %v7967_v53  ;;  %1831 = vmatpush.bf16.msrb.mxu3 %v8014_v16 }
 0x2e5   :  { %v7081_v45 = vpop.eup %7080 }
 0x2e6   :  { %v1492_v40 = vmul.f32 %v7081_v45, %v1485_v46 }
 0x2e8   :  { %v1499_v20 = vmul.f32 %v8489_v24, %v1492_v40 }
 0x2ea   :  { %1504 = vst.msk [vmem:[#allocation4 + $0x28] sm:$0xff] %vm662_vm6, %v1499_v20  ;;  %v1579_v12 = vpack.c.bf16 %v1499_v20, %v1499_v20  ;;  %v10251_v20 = vld [vmem:[#allocation54_spill] sm:$0xff] }
 0x2ec   :  { %6417 = vmatmul.msk.bf16.vlgmr.msrb.gmra.mxu0 %vm662_vm6, %v1579_v12  ;;  %6418 = vmatmul.msk.bf16.vlgmr.msrb.gmra.mxu1 %vm662_vm6, %v1579_v12 }
 0x2ed   :  { %6419 = vmatmul.msk.bf16.vlgmr.msrb.gmra.mxu2 %vm662_vm6, %v1579_v12  ;;  %6420 = vmatmul.msk.bf16.vlgmr.msra.gmra.mxu3 %vm662_vm6, %v1579_v12 }
 0x2ee   :  { %1855 = vmatpush.bf16.msrb.mxu0 %v7983_v60  ;;  %1868 = vmatpush.bf16.msrb.mxu1 %v7985_v62 }
 0x2ef   :  { %1881 = vmatpush.bf16.msrb.mxu2 %v8001_v7  ;;  %1894 = vmatpush.bf16.msra.mxu3 %v8075_v38 }
 0x2f2   :  { %1856 = vmatpush.bf16.msrb.mxu0 %v7997_v2  ;;  %1869 = vmatpush.bf16.msrb.mxu1 %v7999_v6 }
 0x2f3   :  { %1882 = vmatpush.bf16.msrb.mxu2 %v8006_v10  ;;  %1895 = vmatpush.bf16.msra.mxu3 %v8088_v50 }
 0x356   :  { %v1525_v11 = vpop.f32.mrf.mxu0  ;;  %v1538_v0 = vpop.f32.mrf.mxu1 }
 0x357   :  { %v1568_v25 = vadd.f32 %v1525_v11, %v10248_v23  ;;  %v1569_v29 = vadd.f32 %v1538_v0, %v349_v15 }
 0x359   :  { %v6421_v33 = vmul.f32 -1.442695, %v1568_v25  ;;  %v6422_v35 = vmul.f32 -1.442695, %v1569_v29 }
 0x35b   :  { %7082 = vpow2.f32 %v6421_v33 }
 0x35c   :  { %7084 = vpow2.f32 %v6422_v35 }
 0x35d   :  { %v1551_v13 = vpop.f32.mrf.mxu2  ;;  %v1564_v14 = vpop.f32.mrf.mxu3 }
 0x35e   :  { %v1570_v47 = vadd.f32 %v1551_v13, %v378_v30  ;;  %v1527_v42 = vpop.f32.mrf.mxu0  ;;  %v1540_v51 = vpop.f32.mrf.mxu1  ;;  %v1571_v41 = vadd.f32 %v1564_v14, %v407_v1 }
 0x360   :  { %v6423_v18 = vmul.f32 -1.442695, %v1570_v47 }
 0x361   :  { %v7083_v59 = vpop.eup %7082 }
 0x362   :  { %v7085_v34 = vpop.eup %7084  ;;  %v1648_v54 = vadd.f32 1.0, %v7083_v59  ;;  %7086 = vpow2.f32 %v6423_v18 }
 0x363   :  { %v1649_v61 = vadd.f32 1.0, %v7085_v34 }
 0x364   :  { %7088 = vrcp.f32 %v1648_v54  ;;  %v1660_v23 = vand.u32 2147483647, %v1648_v54  ;;  %v1662_v25 = vand.u32 2147483648, %v1648_v54  ;;  %vm1656_vm1 = vweird.f32 %v1648_v54 }
 0x365   :  { %7090 = vrcp.f32 %v1649_v61  ;;  %v1553_v19 = vpop.f32.mrf.mxu2  ;;  %v1566_v26 = vpop.f32.mrf.mxu3  ;;  %v1677_v0 = vand.u32 2147483648, %v1649_v61  ;;  %v1675_v30 = vand.u32 2147483647, %v1649_v61  ;;  %vm1671_vm0 = vweird.f32 %v1649_v61 }
 0x366   :  { %v1663_v18 = vor.u32 1.1754944e-38, %v1662_v25  ;;  %vm1661_vm4 = vcmp.eq.f32.partialorder %v1660_v23, 8.507059e+37 }
 0x367   :  { %v1678_v36 = vor.u32 1.1754944e-38, %v1677_v0  ;;  %vm1676_vm5 = vcmp.eq.f32.partialorder %v1675_v30, 8.507059e+37 }
 0x368   :  { %v7087_v55 = vpop.eup %7086 }
 0x369   :  { %v8512_v8 = vadd.f32 1.0, %v7087_v55  ;;  %v1592_v3 = vpop.f32.mrf.mxu0  ;;  %v1605_v32 = vpop.f32.mrf.mxu1 }
 0x36a   :  { %v7089_v9 = vpop.eup %7088  ;;  %v1635_v12 = vadd.f32 %v1592_v3, %v10251_v20  ;;  %v1636_v15 = vadd.f32 %v1605_v32, %v10252_v37 }
 0x36b   :  { %v7091_v31 = vpop.eup %7090  ;;  %v1652_v45 = vmul.f32 %v7089_v9, %v1648_v54  ;;  %7092 = vrcp.f32 %v8512_v8  ;;  %vm1657_vm14 = vweird.f32 %v7089_v9  ;;  %vm1686_vm8 = vweird.f32 %v8512_v8 }
 0x36c   :  { %v1667_v46 = vmul.f32 %v7091_v31, %v1649_v61  ;;  %7094 = vtanh.f32 %v1571_v41  ;;  %v6424_v33 = vmul.f32 -1.442695, %v1635_v12  ;;  %v6425_v35 = vmul.f32 -1.442695, %v1636_v15  ;;  %vm1658_vm2 = vmor %vm1656_vm1, %vm1657_vm14  ;;  %v10253_v61 = vld [vmem:[#allocation57_spill] sm:$0xff] }
 0x36d   :  { %v1653_v40 = vsub.f32 1.0, %v1652_v45  ;;  %vm1672_vm15 = vweird.f32 %v7091_v31 }
 0x36e   :  { %v1668_v11 = vsub.f32 1.0, %v1667_v46  ;;  %7096 = vpow2.f32 %v6424_v33  ;;  %vm1673_vm3 = vmor %vm1671_vm0, %vm1672_vm15 }
 0x36f   :  { %v1654_v29 = vmul.f32 %v7089_v9, %v1653_v40  ;;  %7098 = vpow2.f32 %v6425_v35 }
 0x370   :  { %v1669_v5 = vmul.f32 %v7091_v31, %v1668_v11  ;;  %v1618_v47 = vpop.f32.mrf.mxu2  ;;  %v1631_v42 = vpop.f32.mrf.mxu3 }
 0x371   :  { %v7093_v13 = vpop.eup %7092  ;;  %v1655_v14 = vadd.f32 %v7089_v9, %v1654_v29  ;;  %v1594_v34 = vpop.f32.mrf.mxu0  ;;  %v1637_v55 = vadd.f32 %v1618_v47, %v10253_v61 }
 0x372   :  { %v1682_v51 = vmul.f32 %v7093_v13, %v8512_v8  ;;  %v1670_v59 = vadd.f32 %v7091_v31, %v1669_v5  ;;  %v1607_v19 = vpop.f32.mrf.mxu1  ;;  %v7095_v26 = vpop.eup %7094  ;;  %vm1687_vm7 = vweird.f32 %v7093_v13 }
 0x373   :  { %v1659_v1 = vsel %vm1658_vm2, %v7089_v9, %v1655_v14  ;;  %v6426_v46 = vmul.f32 -1.442695, %v1637_v55  ;;  %vm1688_vm9 = vmor %vm1686_vm8, %vm1687_vm7 }
 0x374   :  { %v1683_v54 = vsub.f32 1.0, %v1682_v51  ;;  %v1664_v41 = vsel %vm1661_vm4, %v1663_v18, %v1659_v1  ;;  %v1674_v3 = vsel %vm1673_vm3, %v7091_v31, %v1670_v59  ;;  %v7097_v12 = vpop.eup %7096  ;;  %v1692_v31 = vand.u32 2147483648, %v8512_v8  ;;  %v10254_v18 = vld [vmem:[#allocation67_spill] sm:$0xff] }
 0x375   :  { %v1679_v32 = vsel %vm1676_vm5, %v1678_v36, %v1674_v3  ;;  %v1698_v45 = vmul.f32 %v7095_v26, %v1664_v41  ;;  %7100 = vpow2.f32 %v6426_v46  ;;  %v7099_v37 = vpop.eup %7098  ;;  %v1711_v11 = vadd.f32 1.0, %v7097_v12 }
 0x376   :  { %v1684_v40 = vmul.f32 %v7093_v13, %v1683_v54  ;;  %v1697_v20 = vmul.f32 %v1679_v32, %v8456_v58  ;;  %v8523_v0 = vadd.f32 1.0, %v7099_v37  ;;  %v1690_v58 = vand.u32 2147483647, %v8512_v8  ;;  %v8537_v8 = vld [vmem:[%s10151_s1 + $0x18] sm:$0xff] }
 0x377   :  { %v1693_v35 = vor.u32 1.1754944e-38, %v1692_v31  ;;  %v1638_v59 = vadd.f32 %v1631_v42, %v10254_v18  ;;  %v1725_v55 = vand.u32 2147483648, %v1711_v11  ;;  %v1723_v3 = vand.u32 2147483647, %v1711_v11 }
 0x378   :  { %v8521_v15 = vadd.f32 %v1698_v45, %v1697_v20  ;;  %v1685_v9 = vadd.f32 %v7093_v13, %v1684_v40  ;;  %v1620_v23 = vpop.f32.mrf.mxu2  ;;  %v1633_v25 = vpop.f32.mrf.mxu3  ;;  %vm1691_vm10 = vcmp.eq.f32.partialorder %v1690_v58, 8.507059e+37  ;;  %v1740_v42 = vand.u32 2147483648, %v8523_v0 }
 0x379   :  { %v1738_v46 = vand.u32 2147483647, %v8523_v0  ;;  %vm1719_vm13 = vweird.f32 %v1711_v11  ;;  %vm1734_vm14 = vweird.f32 %v8523_v0  ;;  %v1726_v12 = vor.u32 1.1754944e-38, %v1725_v55 }
 0x37a   :  { %7102 = vtanh.f32 %v8521_v15  ;;  %v1689_v33 = vsel %vm1688_vm9, %v7093_v13, %v1685_v9  ;;  %v1741_v9 = vor.u32 1.1754944e-38, %v1740_v42  ;;  %vm1724_vm1 = vcmp.eq.f32.partialorder %v1723_v3, 8.507059e+37 }
 0x37b   :  { %7104 = vrcp.f32 %v1711_v11  ;;  %v7101_v29 = vpop.eup %7100  ;;  %v1694_v14 = vsel %vm1691_vm10, %v1693_v35, %v1689_v33  ;;  %vm1739_vm2 = vcmp.eq.f32.partialorder %v1738_v46, 8.507059e+37  ;;  %v10257_v46 = vld [vmem:[#allocation28_spill] sm:$0xff] }
 0x37c   :  { %7106 = vrcp.f32 %v8523_v0  ;;  %v8530_v5 = vadd.f32 1.0, %v7101_v29 }
 0x37e   :  { %7108 = vrcp.f32 %v8530_v5  ;;  %vm1749_vm4 = vweird.f32 %v8530_v5 }
 0x37f   :  { %7110 = vtanh.f32 %v1638_v59 }
 0x380   :  { %v7103_v30 = vpop.eup %7102 }
 0x381   :  { %v7105_v47 = vpop.eup %7104  ;;  %v1701_v51 = vmul.f32 %v7103_v30, %v1694_v14 }
 0x382   :  { %v7107_v34 = vpop.eup %7106  ;;  %v1715_v19 = vmul.f32 %v7105_v47, %v1711_v11  ;;  %vm1720_vm11 = vweird.f32 %v7105_v47 }
 0x383   :  { %v1769_v13 = vmul.f32 %v8537_v8, %v1701_v51  ;;  %v1730_v26 = vmul.f32 %v7107_v34, %v8523_v0  ;;  %vm1735_vm12 = vweird.f32 %v7107_v34  ;;  %vm1721_vm15 = vmor %vm1719_vm13, %vm1720_vm11  ;;  %v1500_v0 = vmul.f32 %v8489_v24, %v8476_v27 }
 0x384   :  { %v1716_v36 = vsub.f32 1.0, %v1715_v19  ;;  %v7109_v54 = vpop.eup %7108  ;;  %vm1736_vm0 = vmor %vm1734_vm14, %vm1735_vm12  ;;  %v1755_v27 = vand.u32 2147483648, %v8530_v5 }
 0x385   :  { %1774 = vst.msk [vmem:[#allocation3 + $0x18] sm:$0xff] %vm662_vm6, %v1769_v13  ;;  %v1781_v1 = vpack.c.bf16 %v1769_v13, %v1769_v13  ;;  %v1731_v61 = vsub.f32 1.0, %v1730_v26  ;;  %v1745_v45 = vmul.f32 %v7109_v54, %v8530_v5  ;;  %v7111_v11 = vpop.eup %7110  ;;  %vm1750_vm3 = vweird.f32 %v7109_v54  ;;  %v8570_v13 = vld [vmem:[%s10151_s1 + $0x20] sm:$0xff] }
 0x386   :  { %v1717_v41 = vmul.f32 %v7105_v47, %v1716_v36  ;;  %vm1751_vm5 = vmor %vm1749_vm4, %vm1750_vm3  ;;  %v1756_v18 = vor.u32 1.1754944e-38, %v1755_v27 }
 0x387   :  { %v1732_v32 = vmul.f32 %v7107_v34, %v1731_v61  ;;  %6429 = vmatmul.msk.bf16.vlgmr.msra.gmra.mxu0 %vm662_vm6, %v1781_v1  ;;  %6430 = vmatmul.msk.bf16.vlgmr.msra.gmra.mxu1 %vm662_vm6, %v1781_v1  ;;  %v1746_v20 = vsub.f32 1.0, %v1745_v45  ;;  %v10255_v61 = vld [vmem:[#allocation27_spill] sm:$0xff] }
 0x388   :  { %v1718_v40 = vadd.f32 %v7105_v47, %v1717_v41  ;;  %6431 = vmatmul.msk.bf16.vlgmr.msra.gmra.mxu2 %vm662_vm6, %v1781_v1  ;;  %6432 = vmatmul.msk.bf16.vlgmr.msrb.gmra.mxu3 %vm662_vm6, %v1781_v1 }
 0x389   :  { %v1733_v37 = vadd.f32 %v7107_v34, %v1732_v32  ;;  %2055 = vmatpush.bf16.msra.mxu0 %v7954_v39  ;;  %2068 = vmatpush.bf16.msra.mxu1 %v7956_v43  ;;  %v1747_v58 = vmul.f32 %v7109_v54, %v1746_v20 }
 0x38a   :  { %v1722_v23 = vsel %vm1721_vm15, %v7105_v47, %v1718_v40  ;;  %2081 = vmatpush.bf16.msra.mxu2 %v7958_v44  ;;  %2094 = vmatpush.bf16.msrb.mxu3 %v7980_v56  ;;  %v1753_v47 = vand.u32 2147483647, %v8530_v5 }
 0x38b   :  { %v1727_v25 = vsel %vm1724_vm1, %v1726_v12, %v1722_v23  ;;  %v1737_v31 = vsel %vm1736_vm0, %v7107_v34, %v1733_v37  ;;  %v1748_v14 = vadd.f32 %v7109_v54, %v1747_v58 }
 0x38c   :  { %v1742_v29 = vsel %vm1739_vm2, %v1741_v9, %v1737_v31  ;;  %v1761_v33 = vmul.f32 %v7111_v11, %v1727_v25  ;;  %vm1754_vm7 = vcmp.eq.f32.partialorder %v1753_v47, 8.507059e+37 }
 0x38d   :  { %v1760_v35 = vmul.f32 %v1742_v29, %v1500_v0  ;;  %2056 = vmatpush.bf16.msra.mxu0 %v7961_v48  ;;  %2069 = vmatpush.bf16.msra.mxu1 %v7965_v52  ;;  %v1752_v51 = vsel %vm1751_vm5, %v7109_v54, %v1748_v14  ;;  %v10256_v54 = vld [vmem:[#allocation26_spill] sm:$0xff] }
 0x38e   :  { %2082 = vmatpush.bf16.msra.mxu2 %v7967_v53  ;;  %2095 = vmatpush.bf16.msrb.mxu3 %v8014_v16  ;;  %v1757_v34 = vsel %vm1754_vm7, %v1756_v18, %v1752_v51  ;;  %v10259_v51 = vld [vmem:[#allocation50_spill] sm:$0xff] }
 0x38f   :  { %v8561_v30 = vadd.f32 %v1761_v33, %v1760_v35  ;;  %v10258_v33 = vld [vmem:[#allocation56_spill] sm:$0xff]  ;;  %v436_v18 = vadd.f32 %v10259_v51, %v8113_v4 }
 0x391   :  { %7112 = vtanh.f32 %v8561_v30 }
 0x397   :  { %v7113_v59 = vpop.eup %7112 }
 0x398   :  { %v1764_v19 = vmul.f32 %v7113_v59, %v1757_v34  ;;  %v10260_v59 = vld [vmem:[#allocation51_spill] sm:$0xff] }
 0x399   :  { %v465_v34 = vadd.f32 %v10260_v59, %v10241_v28 }
 0x39a   :  { %v1771_v26 = vmul.f32 %v8570_v13, %v1764_v19 }
 0x39c   :  { %1776 = vst.msk [vmem:[#allocation4 + $0x20] sm:$0xff] %vm662_vm6, %v1771_v26  ;;  %v1845_v36 = vpack.c.bf16 %v1771_v26, %v1771_v26  ;;  %v10261_v26 = vld [vmem:[#allocation53_spill] sm:$0xff] }
 0x39e   :  { %6433 = vmatmul.msk.bf16.vlgmr.msrb.gmra.mxu0 %vm662_vm6, %v1845_v36  ;;  %6434 = vmatmul.msk.bf16.vlgmr.msrb.gmra.mxu1 %vm662_vm6, %v1845_v36 }
 0x39f   :  { %6435 = vmatmul.msk.bf16.vlgmr.msrb.gmra.mxu2 %vm662_vm6, %v1845_v36  ;;  %6436 = vmatmul.msk.bf16.vlgmr.msra.gmra.mxu3 %vm662_vm6, %v1845_v36  ;;  %v494_v36 = vadd.f32 %v10261_v26, %v10244_v57 }
 0x3a0   :  { %2119 = vmatpush.bf16.msrb.mxu0 %v7983_v60  ;;  %2132 = vmatpush.bf16.msrb.mxu1 %v7985_v62 }
 0x3a1   :  { %2145 = vmatpush.bf16.msrb.mxu2 %v8001_v7  ;;  %2158 = vmatpush.bf16.msra.mxu3 %v8075_v38 }
 0x3a4   :  { %2120 = vmatpush.bf16.msrb.mxu0 %v7997_v2  ;;  %2133 = vmatpush.bf16.msrb.mxu1 %v7999_v6 }
 0x3a5   :  { %2146 = vmatpush.bf16.msrb.mxu2 %v8006_v10  ;;  %2159 = vmatpush.bf16.msra.mxu3 %v8088_v50 }
 0x404   :  { %v1794_v5 = vpop.f32.mrf.mxu0  ;;  %v1807_v1 = vpop.f32.mrf.mxu1 }
 0x405   :  { %v1837_v55 = vadd.f32 %v1794_v5, %v10255_v61  ;;  %v1838_v42 = vadd.f32 %v1807_v1, %v10256_v54 }
 0x407   :  { %v6437_v41 = vmul.f32 -1.442695, %v1837_v55  ;;  %v6438_v3 = vmul.f32 -1.442695, %v1838_v42 }
 0x409   :  { %7114 = vpow2.f32 %v6437_v41 }
 0x40a   :  { %7116 = vpow2.f32 %v6438_v3 }
 0x40b   :  { %v1820_v32 = vpop.f32.mrf.mxu2  ;;  %v1833_v45 = vpop.f32.mrf.mxu3 }
 0x40c   :  { %v1839_v40 = vadd.f32 %v1820_v32, %v10257_v46  ;;  %v1796_v20 = vpop.f32.mrf.mxu0  ;;  %v1809_v12 = vpop.f32.mrf.mxu1  ;;  %v1840_v35 = vadd.f32 %v1833_v45, %v10258_v33 }
 0x40e   :  { %v6439_v37 = vmul.f32 -1.442695, %v1839_v40 }
 0x40f   :  { %v7115_v9 = vpop.eup %7114 }
 0x410   :  { %v7117_v23 = vpop.eup %7116  ;;  %v1914_v11 = vadd.f32 1.0, %v7115_v9  ;;  %7118 = vpow2.f32 %v6439_v37  ;;  %v1770_v9 = vmul.f32 %v8537_v8, %v8521_v15 }
 0x411   :  { %v1915_v0 = vadd.f32 1.0, %v7117_v23 }
 0x412   :  { %7120 = vrcp.f32 %v1914_v11  ;;  %v1926_v1 = vand.u32 2147483647, %v1914_v11  ;;  %v1928_v42 = vand.u32 2147483648, %v1914_v11  ;;  %vm1922_vm11 = vweird.f32 %v1914_v11 }
 0x413   :  { %7122 = vrcp.f32 %v1915_v0  ;;  %v1822_v25 = vpop.f32.mrf.mxu2  ;;  %v1835_v31 = vpop.f32.mrf.mxu3  ;;  %v1943_v32 = vand.u32 2147483648, %v1915_v0  ;;  %v1941_v46 = vand.u32 2147483647, %v1915_v0  ;;  %vm1937_vm10 = vweird.f32 %v1915_v0 }
 0x414   :  { %v1929_v31 = vor.u32 1.1754944e-38, %v1928_v42  ;;  %vm1927_vm14 = vcmp.eq.f32.partialorder %v1926_v1, 8.507059e+37 }
 0x415   :  { %vm1942_vm15 = vcmp.eq.f32.partialorder %v1941_v46, 8.507059e+37 }
 0x416   :  { %v7119_v58 = vpop.eup %7118 }
 0x417   :  { %v8589_v29 = vadd.f32 1.0, %v7119_v58 }
 0x418   :  { %v7121_v14 = vpop.eup %7120 }
 0x419   :  { %v7123_v27 = vpop.eup %7122  ;;  %v1918_v47 = vmul.f32 %v7121_v14, %v1914_v11  ;;  %7124 = vrcp.f32 %v8589_v29  ;;  %vm1923_vm8 = vweird.f32 %v7121_v14  ;;  %vm1952_vm1 = vweird.f32 %v8589_v29 }
 0x41a   :  { %v1933_v19 = vmul.f32 %v7123_v27, %v1915_v0  ;;  %7126 = vtanh.f32 %v1840_v35  ;;  %vm1938_vm9 = vweird.f32 %v7123_v27  ;;  %vm1924_vm12 = vmor %vm1922_vm11, %vm1923_vm8  ;;  %v1944_v35 = vor.u32 1.1754944e-38, %v1943_v32 }
 0x41b   :  { %v1919_v5 = vsub.f32 1.0, %v1918_v47  ;;  %v1858_v61 = vpop.f32.mrf.mxu0  ;;  %v1871_v55 = vpop.f32.mrf.mxu1  ;;  %vm1939_vm13 = vmor %vm1937_vm10, %vm1938_vm9 }
 0x41c   :  { %v1934_v54 = vsub.f32 1.0, %v1933_v19  ;;  %v1901_v41 = vadd.f32 %v1858_v61, %v436_v18  ;;  %v1902_v3 = vadd.f32 %v1871_v55, %v465_v34 }
 0x41d   :  { %v1920_v45 = vmul.f32 %v7121_v14, %v1919_v5 }
 0x41e   :  { %v1935_v40 = vmul.f32 %v7123_v27, %v1934_v54  ;;  %v6440_v20 = vmul.f32 -1.442695, %v1901_v41  ;;  %v6441_v12 = vmul.f32 -1.442695, %v1902_v3 }
 0x41f   :  { %v7125_v37 = vpop.eup %7124  ;;  %v1921_v23 = vadd.f32 %v7121_v14, %v1920_v45 }
 0x420   :  { %v1948_v25 = vmul.f32 %v7125_v37, %v8589_v29  ;;  %v1936_v58 = vadd.f32 %v7123_v27, %v1935_v40  ;;  %7128 = vpow2.f32 %v6440_v20  ;;  %v7127_v33 = vpop.eup %7126  ;;  %vm1953_vm0 = vweird.f32 %v7125_v37 }
 0x421   :  { %v1925_v47 = vsel %vm1924_vm12, %v7121_v14, %v1921_v23  ;;  %7130 = vpow2.f32 %v6441_v12  ;;  %vm1954_vm2 = vmor %vm1952_vm1, %vm1953_vm0 }
 0x422   :  { %v1949_v51 = vsub.f32 1.0, %v1948_v25  ;;  %v1930_v18 = vsel %vm1927_vm14, %v1929_v31, %v1925_v47  ;;  %v1940_v59 = vsel %vm1939_vm13, %v7123_v27, %v1936_v58  ;;  %v1884_v15 = vpop.f32.mrf.mxu2  ;;  %v1897_v0 = vpop.f32.mrf.mxu3  ;;  %v1958_v27 = vand.u32 2147483648, %v8589_v29 }
 0x423   :  { %v1945_v34 = vsel %vm1942_vm15, %v1944_v35, %v1940_v59  ;;  %v1964_v11 = vmul.f32 %v7127_v33, %v1930_v18  ;;  %v1903_v19 = vadd.f32 %v1884_v15, %v494_v36  ;;  %v1860_v26 = vpop.f32.mrf.mxu0  ;;  %v1873_v5 = vpop.f32.mrf.mxu1  ;;  %v1956_v36 = vand.u32 2147483647, %v8589_v29 }
 0x424   :  { %v1950_v61 = vmul.f32 %v7125_v37, %v1949_v51  ;;  %v1963_v55 = vmul.f32 %v1945_v34, %v1770_v9  ;;  %v1959_v20 = vor.u32 1.1754944e-38, %v1958_v27  ;;  %v10262_v9 = vld [vmem:[#allocation66_spill] sm:$0xff]  ;;  %v1772_v27 = vmul.f32 %v8570_v13, %v8561_v30 }
 0x425   :  { %v6442_v54 = vmul.f32 -1.442695, %v1903_v19  ;;  %v523_v23 = vadd.f32 %v10262_v9, %v8208_v49  ;;  %vm1957_vm3 = vcmp.eq.f32.partialorder %v1956_v36, 8.507059e+37 }
 0x426   :  { %v7129_v42 = vpop.eup %7128  ;;  %v8602_v41 = vadd.f32 %v1964_v11, %v1963_v55  ;;  %v1951_v1 = vadd.f32 %v7125_v37, %v1950_v61 }
 0x427   :  { %v7131_v14 = vpop.eup %7130  ;;  %v1977_v3 = vadd.f32 1.0, %v7129_v42  ;;  %7132 = vpow2.f32 %v6442_v54  ;;  %v1904_v29 = vadd.f32 %v1897_v0, %v523_v23 }
 0x428   :  { %7134 = vtanh.f32 %v8602_v41  ;;  %v8606_v32 = vadd.f32 1.0, %v7131_v14  ;;  %v1955_v40 = vsel %vm1954_vm2, %v7125_v37, %v1951_v1 }
 0x429   :  { %7136 = vrcp.f32 %v1977_v3  ;;  %v1960_v31 = vsel %vm1957_vm3, %v1959_v20, %v1955_v40  ;;  %v1991_v11 = vand.u32 2147483648, %v1977_v3  ;;  %v1989_v0 = vand.u32 2147483647, %v1977_v3 }
 0x42a   :  { %7138 = vrcp.f32 %v8606_v32  ;;  %v1886_v45 = vpop.f32.mrf.mxu2  ;;  %v1899_v46 = vpop.f32.mrf.mxu3  ;;  %v2006_v19 = vand.u32 2147483648, %v8606_v32  ;;  %v2004_v61 = vand.u32 2147483647, %v8606_v32  ;;  %vm1985_vm7 = vweird.f32 %v1977_v3 }
 0x42b   :  { %vm2000_vm8 = vweird.f32 %v8606_v32  ;;  %v1992_v14 = vor.u32 1.1754944e-38, %v1991_v11  ;;  %vm1990_vm11 = vcmp.eq.f32.partialorder %v1989_v0, 8.507059e+37 }
 0x42c   :  { %vm2005_vm12 = vcmp.eq.f32.partialorder %v2004_v61, 8.507059e+37 }
 0x42d   :  { %v7133_v12 = vpop.eup %7132 }
 0x42e   :  { %v7135_v25 = vpop.eup %7134  ;;  %v8613_v58 = vadd.f32 1.0, %v7133_v12 }
 0x42f   :  { %v7137_v33 = vpop.eup %7136  ;;  %v1967_v35 = vmul.f32 %v7135_v25, %v1960_v31 }
 0x430   :  { %v7139_v47 = vpop.eup %7138  ;;  %v1981_v51 = vmul.f32 %v7137_v33, %v1977_v3  ;;  %7140 = vrcp.f32 %v8613_v58  ;;  %vm1986_vm4 = vweird.f32 %v7137_v33  ;;  %v2007_v3 = vor.u32 1.1754944e-38, %v2006_v19 }
 0x431   :  { %v2033_v18 = vmul.f32 %v8570_v13, %v1967_v35  ;;  %v1996_v37 = vmul.f32 %v7139_v47, %v8606_v32  ;;  %7142 = vtanh.f32 %v1904_v29  ;;  %vm2001_vm5 = vweird.f32 %v7139_v47  ;;  %vm1987_vm9 = vmor %vm1985_vm7, %vm1986_vm4 }
 0x432   :  { %v1982_v59 = vsub.f32 1.0, %v1981_v51  ;;  %vm2002_vm10 = vmor %vm2000_vm8, %vm2001_vm5  ;;  %v2021_v31 = vand.u32 2147483648, %v8613_v58  ;;  %vm2015_vm14 = vweird.f32 %v8613_v58 }
 0x433   :  { %2038 = vst.msk [vmem:[#allocation3 + $0x20] sm:$0xff] %vm662_vm6, %v2033_v18  ;;  %v2045_v15 = vpack.c.bf16 %v2033_v18, %v2033_v18  ;;  %v1997_v34 = vsub.f32 1.0, %v1996_v37 }
 0x434   :  { %v1983_v26 = vmul.f32 %v7137_v33, %v1982_v59  ;;  %v2022_v29 = vor.u32 1.1754944e-38, %v2021_v31 }
 0x435   :  { %v1998_v5 = vmul.f32 %v7139_v47, %v1997_v34  ;;  %6445 = vmatmul.msk.bf16.vlgmr.msra.gmra.mxu0 %vm662_vm6, %v2045_v15  ;;  %6446 = vmatmul.msk.bf16.vlgmr.msra.gmra.mxu1 %vm662_vm6, %v2045_v15  ;;  %v10264_v34 = vld [vmem:[#allocation30_spill] sm:$0xff] }
 0x436   :  { %v7141_v55 = vpop.eup %7140  ;;  %v1984_v54 = vadd.f32 %v7137_v33, %v1983_v26  ;;  %6447 = vmatmul.msk.bf16.vlgmr.msra.gmra.mxu2 %vm662_vm6, %v2045_v15  ;;  %6448 = vmatmul.msk.bf16.vlgmr.msrb.gmra.mxu3 %vm662_vm6, %v2045_v15  ;;  %v325_v11 = vadd.f32 %v10264_v34, %v8037_v21 }
 0x437   :  { %v2011_v42 = vmul.f32 %v7141_v55, %v8613_v58  ;;  %v1999_v1 = vadd.f32 %v7139_v47, %v1998_v5  ;;  %2319 = vmatpush.bf16.msra.mxu0 %v7954_v39  ;;  %2332 = vmatpush.bf16.msra.mxu1 %v7956_v43  ;;  %v7143_v32 = vpop.eup %7142  ;;  %vm2016_vm13 = vweird.f32 %v7141_v55 }
 0x438   :  { %v1988_v36 = vsel %vm1987_vm9, %v7137_v33, %v1984_v54  ;;  %2345 = vmatpush.bf16.msra.mxu2 %v7958_v44  ;;  %2358 = vmatpush.bf16.msrb.mxu3 %v7980_v56  ;;  %v2019_v33 = vand.u32 2147483647, %v8613_v58  ;;  %vm2017_vm15 = vmor %vm2015_vm14, %vm2016_vm13  ;;  %v10263_v58 = vld [vmem:[#allocation29_spill] sm:$0xff]  ;;  %v10265_v54 = vld [vmem:[#allocation31_spill] sm:$0xff] }
 0x439   :  { %v2012_v45 = vsub.f32 1.0, %v2011_v42  ;;  %v1993_v46 = vsel %vm1990_vm11, %v1992_v14, %v1988_v36  ;;  %v2003_v40 = vsel %vm2002_vm10, %v7139_v47, %v1999_v1  ;;  %v354_v15 = vadd.f32 %v10263_v58, %v8029_v17 }
 0x43a   :  { %v2008_v20 = vsel %vm2005_vm12, %v2007_v3, %v2003_v40  ;;  %v2027_v12 = vmul.f32 %v7143_v32, %v1993_v46  ;;  %vm2020_vm0 = vcmp.eq.f32.partialorder %v2019_v33, 8.507059e+37  ;;  %v383_v42 = vadd.f32 %v10265_v54, %v8043_v22 }
 0x43b   :  { %v2013_v9 = vmul.f32 %v7141_v55, %v2012_v45  ;;  %v2026_v23 = vmul.f32 %v2008_v20, %v1772_v27  ;;  %2320 = vmatpush.bf16.msra.mxu0 %v7961_v48  ;;  %2333 = vmatpush.bf16.msra.mxu1 %v7965_v52 }
 0x43c   :  { %2346 = vmatpush.bf16.msra.mxu2 %v7967_v53  ;;  %2359 = vmatpush.bf16.msrb.mxu3 %v8014_v16 }
 0x43d   :  { %v8638_v30 = vadd.f32 %v2027_v12, %v2026_v23  ;;  %v2014_v25 = vadd.f32 %v7141_v55, %v2013_v9  ;;  %v10266_v23 = vld [vmem:[#allocation59_spill] sm:$0xff] }
 0x43f   :  { %7144 = vtanh.f32 %v8638_v30  ;;  %v2018_v35 = vsel %vm2017_vm15, %v7141_v55, %v2014_v25  ;;  %v412_v25 = vadd.f32 %v10266_v23, %v8156_v63 }
 0x440   :  { %v2023_v51 = vsel %vm2020_vm0, %v2022_v29, %v2018_v35 }
 0x445   :  { %v7145_v47 = vpop.eup %7144 }
 0x446   :  { %v2030_v18 = vmul.f32 %v7145_v47, %v2023_v51 }
 0x448   :  { %v2035_v37 = vmul.f32 %v8537_v8, %v2030_v18 }
 0x44a   :  { %2040 = vst.msk [vmem:[#allocation4 + $0x18] sm:$0xff] %vm662_vm6, %v2035_v37  ;;  %v2109_v59 = vpack.c.bf16 %v2035_v37, %v2035_v37 }
 0x44c   :  { %6449 = vmatmul.msk.bf16.vlgmr.msrb.gmra.mxu0 %vm662_vm6, %v2109_v59  ;;  %6450 = vmatmul.msk.bf16.vlgmr.msrb.gmra.mxu1 %vm662_vm6, %v2109_v59 }
 0x44d   :  { %6451 = vmatmul.msk.bf16.vlgmr.msrb.gmra.mxu2 %vm662_vm6, %v2109_v59  ;;  %6452 = vmatmul.msk.bf16.vlgmr.msra.gmra.mxu3 %vm662_vm6, %v2109_v59 }
 0x44e   :  { %2383 = vmatpush.bf16.msrb.mxu0 %v7983_v60  ;;  %2396 = vmatpush.bf16.msrb.mxu1 %v7985_v62 }
 0x44f   :  { %2409 = vmatpush.bf16.msrb.mxu2 %v8001_v7  ;;  %2422 = vmatpush.bf16.msra.mxu3 %v8075_v38 }
 0x452   :  { %2384 = vmatpush.bf16.msrb.mxu0 %v7997_v2  ;;  %2397 = vmatpush.bf16.msrb.mxu1 %v7999_v6 }
 0x453   :  { %2410 = vmatpush.bf16.msrb.mxu2 %v8006_v10  ;;  %2423 = vmatpush.bf16.msra.mxu3 %v8088_v50 }
 0x4b2   :  { %v2058_v19 = vpop.f32.mrf.mxu0  ;;  %v2071_v26 = vpop.f32.mrf.mxu1 }
 0x4b3   :  { %v2101_v0 = vadd.f32 %v2058_v19, %v325_v11  ;;  %v2102_v5 = vadd.f32 %v2071_v26, %v354_v15  ;;  %v10267_v19 = vld [vmem:[#allocation46_spill] sm:$0xff] }
 0x4b5   :  { %v6453_v61 = vmul.f32 -1.442695, %v2101_v0  ;;  %v6454_v55 = vmul.f32 -1.442695, %v2102_v5  ;;  %v10268_v0 = vld [vmem:[#allocation47_spill] sm:$0xff] }
 0x4b7   :  { %7146 = vpow2.f32 %v6453_v61 }
 0x4b8   :  { %7148 = vpow2.f32 %v6454_v55 }
 0x4b9   :  { %v2084_v14 = vpop.f32.mrf.mxu2  ;;  %v2097_v1 = vpop.f32.mrf.mxu3 }
 0x4ba   :  { %v2103_v27 = vadd.f32 %v2084_v14, %v383_v42  ;;  %v2060_v3 = vpop.f32.mrf.mxu0  ;;  %v2073_v36 = vpop.f32.mrf.mxu1  ;;  %v2104_v35 = vadd.f32 %v2097_v1, %v412_v25 }
 0x4bb   :  { %v2034_v3 = vmul.f32 %v8570_v13, %v8602_v41 }
 0x4bc   :  { %v6455_v32 = vmul.f32 -1.442695, %v2103_v27 }
 0x4bd   :  { %v7147_v45 = vpop.eup %7146 }
 0x4be   :  { %v7149_v46 = vpop.eup %7148  ;;  %v2178_v40 = vadd.f32 1.0, %v7147_v45  ;;  %7150 = vpow2.f32 %v6455_v32 }
 0x4bf   :  { %v2179_v20 = vadd.f32 1.0, %v7149_v46 }
 0x4c0   :  { %7152 = vrcp.f32 %v2178_v40  ;;  %v2190_v59 = vand.u32 2147483647, %v2178_v40  ;;  %v2192_v11 = vand.u32 2147483648, %v2178_v40  ;;  %vm2186_vm4 = vweird.f32 %v2178_v40 }
 0x4c1   :  { %7154 = vrcp.f32 %v2179_v20  ;;  %v2086_v12 = vpop.f32.mrf.mxu2  ;;  %v2099_v9 = vpop.f32.mrf.mxu3  ;;  %v2207_v61 = vand.u32 2147483648, %v2179_v20  ;;  %v2205_v54 = vand.u32 2147483647, %v2179_v20  ;;  %vm2201_vm3 = vweird.f32 %v2179_v20 }
 0x4c2   :  { %v2193_v45 = vor.u32 1.1754944e-38, %v2192_v11  ;;  %vm2191_vm8 = vcmp.eq.f32.partialorder %v2190_v59, 8.507059e+37 }
 0x4c3   :  { %v2208_v9 = vor.u32 1.1754944e-38, %v2207_v61  ;;  %vm2206_vm9 = vcmp.eq.f32.partialorder %v2205_v54, 8.507059e+37 }
 0x4c4   :  { %v7151_v31 = vpop.eup %7150 }
 0x4c5   :  { %v8666_v33 = vadd.f32 1.0, %v7151_v31 }
 0x4c6   :  { %v7153_v29 = vpop.eup %7152 }
 0x4c7   :  { %v7155_v47 = vpop.eup %7154  ;;  %v2182_v51 = vmul.f32 %v7153_v29, %v2178_v40  ;;  %7156 = vrcp.f32 %v8666_v33  ;;  %vm2187_vm1 = vweird.f32 %v7153_v29  ;;  %vm2216_vm11 = vweird.f32 %v8666_v33 }
 0x4c8   :  { %v2197_v18 = vmul.f32 %v7155_v47, %v2179_v20  ;;  %7158 = vtanh.f32 %v2104_v35  ;;  %vm2202_vm2 = vweird.f32 %v7155_v47  ;;  %vm2188_vm5 = vmor %vm2186_vm4, %vm2187_vm1  ;;  %v2220_v61 = vand.u32 2147483647, %v8666_v33 }
 0x4c9   :  { %v2183_v37 = vsub.f32 1.0, %v2182_v51  ;;  %v2122_v58 = vpop.f32.mrf.mxu0  ;;  %v2135_v15 = vpop.f32.mrf.mxu1  ;;  %vm2203_vm7 = vmor %vm2201_vm3, %vm2202_vm2  ;;  %v10269_v51 = vld [vmem:[#allocation49_spill] sm:$0xff] }
 0x4ca   :  { %v2198_v34 = vsub.f32 1.0, %v2197_v18  ;;  %v2165_v26 = vadd.f32 %v2122_v58, %v10267_v19  ;;  %v2166_v5 = vadd.f32 %v2135_v15, %v10268_v0  ;;  %vm2221_vm13 = vcmp.eq.f32.partialorder %v2220_v61, 8.507059e+37 }
 0x4cb   :  { %v2184_v55 = vmul.f32 %v7153_v29, %v2183_v37 }
 0x4cc   :  { %v2199_v42 = vmul.f32 %v7155_v47, %v2198_v34  ;;  %v6456_v14 = vmul.f32 -1.442695, %v2165_v26  ;;  %v6457_v1 = vmul.f32 -1.442695, %v2166_v5 }
 0x4cd   :  { %v7157_v27 = vpop.eup %7156  ;;  %v2185_v36 = vadd.f32 %v7153_v29, %v2184_v55 }
 0x4ce   :  { %v2212_v32 = vmul.f32 %v7157_v27, %v8666_v33  ;;  %v2200_v46 = vadd.f32 %v7155_v47, %v2199_v42  ;;  %7160 = vpow2.f32 %v6456_v14  ;;  %v7159_v12 = vpop.eup %7158  ;;  %vm2217_vm10 = vweird.f32 %v7157_v27 }
 0x4cf   :  { %v2189_v23 = vsel %vm2188_vm5, %v7153_v29, %v2185_v36  ;;  %7162 = vpow2.f32 %v6457_v1  ;;  %vm2218_vm12 = vmor %vm2216_vm11, %vm2217_vm10 }
 0x4d0   :  { %v2213_v25 = vsub.f32 1.0, %v2212_v32  ;;  %v2194_v31 = vsel %vm2191_vm8, %v2193_v45, %v2189_v23  ;;  %v2204_v35 = vsel %vm2203_vm7, %v7155_v47, %v2200_v46  ;;  %v2148_v13 = vpop.f32.mrf.mxu2  ;;  %v2161_v41 = vpop.f32.mrf.mxu3  ;;  %v2222_v47 = vand.u32 2147483648, %v8666_v33 }
 0x4d1   :  { %v2209_v20 = vsel %vm2206_vm9, %v2208_v9, %v2204_v35  ;;  %v2228_v40 = vmul.f32 %v7159_v12, %v2194_v31  ;;  %v2167_v18 = vadd.f32 %v2148_v13, %v10269_v51  ;;  %v2124_v37 = vpop.f32.mrf.mxu0  ;;  %v2137_v58 = vpop.f32.mrf.mxu1  ;;  %v10270_v12 = vld [vmem:[#allocation65_spill] sm:$0xff] }
 0x4d2   :  { %v2214_v15 = vmul.f32 %v7157_v27, %v2213_v25  ;;  %v2227_v34 = vmul.f32 %v2209_v20, %v2034_v3  ;;  %v2223_v14 = vor.u32 1.1754944e-38, %v2222_v47  ;;  %v2168_v9 = vadd.f32 %v2161_v41, %v10270_v12 }
 0x4d3   :  { %v6458_v11 = vmul.f32 -1.442695, %v2167_v18 }
 0x4d4   :  { %v7161_v19 = vpop.eup %7160  ;;  %v8675_v26 = vadd.f32 %v2228_v40, %v2227_v34  ;;  %v2215_v59 = vadd.f32 %v7157_v27, %v2214_v15 }
 0x4d5   :  { %v7163_v29 = vpop.eup %7162  ;;  %v2241_v0 = vadd.f32 1.0, %v7161_v19  ;;  %7164 = vpow2.f32 %v6458_v11  ;;  %v2036_v19 = vmul.f32 %v8537_v8, %v8638_v30  ;;  %v6460_v8 = vld [vmem:[%s10151_s1 + $0x10] sm:$0xff] }
 0x4d6   :  { %7166 = vtanh.f32 %v8675_v26  ;;  %v2242_v5 = vadd.f32 1.0, %v7163_v29  ;;  %v2219_v42 = vsel %vm2218_vm12, %v7157_v27, %v2215_v59 }
 0x4d7   :  { %7168 = vrcp.f32 %v2241_v0  ;;  %v2224_v36 = vsel %vm2221_vm13, %v2223_v14, %v2219_v42  ;;  %v2255_v20 = vand.u32 2147483648, %v2241_v0  ;;  %v2253_v18 = vand.u32 2147483647, %v2241_v0 }
 0x4d8   :  { %7170 = vrcp.f32 %v2242_v5  ;;  %v2150_v55 = vpop.f32.mrf.mxu2  ;;  %v2163_v54 = vpop.f32.mrf.mxu3  ;;  %v2270_v40 = vand.u32 2147483648, %v2242_v5  ;;  %v2268_v41 = vand.u32 2147483647, %v2242_v5  ;;  %vm2249_vm0 = vweird.f32 %v2241_v0 }
 0x4d9   :  { %vm2264_vm1 = vweird.f32 %v2242_v5  ;;  %v2256_v34 = vor.u32 1.1754944e-38, %v2255_v20  ;;  %vm2254_vm4 = vcmp.eq.f32.partialorder %v2253_v18, 8.507059e+37  ;;  %v10274_v18 = vld [vmem:[#allocation61_spill] sm:$0xff] }
 0x4da   :  { %v2271_v29 = vor.u32 1.1754944e-38, %v2270_v40  ;;  %vm2269_vm5 = vcmp.eq.f32.partialorder %v2268_v41, 8.507059e+37 }
 0x4db   :  { %v7165_v1 = vpop.eup %7164 }
 0x4dc   :  { %v7167_v3 = vpop.eup %7166  ;;  %v8681_v32 = vadd.f32 1.0, %v7165_v1 }
 0x4dd   :  { %v7169_v45 = vpop.eup %7168  ;;  %v2231_v46 = vmul.f32 %v7167_v3, %v2224_v36 }
 0x4de   :  { %v7171_v23 = vpop.eup %7170  ;;  %v2245_v25 = vmul.f32 %v7169_v45, %v2241_v0  ;;  %7172 = vrcp.f32 %v8681_v32  ;;  %vm2250_vm14 = vweird.f32 %v7169_v45  ;;  %v2285_v30 = vand.u32 2147483648, %v8681_v32 }
 0x4df   :  { %v2297_v33 = vmul.f32 %v8489_v24, %v2231_v46  ;;  %v2260_v31 = vmul.f32 %v7171_v23, %v2242_v5  ;;  %7174 = vtanh.f32 %v2168_v9  ;;  %vm2265_vm15 = vweird.f32 %v7171_v23  ;;  %vm2251_vm2 = vmor %vm2249_vm0, %vm2250_vm14  ;;  %v10271_v46 = vld [vmem:[#allocation33_spill] sm:$0xff]  ;;  %v10272_v9 = vld [vmem:[#allocation32_spill] sm:$0xff] }
 0x4e0   :  { %v2246_v35 = vsub.f32 1.0, %v2245_v25  ;;  %vm2266_vm3 = vmor %vm2264_vm1, %vm2265_vm15  ;;  %vm2279_vm8 = vweird.f32 %v8681_v32  ;;  %v2286_v14 = vor.u32 1.1754944e-38, %v2285_v30  ;;  %v10273_v25 = vld [vmem:[#allocation34_spill] sm:$0xff] }
 0x4e1   :  { %2302 = vst.msk [vmem:[#allocation3 + $0x28] sm:$0xff] %vm662_vm6, %v2297_v33  ;;  %v2309_v27 = vpack.c.bf16 %v2297_v33, %v2297_v33  ;;  %v2261_v13 = vsub.f32 1.0, %v2260_v31 }
 0x4e2   :  { %v2247_v51 = vmul.f32 %v7169_v45, %v2246_v35 }
 0x4e3   :  { %v2262_v37 = vmul.f32 %v7171_v23, %v2261_v13  ;;  %6461 = vmatmul.msk.bf16.vlgmr.msra.gmra.mxu0 %vm662_vm6, %v2309_v27  ;;  %6462 = vmatmul.msk.bf16.vlgmr.msra.gmra.mxu1 %vm662_vm6, %v2309_v27 }
 0x4e4   :  { %v7173_v24 = vpop.eup %7172  ;;  %v2248_v58 = vadd.f32 %v7169_v45, %v2247_v51  ;;  %6463 = vmatmul.msk.bf16.vlgmr.msra.gmra.mxu2 %vm662_vm6, %v2309_v27  ;;  %6464 = vmatmul.msk.bf16.vlgmr.msrb.gmra.mxu3 %vm662_vm6, %v2309_v27 }
 0x4e5   :  { %v2275_v15 = vmul.f32 %v7173_v24, %v8681_v32  ;;  %v2263_v11 = vadd.f32 %v7171_v23, %v2262_v37  ;;  %2583 = vmatpush.bf16.msra.mxu0 %v7954_v39  ;;  %2596 = vmatpush.bf16.msra.mxu1 %v7956_v43  ;;  %v7175_v0 = vpop.eup %7174  ;;  %vm2280_vm7 = vweird.f32 %v7173_v24 }
 0x4e6   :  { %v2252_v59 = vsel %vm2251_vm2, %v7169_v45, %v2248_v58  ;;  %2609 = vmatpush.bf16.msra.mxu2 %v7958_v44  ;;  %2622 = vmatpush.bf16.msrb.mxu3 %v7980_v56  ;;  %vm2281_vm9 = vmor %vm2279_vm8, %vm2280_vm7 }
 0x4e7   :  { %v2276_v47 = vsub.f32 1.0, %v2275_v15  ;;  %v2257_v5 = vsel %vm2254_vm4, %v2256_v34, %v2252_v59  ;;  %v2267_v61 = vsel %vm2266_vm3, %v7171_v23, %v2263_v11  ;;  %v10275_v15 = vld [vmem:[#allocation43_spill] sm:$0xff]  ;;  %v10276_v11 = vld [vmem:[#allocation44_spill] sm:$0xff]  ;;  %v10277_v59 = vld [vmem:[#allocation45_spill] sm:$0xff] }
 0x4e8   :  { %v2272_v39 = vsel %vm2269_vm5, %v2271_v29, %v2267_v61  ;;  %v2291_v55 = vmul.f32 %v7175_v0, %v2257_v5  ;;  %v431_v34 = vadd.f32 %v10275_v15, %v8113_v4  ;;  %v489_v0 = vadd.f32 %v10277_v59, %v10244_v57  ;;  %v7546_v57 = vld [vmem:[%s10151_s1 + $0x28] sm:$0xff] }
 0x4e9   :  { %v2277_v43 = vmul.f32 %v7173_v24, %v2276_v47  ;;  %v2290_v54 = vmul.f32 %v2272_v39, %v2036_v19  ;;  %2584 = vmatpush.bf16.msra.mxu0 %v7961_v48  ;;  %2597 = vmatpush.bf16.msra.mxu1 %v7965_v52  ;;  %v2283_v48 = vand.u32 2147483647, %v8681_v32  ;;  %v460_v19 = vadd.f32 %v10276_v11, %v10241_v28  ;;  %v10278_v11 = vld [vmem:[#allocation64_spill] sm:$0xff] }
 0x4ea   :  { %2610 = vmatpush.bf16.msra.mxu2 %v7967_v53  ;;  %2623 = vmatpush.bf16.msrb.mxu3 %v8014_v16 }
 0x4eb   :  { %v2292_v44 = vadd.f32 %v2291_v55, %v2290_v54  ;;  %v2278_v56 = vadd.f32 %v7173_v24, %v2277_v43  ;;  %vm2284_vm10 = vcmp.eq.f32.partialorder %v2283_v48, 8.507059e+37 }
 0x4ed   :  { %7176 = vtanh.f32 %v2292_v44  ;;  %v8707_v42 = vmul.f32 %v6460_v8, %v2292_v44  ;;  %v2282_v52 = vsel %vm2281_vm9, %v7173_v24, %v2278_v56 }
 0x4ee   :  { %v2287_v53 = vsel %vm2284_vm10, %v2286_v14, %v2282_v52  ;;  %v2298_v14 = vmul.f32 %v7546_v57, %v8675_v26 }
 0x4f3   :  { %v7177_v1 = vpop.eup %7176 }
 0x4f4   :  { %v2294_v3 = vmul.f32 %v7177_v1, %v2287_v53 }
 0x4f6   :  { %v2299_v16 = vmul.f32 %v6460_v8, %v2294_v3 }
 0x4f8   :  { %2304 = vst.msk [vmem:[#allocation4 + $0x10] sm:$0xff] %vm662_vm6, %v2299_v16  ;;  %v2373_v36 = vpack.c.bf16 %v2299_v16, %v2299_v16 }
 0x4fa   :  { %6465 = vmatmul.msk.bf16.vlgmr.msrb.gmra.mxu0 %vm662_vm6, %v2373_v36  ;;  %6466 = vmatmul.msk.bf16.vlgmr.msrb.gmra.mxu1 %vm662_vm6, %v2373_v36 }
 0x4fb   :  { %6467 = vmatmul.msk.bf16.vlgmr.msrb.gmra.mxu2 %vm662_vm6, %v2373_v36  ;;  %6468 = vmatmul.msk.bf16.vlgmr.msra.gmra.mxu3 %vm662_vm6, %v2373_v36 }
 0x4fc   :  { %2647 = vmatpush.bf16.msrb.mxu0 %v7983_v60  ;;  %2660 = vmatpush.bf16.msrb.mxu1 %v7985_v62 }
 0x4fd   :  { %2673 = vmatpush.bf16.msrb.mxu2 %v8001_v7  ;;  %2686 = vmatpush.bf16.msra.mxu3 %v8075_v38 }
 0x500   :  { %2648 = vmatpush.bf16.msrb.mxu0 %v7997_v2  ;;  %2661 = vmatpush.bf16.msrb.mxu1 %v7999_v6 }
 0x501   :  { %2674 = vmatpush.bf16.msrb.mxu2 %v8006_v10  ;;  %2687 = vmatpush.bf16.msra.mxu3 %v8088_v50 }
 0x560   :  { %v2322_v32 = vpop.f32.mrf.mxu0  ;;  %v2335_v45 = vpop.f32.mrf.mxu1 }
 0x561   :  { %v2365_v12 = vadd.f32 %v2322_v32, %v10271_v46  ;;  %v2366_v60 = vadd.f32 %v2335_v45, %v10272_v9 }
 0x563   :  { %v6469_v23 = vmul.f32 -1.442695, %v2365_v12  ;;  %v6470_v62 = vmul.f32 -1.442695, %v2366_v60 }
 0x565   :  { %7178 = vpow2.f32 %v6469_v23 }
 0x566   :  { %7180 = vpow2.f32 %v6470_v62 }
 0x567   :  { %v2348_v7 = vpop.f32.mrf.mxu2  ;;  %v2361_v38 = vpop.f32.mrf.mxu3 }
 0x568   :  { %v2367_v2 = vadd.f32 %v2348_v7, %v10273_v25  ;;  %v2324_v33 = vpop.f32.mrf.mxu0  ;;  %v2337_v6 = vpop.f32.mrf.mxu1  ;;  %v2368_v37 = vadd.f32 %v2361_v38, %v10274_v18 }
 0x569   :  { %v6475_v6 = vld [vmem:[%s10151_s1 + $0x30] sm:$0xff] }
 0x56a   :  { %v6471_v31 = vmul.f32 -1.442695, %v2367_v2 }
 0x56b   :  { %v7179_v10 = vpop.eup %7178 }
 0x56c   :  { %v7181_v35 = vpop.eup %7180  ;;  %v2442_v50 = vadd.f32 1.0, %v7179_v10  ;;  %7182 = vpow2.f32 %v6471_v31 }
 0x56d   :  { %v2443_v27 = vadd.f32 1.0, %v7181_v35 }
 0x56e   :  { %7184 = vrcp.f32 %v2442_v50  ;;  %v2454_v5 = vand.u32 2147483647, %v2442_v50  ;;  %v2456_v43 = vand.u32 2147483648, %v2442_v50  ;;  %vm2450_vm14 = vweird.f32 %v2442_v50 }
 0x56f   :  { %7186 = vrcp.f32 %v2443_v27  ;;  %v2350_v13 = vpop.f32.mrf.mxu2  ;;  %v2363_v20 = vpop.f32.mrf.mxu3  ;;  %v2471_v44 = vand.u32 2147483648, %v2443_v27  ;;  %v2469_v4 = vand.u32 2147483647, %v2443_v27  ;;  %vm2465_vm13 = vweird.f32 %v2443_v27 }
 0x570   :  { %v2457_v3 = vor.u32 1.1754944e-38, %v2456_v43  ;;  %vm2455_vm1 = vcmp.eq.f32.partialorder %v2454_v5, 8.507059e+37 }
 0x571   :  { %v2472_v32 = vor.u32 1.1754944e-38, %v2471_v44  ;;  %vm2470_vm2 = vcmp.eq.f32.partialorder %v2469_v4, 8.507059e+37 }
 0x572   :  { %v7183_v40 = vpop.eup %7182 }
 0x573   :  { %v8727_v51 = vadd.f32 1.0, %v7183_v40 }
 0x574   :  { %v7185_v41 = vpop.eup %7184 }
 0x575   :  { %v7187_v24 = vpop.eup %7186  ;;  %v2446_v58 = vmul.f32 %v7185_v41, %v2442_v50  ;;  %7188 = vrcp.f32 %v8727_v51  ;;  %vm2451_vm11 = vweird.f32 %v7185_v41  ;;  %v2486_v20 = vand.u32 2147483648, %v8727_v51 }
 0x576   :  { %v2461_v29 = vmul.f32 %v7187_v24, %v2443_v27  ;;  %7190 = vtanh.f32 %v2368_v37  ;;  %vm2466_vm12 = vweird.f32 %v7187_v24  ;;  %vm2452_vm15 = vmor %vm2450_vm14, %vm2451_vm11  ;;  %vm2480_vm4 = vweird.f32 %v8727_v51 }
 0x577   :  { %v2447_v47 = vsub.f32 1.0, %v2446_v58  ;;  %v2386_v61 = vpop.f32.mrf.mxu0  ;;  %v2399_v39 = vpop.f32.mrf.mxu1  ;;  %vm2467_vm0 = vmor %vm2465_vm13, %vm2466_vm12  ;;  %v2484_v37 = vand.u32 2147483647, %v8727_v51  ;;  %v2487_v15 = vor.u32 1.1754944e-38, %v2486_v20  ;;  %v10280_v20 = vld [vmem:[#allocation36_spill] sm:$0xff] }
 0x578   :  { %v2462_v55 = vsub.f32 1.0, %v2461_v29  ;;  %v2429_v54 = vadd.f32 %v2386_v61, %v431_v34  ;;  %v2430_v8 = vadd.f32 %v2399_v39, %v460_v19  ;;  %v518_v19 = vadd.f32 %v10278_v11, %v8208_v49  ;;  %v10281_v11 = vld [vmem:[#allocation38_spill] sm:$0xff] }
 0x579   :  { %v2448_v56 = vmul.f32 %v7185_v41, %v2447_v47  ;;  %vm2485_vm7 = vcmp.eq.f32.partialorder %v2484_v37, 8.507059e+37 }
 0x57a   :  { %v2463_v30 = vmul.f32 %v7187_v24, %v2462_v55  ;;  %v6472_v28 = vmul.f32 -1.442695, %v2429_v54  ;;  %v6473_v48 = vmul.f32 -1.442695, %v2430_v8 }
 0x57b   :  { %v7189_v52 = vpop.eup %7188  ;;  %v2449_v1 = vadd.f32 %v7185_v41, %v2448_v56 }
 0x57c   :  { %v2476_v53 = vmul.f32 %v7189_v52, %v8727_v51  ;;  %v2464_v16 = vadd.f32 %v7187_v24, %v2463_v30  ;;  %7192 = vpow2.f32 %v6472_v28  ;;  %v7191_v36 = vpop.eup %7190  ;;  %vm2481_vm3 = vweird.f32 %v7189_v52 }
 0x57d   :  { %v2453_v45 = vsel %vm2452_vm15, %v7185_v41, %v2449_v1  ;;  %7194 = vpow2.f32 %v6473_v48  ;;  %vm2482_vm5 = vmor %vm2480_vm4, %vm2481_vm3 }
 0x57e   :  { %v2477_v46 = vsub.f32 1.0, %v2476_v53  ;;  %v2458_v12 = vsel %vm2455_vm1, %v2457_v3, %v2453_v45  ;;  %v2468_v9 = vsel %vm2467_vm0, %v7187_v24, %v2464_v16  ;;  %v2412_v26 = vpop.f32.mrf.mxu2  ;;  %v2425_v60 = vpop.f32.mrf.mxu3 }
 0x57f   :  { %v2473_v23 = vsel %vm2470_vm2, %v2472_v32, %v2468_v9  ;;  %v2492_v62 = vmul.f32 %v7191_v36, %v2458_v12  ;;  %v2431_v7 = vadd.f32 %v2412_v26, %v489_v0  ;;  %v2388_v38 = vpop.f32.mrf.mxu0  ;;  %v2401_v25 = vpop.f32.mrf.mxu1  ;;  %v2432_v61 = vadd.f32 %v2425_v60, %v518_v19 }
 0x580   :  { %v2478_v2 = vmul.f32 %v7189_v52, %v2477_v46  ;;  %v2491_v33 = vmul.f32 %v2473_v23, %v2298_v14  ;;  %v6476_v23 = vld [vmem:[%s10151_s1 + $0x8] sm:$0xff]  ;;  %v388_v19 = vadd.f32 %v10281_v11, %v8043_v22 }
 0x581   :  { %v6474_v31 = vmul.f32 -1.442695, %v2431_v7 }
 0x582   :  { %v7193_v10 = vpop.eup %7192  ;;  %v2493_v35 = vadd.f32 %v2492_v62, %v2491_v33  ;;  %v2479_v27 = vadd.f32 %v7189_v52, %v2478_v2 }
 0x583   :  { %v7195_v50 = vpop.eup %7194  ;;  %v2505_v13 = vadd.f32 1.0, %v7193_v10  ;;  %7196 = vpow2.f32 %v6474_v31 }
 0x584   :  { %7198 = vtanh.f32 %v2493_v35  ;;  %v8747_v40 = vmul.f32 %v6475_v6, %v2493_v35  ;;  %v2506_v18 = vadd.f32 1.0, %v7195_v50  ;;  %v2483_v58 = vsel %vm2482_vm5, %v7189_v52, %v2479_v27  ;;  %v10279_v27 = vld [vmem:[#allocation35_spill] sm:$0xff] }
 0x585   :  { %7200 = vrcp.f32 %v2505_v13  ;;  %v2488_v59 = vsel %vm2485_vm7, %v2487_v15, %v2483_v58  ;;  %v2519_v56 = vand.u32 2147483648, %v2505_v13  ;;  %v2517_v30 = vand.u32 2147483647, %v2505_v13 }
 0x586   :  { %7202 = vrcp.f32 %v2506_v18  ;;  %v2414_v41 = vpop.f32.mrf.mxu2  ;;  %v2427_v24 = vpop.f32.mrf.mxu3  ;;  %v2534_v49 = vand.u32 2147483648, %v2506_v18  ;;  %v2532_v48 = vand.u32 2147483647, %v2506_v18  ;;  %vm2513_vm10 = vweird.f32 %v2505_v13 }
 0x587   :  { %vm2528_vm11 = vweird.f32 %v2506_v18  ;;  %v2520_v1 = vor.u32 1.1754944e-38, %v2519_v56  ;;  %vm2518_vm14 = vcmp.eq.f32.partialorder %v2517_v30, 8.507059e+37 }
 0x588   :  { %v2535_v3 = vor.u32 1.1754944e-38, %v2534_v49  ;;  %vm2533_vm15 = vcmp.eq.f32.partialorder %v2532_v48, 8.507059e+37 }
 0x589   :  { %v7197_v34 = vpop.eup %7196 }
 0x58a   :  { %v7199_v29 = vpop.eup %7198  ;;  %v2507_v0 = vadd.f32 1.0, %v7197_v34 }
 0x58b   :  { %v7201_v47 = vpop.eup %7200  ;;  %v2495_v5 = vmul.f32 %v7199_v29, %v2488_v59 }
 0x58c   :  { %v7203_v39 = vpop.eup %7202  ;;  %v2509_v51 = vmul.f32 %v7201_v47, %v2505_v13  ;;  %7204 = vrcp.f32 %v2507_v0  ;;  %vm2514_vm8 = vweird.f32 %v7201_v47  ;;  %v2549_v38 = vand.u32 2147483648, %v2507_v0 }
 0x58d   :  { %v2561_v55 = vmul.f32 %v6475_v6, %v2495_v5  ;;  %v2524_v43 = vmul.f32 %v7203_v39, %v2506_v18  ;;  %7206 = vtanh.f32 %v2432_v61  ;;  %vm2529_vm9 = vweird.f32 %v7203_v39  ;;  %vm2515_vm12 = vmor %vm2513_vm10, %vm2514_vm8 }
 0x58e   :  { %v2510_v54 = vsub.f32 1.0, %v2509_v51  ;;  %vm2530_vm13 = vmor %vm2528_vm11, %vm2529_vm9  ;;  %vm2543_vm1 = vweird.f32 %v2507_v0  ;;  %v2547_v2 = vand.u32 2147483647, %v2507_v0  ;;  %v2550_v6 = vor.u32 1.1754944e-38, %v2549_v38 }
 0x58f   :  { %2566 = vst.msk [vmem:[#allocation3 + $0x30] sm:$0xff] %vm662_vm6, %v2561_v55  ;;  %v2573_v8 = vpack.c.bf16 %v2561_v55, %v2561_v55  ;;  %v2525_v44 = vsub.f32 1.0, %v2524_v43  ;;  %v359_v13 = vadd.f32 %v10279_v27, %v8029_v17  ;;  %v330_v18 = vadd.f32 %v10280_v20, %v8037_v21  ;;  %v10285_v20 = vld [vmem:[#allocation42_spill] sm:$0xff] }
 0x590   :  { %v2511_v4 = vmul.f32 %v7201_v47, %v2510_v54  ;;  %vm2548_vm3 = vcmp.eq.f32.partialorder %v2547_v2, 8.507059e+37  ;;  %v10282_v54 = vld [vmem:[#allocation62_spill] sm:$0xff] }
 0x591   :  { %v2526_v28 = vmul.f32 %v7203_v39, %v2525_v44  ;;  %6477 = vmatmul.msk.bf16.vlgmr.msra.gmra.mxu0 %vm662_vm6, %v2573_v8  ;;  %6478 = vmatmul.msk.bf16.vlgmr.msra.gmra.mxu1 %vm662_vm6, %v2573_v8 }
 0x592   :  { %v7205_v52 = vpop.eup %7204  ;;  %v2512_v57 = vadd.f32 %v7201_v47, %v2511_v4  ;;  %6479 = vmatmul.msk.bf16.vlgmr.msra.gmra.mxu2 %vm662_vm6, %v2573_v8  ;;  %6480 = vmatmul.msk.bf16.vlgmr.msrb.gmra.mxu3 %vm662_vm6, %v2573_v8  ;;  %v417_v8 = vadd.f32 %v10282_v54, %v8156_v63  ;;  %v10284_v63 = vld [vmem:[#allocation40_spill] sm:$0xff] }
 0x593   :  { %v2539_v14 = vmul.f32 %v7205_v52, %v2507_v0  ;;  %v2527_v53 = vadd.f32 %v7203_v39, %v2526_v28  ;;  %v7207_v36 = vpop.eup %7206  ;;  %vm2544_vm0 = vweird.f32 %v7205_v52 }
 0x594   :  { %v2516_v16 = vsel %vm2515_vm12, %v7201_v47, %v2512_v57  ;;  %vm2545_vm2 = vmor %vm2543_vm1, %vm2544_vm0 }
 0x595   :  { %v2540_v32 = vsub.f32 1.0, %v2539_v14  ;;  %v2521_v45 = vsel %vm2518_vm14, %v2520_v1, %v2516_v16  ;;  %v2531_v46 = vsel %vm2530_vm13, %v7203_v39, %v2527_v53 }
 0x596   :  { %v2536_v12 = vsel %vm2533_vm15, %v2535_v3, %v2531_v46  ;;  %v2555_v9 = vmul.f32 %v7207_v36, %v2521_v45  ;;  %v10283_v3 = vld [vmem:[#allocation39_spill] sm:$0xff] }
 0x597   :  { %v2541_v26 = vmul.f32 %v7205_v52, %v2540_v32  ;;  %v2554_v60 = vmul.f32 %v2536_v12, %v8707_v42 }
 0x599   :  { %v2556_v62 = vadd.f32 %v2555_v9, %v2554_v60  ;;  %v2542_v7 = vadd.f32 %v7205_v52, %v2541_v26 }
 0x59b   :  { %7208 = vtanh.f32 %v2556_v62  ;;  %v8762_v25 = vmul.f32 %v6476_v23, %v2556_v62  ;;  %v2546_v33 = vsel %vm2545_vm2, %v7205_v52, %v2542_v7 }
 0x59c   :  { %v2551_v10 = vsel %vm2548_vm3, %v2550_v6, %v2546_v33 }
 0x5a1   :  { %v7209_v31 = vpop.eup %7208 }
 0x5a2   :  { %v2558_v42 = vmul.f32 %v7209_v31, %v2551_v10 }
 0x5a4   :  { %v2563_v35 = vmul.f32 %v6476_v23, %v2558_v42 }
 0x5a6   :  { %2568 = vst.msk [vmem:[#allocation4 + $0x8] sm:$0xff] %vm662_vm6, %v2563_v35  ;;  %v2637_v50 = vpack.c.bf16 %v2563_v35, %v2563_v35 }
 0x5a8   :  { %6481 = vmatmul.msk.bf16.vlgmr.msrb.gmra.mxu0 %vm662_vm6, %v2637_v50  ;;  %6482 = vmatmul.msk.bf16.vlgmr.msrb.gmra.mxu1 %vm662_vm6, %v2637_v50 }
 0x5a9   :  { %6483 = vmatmul.msk.bf16.vlgmr.msrb.gmra.mxu2 %vm662_vm6, %v2637_v50  ;;  %6484 = vmatmul.msk.bf16.vlgmr.msra.gmra.mxu3 %vm662_vm6, %v2637_v50 }
 0x60e   :  { %v2586_v37 = vpop.f32.mrf.mxu0  ;;  %v2599_v41 = vpop.f32.mrf.mxu1 }
 0x60f   :  { %v2629_v24 = vadd.f32 %v2586_v37, %v330_v18  ;;  %v2630_v58 = vadd.f32 %v2599_v41, %v359_v13 }
 0x611   :  { %v6485_v15 = vmul.f32 -1.442695, %v2629_v24  ;;  %v6486_v34 = vmul.f32 -1.442695, %v2630_v58 }
 0x613   :  { %7210 = vpow2.f32 %v6485_v15 }
 0x614   :  { %7212 = vpow2.f32 %v6486_v34 }
 0x615   :  { %v2612_v29 = vpop.f32.mrf.mxu2  ;;  %v2625_v59 = vpop.f32.mrf.mxu3 }
 0x616   :  { %v2631_v0 = vadd.f32 %v2612_v29, %v388_v19  ;;  %v2588_v47 = vpop.f32.mrf.mxu0  ;;  %v2601_v5 = vpop.f32.mrf.mxu1  ;;  %v2632_v56 = vadd.f32 %v2625_v59, %v417_v8  ;;  %v6528_v8 = vld [vmem:[#allocation10 + $0x60] sm:$0xf0] }
 0x618   :  { %v6487_v17 = vmul.f32 -1.442695, %v2631_v0 }
 0x619   :  { %v7211_v61 = vpop.eup %7210 }
 0x61a   :  { %v7213_v39 = vpop.eup %7212  ;;  %v2706_v21 = vadd.f32 1.0, %v7211_v61  ;;  %7214 = vpow2.f32 %v6487_v17 }
 0x61b   :  { %v2707_v51 = vadd.f32 1.0, %v7213_v39  ;;  %v6526_v39 = vld [vmem:[#allocation10 + $0x40] sm:$0xf] }
 0x61c   :  { %7216 = vrcp.f32 %v2706_v21  ;;  %v2718_v52 = vand.u32 2147483647, %v2706_v21  ;;  %v2720_v53 = vand.u32 2147483648, %v2706_v21  ;;  %vm2714_vm8 = vweird.f32 %v2706_v21 }
 0x61d   :  { %7218 = vrcp.f32 %v2707_v51  ;;  %v2614_v55 = vpop.f32.mrf.mxu2  ;;  %v2627_v43 = vpop.f32.mrf.mxu3  ;;  %v2735_v32 = vand.u32 2147483648, %v2707_v51  ;;  %v2733_v46 = vand.u32 2147483647, %v2707_v51  ;;  %vm2729_vm7 = vweird.f32 %v2707_v51 }
 0x61e   :  { %v2721_v7 = vor.u32 1.1754944e-38, %v2720_v53  ;;  %vm2719_vm11 = vcmp.eq.f32.partialorder %v2718_v52, 8.507059e+37  ;;  %v6942_v43 = vld [vmem:[#allocation10 + $0x44] sm:$0xf] }
 0x61f   :  { %v2736_v33 = vor.u32 1.1754944e-38, %v2735_v32  ;;  %vm2734_vm12 = vcmp.eq.f32.partialorder %v2733_v46, 8.507059e+37  ;;  %v6934_v32 = vld [vmem:[#allocation10 + $0x4] sm:$0xf]  ;;  %v6943_v46 = vld [vmem:[#allocation10 + $0x4c] sm:$0xf] }
 0x620   :  { %v7215_v22 = vpop.eup %7214 }
 0x621   :  { %v8777_v44 = vadd.f32 1.0, %v7215_v22  ;;  %v6534_v22 = vld [vmem:[#allocation10 + $0x48] sm:$0xf] }
 0x622   :  { %v7217_v49 = vpop.eup %7216 }
 0x623   :  { %v7219_v4 = vpop.eup %7218  ;;  %v2710_v30 = vmul.f32 %v7217_v49, %v2706_v21  ;;  %7220 = vrcp.f32 %v8777_v44  ;;  %vm2715_vm4 = vweird.f32 %v7217_v49  ;;  %v2750_v0 = vand.u32 2147483648, %v8777_v44  ;;  %v6946_v21 = vld [vmem:[#allocation10 + $0x5c] sm:$0xf0] }
 0x624   :  { %v2725_v28 = vmul.f32 %v7219_v4, %v2707_v51  ;;  %7222 = vtanh.f32 %v2632_v56  ;;  %vm2730_vm5 = vweird.f32 %v7219_v4  ;;  %vm2716_vm9 = vmor %vm2714_vm8, %vm2715_vm4  ;;  %vm2744_vm14 = vweird.f32 %v8777_v44  ;;  %v10288_v56 = vld [vmem:[#allocation63_spill] sm:$0xff] }
 0x625   :  { %v2711_v48 = vsub.f32 1.0, %v2710_v30  ;;  %v2650_v57 = vpop.f32.mrf.mxu0  ;;  %v2663_v14 = vpop.f32.mrf.mxu1  ;;  %vm2731_vm10 = vmor %vm2729_vm7, %vm2730_vm5  ;;  %v6527_v55 = vor.u32 %v6946_v21, %v6526_v39  ;;  %v2751_v54 = vor.u32 1.1754944e-38, %v2750_v0  ;;  %v6947_v30 = vld [vmem:[#allocation10 + $0x64] sm:$0xf0]  ;;  %v6949_v0 = vld [vmem:[#allocation10 + $0x74] sm:$0xf0] }
 0x626   :  { %v2726_v1 = vsub.f32 1.0, %v2725_v28  ;;  %v2693_v16 = vadd.f32 %v2650_v57, %v10283_v3  ;;  %v2694_v36 = vadd.f32 %v2663_v14, %v10284_v63  ;;  %v6494_v28 = vld [vmem:[#allocation10] sm:$0xf]  ;;  %v6491_v57 = vld [vmem:[%s10151_s1 + $0x38] sm:$0xff]  ;;  %v6535_v53 = vor.u32 %v6947_v30, %v6534_v22 }
 0x627   :  { %v2712_v45 = vmul.f32 %v7217_v49, %v2711_v48  ;;  %2984 = vmatpush.bf16.msra.mxu0 %v6527_v55  ;;  %v6938_v3 = vld [vmem:[#allocation10 + $0x1c] sm:$0xf0]  ;;  %v6945_v39 = vld [vmem:[#allocation10 + $0x5c] sm:$0xf] }
 0x628   :  { %v2727_v12 = vmul.f32 %v7219_v4, %v2726_v1  ;;  %v6488_v9 = vmul.f32 -1.442695, %v2693_v16  ;;  %v6489_v26 = vmul.f32 -1.442695, %v2694_v36  ;;  %v6495_v36 = vor.u32 %v6938_v3, %v6494_v28  ;;  %3042 = vmatpush.bf16.msra.mxu2 %v6535_v53  ;;  %v6552_v21 = vld [vmem:[#allocation10 + $0x78] sm:$0xf0] }
 0x629   :  { %v8782_v60 = vpop.eup %7220  ;;  %v2713_v23 = vadd.f32 %v7217_v49, %v2712_v45  ;;  %v6496_v45 = vld [vmem:[#allocation10 + $0x20] sm:$0xf0] }
 0x62a   :  { %v2740_v62 = vmul.f32 %v8782_v60, %v8777_v44  ;;  %v2728_v38 = vadd.f32 %v7219_v4, %v2727_v12  ;;  %7224 = vpow2.f32 %v6488_v9  ;;  %v7223_v2 = vpop.eup %7222  ;;  %vm2745_vm13 = vweird.f32 %v8782_v60 }
 0x62b   :  { %v2717_v6 = vsel %vm2716_vm9, %v7217_v49, %v2713_v23  ;;  %7226 = vpow2.f32 %v6489_v26  ;;  %vm8799_vm15 = vmor %vm2744_vm14, %vm2745_vm13  ;;  %v6536_v26 = vld [vmem:[#allocation10 + $0x68] sm:$0xf0]  ;;  %v6939_v23 = vld [vmem:[#allocation10 + $0x24] sm:$0xf0]  ;;  %2985 = vmatpush.bf16.msra.mxu0 %v6495_v36 }
 0x62c   :  { %v2741_v31 = vsub.f32 1.0, %v2740_v62  ;;  %v2722_v10 = vsel %vm2719_vm11, %v2721_v7, %v2717_v6  ;;  %v2732_v42 = vsel %vm2731_vm10, %v7219_v4, %v2728_v38  ;;  %v2676_v35 = vpop.f32.mrf.mxu2  ;;  %v2689_v50 = vpop.f32.mrf.mxu3  ;;  %v6531_v4 = vor.u32 %v6942_v43, %v6528_v8  ;;  %v6935_v6 = vld [vmem:[#allocation10 + $0xc] sm:$0xf] }
 0x62d   :  { %v2737_v27 = vsel %vm2734_vm12, %v2736_v33, %v2732_v42  ;;  %v2756_v13 = vmul.f32 %v7223_v2, %v2722_v10  ;;  %v2695_v18 = vadd.f32 %v2676_v35, %v10285_v20  ;;  %v2652_v37 = vpop.f32.mrf.mxu0  ;;  %v2665_v41 = vpop.f32.mrf.mxu1  ;;  %v2696_v49 = vadd.f32 %v2689_v50, %v10288_v56 }
 0x62e   :  { %v2742_v24 = vmul.f32 %v8782_v60, %v2741_v31  ;;  %v2755_v58 = vmul.f32 %v2737_v27, %v8747_v40  ;;  %v2748_v40 = vand.u32 2147483647, %v8777_v44  ;;  %3013 = vmatpush.bf16.msra.mxu1 %v6531_v4  ;;  %v6499_v33 = vor.u32 %v6934_v32, %v6496_v45  ;;  %v6504_v31 = vld [vmem:[#allocation10 + $0x28] sm:$0xf0]  ;;  %v6542_v41 = vld [vmem:[#allocation10 + $0x50] sm:$0xf] }
 0x62f   :  { %v6490_v15 = vmul.f32 -1.442695, %v2695_v18  ;;  %v6539_v35 = vor.u32 %v6943_v46, %v6536_v26  ;;  %v6507_v37 = vor.u32 %v6935_v6, %v6504_v31  ;;  %v2843_v32 = vld [vmem:[#allocation4 + $0x8] sm:$0xff]  ;;  %v6940_v46 = vld [vmem:[#allocation10 + $0x2c] sm:$0xf0]  ;;  %v2845_v31 = vld [vmem:[#allocation4 + $0x18] sm:$0xff] }
 0x630   :  { %v7225_v34 = vpop.eup %7224  ;;  %v2757_v11 = vadd.f32 %v2756_v13, %v2755_v58  ;;  %v2743_v29 = vadd.f32 %v8782_v60, %v2742_v24  ;;  %vm2749_vm0 = vcmp.eq.f32.partialorder %v2748_v40, 8.507059e+37  ;;  %v6948_v24 = vld [vmem:[#allocation10 + $0x6c] sm:$0xf0]  ;;  %v6944_v58 = vld [vmem:[#allocation10 + $0x54] sm:$0xf] }
 0x631   :  { %v7227_v19 = vpop.eup %7226  ;;  %v8791_v59 = vadd.f32 1.0, %v7225_v34  ;;  %7228 = vpow2.f32 %v6490_v15  ;;  %3071 = vmatpush.bf16.msrb.mxu3 %v6539_v35  ;;  %v6512_v26 = vld [vmem:[#allocation10 + $0x30] sm:$0xf0]  ;;  %v2847_v35 = vld [vmem:[#allocation4 + $0x28] sm:$0xff]  ;;  %v6930_v13 = vld [vmem:[%s10156_s6 + $0x5c] sm:$0xf0] }
 0x632   :  { %7230 = vtanh.f32 %v2757_v11  ;;  %v8794_v47 = vadd.f32 1.0, %v7227_v19  ;;  %v2747_v51 = vsel %vm8799_vm15, %v8782_v60, %v2743_v29  ;;  %v6502_v60 = vld [vmem:[#allocation10 + $0x8] sm:$0xf]  ;;  %3014 = vmatpush.bf16.msra.mxu1 %v6499_v33  ;;  %v6543_v11 = vor.u32 %v6948_v24, %v6542_v41  ;;  %v6544_v19 = vld [vmem:[#allocation10 + $0x70] sm:$0xf0] }
 0x633   :  { %7232 = vrcp.f32 %v8791_v59  ;;  %v2752_v52 = vsel %vm2749_vm0, %v2751_v54, %v2747_v51  ;;  %v2781_v1 = vand.u32 2147483647, %v8791_v59  ;;  %v2783_v42 = vand.u32 2147483648, %v8791_v59  ;;  %v6550_v29 = vld [vmem:[#allocation10 + $0x58] sm:$0xf]  ;;  %v2844_v6 = vld [vmem:[#allocation4 + $0x10] sm:$0xff] }
 0x634   :  { %7234 = vrcp.f32 %v8794_v47  ;;  %v2678_v17 = vpop.f32.mrf.mxu2  ;;  %v2691_v61 = vpop.f32.mrf.mxu3  ;;  %v2798_v2 = vand.u32 2147483648, %v8794_v47  ;;  %v6503_v50 = vor.u32 %v6939_v23, %v6502_v60  ;;  %v2796_v20 = vand.u32 2147483647, %v8794_v47  ;;  %3100 = vmatpush.bf16.msrb.mxu0 %v6543_v11  ;;  %v6518_v60 = vld [vmem:[#allocation10 + $0x18] sm:$0xf] }
 0x635   :  { %vm8828_vm2 = vcmp.eq.f32.partialorder %v2781_v1, 8.507059e+37  ;;  %vm2792_vm4 = vweird.f32 %v8794_v47  ;;  %vm2777_vm5 = vweird.f32 %v8791_v59  ;;  %v2784_v5 = vor.u32 1.1754944e-38, %v2783_v42  ;;  %3072 = vmatpush.bf16.msrb.mxu3 %v6507_v37  ;;  %v6941_v23 = vld [vmem:[#allocation10 + $0x34] sm:$0xf0]  ;;  %v2846_v42 = vld [vmem:[#allocation4 + $0x20] sm:$0xff] }
 0x636   :  { %3043 = vmatpush.bf16.msra.mxu2 %v6503_v50  ;;  %v6547_v61 = vor.u32 %v6944_v58, %v6544_v19  ;;  %v6551_v43 = vor.u32 %v6949_v0, %v6550_v29  ;;  %v6555_v54 = vor.u32 %v6945_v39, %v6552_v21  ;;  %vm2797_vm9 = vcmp.eq.f32.partialorder %v2796_v20, 8.507059e+37  ;;  %v6926_v20 = vld [vmem:[%s10156_s6 + $0x44] sm:$0xf]  ;;  %v6630_v41 = vld [vmem:[%s10156_s6 + $0x48] sm:$0xf]  ;;  %v2848_v29 = vld [vmem:[#allocation4 + $0x30] sm:$0xff] }
 0x637   :  { %v7229_v44 = vpop.eup %7228  ;;  %v2852_v50 = vpack.c.bf16 %v2847_v35, %v2846_v42  ;;  %v6624_v37 = vld [vmem:[%s10156_s6 + $0x60] sm:$0xf0]  ;;  %v6931_v24 = vld [vmem:[%s10156_s6 + $0x64] sm:$0xf0]  ;;  %v6632_v11 = vld [vmem:[%s10156_s6 + $0x68] sm:$0xf0] }
 0x638   :  { %v7231_v48 = vpop.eup %7230  ;;  %v8811_v14 = vadd.f32 1.0, %v7229_v44  ;;  %3129 = vmatpush.bf16.msrb.mxu1 %v6547_v61  ;;  %v6627_v58 = vor.u32 %v6926_v20, %v6624_v37  ;;  %v2849_v0 = vld [vmem:[#allocation4 + $0x38] sm:$0xff]  ;;  %v6918_v61 = vld [vmem:[%s10156_s6 + $0x4] sm:$0xf]  ;;  %v2832_v35 = vld [vmem:[#allocation3 + $0x10] sm:$0xff] }
 0x639   :  { %v8814_v16 = vpop.eup %7232  ;;  %v2759_v63 = vmul.f32 %v7231_v48, %v2752_v52  ;;  %3187 = vmatpush.bf16.msra.mxu3 %v6555_v54  ;;  %v6592_v21 = vld [vmem:[%s10156_s6 + $0x20] sm:$0xf0]  ;;  %v6919_v54 = vld [vmem:[%s10156_s6 + $0xc] sm:$0xf] }
 0x63a   :  { %v8816_v12 = vpop.eup %7234  ;;  %v2773_v9 = vmul.f32 %v8814_v16, %v8791_v59  ;;  %7236 = vrcp.f32 %v8811_v14  ;;  %vm2778_vm1 = vweird.f32 %v8814_v16  ;;  %v2799_v59 = vor.u32 1.1754944e-38, %v2798_v2  ;;  %3158 = vmatpush.bf16.msrb.mxu2 %v6551_v43  ;;  %v6520_v2 = vld [vmem:[#allocation10 + $0x38] sm:$0xf0] }
 0x63b   :  { %v2825_v62 = vmul.f32 %v6491_v57, %v2759_v63  ;;  %v2788_v7 = vmul.f32 %v8816_v12, %v8794_v47  ;;  %7238 = vtanh.f32 %v2696_v49  ;;  %vm2793_vm3 = vweird.f32 %v8816_v12  ;;  %vm2779_vm7 = vmor %vm2777_vm5, %vm2778_vm1 }
 0x63c   :  { %v2774_v38 = vsub.f32 1.0, %v2773_v9  ;;  %vm2794_vm8 = vmor %vm2792_vm4, %vm2793_vm3  ;;  %v2813_v48 = vand.u32 2147483648, %v8811_v14  ;;  %vm2807_vm11 = vweird.f32 %v8811_v14  ;;  %v2811_v52 = vand.u32 2147483647, %v8811_v14 }
 0x63d   :  { %2828 = vst.msk [vmem:[#allocation3 + $0x38] sm:$0xff] %vm662_vm6, %v2825_v62  ;;  %v2789_v10 = vsub.f32 1.0, %v2788_v7  ;;  %v6519_v7 = vor.u32 %v6941_v23, %v6518_v60 }
 0x63e   :  { %v2775_v27 = vmul.f32 %v8814_v16, %v2774_v38  ;;  %v2814_v1 = vor.u32 1.1754944e-38, %v2813_v48  ;;  %vm2812_vm13 = vcmp.eq.f32.partialorder %v2811_v52, 8.507059e+37  ;;  %v6937_v38 = vld [vmem:[#allocation10 + $0x1c] sm:$0xf]  ;;  %v6933_v48 = vld [vmem:[%s10156_s6 + $0x74] sm:$0xf0] }
 0x63f   :  { %v2790_v18 = vmul.f32 %v8816_v12, %v2789_v10  ;;  %v6523_v33 = vor.u32 %v6937_v38, %v6520_v2  ;;  %3159 = vmatpush.bf16.msrb.mxu2 %v6519_v7  ;;  %v2851_v10 = vpack.c.bf16 %v2845_v31, %v2844_v6  ;;  %v6614_v7 = vld [vmem:[%s10156_s6 + $0x18] sm:$0xf] }
 0x640   :  { %v7237_v15 = vpop.eup %7236  ;;  %v2776_v34 = vadd.f32 %v8814_v16, %v2775_v27  ;;  %v6622_v27 = vld [vmem:[%s10156_s6 + $0x40] sm:$0xf]  ;;  %v6925_v38 = vld [vmem:[%s10156_s6 + $0x34] sm:$0xf0] }
 0x641   :  { %v2803_v40 = vmul.f32 %v7237_v15, %v8811_v14  ;;  %v2791_v17 = vadd.f32 %v8816_v12, %v2790_v18  ;;  %v7239_v51 = vpop.eup %7238  ;;  %vm2808_vm10 = vweird.f32 %v7237_v15  ;;  %v6510_v14 = vld [vmem:[#allocation10 + $0x10] sm:$0xf]  ;;  %3188 = vmatpush.bf16.msra.mxu3 %v6523_v33  ;;  %v6623_v18 = vor.u32 %v6930_v13, %v6622_v27  ;;  %v2833_v33 = vld [vmem:[#allocation3 + $0x18] sm:$0xff] }
 0x642   :  { %v2780_v55 = vsel %vm2779_vm7, %v8814_v16, %v2776_v34  ;;  %vm2809_vm12 = vmor %vm2807_vm11, %vm2808_vm10  ;;  %v6511_v9 = vor.u32 %v6940_v46, %v6510_v14  ;;  %v6927_v34 = vld [vmem:[%s10156_s6 + $0x4c] sm:$0xf]  ;;  %v6920_v14 = vld [vmem:[%s10156_s6 + $0x14] sm:$0xf]  ;;  %v6615_v2 = vor.u32 %v6925_v38, %v6614_v7  ;;  %v9016_v13 = vpack.c.bf16 %v2833_v33, %v2832_v35 }
 0x643   :  { %v2804_v8 = vsub.f32 1.0, %v2803_v40  ;;  %v2785_v22 = vsel %vm8828_vm2, %v2784_v5, %v2780_v55  ;;  %v2795_v44 = vsel %vm2794_vm8, %v8816_v12, %v2791_v17  ;;  %v6936_v12 = vld [vmem:[#allocation10 + $0x14] sm:$0xf]  ;;  %v6635_v19 = vor.u32 %v6927_v34, %v6632_v11  ;;  %v6590_v5 = vld [vmem:[%s10156_s6] sm:$0xf] }
 0x644   :  { %v2800_v56 = vsel %vm2797_vm9, %v2799_v59, %v2795_v44  ;;  %v2819_v49 = vmul.f32 %v7239_v51, %v2785_v22  ;;  %v6515_v62 = vor.u32 %v6936_v12, %v6512_v26  ;;  %3101 = vmatpush.bf16.msrb.mxu0 %v6511_v9  ;;  %v2853_v40 = vpack.c.bf16 %v2849_v0, %v2848_v29  ;;  %v6922_v17 = vld [vmem:[%s10156_s6 + $0x1c] sm:$0xf0]  ;;  %v6598_v51 = vld [vmem:[%s10156_s6 + $0x8] sm:$0xf]  ;;  %v6638_v44 = vld [vmem:[%s10156_s6 + $0x50] sm:$0xf] }
 0x645   :  { %v2805_v47 = vmul.f32 %v7237_v15, %v2804_v8  ;;  %v2818_v4 = vmul.f32 %v2800_v56, %v8762_v25  ;;  %v2824_v25 = vld [vmem:[%s10151_s1] sm:$0xff]  ;;  %v6591_v39 = vor.u32 %v6922_v17, %v6590_v5  ;;  %v6923_v59 = vld [vmem:[%s10156_s6 + $0x24] sm:$0xf0]  ;;  %v6595_v55 = vor.u32 %v6918_v61, %v6592_v21  ;;  %v6600_v8 = vld [vmem:[%s10156_s6 + $0x28] sm:$0xf0] }
 0x646   :  { %3130 = vmatpush.bf16.msrb.mxu1 %v6515_v62  ;;  %v6599_v43 = vor.u32 %v6923_v59, %v6598_v51  ;;  %v6603_v22 = vor.u32 %v6919_v54, %v6600_v8  ;;  %v6932_v56 = vld [vmem:[%s10156_s6 + $0x6c] sm:$0xf0]  ;;  %v6608_v12 = vld [vmem:[%s10156_s6 + $0x30] sm:$0xf0]  ;;  %v6616_v27 = vld [vmem:[%s10156_s6 + $0x38] sm:$0xf0] }
 0x647   :  { %v2820_v30 = vadd.f32 %v2819_v49, %v2818_v4  ;;  %v2806_v28 = vadd.f32 %v7237_v15, %v2805_v47  ;;  %v6928_v49 = vld [vmem:[%s10156_s6 + $0x54] sm:$0xf]  ;;  %v6639_v47 = vor.u32 %v6932_v56, %v6638_v44  ;;  %v6611_v9 = vor.u32 %v6920_v14, %v6608_v12  ;;  %v2834_v29 = vld [vmem:[#allocation3 + $0x20] sm:$0xff]  ;;  %v6956_v5 = vld [vmem:[#allocation12 + $0x2c] sm:$0xf0] }
 0x648   :  { %v6640_v4 = vld [vmem:[%s10156_s6 + $0x70] sm:$0xf0]  ;;  %v6954_v17 = vld [vmem:[#allocation12 + $0x24] sm:$0xf]  ;;  %v6710_v54 = vld [vmem:[#allocation12 + $0x28] sm:$0xf] }
 0x649   :  { %7240 = vtanh.f32 %v2820_v30  ;;  %v2810_v57 = vsel %vm2809_vm12, %v7237_v15, %v2806_v28  ;;  %v6631_v15 = vor.u32 %v6931_v24, %v6630_v41  ;;  %v6643_v30 = vor.u32 %v6928_v49, %v6640_v4  ;;  %v6646_v28 = vld [vmem:[%s10156_s6 + $0x58] sm:$0xf]  ;;  %v6686_v12 = vld [vmem:[#allocation12] sm:$0xf]  ;;  %v6950_v7 = vld [vmem:[#allocation12 + $0x4] sm:$0xf] }
 0x64a   :  { %v2815_v3 = vsel %vm2812_vm13, %v2814_v1, %v2810_v57  ;;  %v6647_v52 = vor.u32 %v6933_v48, %v6646_v28  ;;  %v6929_v57 = vld [vmem:[%s10156_s6 + $0x5c] sm:$0xf]  ;;  %v6957_v8 = vld [vmem:[#allocation12 + $0x34] sm:$0xf0]  ;;  %v6955_v28 = vld [vmem:[#allocation12 + $0x2c] sm:$0xf] }
 0x64b   :  { %v6648_v1 = vld [vmem:[%s10156_s6 + $0x78] sm:$0xf0] }
 0x64c   :  { %v2837_v44 = vld [vmem:[#allocation3 + $0x38] sm:$0xff] }
 0x64d   :  { %v6712_v48 = vld [vmem:[#allocation12 + $0x38] sm:$0xf0] }
 0x64f   :  { %v7241_v53 = vpop.eup %7240 }
 0x650   :  { %v2822_v16 = vmul.f32 %v7241_v53, %v2815_v3  ;;  %v6651_v53 = vor.u32 %v6929_v57, %v6648_v1  ;;  %v2831_v3 = vld [vmem:[#allocation3 + $0x8] sm:$0xff]  ;;  %v9079_v57 = vor.u32 %v6955_v28, %v6712_v48 }
 0x652   :  { %v2826_v63 = vmul.f32 %v2824_v25, %v2822_v16 }
 0x654   :  { %2829 = vst.msk [vmem:[#allocation4] sm:$0xff] %vm662_vm6, %v2826_v63  ;;  %v2830_v63 = vld [vmem:[#allocation3] sm:$0xff] }
 0x65b   :  { %v2842_v36 = vld [vmem:[#allocation4] sm:$0xff] }
 0x65c   :  { %v2850_v45 = vpack.c.bf16 %v2843_v32, %v2842_v36  ;;  %v8966_v36 = vpack.c.bf16 %v2831_v3, %v2830_v63  ;;  %v6606_v32 = vld [vmem:[%s10156_s6 + $0x10] sm:$0xf] }
 0x65e   :  { %6556 = vmatmul.msk.bf16.vlgmr.msra.gmra.mxu0 %vm662_vm6, %v2850_v45  ;;  %6560 = vmatmul.msk.bf16.vlgmr.msra.gmra.mxu1 %vm662_vm6, %v2850_v45 }
 0x65f   :  { %6564 = vmatmul.msk.bf16.vlgmr.msra.gmra.mxu2 %vm662_vm6, %v2850_v45  ;;  %6568 = vmatmul.msk.bf16.vlgmr.msrb.gmra.mxu3 %vm662_vm6, %v2850_v45 }
 0x660   :  { %3308 = vmatpush.bf16.msra.mxu0 %v6623_v18  ;;  %3337 = vmatpush.bf16.msra.mxu1 %v6627_v58  ;;  %v2835_v58 = vld [vmem:[#allocation3 + $0x28] sm:$0xff] }
 0x661   :  { %3366 = vmatpush.bf16.msra.mxu2 %v6631_v15  ;;  %3395 = vmatpush.bf16.msrb.mxu3 %v6635_v19  ;;  %v9042_v0 = vpack.c.bf16 %v2835_v58, %v2834_v29  ;;  %v6953_v58 = vld [vmem:[#allocation12 + $0x14] sm:$0xf0] }
 0x664   :  { %3309 = vmatpush.bf16.msra.mxu0 %v6591_v39  ;;  %3338 = vmatpush.bf16.msra.mxu1 %v6595_v55  ;;  %v6704_v39 = vld [vmem:[#allocation12 + $0x30] sm:$0xf0] }
 0x665   :  { %3367 = vmatpush.bf16.msra.mxu2 %v6599_v43  ;;  %3396 = vmatpush.bf16.msrb.mxu3 %v6603_v22  ;;  %v9054_v21 = vor.u32 %v6954_v17, %v6704_v39  ;;  %v9066_v22 = vor.u32 %v6957_v8, %v6710_v54  ;;  %v6951_v54 = vld [vmem:[#allocation12 + $0xc] sm:$0xf]  ;;  %v6696_v8 = vld [vmem:[#allocation12 + $0x18] sm:$0xf0] }
 0x66e   :  { %6557 = vmatmul.msk.bf16.gmra.mxu0 %vm662_vm6, %v2851_v10  ;;  %6561 = vmatmul.msk.bf16.gmra.mxu1 %vm662_vm6, %v2851_v10 }
 0x66f   :  { %6565 = vmatmul.msk.bf16.gmra.mxu2 %vm662_vm6, %v2851_v10  ;;  %6569 = vmatmul.msk.bf16.gmra.mxu3 %vm662_vm6, %v2851_v10 }
 0x67e   :  { %6558 = vmatmul.msk.bf16.gmra.mxu0 %vm662_vm6, %v2852_v50  ;;  %6562 = vmatmul.msk.bf16.gmra.mxu1 %vm662_vm6, %v2852_v50 }
 0x67f   :  { %6566 = vmatmul.msk.bf16.gmra.mxu2 %vm662_vm6, %v2852_v50  ;;  %6570 = vmatmul.msk.bf16.gmra.mxu3 %vm662_vm6, %v2852_v50 }
 0x68e   :  { %6559 = vmatmul.msk.bf16.gmra.mxu0 %vm662_vm6, %v2853_v40  ;;  %6563 = vmatmul.msk.bf16.gmra.mxu1 %vm662_vm6, %v2853_v40 }
 0x68f   :  { %6567 = vmatmul.msk.bf16.gmra.mxu2 %vm662_vm6, %v2853_v40  ;;  %6571 = vmatmul.msk.bf16.gmra.mxu3 %vm662_vm6, %v2853_v40 }
 0x69e   :  { %6572 = vmatmul.msk.bf16.vlgmr.msrb.gmra.mxu0 %vm662_vm6, %v2850_v45  ;;  %6576 = vmatmul.msk.bf16.vlgmr.msrb.gmra.mxu1 %vm662_vm6, %v2850_v45 }
 0x69f   :  { %6580 = vmatmul.msk.bf16.vlgmr.msrb.gmra.mxu2 %vm662_vm6, %v2850_v45  ;;  %6584 = vmatmul.msk.bf16.vlgmr.msra.gmra.mxu3 %vm662_vm6, %v2850_v45  ;;  %v6924_v45 = vld [vmem:[%s10156_s6 + $0x2c] sm:$0xf0] }
 0x6a0   :  { %3424 = vmatpush.bf16.msrb.mxu0 %v6639_v47  ;;  %3453 = vmatpush.bf16.msrb.mxu1 %v6643_v30  ;;  %v6607_v46 = vor.u32 %v6924_v45, %v6606_v32  ;;  %v2836_v30 = vld [vmem:[#allocation3 + $0x30] sm:$0xff] }
 0x6a1   :  { %3482 = vmatpush.bf16.msrb.mxu2 %v6647_v52  ;;  %3511 = vmatpush.bf16.msra.mxu3 %v6651_v53  ;;  %v9077_v52 = vpack.c.bf16 %v2837_v44, %v2836_v30  ;;  %v9139_v44 = vor.u32 %v6951_v54, %v6696_v8  ;;  %v6962_v54 = vld [vmem:[#allocation13 + $0x24] sm:$0xf] }
 0x6a3   :  { %10314 = vst [vmem:[#allocation30_spill] sm:$0xff] %v9139_v44 }
 0x6a4   :  { %3425 = vmatpush.bf16.msrb.mxu0 %v6607_v46  ;;  %3454 = vmatpush.bf16.msrb.mxu1 %v6611_v9  ;;  %v6952_v9 = vld [vmem:[#allocation12 + $0xc] sm:$0xf0] }
 0x6a5   :  { %3483 = vmatpush.bf16.msrb.mxu2 %v6615_v2  ;;  %v9114_v38 = vor.u32 %v6952_v9, %v6686_v12  ;;  %v6688_v2 = vld [vmem:[#allocation12 + $0x10] sm:$0xf0] }
 0x6a6   :  { %v9116_v33 = vor.u32 %v6950_v7, %v6688_v2 }
 0x6a7   :  { %10307 = vst [vmem:[#allocation28_spill] sm:$0xff] %v9114_v38 }
 0x6a8   :  { %10308 = vst [vmem:[#allocation56_spill] sm:$0xff] %v9116_v33 }
 0x6ae   :  { %6573 = vmatmul.msk.bf16.gmra.mxu0 %vm662_vm6, %v2851_v10  ;;  %6577 = vmatmul.msk.bf16.gmra.mxu1 %vm662_vm6, %v2851_v10 }
 0x6af   :  { %6581 = vmatmul.msk.bf16.gmra.mxu2 %vm662_vm6, %v2851_v10  ;;  %6585 = vmatmul.msk.bf16.gmra.mxu3 %vm662_vm6, %v2851_v10 }
 0x6be   :  { %6574 = vmatmul.msk.bf16.gmra.mxu0 %vm662_vm6, %v2852_v50  ;;  %6578 = vmatmul.msk.bf16.gmra.mxu1 %vm662_vm6, %v2852_v50 }
 0x6bf   :  { %6582 = vmatmul.msk.bf16.gmra.mxu2 %vm662_vm6, %v2852_v50  ;;  %6586 = vmatmul.msk.bf16.gmra.mxu3 %vm662_vm6, %v2852_v50  ;;  %v6921_v50 = vld [vmem:[%s10156_s6 + $0x1c] sm:$0xf] }
 0x6c0   :  { %v6619_v20 = vor.u32 %v6921_v50, %v6616_v27 }
 0x6c2   :  { %3512 = vmatpush.bf16.msra.mxu3 %v6619_v20 }
 0x6ce   :  { %6575 = vmatmul.msk.bf16.gmra.mxu0 %vm662_vm6, %v2853_v40  ;;  %6579 = vmatmul.msk.bf16.gmra.mxu1 %vm662_vm6, %v2853_v40 }
 0x6cf   :  { %6583 = vmatmul.msk.bf16.gmra.mxu2 %vm662_vm6, %v2853_v40  ;;  %6587 = vmatmul.msk.bf16.gmra.mxu3 %vm662_vm6, %v2853_v40  ;;  %v6702_v40 = vld [vmem:[#allocation12 + $0x20] sm:$0xf] }
 0x6d0   :  { %v9052_v61 = vor.u32 %v6956_v5, %v6702_v40 }
 0x6db   :  { %v8962_v25 = vpop.f32.mrf.mxu0  ;;  %v8964_v16 = vpop.f32.mrf.mxu1 }
 0x6de   :  { %6652 = vmatmul.msk.bf16.vlgmr.msra.gmra.mxu0 %vm662_vm6, %v8966_v36  ;;  %6656 = vmatmul.msk.bf16.vlgmr.msra.gmra.mxu1 %vm662_vm6, %v8966_v36 }
 0x6df   :  { %6660 = vmatmul.msk.bf16.vlgmr.msra.gmra.mxu2 %vm662_vm6, %v8966_v36  ;;  %6664 = vmatmul.msk.bf16.vlgmr.msrb.gmra.mxu3 %vm662_vm6, %v8966_v36 }
 0x6e0   :  { %3746 = vmatpush.bf16.msra.mxu0 %v9052_v61  ;;  %3759 = vmatpush.bf16.msra.mxu1 %v9054_v21 }
 0x6e1   :  { %3772 = vmatpush.bf16.msra.mxu2 %v9066_v22  ;;  %3785 = vmatpush.bf16.msrb.mxu3 %v9079_v57 }
 0x6e2   :  { %v8988_v26 = vpop.f32.mrf.mxu2  ;;  %v8990_v60 = vpop.f32.mrf.mxu3 }
 0x6e3   :  { %v8992_v23 = vpop.f32.mrf.mxu0  ;;  %v8994_v62 = vpop.f32.mrf.mxu1 }
 0x6e4   :  { %10291 = vst [vmem:[#allocation37_spill] sm:$0xff] %v8992_v23  ;;  %3747 = vmatpush.bf16.msra.mxu0 %v9114_v38  ;;  %3760 = vmatpush.bf16.msra.mxu1 %v9116_v33 }
 0x6e5   :  { %10292 = vst [vmem:[#allocation58_spill] sm:$0xff] %v8994_v62  ;;  %3786 = vmatpush.bf16.msrb.mxu3 %v9139_v44 }
 0x6ea   :  { %v9002_v6 = vpop.f32.mrf.mxu2  ;;  %v9004_v31 = vpop.f32.mrf.mxu3 }
 0x6eb   :  { %10293 = vst [vmem:[#allocation48_spill] sm:$0xff] %v9002_v6  ;;  %v9006_v10 = vpop.f32.mrf.mxu0  ;;  %v9008_v42 = vpop.f32.mrf.mxu1 }
 0x6ec   :  { %10294 = vst [vmem:[#allocation41_spill] sm:$0xff] %v9004_v31 }
 0x6ee   :  { %6653 = vmatmul.msk.bf16.gmra.mxu0 %vm662_vm6, %v9016_v13  ;;  %6657 = vmatmul.msk.bf16.gmra.mxu1 %vm662_vm6, %v9016_v13 }
 0x6ef   :  { %6661 = vmatmul.msk.bf16.gmra.mxu2 %vm662_vm6, %v9016_v13  ;;  %6665 = vmatmul.msk.bf16.gmra.mxu3 %vm662_vm6, %v9016_v13 }
 0x6f2   :  { %v9026_v18 = vpop.f32.mrf.mxu2  ;;  %v9028_v37 = vpop.f32.mrf.mxu3 }
 0x6f3   :  { %v9030_v41 = vpop.f32.mrf.mxu0  ;;  %v9032_v24 = vpop.f32.mrf.mxu1 }
 0x6f4   :  { %10295 = vst [vmem:[#allocation60_spill] sm:$0xff] %v9030_v41  ;;  %v10324_v41 = vmov 0  }
 0x6f5   :  { %10296 = vst [vmem:[#allocation68_spill] sm:$0xff] %v9032_v24 }
 0x6fa   :  { %v9034_v15 = vpop.f32.mrf.mxu2  ;;  %v9036_v34 = vpop.f32.mrf.mxu3 }
 0x6fb   :  { %10297 = vst [vmem:[#allocation23_spill] sm:$0xff] %v9034_v15  ;;  %v9038_v11 = vpop.f32.mrf.mxu0  ;;  %v9040_v19 = vpop.f32.mrf.mxu1 }
 0x6fc   :  { %10298 = vst [vmem:[#allocation24_spill] sm:$0xff] %v9036_v34 }
 0x6fe   :  { %6654 = vmatmul.msk.bf16.gmra.mxu0 %vm662_vm6, %v9042_v0  ;;  %6658 = vmatmul.msk.bf16.gmra.mxu1 %vm662_vm6, %v9042_v0 }
 0x6ff   :  { %6662 = vmatmul.msk.bf16.gmra.mxu2 %vm662_vm6, %v9042_v0  ;;  %6666 = vmatmul.msk.bf16.gmra.mxu3 %vm662_vm6, %v9042_v0 }
 0x702   :  { %v9056_v51 = vpop.f32.mrf.mxu2  ;;  %v9058_v59 = vpop.f32.mrf.mxu3 }
 0x703   :  { %v9061_v55 = vpop.f32.mrf.mxu0  ;;  %v9063_v43 = vpop.f32.mrf.mxu1 }
 0x704   :  { %10299 = vst [vmem:[#allocation25_spill] sm:$0xff] %v9061_v55  ;;  %v6744_v55 = vld [vmem:[#allocation13 + $0x38] sm:$0xf0] }
 0x705   :  { %10300 = vst [vmem:[#allocation52_spill] sm:$0xff] %v9063_v43  ;;  %v6963_v43 = vld [vmem:[#allocation13 + $0x2c] sm:$0xf] }
 0x70a   :  { %v9069_v56 = vpop.f32.mrf.mxu2  ;;  %v9071_v49 = vpop.f32.mrf.mxu3 }
 0x70b   :  { %10301 = vst [vmem:[#allocation54_spill] sm:$0xff] %v9069_v56  ;;  %v9073_v47 = vpop.f32.mrf.mxu0  ;;  %v9075_v4 = vpop.f32.mrf.mxu1 }
 0x70c   :  { %10302 = vst [vmem:[#allocation55_spill] sm:$0xff] %v9071_v49 }
 0x70e   :  { %6655 = vmatmul.msk.bf16.gmra.mxu0 %vm662_vm6, %v9077_v52  ;;  %6659 = vmatmul.msk.bf16.gmra.mxu1 %vm662_vm6, %v9077_v52 }
 0x70f   :  { %6663 = vmatmul.msk.bf16.gmra.mxu2 %vm662_vm6, %v9077_v52  ;;  %6667 = vmatmul.msk.bf16.gmra.mxu3 %vm662_vm6, %v9077_v52 }
 0x712   :  { %v9090_v1 = vpop.f32.mrf.mxu2  ;;  %v9092_v53 = vpop.f32.mrf.mxu3 }
 0x713   :  { %v9094_v3 = vpop.f32.mrf.mxu0  ;;  %v9096_v63 = vpop.f32.mrf.mxu1 }
 0x714   :  { %10303 = vst [vmem:[#allocation57_spill] sm:$0xff] %v9094_v3 }
 0x715   :  { %10304 = vst [vmem:[#allocation67_spill] sm:$0xff] %v9096_v63 }
 0x71a   :  { %v9098_v32 = vpop.f32.mrf.mxu2  ;;  %v9100_v45 = vpop.f32.mrf.mxu3 }
 0x71b   :  { %10305 = vst [vmem:[#allocation27_spill] sm:$0xff] %v9098_v32  ;;  %v9102_v14 = vpop.f32.mrf.mxu0  ;;  %v9104_v46 = vpop.f32.mrf.mxu1 }
 0x71c   :  { %10306 = vst [vmem:[#allocation26_spill] sm:$0xff] %v9100_v45  ;;  %v6736_v45 = vld [vmem:[#allocation13 + $0x30] sm:$0xf0] }
 0x71d   :  { %v9176_v32 = vor.u32 %v6962_v54, %v6736_v45  ;;  %v6958_v45 = vld [vmem:[#allocation13 + $0x4] sm:$0xf]  ;;  %v6720_v54 = vld [vmem:[#allocation13 + $0x10] sm:$0xf0] }
 0x71e   :  { %6668 = vmatmul.msk.bf16.vlgmr.msrb.gmra.mxu0 %vm662_vm6, %v8966_v36  ;;  %6672 = vmatmul.msk.bf16.vlgmr.msrb.gmra.mxu1 %vm662_vm6, %v8966_v36  ;;  %v9192_v56 = vor.u32 %v6958_v45, %v6720_v54  ;;  %v6728_v45 = vld [vmem:[#allocation13 + $0x18] sm:$0xf0] }
 0x71f   :  { %6676 = vmatmul.msk.bf16.vlgmr.msrb.gmra.mxu2 %vm662_vm6, %v8966_v36  ;;  %6680 = vmatmul.msk.bf16.vlgmr.msra.gmra.mxu3 %vm662_vm6, %v8966_v36  ;;  %v6694_v36 = vld [vmem:[#allocation12 + $0x8] sm:$0xf] }
 0x720   :  { %v9128_v29 = vor.u32 %v6953_v58, %v6694_v36  ;;  %v6964_v58 = vld [vmem:[#allocation13 + $0x2c] sm:$0xf0]  ;;  %3859 = vmatpush.bf16.msrb.mxu1 %v9176_v32 }
 0x722   :  { %v9118_v35 = vpop.f32.mrf.mxu2  ;;  %v9120_v50 = vpop.f32.mrf.mxu3  ;;  %10311 = vst [vmem:[#allocation53_spill] sm:$0xff] %v9128_v29  ;;  %3773 = vmatpush.bf16.msra.mxu2 %v9128_v29 }
 0x723   :  { %v9123_v27 = vpop.f32.mrf.mxu0  ;;  %v9125_v20 = vpop.f32.mrf.mxu1 }
 0x724   :  { %10309 = vst [vmem:[#allocation50_spill] sm:$0xff] %v9123_v27  ;;  %v6718_v27 = vld [vmem:[#allocation13] sm:$0xf]  ;;  %3860 = vmatpush.bf16.msrb.mxu1 %v9192_v56 }
 0x725   :  { %10310 = vst [vmem:[#allocation51_spill] sm:$0xff] %v9125_v20  ;;  %v6965_v20 = vld [vmem:[#allocation13 + $0x34] sm:$0xf0] }
 0x72a   :  { %v9131_v40 = vpop.f32.mrf.mxu2  ;;  %v9133_v5 = vpop.f32.mrf.mxu3 }
 0x72b   :  { %10312 = vst [vmem:[#allocation66_spill] sm:$0xff] %v9131_v40  ;;  %v9135_v17 = vpop.f32.mrf.mxu0  ;;  %v9137_v39 = vpop.f32.mrf.mxu1 }
 0x72c   :  { %10313 = vst [vmem:[#allocation29_spill] sm:$0xff] %v9133_v5 }
 0x72e   :  { %6669 = vmatmul.msk.bf16.gmra.mxu0 %vm662_vm6, %v9016_v13  ;;  %6673 = vmatmul.msk.bf16.gmra.mxu1 %vm662_vm6, %v9016_v13 }
 0x72f   :  { %6677 = vmatmul.msk.bf16.gmra.mxu2 %vm662_vm6, %v9016_v13  ;;  %6681 = vmatmul.msk.bf16.gmra.mxu3 %vm662_vm6, %v9016_v13  ;;  %v6734_v13 = vld [vmem:[#allocation13 + $0x20] sm:$0xf] }
 0x730   :  { %v9174_v8 = vor.u32 %v6964_v58, %v6734_v13  ;;  %v6960_v58 = vld [vmem:[#allocation13 + $0xc] sm:$0xf0] }
 0x731   :  { %v9190_v49 = vor.u32 %v6960_v58, %v6718_v27 }
 0x732   :  { %v9150_v30 = vpop.f32.mrf.mxu2  ;;  %v9152_v28 = vpop.f32.mrf.mxu3  ;;  %3846 = vmatpush.bf16.msrb.mxu0 %v9174_v8 }
 0x733   :  { %v9154_v48 = vpop.f32.mrf.mxu0  ;;  %v9156_v12 = vpop.f32.mrf.mxu1 }
 0x734   :  { %10315 = vst [vmem:[#allocation31_spill] sm:$0xff] %v9154_v48 }
 0x735   :  { %10316 = vst [vmem:[#allocation59_spill] sm:$0xff] %v9156_v12 }
 0x736   :  { %3847 = vmatpush.bf16.msrb.mxu0 %v9190_v49 }
 0x73a   :  { %v9158_v9 = vpop.f32.mrf.mxu2  ;;  %v9160_v7 = vpop.f32.mrf.mxu3 }
 0x73b   :  { %10317 = vst [vmem:[#allocation46_spill] sm:$0xff] %v9158_v9  ;;  %v9162_v2 = vpop.f32.mrf.mxu0  ;;  %v9164_v36 = vpop.f32.mrf.mxu1  ;;  %v6959_v9 = vld [vmem:[#allocation13 + $0xc] sm:$0xf] }
 0x73c   :  { %10318 = vst [vmem:[#allocation47_spill] sm:$0xff] %v9160_v7  ;;  %v9195_v7 = vor.u32 %v6963_v43, %v6744_v55  ;;  %v9210_v43 = vor.u32 %v6959_v9, %v6728_v45 }
 0x73e   :  { %6670 = vmatmul.msk.bf16.gmra.mxu0 %vm662_vm6, %v9042_v0  ;;  %6674 = vmatmul.msk.bf16.gmra.mxu1 %vm662_vm6, %v9042_v0  ;;  %10323 = vst [vmem:[#allocation34_spill] sm:$0xff] %v9210_v43 }
 0x73f   :  { %6678 = vmatmul.msk.bf16.gmra.mxu2 %vm662_vm6, %v9042_v0  ;;  %6682 = vmatmul.msk.bf16.gmra.mxu3 %vm662_vm6, %v9042_v0  ;;  %v6742_v0 = vld [vmem:[#allocation13 + $0x28] sm:$0xf] }
 0x740   :  { %v9188_v13 = vor.u32 %v6965_v20, %v6742_v0  ;;  %3885 = vmatpush.bf16.msra.mxu3 %v9195_v7  ;;  %v6726_v20 = vld [vmem:[#allocation13 + $0x8] sm:$0xf]  ;;  %v6961_v0 = vld [vmem:[#allocation13 + $0x14] sm:$0xf0] }
 0x741   :  { %v9204_v58 = vor.u32 %v6961_v0, %v6726_v20 }
 0x742   :  { %v9178_v63 = vpop.f32.mrf.mxu2  ;;  %v9180_v3 = vpop.f32.mrf.mxu3  ;;  %3872 = vmatpush.bf16.msrb.mxu2 %v9188_v13 }
 0x743   :  { %v9183_v5 = vpop.f32.mrf.mxu0  ;;  %v9185_v40 = vpop.f32.mrf.mxu1 }
 0x744   :  { %10319 = vst [vmem:[#allocation49_spill] sm:$0xff] %v9183_v5  ;;  %3886 = vmatpush.bf16.msra.mxu3 %v9210_v43  ;;  %v9261_v5 = vld [vmem:[%s10160_s10] sm:$0xff] }
 0x745   :  { %10320 = vst [vmem:[#allocation65_spill] sm:$0xff] %v9185_v40  ;;  %v9269_v23 = vperm.slane %v9261_v5, 0 }
 0x746   :  { %3873 = vmatpush.bf16.msrb.mxu2 %v9204_v58 }
 0x74a   :  { %v9200_v12 = vpop.f32.mrf.mxu2  ;;  %v9202_v27 = vpop.f32.mrf.mxu3 }
 0x74b   :  { %10321 = vst [vmem:[#allocation33_spill] sm:$0xff] %v9200_v12  ;;  %v9206_v54 = vpop.f32.mrf.mxu0  ;;  %v9208_v55 = vpop.f32.mrf.mxu1 }
 0x74c   :  { %10322 = vst [vmem:[#allocation32_spill] sm:$0xff] %v9202_v27 }
 0x74e   :  { %6671 = vmatmul.msk.bf16.gmra.mxu0 %vm662_vm6, %v9077_v52  ;;  %6675 = vmatmul.msk.bf16.gmra.mxu1 %vm662_vm6, %v9077_v52 }
 0x74f   :  { %6679 = vmatmul.msk.bf16.gmra.mxu2 %vm662_vm6, %v9077_v52  ;;  %6683 = vmatmul.msk.bf16.gmra.mxu3 %vm662_vm6, %v9077_v52 }
 0x752   :  { %v9222_v20 = vpop.f32.mrf.mxu2  ;;  %v9224_v9 = vpop.f32.mrf.mxu3 }
 0x753   :  { %v9226_v0 = vpop.f32.mrf.mxu0  ;;  %v9228_v45 = vpop.f32.mrf.mxu1 }
 0x75a   :  { %v9230_v48 = vpop.f32.mrf.mxu2  ;;  %v9232_v34 = vpop.f32.mrf.mxu3 }
 0x75b   :  { %v9234_v15 = vpop.f32.mrf.mxu0  ;;  %v9236_v24 = vpop.f32.mrf.mxu1 }
 0x75e   :  { %3748 = vmatmul.bf16.vlgmr.msra.gmra.mxu0 %v10324_v41  ;;  %3761 = vmatmul.bf16.vlgmr.msra.gmra.mxu1 %v10324_v41 }
 0x75f   :  { %3774 = vmatmul.bf16.vlgmr.msra.gmra.mxu2 %v10324_v41  ;;  %3787 = vmatmul.bf16.vlgmr.msrb.gmra.mxu3 %v10324_v41 }
 0x760   :  { %4044 = vmatpush.bf16.msra.mxu0 %v9052_v61  ;;  %4057 = vmatpush.bf16.msra.mxu1 %v9054_v21 }
 0x761   :  { %4070 = vmatpush.bf16.msra.mxu2 %v9066_v22  ;;  %4083 = vmatpush.bf16.msrb.mxu3 %v9079_v57 }
 0x762   :  { %v9246_v52 = vpop.f32.mrf.mxu2  ;;  %v9248_v27 = vpop.f32.mrf.mxu3 }
 0x763   :  { %v9250_v12 = vpop.f32.mrf.mxu0  ;;  %v9252_v40 = vpop.f32.mrf.mxu1 }
 0x764   :  { %10325 = vst [vmem:[#allocation61_spill] sm:$0xff] %v9250_v12  ;;  %4045 = vmatpush.bf16.msra.mxu0 %v9114_v38  ;;  %4058 = vmatpush.bf16.msra.mxu1 %v9116_v33 }
 0x765   :  { %10326 = vst [vmem:[#allocation43_spill] sm:$0xff] %v9252_v40  ;;  %4071 = vmatpush.bf16.msra.mxu2 %v9128_v29  ;;  %4084 = vmatpush.bf16.msrb.mxu3 %v9139_v44  ;;  %v9273_v44 = vperm.slane %v9261_v5, 1 }
 0x76a   :  { %v9263_v31 = vpop.f32.mrf.mxu2  ;;  %v9265_v6 = vpop.f32.mrf.mxu3 }
 0x76b   :  { %10327 = vst [vmem:[#allocation44_spill] sm:$0xff] %v9263_v31  ;;  %v3316_v62 = vpop.f32.mrf.mxu0  ;;  %v3345_v12 = vpop.f32.mrf.mxu1 }
 0x76c   :  { %10328 = vst [vmem:[#allocation45_spill] sm:$0xff] %v9265_v6  ;;  %v3317_v40 = vadd.f32 %v3316_v62, %v9006_v10  ;;  %v3346_v29 = vadd.f32 %v3345_v12, %v9008_v42 }
 0x76e   :  { %v9276_v33 = vadd.f32 %v9269_v23, %v3317_v40  ;;  %v9279_v38 = vadd.f32 %v9273_v44, %v3346_v29  ;;  %3848 = vmatmul.bf16.vlgmr.msrb.gmra.mxu0 %v10324_v41  ;;  %3861 = vmatmul.bf16.vlgmr.msrb.gmra.mxu1 %v10324_v41  ;;  %v9291_v29 = vperm.slane %v9261_v5, 2 }
 0x76f   :  { %3874 = vmatmul.bf16.vlgmr.msrb.gmra.mxu2 %v10324_v41  ;;  %3887 = vmatmul.bf16.vlgmr.msra.gmra.mxu3 %v10324_v41 }
 0x770   :  { %10329 = vst [vmem:[#allocation64_spill] sm:$0xff] %v9276_v33  ;;  %4108 = vmatpush.bf16.msrb.mxu0 %v9174_v8  ;;  %4121 = vmatpush.bf16.msrb.mxu1 %v9176_v32 }
 0x771   :  { %10330 = vst [vmem:[#allocation35_spill] sm:$0xff] %v9279_v38  ;;  %4134 = vmatpush.bf16.msrb.mxu2 %v9188_v13  ;;  %4147 = vmatpush.bf16.msra.mxu3 %v9195_v7  ;;  %v9299_v38 = vperm.slane %v9261_v5, 3 }
 0x772   :  { %v3374_v62 = vpop.f32.mrf.mxu2  ;;  %v3403_v10 = vpop.f32.mrf.mxu3 }
 0x773   :  { %v3375_v42 = vadd.f32 %v3374_v62, %v9026_v18  ;;  %v3404_v40 = vadd.f32 %v3403_v10, %v9028_v37  ;;  %v9294_v12 = vpop.f32.mrf.mxu0  ;;  %v9296_v41 = vpop.f32.mrf.mxu1 }
 0x774   :  { %10331 = vst [vmem:[#allocation36_spill] sm:$0xff] %v9294_v12  ;;  %4109 = vmatpush.bf16.msrb.mxu0 %v9190_v49  ;;  %4122 = vmatpush.bf16.msrb.mxu1 %v9192_v56 }
 0x775   :  { %10332 = vst [vmem:[#allocation38_spill] sm:$0xff] %v9296_v41  ;;  %v9304_v33 = vadd.f32 %v9291_v29, %v3375_v42  ;;  %4135 = vmatpush.bf16.msrb.mxu2 %v9204_v58  ;;  %4148 = vmatpush.bf16.msra.mxu3 %v9210_v43  ;;  %v9309_v18 = vadd.f32 %v9299_v38, %v3404_v40 }
 0x777   :  { %10333 = vst [vmem:[#allocation62_spill] sm:$0xff] %v9304_v33 }
 0x778   :  { %10334 = vst [vmem:[#allocation39_spill] sm:$0xff] %v9309_v18 }
 0x77a   :  { %v9311_v37 = vpop.f32.mrf.mxu2  ;;  %v9313_v62 = vpop.f32.mrf.mxu3 }
 0x77b   :  { %10335 = vst [vmem:[#allocation40_spill] sm:$0xff] %v9311_v37  ;;  %v3321_v10 = vpop.f32.mrf.mxu0  ;;  %v3350_v41 = vpop.f32.mrf.mxu1 }
 0x77c   :  { %10336 = vst [vmem:[#allocation42_spill] sm:$0xff] %v9313_v62  ;;  %v3322_v12 = vadd.f32 %v3321_v10, %v9038_v11  ;;  %v3351_v6 = vadd.f32 %v3350_v41, %v9040_v19 }
 0x77e   :  { %v9318_v42 = vadd.f32 %v9269_v23, %v3322_v12  ;;  %v9321_v33 = vadd.f32 %v9273_v44, %v3351_v6 }
 0x782   :  { %v3379_v31 = vpop.f32.mrf.mxu2  ;;  %v3408_v43 = vpop.f32.mrf.mxu3 }
 0x783   :  { %v3380_v40 = vadd.f32 %v3379_v31, %v9056_v51  ;;  %v3409_v37 = vadd.f32 %v3408_v43, %v9058_v59  ;;  %v9325_v18 = vpop.f32.mrf.mxu0  ;;  %v9327_v62 = vpop.f32.mrf.mxu1 }
 0x784   :  { %10337 = vst [vmem:[#allocation63_spill] sm:$0xff] %v9325_v18 }
 0x785   :  { %10338 = vst [vmem:[#allocation69_spill] sm:$0xff] %v9327_v62  ;;  %v9330_v11 = vadd.f32 %v9291_v29, %v3380_v40  ;;  %v9333_v19 = vadd.f32 %v9299_v38, %v3409_v37 }
 0x787   :  { %10339 = vst [vmem:[#allocation70_spill] sm:$0xff] %v9330_v11 }
 0x788   :  { %10340 = vst [vmem:[#allocation71_spill] sm:$0xff] %v9333_v19 }
 0x78a   :  { %v9335_v12 = vpop.f32.mrf.mxu2  ;;  %v9337_v6 = vpop.f32.mrf.mxu3 }
 0x78b   :  { %10341 = vst [vmem:[#allocation72_spill] sm:$0xff] %v9335_v12  ;;  %v3326_v41 = vpop.f32.mrf.mxu0  ;;  %v3355_v10 = vpop.f32.mrf.mxu1 }
 0x78c   :  { %10342 = vst [vmem:[#allocation73_spill] sm:$0xff] %v9337_v6  ;;  %v3327_v31 = vadd.f32 %v3326_v41, %v9073_v47  ;;  %v3356_v51 = vadd.f32 %v3355_v10, %v9075_v4 }
 0x78e   :  { %v9342_v59 = vadd.f32 %v9269_v23, %v3327_v31  ;;  %v9345_v43 = vadd.f32 %v9273_v44, %v3356_v51  ;;  %v9364_v31 = vperm.slane %v9261_v5, 4 }
 0x790   :  { %10343 = vst [vmem:[#allocation74_spill] sm:$0xff] %v9342_v59 }
 0x791   :  { %10344 = vst [vmem:[#allocation75_spill] sm:$0xff] %v9345_v43 }
 0x792   :  { %v3384_v40 = vpop.f32.mrf.mxu2  ;;  %v3413_v62 = vpop.f32.mrf.mxu3 }
 0x793   :  { %v3385_v37 = vadd.f32 %v3384_v40, %v9090_v1  ;;  %v3414_v12 = vadd.f32 %v3413_v62, %v9092_v53  ;;  %v9349_v18 = vpop.f32.mrf.mxu0  ;;  %v9351_v6 = vpop.f32.mrf.mxu1  ;;  %v9367_v1 = vperm.slane %v9261_v5, 5 }
 0x794   :  { %10345 = vst [vmem:[#allocation76_spill] sm:$0xff] %v9349_v18 }
 0x795   :  { %10346 = vst [vmem:[#allocation77_spill] sm:$0xff] %v9351_v6  ;;  %v9354_v47 = vadd.f32 %v9291_v29, %v3385_v37  ;;  %v9357_v4 = vadd.f32 %v9299_v38, %v3414_v12 }
 0x797   :  { %10347 = vst [vmem:[#allocation78_spill] sm:$0xff] %v9354_v47 }
 0x798   :  { %10348 = vst [vmem:[#allocation79_spill] sm:$0xff] %v9357_v4 }
 0x79a   :  { %v9359_v41 = vpop.f32.mrf.mxu2  ;;  %v9361_v10 = vpop.f32.mrf.mxu3 }
 0x79b   :  { %10349 = vst [vmem:[#allocation80_spill] sm:$0xff] %v9359_v41  ;;  %v3427_v53 = vpop.f32.mrf.mxu0  ;;  %v3456_v62 = vpop.f32.mrf.mxu1  ;;  %v9381_v41 = vperm.slane %v9261_v5, 7 }
 0x79c   :  { %10350 = vst [vmem:[#allocation81_spill] sm:$0xff] %v9361_v10  ;;  %v3428_v51 = vadd.f32 %v3427_v53, %v9102_v14  ;;  %v3457_v40 = vadd.f32 %v3456_v62, %v9104_v46  ;;  %v9378_v10 = vperm.slane %v9261_v5, 6 }
 0x79e   :  { %v9372_v37 = vadd.f32 %v9364_v31, %v3428_v51  ;;  %v9375_v12 = vadd.f32 %v9367_v1, %v3457_v40 }
 0x7a0   :  { %10351 = vst [vmem:[#allocation82_spill] sm:$0xff] %v9372_v37 }
 0x7a1   :  { %10352 = vst [vmem:[#allocation83_spill] sm:$0xff] %v9375_v12 }
 0x7a2   :  { %v3485_v6 = vpop.f32.mrf.mxu2  ;;  %v3514_v18 = vpop.f32.mrf.mxu3 }
 0x7a3   :  { %v3486_v4 = vadd.f32 %v3485_v6, %v9118_v35  ;;  %v3515_v14 = vadd.f32 %v3514_v18, %v9120_v50  ;;  %v9385_v53 = vpop.f32.mrf.mxu0  ;;  %v9387_v46 = vpop.f32.mrf.mxu1 }
 0x7a4   :  { %10353 = vst [vmem:[#allocation84_spill] sm:$0xff] %v9385_v53 }
 0x7a5   :  { %10354 = vst [vmem:[#allocation85_spill] sm:$0xff] %v9387_v46  ;;  %v9390_v62 = vadd.f32 %v9378_v10, %v3486_v4  ;;  %v9393_v51 = vadd.f32 %v9381_v41, %v3515_v14 }
 0x7a7   :  { %10355 = vst [vmem:[#allocation86_spill] sm:$0xff] %v9390_v62 }
 0x7a8   :  { %10356 = vst [vmem:[#allocation87_spill] sm:$0xff] %v9393_v51 }
 0x7aa   :  { %v9395_v40 = vpop.f32.mrf.mxu2  ;;  %v9397_v5 = vpop.f32.mrf.mxu3 }
 0x7ab   :  { %10357 = vst [vmem:[#allocation88_spill] sm:$0xff] %v9395_v40  ;;  %v3432_v12 = vpop.f32.mrf.mxu0  ;;  %v3461_v37 = vpop.f32.mrf.mxu1 }
 0x7ac   :  { %10358 = vst [vmem:[#allocation89_spill] sm:$0xff] %v9397_v5  ;;  %v3433_v35 = vadd.f32 %v3432_v12, %v9135_v17  ;;  %v3462_v50 = vadd.f32 %v3461_v37, %v9137_v39 }
 0x7ae   :  { %v9402_v18 = vadd.f32 %v9364_v31, %v3433_v35  ;;  %v9405_v6 = vadd.f32 %v9367_v1, %v3462_v50 }
 0x7b0   :  { %10359 = vst [vmem:[#allocation90_spill] sm:$0xff] %v9402_v18 }
 0x7b1   :  { %10360 = vst [vmem:[#allocation91_spill] sm:$0xff] %v9405_v6 }
 0x7b2   :  { %v3490_v4 = vpop.f32.mrf.mxu2  ;;  %v3519_v62 = vpop.f32.mrf.mxu3 }
 0x7b3   :  { %v3491_v14 = vadd.f32 %v3490_v4, %v9150_v30  ;;  %v3520_v51 = vadd.f32 %v3519_v62, %v9152_v28  ;;  %v9409_v40 = vpop.f32.mrf.mxu0  ;;  %v9411_v5 = vpop.f32.mrf.mxu1 }
 0x7b4   :  { %10361 = vst [vmem:[#allocation92_spill] sm:$0xff] %v9409_v40 }
 0x7b5   :  { %10362 = vst [vmem:[#allocation93_spill] sm:$0xff] %v9411_v5  ;;  %v9414_v17 = vadd.f32 %v9378_v10, %v3491_v14  ;;  %v9417_v39 = vadd.f32 %v9381_v41, %v3520_v51 }
 0x7b7   :  { %10363 = vst [vmem:[#allocation94_spill] sm:$0xff] %v9414_v17 }
 0x7b8   :  { %10364 = vst [vmem:[#allocation95_spill] sm:$0xff] %v9417_v39 }
 0x7ba   :  { %v9419_v37 = vpop.f32.mrf.mxu2  ;;  %v9421_v12 = vpop.f32.mrf.mxu3 }
 0x7bb   :  { %10365 = vst [vmem:[#allocation96_spill] sm:$0xff] %v9419_v37  ;;  %v3437_v35 = vpop.f32.mrf.mxu0  ;;  %v3466_v50 = vpop.f32.mrf.mxu1 }
 0x7bc   :  { %10366 = vst [vmem:[#allocation97_spill] sm:$0xff] %v9421_v12  ;;  %v3438_v30 = vadd.f32 %v3437_v35, %v9162_v2  ;;  %v3467_v28 = vadd.f32 %v3466_v50, %v9164_v36 }
 0x7be   :  { %v9426_v62 = vadd.f32 %v9364_v31, %v3438_v30  ;;  %v9429_v4 = vadd.f32 %v9367_v1, %v3467_v28 }
 0x7c2   :  { %v3495_v14 = vpop.f32.mrf.mxu2  ;;  %v3524_v46 = vpop.f32.mrf.mxu3 }
 0x7c3   :  { %v3496_v51 = vadd.f32 %v3495_v14, %v9178_v63  ;;  %v3525_v53 = vadd.f32 %v3524_v46, %v9180_v3  ;;  %v9433_v47 = vpop.f32.mrf.mxu0  ;;  %v9435_v43 = vpop.f32.mrf.mxu1 }
 0x7c5   :  { %v9438_v2 = vadd.f32 %v9378_v10, %v3496_v51  ;;  %v9441_v36 = vadd.f32 %v9381_v41, %v3525_v53 }
 0x7ca   :  { %v9443_v35 = vpop.f32.mrf.mxu2  ;;  %v9445_v50 = vpop.f32.mrf.mxu3 }
 0x7cb   :  { %v3442_v30 = vpop.f32.mrf.mxu0  ;;  %v3471_v28 = vpop.f32.mrf.mxu1 }
 0x7cc   :  { %v3443_v63 = vadd.f32 %v3442_v30, %v9206_v54  ;;  %v3472_v3 = vadd.f32 %v3471_v28, %v9208_v55  ;;  %v3312_v55 = vadd.f32 %v9234_v15, %v8962_v25  ;;  %v3341_v30 = vadd.f32 %v9236_v24, %v8964_v16 }
 0x7ce   :  { %v9450_v46 = vadd.f32 %v9364_v31, %v3443_v63  ;;  %v9453_v14 = vadd.f32 %v9367_v1, %v3472_v3 }
 0x7d2   :  { %v3500_v51 = vpop.f32.mrf.mxu2  ;;  %v3529_v59 = vpop.f32.mrf.mxu3 }
 0x7d3   :  { %v3501_v53 = vadd.f32 %v3500_v51, %v9222_v20  ;;  %v3530_v39 = vadd.f32 %v3529_v59, %v9224_v9  ;;  %v3444_v17 = vpop.f32.mrf.mxu0  ;;  %v3473_v6 = vpop.f32.mrf.mxu1  ;;  %v3552_v20 = vadd.f32 %v9269_v23, %v3312_v55  ;;  %v3553_v9 = vadd.f32 %v9273_v44, %v3341_v30 }
 0x7d4   :  { %v3445_v40 = vadd.f32 %v3444_v17, %v9226_v0 }
 0x7d5   :  { %v9458_v18 = vadd.f32 %v9378_v10, %v3501_v53  ;;  %v9461_v54 = vadd.f32 %v9381_v41, %v3530_v39  ;;  %v3370_v39 = vadd.f32 %v9246_v52, %v8988_v26  ;;  %v3399_v26 = vadd.f32 %v9248_v27, %v8990_v60 }
 0x7d7   :  { %v3554_v25 = vadd.f32 %v9291_v29, %v3370_v39 }
 0x7da   :  { %v3502_v28 = vpop.f32.mrf.mxu2  ;;  %v9467_v63 = vpop.f32.mrf.mxu3 }
 0x7db   :  { %v3749_v59 = vpop.f32.mrf.mxu0  ;;  %v3762_v3 = vpop.f32.mrf.mxu1  ;;  %v3503_v60 = vadd.f32 %v3502_v28, %v9230_v48 }
 0x7dc   :  { %v3792_v51 = vadd.f32 %v3749_v59, %v3552_v20  ;;  %v3793_v53 = vadd.f32 %v3762_v3, %v3553_v9  ;;  %v3474_v20 = vadd.f32 %v3473_v6, %v9228_v45 }
 0x7de   :  { %v6748_v12 = vmul.f32 -1.442695, %v3792_v51  ;;  %v6749_v19 = vmul.f32 -1.442695, %v3793_v53  ;;  %v3613_v3 = vadd.f32 %v9367_v1, %v3474_v20  ;;  %v3555_v51 = vadd.f32 %v9299_v38, %v3399_v26 }
 0x7e0   :  { %7242 = vpow2.f32 %v6748_v12 }
 0x7e1   :  { %7244 = vpow2.f32 %v6749_v19 }
 0x7e2   :  { %v3775_v16 = vpop.f32.mrf.mxu2  ;;  %v3788_v24 = vpop.f32.mrf.mxu3 }
 0x7e3   :  { %v3794_v15 = vadd.f32 %v3775_v16, %v3554_v25  ;;  %v3751_v37 = vpop.f32.mrf.mxu0  ;;  %v3764_v55 = vpop.f32.mrf.mxu1  ;;  %v3795_v27 = vadd.f32 %v3788_v24, %v3555_v51 }
 0x7e4   :  { %v3612_v37 = vadd.f32 %v9364_v31, %v3445_v40 }
 0x7e5   :  { %v6750_v5 = vmul.f32 -1.442695, %v3794_v15 }
 0x7e6   :  { %v7243_v30 = vpop.eup %7242 }
 0x7e7   :  { %v7245_v9 = vpop.eup %7244  ;;  %v3905_v52 = vadd.f32 1.0, %v7243_v30  ;;  %7246 = vpow2.f32 %v6750_v5  ;;  %v3614_v30 = vadd.f32 %v9378_v10, %v3503_v60 }
 0x7e8   :  { %v3906_v19 = vadd.f32 1.0, %v7245_v9 }
 0x7e9   :  { %7248 = vrcp.f32 %v3905_v52  ;;  %v3917_v9 = vand.u32 2147483647, %v3905_v52  ;;  %v3919_v28 = vand.u32 2147483648, %v3905_v52  ;;  %vm3913_vm1 = vweird.f32 %v3905_v52 }
 0x7ea   :  { %7250 = vrcp.f32 %v3906_v19  ;;  %v3777_v12 = vpop.f32.mrf.mxu2  ;;  %v3790_v59 = vpop.f32.mrf.mxu3  ;;  %vm3928_vm0 = vweird.f32 %v3906_v19 }
 0x7eb   :  { %v3849_v0 = vpop.f32.mrf.mxu0  ;;  %v3862_v17 = vpop.f32.mrf.mxu1  ;;  %vm3918_vm3 = vcmp.eq.f32.partialorder %v3917_v9, 8.507059e+37 }
 0x7ec   :  { %v3892_v45 = vadd.f32 %v3849_v0, %v3612_v37  ;;  %v3893_v6 = vadd.f32 %v3862_v17, %v3613_v3  ;;  %v3934_v3 = vand.u32 2147483648, %v3906_v19  ;;  %v3932_v0 = vand.u32 2147483647, %v3906_v19 }
 0x7ed   :  { %v7247_v53 = vpop.eup %7246 }
 0x7ee   :  { %v9482_v5 = vadd.f32 1.0, %v7247_v53  ;;  %v6751_v39 = vmul.f32 -1.442695, %v3892_v45  ;;  %v6752_v16 = vmul.f32 -1.442695, %v3893_v6  ;;  %vm3933_vm5 = vcmp.eq.f32.partialorder %v3932_v0, 8.507059e+37 }
 0x7ef   :  { %v7249_v25 = vpop.eup %7248  ;;  %v4022_v0 = vld [vmem:[%s10151_s1] sm:$0xff] }
 0x7f0   :  { %v7251_v15 = vpop.eup %7250  ;;  %v3909_v55 = vmul.f32 %v7249_v25, %v3905_v52  ;;  %7252 = vrcp.f32 %v9482_v5  ;;  %vm3914_vm14 = vweird.f32 %v7249_v25  ;;  %v3532_v52 = vadd.f32 %v9467_v63, %v9232_v34 }
 0x7f1   :  { %v3924_v40 = vmul.f32 %v7251_v15, %v3906_v19  ;;  %7254 = vtanh.f32 %v3795_v27  ;;  %vm3929_vm15 = vweird.f32 %v7251_v15  ;;  %vm3915_vm2 = vmor %vm3913_vm1, %vm3914_vm14  ;;  %vm3943_vm8 = vweird.f32 %v9482_v5 }
 0x7f2   :  { %v3910_v20 = vsub.f32 1.0, %v3909_v55  ;;  %7256 = vpow2.f32 %v6751_v39  ;;  %v3875_v26 = vpop.f32.mrf.mxu2  ;;  %v3888_v12 = vpop.f32.mrf.mxu3  ;;  %v3920_v39 = vor.u32 1.1754944e-38, %v3919_v28  ;;  %vm3930_vm4 = vmor %vm3928_vm0, %vm3929_vm15  ;;  %v3615_v63 = vadd.f32 %v9381_v41, %v3532_v52 }
 0x7f3   :  { %v3925_v48 = vsub.f32 1.0, %v3924_v40  ;;  %7258 = vpow2.f32 %v6752_v16  ;;  %v3894_v24 = vadd.f32 %v3875_v26, %v3614_v30  ;;  %v3851_v59 = vpop.f32.mrf.mxu0  ;;  %v3864_v37 = vpop.f32.mrf.mxu1  ;;  %v3935_v40 = vor.u32 1.1754944e-38, %v3934_v3 }
 0x7f4   :  { %v3911_v51 = vmul.f32 %v7249_v25, %v3910_v20 }
 0x7f5   :  { %v3926_v17 = vmul.f32 %v7251_v15, %v3925_v48  ;;  %v6753_v45 = vmul.f32 -1.442695, %v3894_v24 }
 0x7f6   :  { %v7253_v6 = vpop.eup %7252  ;;  %v3912_v53 = vadd.f32 %v7249_v25, %v3911_v51 }
 0x7f7   :  { %v7255_v60 = vpop.eup %7254  ;;  %v3939_v27 = vmul.f32 %v7253_v6, %v9482_v5  ;;  %v3927_v16 = vadd.f32 %v7251_v15, %v3926_v17  ;;  %7260 = vpow2.f32 %v6753_v45  ;;  %vm3944_vm7 = vweird.f32 %v7253_v6 }
 0x7f8   :  { %v7257_v55 = vpop.eup %7256  ;;  %v3916_v30 = vsel %vm3915_vm2, %v7249_v25, %v3912_v53  ;;  %v3949_v53 = vand.u32 2147483648, %v9482_v5  ;;  %vm3945_vm9 = vmor %vm3943_vm8, %vm3944_vm7 }
 0x7f9   :  { %v7259_v20 = vpop.eup %7258  ;;  %v3940_v26 = vsub.f32 1.0, %v3939_v27  ;;  %v3921_v48 = vsel %vm3918_vm3, %v3920_v39, %v3916_v30  ;;  %v3931_v19 = vsel %vm3930_vm4, %v7251_v15, %v3927_v16  ;;  %v9488_v24 = vadd.f32 1.0, %v7257_v55 }
 0x7fa   :  { %v3936_v59 = vsel %vm3933_vm5, %v3935_v40, %v3931_v19  ;;  %v3955_v28 = vmul.f32 %v7255_v60, %v3921_v48  ;;  %v9492_v37 = vadd.f32 1.0, %v7259_v20  ;;  %v3877_v51 = vpop.f32.mrf.mxu2  ;;  %v3890_v3 = vpop.f32.mrf.mxu3  ;;  %v3947_v27 = vand.u32 2147483647, %v9482_v5 }
 0x7fb   :  { %v3941_v25 = vmul.f32 %v7253_v6, %v3940_v26  ;;  %v3954_v9 = vmul.f32 0.0, %v3936_v59  ;;  %7262 = vrcp.f32 %v9488_v24  ;;  %v3895_v39 = vadd.f32 %v3888_v12, %v3615_v63 }
 0x7fc   :  { %7264 = vrcp.f32 %v9492_v37  ;;  %v3950_v20 = vor.u32 1.1754944e-38, %v3949_v53  ;;  %vm3948_vm10 = vcmp.eq.f32.partialorder %v3947_v27, 8.507059e+37  ;;  %v3997_v5 = vand.u32 2147483648, %v9492_v37 }
 0x7fd   :  { %v7261_v15 = vpop.eup %7260  ;;  %v3956_v17 = vadd.f32 %v3955_v28, %v3954_v9  ;;  %v3942_v45 = vadd.f32 %v7253_v6, %v3941_v25  ;;  %v3982_v28 = vand.u32 2147483648, %v9488_v24  ;;  %vm3976_vm13 = vweird.f32 %v9488_v24 }
 0x7fe   :  { %v9499_v34 = vadd.f32 1.0, %v7261_v15  ;;  %v3995_v15 = vand.u32 2147483647, %v9492_v37  ;;  %vm3991_vm14 = vweird.f32 %v9492_v37 }
 0x7ff   :  { %7266 = vtanh.f32 %v3956_v17  ;;  %v9503_v60 = vmul.f32 %v4022_v0, %v3956_v17  ;;  %v3946_v40 = vsel %vm3945_vm9, %v7253_v6, %v3942_v45  ;;  %v3980_v6 = vand.u32 2147483647, %v9488_v24 }
 0x800   :  { %7268 = vrcp.f32 %v9499_v34  ;;  %v3951_v52 = vsel %vm3948_vm10, %v3950_v20, %v3946_v40  ;;  %v3983_v53 = vor.u32 1.1754944e-38, %v3982_v28  ;;  %vm3996_vm2 = vcmp.eq.f32.partialorder %v3995_v15, 8.507059e+37 }
 0x801   :  { %v7263_v16 = vpop.eup %7262  ;;  %7270 = vtanh.f32 %v3895_v39  ;;  %vm3981_vm0 = vcmp.eq.f32.partialorder %v3980_v6, 8.507059e+37  ;;  %vm4006_vm4 = vweird.f32 %v9499_v34  ;;  %v4010_v28 = vand.u32 2147483647, %v9499_v34  ;;  %v10369_v6 = vld [vmem:[#allocation53_spill] sm:$0xff] }
 0x802   :  { %v7265_v55 = vpop.eup %7264  ;;  %v3972_v30 = vmul.f32 %v7263_v16, %v9488_v24  ;;  %vm3977_vm11 = vweird.f32 %v7263_v16 }
 0x803   :  { %v3987_v26 = vmul.f32 %v7265_v55, %v9492_v37  ;;  %vm3992_vm12 = vweird.f32 %v7265_v55  ;;  %vm3978_vm15 = vmor %vm3976_vm13, %vm3977_vm11  ;;  %vm4011_vm7 = vcmp.eq.f32.partialorder %v4010_v28, 8.507059e+37 }
 0x804   :  { %v3973_v48 = vsub.f32 1.0, %v3972_v30  ;;  %v3998_v30 = vor.u32 1.1754944e-38, %v3997_v5  ;;  %vm3993_vm1 = vmor %vm3991_vm14, %vm3992_vm12 }
 0x805   :  { %v7267_v19 = vpop.eup %7266  ;;  %v3988_v59 = vsub.f32 1.0, %v3987_v26 }
 0x806   :  { %v7269_v12 = vpop.eup %7268  ;;  %v3958_v51 = vmul.f32 %v7267_v19, %v3951_v52  ;;  %v3974_v3 = vmul.f32 %v7263_v16, %v3973_v48 }
 0x807   :  { %v3989_v25 = vmul.f32 %v7265_v55, %v3988_v59  ;;  %v4002_v9 = vmul.f32 %v7269_v12, %v9499_v34  ;;  %v7271_v39 = vpop.eup %7270  ;;  %vm4007_vm3 = vweird.f32 %v7269_v12  ;;  %v4012_v59 = vand.u32 2147483648, %v9499_v34  ;;  %v10371_v34 = vld [vmem:[#allocation34_spill] sm:$0xff] }
 0x808   :  { %v4024_v17 = vmul.f32 %v4022_v0, %v3958_v51  ;;  %v3975_v45 = vadd.f32 %v7263_v16, %v3974_v3  ;;  %v10367_v51 = vld [vmem:[#allocation28_spill] sm:$0xff]  ;;  %vm4008_vm5 = vmor %vm4006_vm4, %vm4007_vm3 }
 0x809   :  { %v4003_v63 = vsub.f32 1.0, %v4002_v9  ;;  %v3990_v27 = vadd.f32 %v7265_v55, %v3989_v25  ;;  %v10368_v3 = vld [vmem:[#allocation56_spill] sm:$0xff]  ;;  %v10370_v25 = vld [vmem:[#allocation30_spill] sm:$0xff]  ;;  %v4013_v15 = vor.u32 1.1754944e-38, %v4012_v59 }
 0x80a   :  { %4028 = vst.msk [vmem:[#allocation3] sm:$0xff] %vm662_vm6, %v4024_v17  ;;  %v4034_v40 = vpack.c.bf16 %v4024_v17, %v4024_v17  ;;  %v3979_v20 = vsel %vm3978_vm15, %v7263_v16, %v3975_v45  ;;  %v6754_v16 = vld [vmem:[%s10151_s1 + $0x38] sm:$0xff] }
 0x80b   :  { %v3984_v26 = vsel %vm3981_vm0, %v3983_v53, %v3979_v20  ;;  %v3994_v0 = vsel %vm3993_vm1, %v7265_v55, %v3990_v27  ;;  %v4004_v48 = vmul.f32 %v7269_v12, %v4003_v63  ;;  %v10375_v20 = vld [vmem:[#allocation43_spill] sm:$0xff] }
 0x80c   :  { %v3999_v24 = vsel %vm3996_vm2, %v3998_v30, %v3994_v0  ;;  %v4018_v19 = vmul.f32 %v7271_v39, %v3984_v26  ;;  %6755 = vmatmul.msk.bf16.vlgmr.msra.gmra.mxu0 %vm662_vm6, %v4034_v40  ;;  %6756 = vmatmul.msk.bf16.vlgmr.msra.gmra.mxu1 %vm662_vm6, %v4034_v40  ;;  %v10373_v39 = vld [vmem:[#allocation61_spill] sm:$0xff]  ;;  %v10374_v30 = vld [vmem:[#allocation58_spill] sm:$0xff] }
 0x80d   :  { %v4017_v37 = vmul.f32 0.0, %v3999_v24  ;;  %6757 = vmatmul.msk.bf16.vlgmr.msra.gmra.mxu2 %vm662_vm6, %v4034_v40  ;;  %6758 = vmatmul.msk.bf16.vlgmr.msrb.gmra.mxu3 %vm662_vm6, %v4034_v40  ;;  %v4005_v52 = vadd.f32 %v7269_v12, %v4004_v48  ;;  %v3343_v26 = vadd.f32 %v10375_v20, %v10374_v30  ;;  %v10378_v20 = vld [vmem:[#allocation41_spill] sm:$0xff] }
 0x80e   :  { %4306 = vmatpush.bf16.msra.mxu0 %v9052_v61  ;;  %4319 = vmatpush.bf16.msra.mxu1 %v9054_v21 }
 0x80f   :  { %v4019_v55 = vadd.f32 %v4018_v19, %v4017_v37  ;;  %4332 = vmatpush.bf16.msra.mxu2 %v9066_v22  ;;  %4345 = vmatpush.bf16.msrb.mxu3 %v9079_v57  ;;  %v4009_v9 = vsel %vm4008_vm5, %v7269_v12, %v4005_v52  ;;  %v10372_v12 = vld [vmem:[#allocation37_spill] sm:$0xff]  ;;  %v3561_v48 = vadd.f32 %v9273_v44, %v3343_v26  ;;  %v10377_v52 = vld [vmem:[#allocation44_spill] sm:$0xff] }
 0x810   :  { %v4014_v45 = vsel %vm4011_vm7, %v4013_v15, %v4009_v9  ;;  %v3314_v40 = vadd.f32 %v10373_v39, %v10372_v12  ;;  %v10379_v26 = vld [vmem:[#allocation45_spill] sm:$0xff] }
 0x811   :  { %7272 = vtanh.f32 %v4019_v55  ;;  %v9531_v5 = vmul.f32 %v6754_v16, %v4019_v55  ;;  %v10376_v55 = vld [vmem:[#allocation48_spill] sm:$0xff] }
 0x812   :  { %4307 = vmatpush.bf16.msra.mxu0 %v10367_v51  ;;  %4320 = vmatpush.bf16.msra.mxu1 %v10368_v3  ;;  %v3560_v0 = vadd.f32 %v9269_v23, %v3314_v40  ;;  %v3372_v59 = vadd.f32 %v10377_v52, %v10376_v55 }
 0x813   :  { %4333 = vmatpush.bf16.msra.mxu2 %v10369_v6  ;;  %4346 = vmatpush.bf16.msrb.mxu3 %v10370_v25 }
 0x814   :  { %v3562_v15 = vadd.f32 %v9291_v29, %v3372_v59 }
 0x817   :  { %v7273_v17 = vpop.eup %7272 }
 0x818   :  { %v4021_v63 = vmul.f32 %v7273_v17, %v4014_v45 }
 0x81a   :  { %v4026_v53 = vmul.f32 %v6754_v16, %v4021_v63 }
 0x81c   :  { %4029 = vst.msk [vmem:[#allocation4 + $0x38] sm:$0xff] %vm662_vm6, %v4026_v53  ;;  %v4098_v27 = vpack.c.bf16 %v4026_v53, %v4026_v53 }
 0x81e   :  { %6759 = vmatmul.msk.bf16.vlgmr.msrb.gmra.mxu0 %vm662_vm6, %v4098_v27  ;;  %6760 = vmatmul.msk.bf16.vlgmr.msrb.gmra.mxu1 %vm662_vm6, %v4098_v27 }
 0x81f   :  { %6761 = vmatmul.msk.bf16.vlgmr.msrb.gmra.mxu2 %vm662_vm6, %v4098_v27  ;;  %6762 = vmatmul.msk.bf16.vlgmr.msra.gmra.mxu3 %vm662_vm6, %v4098_v27 }
 0x820   :  { %4370 = vmatpush.bf16.msrb.mxu0 %v9174_v8  ;;  %4383 = vmatpush.bf16.msrb.mxu1 %v9176_v32 }
 0x821   :  { %4396 = vmatpush.bf16.msrb.mxu2 %v9188_v13  ;;  %4409 = vmatpush.bf16.msra.mxu3 %v9195_v7 }
 0x824   :  { %4371 = vmatpush.bf16.msrb.mxu0 %v9190_v49  ;;  %4384 = vmatpush.bf16.msrb.mxu1 %v9192_v56 }
 0x825   :  { %4397 = vmatpush.bf16.msrb.mxu2 %v9204_v58  ;;  %4410 = vmatpush.bf16.msra.mxu3 %v10371_v34 }
 0x889   :  { %v4047_v24 = vpop.f32.mrf.mxu0  ;;  %v4060_v19 = vpop.f32.mrf.mxu1 }
 0x88a   :  { %v4090_v37 = vadd.f32 %v4047_v24, %v3560_v0  ;;  %v4091_v16 = vadd.f32 %v4060_v19, %v3561_v48  ;;  %v3401_v0 = vadd.f32 %v10379_v26, %v10378_v20 }
 0x88c   :  { %v6763_v28 = vmul.f32 -1.442695, %v4090_v37  ;;  %v6764_v9 = vmul.f32 -1.442695, %v4091_v16  ;;  %v3563_v37 = vadd.f32 %v9299_v38, %v3401_v0 }
 0x88e   :  { %7274 = vpow2.f32 %v6763_v28 }
 0x88f   :  { %7276 = vpow2.f32 %v6764_v9 }
 0x890   :  { %v4073_v17 = vpop.f32.mrf.mxu2  ;;  %v4086_v45 = vpop.f32.mrf.mxu3 }
 0x891   :  { %v4092_v63 = vadd.f32 %v4073_v17, %v3562_v15  ;;  %v4049_v53 = vpop.f32.mrf.mxu0  ;;  %v4062_v27 = vpop.f32.mrf.mxu1  ;;  %v4093_v28 = vadd.f32 %v4086_v45, %v3563_v37 }
 0x893   :  { %v6765_v12 = vmul.f32 -1.442695, %v4092_v63 }
 0x894   :  { %v7275_v39 = vpop.eup %7274 }
 0x895   :  { %v7277_v40 = vpop.eup %7276  ;;  %v4167_v30 = vadd.f32 1.0, %v7275_v39  ;;  %7278 = vpow2.f32 %v6765_v12 }
 0x896   :  { %v4168_v48 = vadd.f32 1.0, %v7277_v40 }
 0x897   :  { %7280 = vrcp.f32 %v4167_v30  ;;  %v4179_v0 = vand.u32 2147483647, %v4167_v30  ;;  %vm4175_vm11 = vweird.f32 %v4167_v30 }
 0x898   :  { %7282 = vrcp.f32 %v4168_v48  ;;  %v4075_v24 = vpop.f32.mrf.mxu2  ;;  %v4088_v19 = vpop.f32.mrf.mxu3  ;;  %v4196_v26 = vand.u32 2147483648, %v4168_v48  ;;  %v4194_v45 = vand.u32 2147483647, %v4168_v48  ;;  %vm4190_vm10 = vweird.f32 %v4168_v48 }
 0x899   :  { %v4181_v24 = vand.u32 2147483648, %v4167_v30  ;;  %vm4180_vm14 = vcmp.eq.f32.partialorder %v4179_v0, 8.507059e+37 }
 0x89a   :  { %vm4195_vm15 = vcmp.eq.f32.partialorder %v4194_v45, 8.507059e+37 }
 0x89b   :  { %v7279_v16 = vpop.eup %7278  ;;  %v4111_v55 = vpop.f32.mrf.mxu0 }
 0x89c   :  { %v4124_v52 = vpop.f32.mrf.mxu1  ;;  %v9564_v59 = vadd.f32 1.0, %v7279_v16  ;;  %v4154_v9 = vadd.f32 %v4111_v55, %v9450_v46 }
 0x89d   :  { %v4155_v15 = vadd.f32 %v4124_v52, %v9453_v14  ;;  %v7281_v17 = vpop.eup %7280 }
 0x89e   :  { %v7283_v63 = vpop.eup %7282  ;;  %v4171_v53 = vmul.f32 %v7281_v17, %v4167_v30  ;;  %7284 = vrcp.f32 %v9564_v59  ;;  %v6766_v39 = vmul.f32 -1.442695, %v4154_v9  ;;  %vm4176_vm8 = vweird.f32 %v7281_v17 }
 0x89f   :  { %v4186_v27 = vmul.f32 %v7283_v63, %v4168_v48  ;;  %7286 = vtanh.f32 %v4093_v28  ;;  %v6767_v40 = vmul.f32 -1.442695, %v4155_v15  ;;  %vm4191_vm9 = vweird.f32 %v7283_v63  ;;  %vm4177_vm12 = vmor %vm4175_vm11, %vm4176_vm8 }
 0x8a0   :  { %v4172_v12 = vsub.f32 1.0, %v4171_v53  ;;  %7288 = vpow2.f32 %v6766_v39  ;;  %v4182_v53 = vor.u32 1.1754944e-38, %v4181_v24  ;;  %vm4192_vm13 = vmor %vm4190_vm10, %vm4191_vm9  ;;  %vm4205_vm1 = vweird.f32 %v9564_v59 }
 0x8a1   :  { %v4187_v20 = vsub.f32 1.0, %v4186_v27  ;;  %7290 = vpow2.f32 %v6767_v40 }
 0x8a2   :  { %v4173_v19 = vmul.f32 %v7281_v17, %v4172_v12  ;;  %v4137_v46 = vpop.f32.mrf.mxu2  ;;  %v4150_v14 = vpop.f32.mrf.mxu3 }
 0x8a3   :  { %v4188_v37 = vmul.f32 %v7283_v63, %v4187_v20  ;;  %v4156_v16 = vadd.f32 %v4137_v46, %v9458_v18  ;;  %v4113_v55 = vpop.f32.mrf.mxu0  ;;  %v4197_v20 = vor.u32 1.1754944e-38, %v4196_v26 }
 0x8a4   :  { %v4126_v52 = vpop.f32.mrf.mxu1  ;;  %v7285_v28 = vpop.eup %7284  ;;  %v4174_v9 = vadd.f32 %v7281_v17, %v4173_v19 }
 0x8a5   :  { %v4201_v15 = vmul.f32 %v7285_v28, %v9564_v59  ;;  %v4189_v27 = vadd.f32 %v7283_v63, %v4188_v37  ;;  %v6768_v12 = vmul.f32 -1.442695, %v4156_v16  ;;  %v7287_v39 = vpop.eup %7286  ;;  %v6769_v16 = vld [vmem:[%s10151_s1 + $0x8] sm:$0xff]  ;;  %vm4206_vm0 = vweird.f32 %v7285_v28 }
 0x8a6   :  { %v4178_v40 = vsel %vm4177_vm12, %v7281_v17, %v4174_v9  ;;  %v7289_v48 = vpop.eup %7288  ;;  %vm4207_vm2 = vmor %vm4205_vm1, %vm4206_vm0 }
 0x8a7   :  { %v4202_v18 = vsub.f32 1.0, %v4201_v15  ;;  %v4183_v46 = vsel %vm4180_vm14, %v4182_v53, %v4178_v40  ;;  %v4193_v55 = vsel %vm4192_vm13, %v7283_v63, %v4189_v27  ;;  %7292 = vpow2.f32 %v6768_v12  ;;  %v7291_v52 = vpop.eup %7290 }
 0x8a8   :  { %v4198_v30 = vsel %vm4195_vm15, %v4197_v20, %v4193_v55  ;;  %v4217_v19 = vmul.f32 %v7287_v39, %v4183_v46  ;;  %v4230_v37 = vadd.f32 1.0, %v7289_v48  ;;  %v4231_v26 = vadd.f32 1.0, %v7291_v52 }
 0x8a9   :  { %v4203_v11 = vmul.f32 %v7285_v28, %v4202_v18  ;;  %v4216_v24 = vmul.f32 %v4198_v30, %v9503_v60  ;;  %v4211_v15 = vand.u32 2147483648, %v9564_v59  ;;  %v4209_v60 = vand.u32 2147483647, %v9564_v59 }
 0x8aa   :  { %v4139_v17 = vpop.f32.mrf.mxu2  ;;  %v4152_v0 = vpop.f32.mrf.mxu3  ;;  %7294 = vrcp.f32 %v4230_v37  ;;  %v4157_v20 = vadd.f32 %v4150_v14, %v9461_v54  ;;  %v4259_v59 = vand.u32 2147483648, %v4231_v26  ;;  %v4257_v14 = vand.u32 2147483647, %v4231_v26 }
 0x8ab   :  { %v4218_v45 = vadd.f32 %v4217_v19, %v4216_v24  ;;  %v4204_v9 = vadd.f32 %v7285_v28, %v4203_v11  ;;  %7296 = vrcp.f32 %v4231_v26  ;;  %v4212_v11 = vor.u32 1.1754944e-38, %v4211_v15 }
 0x8ac   :  { %vm4210_vm3 = vcmp.eq.f32.partialorder %v4209_v60, 8.507059e+37  ;;  %v4244_v24 = vand.u32 2147483648, %v4230_v37  ;;  %vm4238_vm7 = vweird.f32 %v4230_v37  ;;  %vm4253_vm8 = vweird.f32 %v4231_v26 }
 0x8ad   :  { %v7293_v63 = vpop.eup %7292  ;;  %7298 = vtanh.f32 %v4218_v45  ;;  %v9578_v53 = vmul.f32 %v6769_v16, %v4218_v45  ;;  %v4208_v12 = vsel %vm4207_vm2, %v7285_v28, %v4204_v9  ;;  %v4242_v45 = vand.u32 2147483647, %v4230_v37 }
 0x8ae   :  { %v9582_v27 = vadd.f32 1.0, %v7293_v63  ;;  %v4213_v55 = vsel %vm4210_vm3, %v4212_v11, %v4208_v12  ;;  %v4245_v12 = vor.u32 1.1754944e-38, %v4244_v24  ;;  %vm4258_vm12 = vcmp.eq.f32.partialorder %v4257_v14, 8.507059e+37 }
 0x8af   :  { %vm4243_vm11 = vcmp.eq.f32.partialorder %v4242_v45, 8.507059e+37 }
 0x8b0   :  { %7300 = vrcp.f32 %v9582_v27  ;;  %v7295_v39 = vpop.eup %7294  ;;  %vm4268_vm14 = vweird.f32 %v9582_v27 }
 0x8b1   :  { %v7297_v40 = vpop.eup %7296  ;;  %v4234_v18 = vmul.f32 %v7295_v39, %v4230_v37  ;;  %7302 = vtanh.f32 %v4157_v20  ;;  %vm4239_vm4 = vweird.f32 %v7295_v39 }
 0x8b2   :  { %v4249_v48 = vmul.f32 %v7297_v40, %v4231_v26  ;;  %vm4254_vm5 = vweird.f32 %v7297_v40  ;;  %vm4240_vm9 = vmor %vm4238_vm7, %vm4239_vm4 }
 0x8b3   :  { %v7299_v46 = vpop.eup %7298  ;;  %v4235_v19 = vsub.f32 1.0, %v4234_v18  ;;  %vm4255_vm10 = vmor %vm4253_vm8, %vm4254_vm5 }
 0x8b4   :  { %v4220_v30 = vmul.f32 %v7299_v46, %v4213_v55  ;;  %v4250_v52 = vsub.f32 1.0, %v4249_v48 }
 0x8b5   :  { %v4236_v0 = vmul.f32 %v7295_v39, %v4235_v19 }
 0x8b6   :  { %v7301_v17 = vpop.eup %7300  ;;  %v4286_v28 = vmul.f32 %v6769_v16, %v4220_v30  ;;  %v4251_v9 = vmul.f32 %v7297_v40, %v4250_v52  ;;  %v4260_v16 = vor.u32 1.1754944e-38, %v4259_v59  ;;  %v4274_v52 = vand.u32 2147483648, %v9582_v27 }
 0x8b7   :  { %v4264_v54 = vmul.f32 %v7301_v17, %v9582_v27  ;;  %v4237_v15 = vadd.f32 %v7295_v39, %v4236_v0  ;;  %v7303_v18 = vpop.eup %7302  ;;  %vm4269_vm13 = vweird.f32 %v7301_v17 }
 0x8b8   :  { %4290 = vst.msk [vmem:[#allocation3 + $0x8] sm:$0xff] %vm662_vm6, %v4286_v28  ;;  %v4296_v63 = vpack.c.bf16 %v4286_v28, %v4286_v28  ;;  %v4252_v11 = vadd.f32 %v7297_v40, %v4251_v9  ;;  %vm4270_vm15 = vmor %vm4268_vm14, %vm4269_vm13  ;;  %v4275_v28 = vor.u32 1.1754944e-38, %v4274_v52 }
 0x8b9   :  { %v4265_v60 = vsub.f32 1.0, %v4264_v54  ;;  %v4241_v20 = vsel %vm4240_vm9, %v7295_v39, %v4237_v15 }
 0x8ba   :  { %6771 = vmatmul.msk.bf16.vlgmr.msra.gmra.mxu0 %vm662_vm6, %v4296_v63  ;;  %6772 = vmatmul.msk.bf16.vlgmr.msra.gmra.mxu1 %vm662_vm6, %v4296_v63  ;;  %v4246_v46 = vsel %vm4243_vm11, %v4245_v12, %v4241_v20  ;;  %v4256_v55 = vsel %vm4255_vm10, %v7297_v40, %v4252_v11  ;;  %v6770_v40 = vld [vmem:[%s10151_s1 + $0x30] sm:$0xff] }
 0x8bb   :  { %6773 = vmatmul.msk.bf16.vlgmr.msra.gmra.mxu2 %vm662_vm6, %v4296_v63  ;;  %6774 = vmatmul.msk.bf16.vlgmr.msrb.gmra.mxu3 %vm662_vm6, %v4296_v63  ;;  %v4266_v37 = vmul.f32 %v7301_v17, %v4265_v60  ;;  %v4261_v26 = vsel %vm4258_vm12, %v4260_v16, %v4256_v55  ;;  %v4280_v48 = vmul.f32 %v7303_v18, %v4246_v46  ;;  %v10380_v63 = vld [vmem:[#allocation64_spill] sm:$0xff]  ;;  %v10381_v60 = vld [vmem:[#allocation35_spill] sm:$0xff]  ;;  %v10382_v46 = vld [vmem:[#allocation62_spill] sm:$0xff] }
 0x8bc   :  { %4568 = vmatpush.bf16.msra.mxu0 %v9052_v61  ;;  %4581 = vmatpush.bf16.msra.mxu1 %v9054_v21  ;;  %v4279_v39 = vmul.f32 %v4261_v26, %v9531_v5  ;;  %v4272_v5 = vand.u32 2147483647, %v9582_v27 }
 0x8bd   :  { %4594 = vmatpush.bf16.msra.mxu2 %v9066_v22  ;;  %4607 = vmatpush.bf16.msrb.mxu3 %v9079_v57  ;;  %v4267_v19 = vadd.f32 %v7301_v17, %v4266_v37 }
 0x8be   :  { %v4281_v30 = vadd.f32 %v4280_v48, %v4279_v39  ;;  %vm4273_vm0 = vcmp.eq.f32.partialorder %v4272_v5, 8.507059e+37 }
 0x8bf   :  { %v4271_v24 = vsel %vm4270_vm15, %v7301_v17, %v4267_v19 }
 0x8c0   :  { %4569 = vmatpush.bf16.msra.mxu0 %v10367_v51  ;;  %4582 = vmatpush.bf16.msra.mxu1 %v10368_v3  ;;  %7304 = vtanh.f32 %v4281_v30  ;;  %v9603_v59 = vmul.f32 %v6770_v40, %v4281_v30  ;;  %v4276_v45 = vsel %vm4273_vm0, %v4275_v28, %v4271_v24  ;;  %v10383_v24 = vld [vmem:[#allocation49_spill] sm:$0xff] }
 0x8c1   :  { %4595 = vmatpush.bf16.msra.mxu2 %v10369_v6  ;;  %4608 = vmatpush.bf16.msrb.mxu3 %v10370_v25  ;;  %v3440_v28 = vadd.f32 %v9433_v47, %v10383_v24  ;;  %v10386_v47 = vld [vmem:[#allocation33_spill] sm:$0xff] }
 0x8c6   :  { %v7305_v0 = vpop.eup %7304 }
 0x8c7   :  { %v4283_v9 = vmul.f32 %v7305_v0, %v4276_v45  ;;  %v10384_v0 = vld [vmem:[#allocation65_spill] sm:$0xff] }
 0x8c8   :  { %v3469_v45 = vadd.f32 %v9435_v43, %v10384_v0 }
 0x8c9   :  { %v4288_v54 = vmul.f32 %v6770_v40, %v4283_v9 }
 0x8cb   :  { %4291 = vst.msk [vmem:[#allocation4 + $0x30] sm:$0xff] %vm662_vm6, %v4288_v54  ;;  %v4360_v14 = vpack.c.bf16 %v4288_v54, %v4288_v54 }
 0x8cd   :  { %6775 = vmatmul.msk.bf16.vlgmr.msrb.gmra.mxu0 %vm662_vm6, %v4360_v14  ;;  %6776 = vmatmul.msk.bf16.vlgmr.msrb.gmra.mxu1 %vm662_vm6, %v4360_v14 }
 0x8ce   :  { %6777 = vmatmul.msk.bf16.vlgmr.msrb.gmra.mxu2 %vm662_vm6, %v4360_v14  ;;  %6778 = vmatmul.msk.bf16.vlgmr.msra.gmra.mxu3 %vm662_vm6, %v4360_v14  ;;  %v10385_v14 = vld [vmem:[#allocation39_spill] sm:$0xff] }
 0x8cf   :  { %4632 = vmatpush.bf16.msrb.mxu0 %v9174_v8  ;;  %4645 = vmatpush.bf16.msrb.mxu1 %v9176_v32 }
 0x8d0   :  { %4658 = vmatpush.bf16.msrb.mxu2 %v9188_v13  ;;  %4671 = vmatpush.bf16.msra.mxu3 %v9195_v7 }
 0x8d3   :  { %4633 = vmatpush.bf16.msrb.mxu0 %v9190_v49  ;;  %4646 = vmatpush.bf16.msrb.mxu1 %v9192_v56 }
 0x8d4   :  { %4659 = vmatpush.bf16.msrb.mxu2 %v9204_v58  ;;  %4672 = vmatpush.bf16.msra.mxu3 %v10371_v34 }
 0x937   :  { %v4309_v27 = vpop.f32.mrf.mxu0  ;;  %v4322_v17 = vpop.f32.mrf.mxu1 }
 0x938   :  { %v4352_v15 = vadd.f32 %v4309_v27, %v10380_v63  ;;  %v4353_v12 = vadd.f32 %v4322_v17, %v10381_v60 }
 0x93a   :  { %v6779_v11 = vmul.f32 -1.442695, %v4352_v15  ;;  %v6780_v16 = vmul.f32 -1.442695, %v4353_v12 }
 0x93c   :  { %7306 = vpow2.f32 %v6779_v11  ;;  %v3596_v11 = vadd.f32 %v9364_v31, %v3440_v28 }
 0x93d   :  { %7308 = vpow2.f32 %v6780_v16  ;;  %v3597_v16 = vadd.f32 %v9367_v1, %v3469_v45 }
 0x93e   :  { %v4335_v20 = vpop.f32.mrf.mxu2  ;;  %v4348_v18 = vpop.f32.mrf.mxu3 }
 0x93f   :  { %v4354_v55 = vadd.f32 %v4335_v20, %v10382_v46  ;;  %v4311_v37 = vpop.f32.mrf.mxu0  ;;  %v4324_v26 = vpop.f32.mrf.mxu1  ;;  %v4355_v27 = vadd.f32 %v4348_v18, %v10385_v14  ;;  %v3498_v20 = vadd.f32 %v9443_v35, %v10386_v47 }
 0x941   :  { %v6781_v48 = vmul.f32 -1.442695, %v4354_v55  ;;  %v3598_v0 = vadd.f32 %v9378_v10, %v3498_v20 }
 0x942   :  { %v7307_v39 = vpop.eup %7306 }
 0x943   :  { %v7309_v40 = vpop.eup %7308  ;;  %v4429_v30 = vadd.f32 1.0, %v7307_v39  ;;  %7310 = vpow2.f32 %v6781_v48 }
 0x944   :  { %v4430_v19 = vadd.f32 1.0, %v7309_v40 }
 0x945   :  { %7312 = vrcp.f32 %v4429_v30  ;;  %v4441_v48 = vand.u32 2147483647, %v4429_v30  ;;  %v4443_v39 = vand.u32 2147483648, %v4429_v30  ;;  %vm4437_vm4 = vweird.f32 %v4429_v30 }
 0x946   :  { %7314 = vrcp.f32 %v4430_v19  ;;  %v4337_v52 = vpop.f32.mrf.mxu2  ;;  %v4350_v5 = vpop.f32.mrf.mxu3  ;;  %v4458_v26 = vand.u32 2147483648, %v4430_v19  ;;  %v4456_v28 = vand.u32 2147483647, %v4430_v19  ;;  %vm4452_vm3 = vweird.f32 %v4430_v19 }
 0x947   :  { %vm4442_vm7 = vcmp.eq.f32.partialorder %v4441_v48, 8.507059e+37 }
 0x948   :  { %v4459_v20 = vor.u32 1.1754944e-38, %v4458_v26  ;;  %vm4457_vm9 = vcmp.eq.f32.partialorder %v4456_v28, 8.507059e+37 }
 0x949   :  { %v7311_v9 = vpop.eup %7310 }
 0x94a   :  { %v9629_v54 = vadd.f32 1.0, %v7311_v9  ;;  %v4373_v63 = vpop.f32.mrf.mxu0  ;;  %v4386_v15 = vpop.f32.mrf.mxu1 }
 0x94b   :  { %v7313_v17 = vpop.eup %7312  ;;  %v4416_v55 = vadd.f32 %v4373_v63, %v3596_v11  ;;  %v4417_v37 = vadd.f32 %v4386_v15, %v3597_v16  ;;  %v4444_v63 = vor.u32 1.1754944e-38, %v4443_v39 }
 0x94c   :  { %v7315_v60 = vpop.eup %7314  ;;  %v4433_v12 = vmul.f32 %v7313_v17, %v4429_v30  ;;  %7316 = vrcp.f32 %v9629_v54  ;;  %vm4438_vm1 = vweird.f32 %v7313_v17  ;;  %vm4467_vm11 = vweird.f32 %v9629_v54 }
 0x94d   :  { %v4448_v43 = vmul.f32 %v7315_v60, %v4430_v19  ;;  %7318 = vtanh.f32 %v4355_v27  ;;  %v6782_v52 = vmul.f32 -1.442695, %v4416_v55  ;;  %v6783_v5 = vmul.f32 -1.442695, %v4417_v37  ;;  %vm4439_vm5 = vmor %vm4437_vm4, %vm4438_vm1 }
 0x94e   :  { %v4434_v46 = vsub.f32 1.0, %v4433_v12  ;;  %vm4453_vm2 = vweird.f32 %v7315_v60 }
 0x94f   :  { %v4449_v18 = vsub.f32 1.0, %v4448_v43  ;;  %7320 = vpow2.f32 %v6782_v52  ;;  %vm4454_vm8 = vmor %vm4452_vm3, %vm4453_vm2 }
 0x950   :  { %v4435_v40 = vmul.f32 %v7313_v17, %v4434_v46  ;;  %7322 = vpow2.f32 %v6783_v5 }
 0x951   :  { %v4450_v24 = vmul.f32 %v7315_v60, %v4449_v18  ;;  %v4399_v9 = vpop.f32.mrf.mxu2  ;;  %v4412_v14 = vpop.f32.mrf.mxu3 }
 0x952   :  { %v7317_v45 = vpop.eup %7316  ;;  %v4436_v35 = vadd.f32 %v7313_v17, %v4435_v40  ;;  %v4375_v12 = vpop.f32.mrf.mxu0  ;;  %v4418_v30 = vadd.f32 %v4399_v9, %v3598_v0 }
 0x953   :  { %v4463_v27 = vmul.f32 %v7317_v45, %v9629_v54  ;;  %v4451_v15 = vadd.f32 %v7315_v60, %v4450_v24  ;;  %v4388_v11 = vpop.f32.mrf.mxu1  ;;  %v7319_v16 = vpop.eup %7318  ;;  %vm4468_vm10 = vweird.f32 %v7317_v45 }
 0x954   :  { %v4440_v47 = vsel %vm4439_vm5, %v7313_v17, %v4436_v35  ;;  %v6784_v40 = vmul.f32 -1.442695, %v4418_v30  ;;  %v6785_v17 = vld [vmem:[%s10151_s1 + $0x10] sm:$0xff]  ;;  %v4473_v35 = vand.u32 2147483648, %v9629_v54  ;;  %vm4469_vm12 = vmor %vm4467_vm11, %vm4468_vm10 }
 0x955   :  { %v4464_v43 = vsub.f32 1.0, %v4463_v27  ;;  %v4445_v46 = vsel %vm4442_vm7, %v4444_v63, %v4440_v47  ;;  %v4455_v55 = vsel %vm4454_vm8, %v7315_v60, %v4451_v15  ;;  %v7321_v5 = vpop.eup %7320  ;;  %v4471_v63 = vand.u32 2147483647, %v9629_v54 }
 0x956   :  { %v4460_v37 = vsel %vm4457_vm9, %v4459_v20, %v4455_v55  ;;  %v4479_v18 = vmul.f32 %v7319_v16, %v4445_v46  ;;  %7324 = vpow2.f32 %v6784_v40  ;;  %v7323_v19 = vpop.eup %7322  ;;  %v4492_v26 = vadd.f32 1.0, %v7321_v5 }
 0x957   :  { %v4465_v39 = vmul.f32 %v7317_v45, %v4464_v43  ;;  %v4478_v52 = vmul.f32 %v4460_v37, %v9578_v53  ;;  %v9646_v0 = vadd.f32 1.0, %v7323_v19  ;;  %v10387_v53 = vld [vmem:[#allocation32_spill] sm:$0xff]  ;;  %v4474_v11 = vor.u32 1.1754944e-38, %v4473_v35 }
 0x958   :  { %v3527_v27 = vadd.f32 %v9445_v50, %v10387_v53  ;;  %vm4472_vm13 = vcmp.eq.f32.partialorder %v4471_v63, 8.507059e+37  ;;  %vm4500_vm0 = vweird.f32 %v4492_v26 }
 0x959   :  { %v4480_v48 = vadd.f32 %v4479_v18, %v4478_v52  ;;  %v4466_v24 = vadd.f32 %v7317_v45, %v4465_v39  ;;  %v4401_v60 = vpop.f32.mrf.mxu2  ;;  %v4414_v28 = vpop.f32.mrf.mxu3  ;;  %v4506_v52 = vand.u32 2147483648, %v4492_v26  ;;  %v4521_v19 = vand.u32 2147483648, %v9646_v0 }
 0x95a   :  { %v3599_v47 = vadd.f32 %v9381_v41, %v3527_v27  ;;  %vm4515_vm1 = vweird.f32 %v9646_v0 }
 0x95b   :  { %7326 = vtanh.f32 %v4480_v48  ;;  %v9649_v9 = vmul.f32 %v6785_v17, %v4480_v48  ;;  %v4470_v12 = vsel %vm4469_vm12, %v7317_v45, %v4466_v24  ;;  %v4504_v24 = vand.u32 2147483647, %v4492_v26 }
 0x95c   :  { %7328 = vrcp.f32 %v4492_v26  ;;  %v7325_v15 = vpop.eup %7324  ;;  %v4475_v30 = vsel %vm4472_vm13, %v4474_v11, %v4470_v12  ;;  %v4419_v46 = vadd.f32 %v4412_v14, %v3599_v47  ;;  %v4507_v53 = vor.u32 1.1754944e-38, %v4506_v52 }
 0x95d   :  { %7330 = vrcp.f32 %v9646_v0  ;;  %v9656_v16 = vadd.f32 1.0, %v7325_v15  ;;  %vm4505_vm3 = vcmp.eq.f32.partialorder %v4504_v24, 8.507059e+37  ;;  %v4522_v15 = vor.u32 1.1754944e-38, %v4521_v19  ;;  %v10391_v24 = vld [vmem:[#allocation38_spill] sm:$0xff] }
 0x95f   :  { %7332 = vrcp.f32 %v9656_v16  ;;  %vm4530_vm8 = vweird.f32 %v9656_v16 }
 0x960   :  { %7334 = vtanh.f32 %v4419_v46  ;;  %v4536_v46 = vand.u32 2147483648, %v9656_v16 }
 0x961   :  { %v7327_v20 = vpop.eup %7326 }
 0x962   :  { %v7329_v50 = vpop.eup %7328  ;;  %v4482_v43 = vmul.f32 %v7327_v20, %v4475_v30 }
 0x963   :  { %v7331_v54 = vpop.eup %7330  ;;  %v4496_v55 = vmul.f32 %v7329_v50, %v4492_v26  ;;  %vm4501_vm14 = vweird.f32 %v7329_v50 }
 0x964   :  { %v4548_v37 = vmul.f32 %v6785_v17, %v4482_v43  ;;  %v4511_v18 = vmul.f32 %v7331_v54, %v9646_v0  ;;  %vm4516_vm15 = vweird.f32 %v7331_v54  ;;  %v4519_v17 = vand.u32 2147483647, %v9646_v0  ;;  %vm4502_vm2 = vmor %vm4500_vm0, %vm4501_vm14 }
 0x965   :  { %v4497_v40 = vsub.f32 1.0, %v4496_v55  ;;  %v7333_v5 = vpop.eup %7332  ;;  %vm4517_vm4 = vmor %vm4515_vm1, %vm4516_vm15  ;;  %v4537_v55 = vor.u32 1.1754944e-38, %v4536_v46 }
 0x966   :  { %4552 = vst.msk [vmem:[#allocation3 + $0x10] sm:$0xff] %vm662_vm6, %v4548_v37  ;;  %v4558_v45 = vpack.c.bf16 %v4548_v37, %v4548_v37  ;;  %v4512_v39 = vsub.f32 1.0, %v4511_v18  ;;  %v4526_v14 = vmul.f32 %v7333_v5, %v9656_v16  ;;  %v7335_v26 = vpop.eup %7334  ;;  %vm4520_vm5 = vcmp.eq.f32.partialorder %v4519_v17, 8.507059e+37 }
 0x967   :  { %v4498_v48 = vmul.f32 %v7329_v50, %v4497_v40  ;;  %vm4531_vm7 = vweird.f32 %v7333_v5 }
 0x968   :  { %v4513_v60 = vmul.f32 %v7331_v54, %v4512_v39  ;;  %6787 = vmatmul.msk.bf16.vlgmr.msra.gmra.mxu0 %vm662_vm6, %v4558_v45  ;;  %6788 = vmatmul.msk.bf16.vlgmr.msra.gmra.mxu1 %vm662_vm6, %v4558_v45  ;;  %v4527_v35 = vsub.f32 1.0, %v4526_v14  ;;  %vm4532_vm9 = vmor %vm4530_vm8, %vm4531_vm7 }
 0x969   :  { %v4499_v28 = vadd.f32 %v7329_v50, %v4498_v48  ;;  %6789 = vmatmul.msk.bf16.vlgmr.msra.gmra.mxu2 %vm662_vm6, %v4558_v45  ;;  %6790 = vmatmul.msk.bf16.vlgmr.msrb.gmra.mxu3 %vm662_vm6, %v4558_v45  ;;  %v9689_v45 = vld [vmem:[%s10151_s1 + $0x28] sm:$0xff] }
 0x96a   :  { %v4514_v27 = vadd.f32 %v7331_v54, %v4513_v60  ;;  %4830 = vmatpush.bf16.msra.mxu0 %v9052_v61  ;;  %4843 = vmatpush.bf16.msra.mxu1 %v9054_v21  ;;  %v4528_v11 = vmul.f32 %v7333_v5, %v4527_v35  ;;  %v10390_v48 = vld [vmem:[#allocation68_spill] sm:$0xff] }
 0x96b   :  { %v4503_v63 = vsel %vm4502_vm2, %v7329_v50, %v4499_v28  ;;  %4856 = vmatpush.bf16.msra.mxu2 %v9066_v22  ;;  %4869 = vmatpush.bf16.msrb.mxu3 %v9079_v57  ;;  %v3348_v60 = vadd.f32 %v10391_v24, %v10390_v48 }
 0x96c   :  { %v4508_v12 = vsel %vm4505_vm3, %v4507_v53, %v4503_v63  ;;  %v4518_v0 = vsel %vm4517_vm4, %v7331_v54, %v4514_v27  ;;  %v4529_v43 = vadd.f32 %v7333_v5, %v4528_v11  ;;  %v10392_v63 = vld [vmem:[#allocation23_spill] sm:$0xff] }
 0x96d   :  { %v4523_v47 = vsel %vm4520_vm5, %v4522_v15, %v4518_v0  ;;  %v4542_v20 = vmul.f32 %v7335_v26, %v4508_v12  ;;  %v3577_v17 = vadd.f32 %v9273_v44, %v3348_v60  ;;  %v10393_v15 = vld [vmem:[#allocation40_spill] sm:$0xff] }
 0x96e   :  { %v4541_v30 = vmul.f32 %v4523_v47, %v9603_v59  ;;  %4831 = vmatpush.bf16.msra.mxu0 %v10367_v51  ;;  %4844 = vmatpush.bf16.msra.mxu1 %v10368_v3  ;;  %v4534_v59 = vand.u32 2147483647, %v9656_v16  ;;  %v4533_v54 = vsel %vm4532_vm9, %v7333_v5, %v4529_v43  ;;  %v10388_v16 = vld [vmem:[#allocation60_spill] sm:$0xff]  ;;  %v3377_v26 = vadd.f32 %v10393_v15, %v10392_v63 }
 0x96f   :  { %4857 = vmatpush.bf16.msra.mxu2 %v10369_v6  ;;  %4870 = vmatpush.bf16.msrb.mxu3 %v10370_v25  ;;  %v10389_v5 = vld [vmem:[#allocation36_spill] sm:$0xff] }
 0x970   :  { %v9680_v50 = vadd.f32 %v4542_v20, %v4541_v30  ;;  %vm4535_vm10 = vcmp.eq.f32.partialorder %v4534_v59, 8.507059e+37  ;;  %v3319_v19 = vadd.f32 %v10389_v5, %v10388_v16  ;;  %v3578_v11 = vadd.f32 %v9291_v29, %v3377_v26 }
 0x971   :  { %v4538_v18 = vsel %vm4535_vm10, %v4537_v55, %v4533_v54 }
 0x972   :  { %7336 = vtanh.f32 %v9680_v50  ;;  %v3576_v14 = vadd.f32 %v9269_v23, %v3319_v19 }
 0x978   :  { %v7337_v37 = vpop.eup %7336 }
 0x979   :  { %v4545_v40 = vmul.f32 %v7337_v37, %v4538_v18  ;;  %v10394_v18 = vld [vmem:[#allocation24_spill] sm:$0xff] }
 0x97b   :  { %v4550_v39 = vmul.f32 %v9689_v45, %v4545_v40  ;;  %v10395_v40 = vld [vmem:[#allocation42_spill] sm:$0xff] }
 0x97d   :  { %4553 = vst.msk [vmem:[#allocation4 + $0x28] sm:$0xff] %vm662_vm6, %v4550_v39  ;;  %v4622_v52 = vpack.c.bf16 %v4550_v39, %v4550_v39  ;;  %v3406_v39 = vadd.f32 %v10395_v40, %v10394_v18 }
 0x97f   :  { %6791 = vmatmul.msk.bf16.vlgmr.msrb.gmra.mxu0 %vm662_vm6, %v4622_v52  ;;  %6792 = vmatmul.msk.bf16.vlgmr.msrb.gmra.mxu1 %vm662_vm6, %v4622_v52  ;;  %v3579_v19 = vadd.f32 %v9299_v38, %v3406_v39 }
 0x980   :  { %6793 = vmatmul.msk.bf16.vlgmr.msrb.gmra.mxu2 %vm662_vm6, %v4622_v52  ;;  %6794 = vmatmul.msk.bf16.vlgmr.msra.gmra.mxu3 %vm662_vm6, %v4622_v52 }
 0x981   :  { %4894 = vmatpush.bf16.msrb.mxu0 %v9174_v8  ;;  %4907 = vmatpush.bf16.msrb.mxu1 %v9176_v32 }
 0x982   :  { %4920 = vmatpush.bf16.msrb.mxu2 %v9188_v13  ;;  %4933 = vmatpush.bf16.msra.mxu3 %v9195_v7 }
 0x985   :  { %4895 = vmatpush.bf16.msrb.mxu0 %v9190_v49  ;;  %4908 = vmatpush.bf16.msrb.mxu1 %v9192_v56 }
 0x986   :  { %4921 = vmatpush.bf16.msrb.mxu2 %v9204_v58  ;;  %4934 = vmatpush.bf16.msra.mxu3 %v10371_v34 }
 0x9e5   :  { %v4571_v28 = vpop.f32.mrf.mxu0  ;;  %v4584_v35 = vpop.f32.mrf.mxu1 }
 0x9e6   :  { %v4614_v53 = vadd.f32 %v4571_v28, %v3576_v14  ;;  %v4615_v27 = vadd.f32 %v4584_v35, %v3577_v17 }
 0x9e8   :  { %v6795_v12 = vmul.f32 -1.442695, %v4614_v53  ;;  %v6796_v0 = vmul.f32 -1.442695, %v4615_v27 }
 0x9ea   :  { %7338 = vpow2.f32 %v6795_v12 }
 0x9eb   :  { %7340 = vpow2.f32 %v6796_v0 }
 0x9ec   :  { %v4597_v47 = vpop.f32.mrf.mxu2  ;;  %v4610_v20 = vpop.f32.mrf.mxu3 }
 0x9ed   :  { %v4616_v30 = vadd.f32 %v4597_v47, %v3578_v11  ;;  %v4573_v43 = vpop.f32.mrf.mxu0  ;;  %v4586_v46 = vpop.f32.mrf.mxu1  ;;  %v4617_v60 = vadd.f32 %v4610_v20, %v3579_v19 }
 0x9ef   :  { %v6797_v59 = vmul.f32 -1.442695, %v4616_v30 }
 0x9f0   :  { %v7339_v54 = vpop.eup %7338 }
 0x9f1   :  { %v7341_v55 = vpop.eup %7340  ;;  %v4691_v37 = vadd.f32 1.0, %v7339_v54  ;;  %7342 = vpow2.f32 %v6797_v59 }
 0x9f2   :  { %v4692_v52 = vadd.f32 1.0, %v7341_v55 }
 0x9f3   :  { %7344 = vrcp.f32 %v4691_v37  ;;  %v4703_v27 = vand.u32 2147483647, %v4691_v37  ;;  %v4705_v12 = vand.u32 2147483648, %v4691_v37  ;;  %vm4699_vm14 = vweird.f32 %v4691_v37 }
 0x9f4   :  { %7346 = vrcp.f32 %v4692_v52  ;;  %v4599_v16 = vpop.f32.mrf.mxu2  ;;  %v4612_v5 = vpop.f32.mrf.mxu3  ;;  %v4720_v47 = vand.u32 2147483648, %v4692_v52  ;;  %v4718_v20 = vand.u32 2147483647, %v4692_v52  ;;  %vm4714_vm13 = vweird.f32 %v4692_v52 }
 0x9f5   :  { %v4706_v40 = vor.u32 1.1754944e-38, %v4705_v12  ;;  %vm4704_vm0 = vcmp.eq.f32.partialorder %v4703_v27, 8.507059e+37 }
 0x9f6   :  { %v4721_v16 = vor.u32 1.1754944e-38, %v4720_v47  ;;  %vm4719_vm2 = vcmp.eq.f32.partialorder %v4718_v20, 8.507059e+37 }
 0x9f7   :  { %v7343_v48 = vpop.eup %7342 }
 0x9f8   :  { %v9717_v24 = vadd.f32 1.0, %v7343_v48 }
 0x9f9   :  { %v7345_v14 = vpop.eup %7344 }
 0x9fa   :  { %v7347_v17 = vpop.eup %7346  ;;  %v4695_v28 = vmul.f32 %v7345_v14, %v4691_v37  ;;  %7348 = vrcp.f32 %v9717_v24  ;;  %vm4700_vm11 = vweird.f32 %v7345_v14  ;;  %v4735_v47 = vand.u32 2147483648, %v9717_v24 }
 0x9fb   :  { %v4710_v35 = vmul.f32 %v7347_v17, %v4692_v52  ;;  %7350 = vtanh.f32 %v4617_v60  ;;  %vm4715_vm12 = vweird.f32 %v7347_v17  ;;  %vm4701_vm15 = vmor %vm4699_vm14, %vm4700_vm11  ;;  %vm4729_vm4 = vweird.f32 %v9717_v24 }
 0x9fc   :  { %v4696_v53 = vsub.f32 1.0, %v4695_v28  ;;  %v4635_v63 = vpop.f32.mrf.mxu0  ;;  %v4648_v15 = vpop.f32.mrf.mxu1  ;;  %vm4716_vm1 = vmor %vm4714_vm13, %vm4715_vm12 }
 0x9fd   :  { %v4711_v26 = vsub.f32 1.0, %v4710_v35  ;;  %v4678_v0 = vadd.f32 %v4635_v63, %v9426_v62  ;;  %v4679_v11 = vadd.f32 %v4648_v15, %v9429_v4 }
 0x9fe   :  { %v4697_v30 = vmul.f32 %v7345_v14, %v4696_v53 }
 0x9ff   :  { %v4712_v43 = vmul.f32 %v7347_v17, %v4711_v26  ;;  %v6798_v46 = vmul.f32 -1.442695, %v4678_v0  ;;  %v6799_v59 = vmul.f32 -1.442695, %v4679_v11 }
 0xa00   :  { %v7349_v54 = vpop.eup %7348  ;;  %v4698_v55 = vadd.f32 %v7345_v14, %v4697_v30 }
 0xa01   :  { %v4725_v18 = vmul.f32 %v7349_v54, %v9717_v24  ;;  %v4713_v39 = vadd.f32 %v7347_v17, %v4712_v43  ;;  %7352 = vpow2.f32 %v6798_v46  ;;  %v7351_v62 = vpop.eup %7350  ;;  %vm4730_vm3 = vweird.f32 %v7349_v54 }
 0xa02   :  { %v4702_v4 = vsel %vm4701_vm15, %v7345_v14, %v4698_v55  ;;  %7354 = vpow2.f32 %v6799_v59  ;;  %vm4731_vm5 = vmor %vm4729_vm4, %vm4730_vm3  ;;  %v4736_v46 = vor.u32 1.1754944e-38, %v4735_v47 }
 0xa03   :  { %v4726_v5 = vsub.f32 1.0, %v4725_v18  ;;  %v4707_v19 = vsel %vm4704_vm0, %v4706_v40, %v4702_v4  ;;  %v4717_v48 = vsel %vm4716_vm1, %v7347_v17, %v4713_v39  ;;  %v4661_v52 = vpop.f32.mrf.mxu2  ;;  %v4674_v60 = vpop.f32.mrf.mxu3 }
 0xa04   :  { %v4722_v37 = vsel %vm4719_vm2, %v4721_v16, %v4717_v48  ;;  %v4741_v28 = vmul.f32 %v7351_v62, %v4707_v19  ;;  %v4680_v35 = vadd.f32 %v4661_v52, %v9438_v2  ;;  %v4637_v53 = vpop.f32.mrf.mxu0  ;;  %v4650_v63 = vpop.f32.mrf.mxu1  ;;  %v4733_v2 = vand.u32 2147483647, %v9717_v24  ;;  %v9741_v24 = vld [vmem:[%s10151_s1 + $0x18] sm:$0xff] }
 0xa05   :  { %v4727_v15 = vmul.f32 %v7349_v54, %v4726_v5  ;;  %v4740_v14 = vmul.f32 %v4722_v37, %v9649_v9  ;;  %v4681_v4 = vadd.f32 %v4674_v60, %v9441_v36 }
 0xa06   :  { %v6800_v27 = vmul.f32 -1.442695, %v4680_v35  ;;  %vm4734_vm7 = vcmp.eq.f32.partialorder %v4733_v2, 8.507059e+37 }
 0xa07   :  { %v7353_v26 = vpop.eup %7352  ;;  %v9726_v12 = vadd.f32 %v4741_v28, %v4740_v14  ;;  %v4728_v11 = vadd.f32 %v7349_v54, %v4727_v15 }
 0xa08   :  { %v7355_v0 = vpop.eup %7354  ;;  %v4754_v17 = vadd.f32 1.0, %v7353_v26  ;;  %7356 = vpow2.f32 %v6800_v27 }
 0xa09   :  { %7358 = vtanh.f32 %v9726_v12  ;;  %v9730_v30 = vadd.f32 1.0, %v7355_v0  ;;  %v4732_v43 = vsel %vm4731_vm5, %v7349_v54, %v4728_v11  ;;  %v4551_v11 = vmul.f32 %v9689_v45, %v9680_v50 }
 0xa0a   :  { %7360 = vrcp.f32 %v4754_v17  ;;  %v4737_v18 = vsel %vm4734_vm7, %v4736_v46, %v4732_v43  ;;  %v4768_v28 = vand.u32 2147483648, %v4754_v17  ;;  %v4766_v35 = vand.u32 2147483647, %v4754_v17 }
 0xa0b   :  { %7362 = vrcp.f32 %v9730_v30  ;;  %v4663_v9 = vpop.f32.mrf.mxu2  ;;  %v4676_v20 = vpop.f32.mrf.mxu3  ;;  %v4783_v36 = vand.u32 2147483648, %v9730_v30  ;;  %v4781_v63 = vand.u32 2147483647, %v9730_v30  ;;  %vm4762_vm10 = vweird.f32 %v4754_v17 }
 0xa0c   :  { %vm4777_vm11 = vweird.f32 %v9730_v30  ;;  %v4769_v26 = vor.u32 1.1754944e-38, %v4768_v28  ;;  %vm4767_vm13 = vcmp.eq.f32.partialorder %v4766_v35, 8.507059e+37 }
 0xa0d   :  { %vm4782_vm15 = vcmp.eq.f32.partialorder %v4781_v63, 8.507059e+37 }
 0xa0e   :  { %v7357_v59 = vpop.eup %7356 }
 0xa0f   :  { %v7359_v55 = vpop.eup %7358  ;;  %v9735_v40 = vadd.f32 1.0, %v7357_v59 }
 0xa10   :  { %v7361_v39 = vpop.eup %7360  ;;  %v4744_v62 = vmul.f32 %v7359_v55, %v4737_v18 }
 0xa11   :  { %v7363_v16 = vpop.eup %7362  ;;  %v4758_v5 = vmul.f32 %v7361_v39, %v4754_v17  ;;  %7364 = vrcp.f32 %v9735_v40  ;;  %vm4763_vm8 = vweird.f32 %v7361_v39  ;;  %v4784_v17 = vor.u32 1.1754944e-38, %v4783_v36 }
 0xa12   :  { %v4810_v54 = vmul.f32 %v9741_v24, %v4744_v62  ;;  %v4773_v19 = vmul.f32 %v7363_v16, %v9730_v30  ;;  %7366 = vtanh.f32 %v4681_v4  ;;  %vm4778_vm9 = vweird.f32 %v7363_v16  ;;  %vm4764_vm12 = vmor %vm4762_vm10, %vm4763_vm8 }
 0xa13   :  { %v4759_v48 = vsub.f32 1.0, %v4758_v5  ;;  %vm4779_vm14 = vmor %vm4777_vm11, %vm4778_vm9  ;;  %v4798_v18 = vand.u32 2147483648, %v9735_v40  ;;  %vm4792_vm1 = vweird.f32 %v9735_v40 }
 0xa14   :  { %4814 = vst.msk [vmem:[#allocation3 + $0x18] sm:$0xff] %vm662_vm6, %v4810_v54  ;;  %v4820_v52 = vpack.c.bf16 %v4810_v54, %v4810_v54  ;;  %v4774_v37 = vsub.f32 1.0, %v4773_v19  ;;  %v9775_v19 = vld [vmem:[%s10151_s1 + $0x20] sm:$0xff] }
 0xa15   :  { %v4760_v60 = vmul.f32 %v7361_v39, %v4759_v48  ;;  %v4799_v4 = vor.u32 1.1754944e-38, %v4798_v18  ;;  %v10402_v18 = vld [vmem:[#allocation96_spill] sm:$0xff] }
 0xa16   :  { %v4775_v53 = vmul.f32 %v7363_v16, %v4774_v37  ;;  %6803 = vmatmul.msk.bf16.vlgmr.msra.gmra.mxu0 %vm662_vm6, %v4820_v52  ;;  %6804 = vmatmul.msk.bf16.vlgmr.msra.gmra.mxu1 %vm662_vm6, %v4820_v52 }
 0xa17   :  { %v7365_v15 = vpop.eup %7364  ;;  %v4761_v14 = vadd.f32 %v7361_v39, %v4760_v60  ;;  %6805 = vmatmul.msk.bf16.vlgmr.msra.gmra.mxu2 %vm662_vm6, %v4820_v52  ;;  %6806 = vmatmul.msk.bf16.vlgmr.msrb.gmra.mxu3 %vm662_vm6, %v4820_v52 }
 0xa18   :  { %v4788_v27 = vmul.f32 %v7365_v15, %v9735_v40  ;;  %v4776_v0 = vadd.f32 %v7363_v16, %v4775_v53  ;;  %5092 = vmatpush.bf16.msra.mxu0 %v9052_v61  ;;  %5105 = vmatpush.bf16.msra.mxu1 %v9054_v21  ;;  %v7367_v30 = vpop.eup %7366  ;;  %vm4793_vm0 = vweird.f32 %v7365_v15 }
 0xa19   :  { %v4765_v47 = vsel %vm4764_vm12, %v7361_v39, %v4761_v14  ;;  %5118 = vmatpush.bf16.msra.mxu2 %v9066_v22  ;;  %5131 = vmatpush.bf16.msrb.mxu3 %v9079_v57  ;;  %v4796_v39 = vand.u32 2147483647, %v9735_v40  ;;  %vm4794_vm2 = vmor %vm4792_vm1, %vm4793_vm0 }
 0xa1a   :  { %v4789_v2 = vsub.f32 1.0, %v4788_v27  ;;  %v4770_v9 = vsel %vm4767_vm13, %v4769_v26, %v4765_v47  ;;  %v4780_v20 = vsel %vm4779_vm14, %v7363_v16, %v4776_v0 }
 0xa1b   :  { %v4785_v43 = vsel %vm4782_vm15, %v4784_v17, %v4780_v20  ;;  %v4804_v46 = vmul.f32 %v7367_v30, %v4770_v9  ;;  %vm4797_vm3 = vcmp.eq.f32.partialorder %v4796_v39, 8.507059e+37  ;;  %v10397_v9 = vld [vmem:[#allocation31_spill] sm:$0xff]  ;;  %v10398_v20 = vld [vmem:[#allocation92_spill] sm:$0xff] }
 0xa1c   :  { %v4790_v59 = vmul.f32 %v7365_v15, %v4789_v2  ;;  %v4803_v55 = vmul.f32 %v4785_v43, %v4551_v11  ;;  %5093 = vmatpush.bf16.msra.mxu0 %v10367_v51  ;;  %5106 = vmatpush.bf16.msra.mxu1 %v10368_v3  ;;  %v3435_v43 = vadd.f32 %v10398_v20, %v10397_v9 }
 0xa1d   :  { %5119 = vmatpush.bf16.msra.mxu2 %v10369_v6  ;;  %5132 = vmatpush.bf16.msrb.mxu3 %v10370_v25  ;;  %v4811_v9 = vmul.f32 %v9741_v24, %v9726_v12 }
 0xa1e   :  { %v9766_v50 = vadd.f32 %v4804_v46, %v4803_v55  ;;  %v4791_v45 = vadd.f32 %v7365_v15, %v4790_v59  ;;  %v10399_v46 = vld [vmem:[#allocation59_spill] sm:$0xff]  ;;  %v10400_v59 = vld [vmem:[#allocation93_spill] sm:$0xff] }
 0xa1f   :  { %v3464_v55 = vadd.f32 %v10400_v59, %v10399_v46 }
 0xa20   :  { %7368 = vtanh.f32 %v9766_v50  ;;  %v4795_v62 = vsel %vm4794_vm2, %v7365_v15, %v4791_v45  ;;  %v10396_v15 = vld [vmem:[#allocation70_spill] sm:$0xff] }
 0xa21   :  { %v4800_v5 = vsel %vm4797_vm3, %v4799_v4, %v4795_v62  ;;  %v10401_v45 = vld [vmem:[#allocation46_spill] sm:$0xff]  ;;  %v10403_v4 = vld [vmem:[#allocation71_spill] sm:$0xff] }
 0xa22   :  { %v3493_v39 = vadd.f32 %v10402_v18, %v10401_v45 }
 0xa26   :  { %v7369_v16 = vpop.eup %7368 }
 0xa27   :  { %v4807_v54 = vmul.f32 %v7369_v16, %v4800_v5 }
 0xa29   :  { %v4812_v48 = vmul.f32 %v9775_v19, %v4807_v54 }
 0xa2b   :  { %4815 = vst.msk [vmem:[#allocation4 + $0x20] sm:$0xff] %vm662_vm6, %v4812_v48  ;;  %v4884_v52 = vpack.c.bf16 %v4812_v48, %v4812_v48 }
 0xa2d   :  { %6807 = vmatmul.msk.bf16.vlgmr.msrb.gmra.mxu0 %vm662_vm6, %v4884_v52  ;;  %6808 = vmatmul.msk.bf16.vlgmr.msrb.gmra.mxu1 %vm662_vm6, %v4884_v52 }
 0xa2e   :  { %6809 = vmatmul.msk.bf16.vlgmr.msrb.gmra.mxu2 %vm662_vm6, %v4884_v52  ;;  %6810 = vmatmul.msk.bf16.vlgmr.msra.gmra.mxu3 %vm662_vm6, %v4884_v52 }
 0xa2f   :  { %5156 = vmatpush.bf16.msrb.mxu0 %v9174_v8  ;;  %5169 = vmatpush.bf16.msrb.mxu1 %v9176_v32 }
 0xa30   :  { %5182 = vmatpush.bf16.msrb.mxu2 %v9188_v13  ;;  %5195 = vmatpush.bf16.msra.mxu3 %v9195_v7 }
 0xa33   :  { %5157 = vmatpush.bf16.msrb.mxu0 %v9190_v49  ;;  %5170 = vmatpush.bf16.msrb.mxu1 %v9192_v56 }
 0xa34   :  { %5183 = vmatpush.bf16.msrb.mxu2 %v9204_v58  ;;  %5196 = vmatpush.bf16.msra.mxu3 %v10371_v34 }
 0xa93   :  { %v4833_v40 = vpop.f32.mrf.mxu0  ;;  %v4846_v37 = vpop.f32.mrf.mxu1 }
 0xa94   :  { %v4876_v28 = vadd.f32 %v4833_v40, %v9318_v42  ;;  %v4877_v36 = vadd.f32 %v4846_v37, %v9321_v33  ;;  %v3580_v40 = vadd.f32 %v9364_v31, %v3435_v43  ;;  %v3581_v37 = vadd.f32 %v9367_v1, %v3464_v55 }
 0xa96   :  { %v6811_v60 = vmul.f32 -1.442695, %v4876_v28  ;;  %v6812_v35 = vmul.f32 -1.442695, %v4877_v36 }
 0xa98   :  { %7370 = vpow2.f32 %v6811_v60 }
 0xa99   :  { %7372 = vpow2.f32 %v6812_v35 }
 0xa9a   :  { %v4859_v53 = vpop.f32.mrf.mxu2  ;;  %v4872_v63 = vpop.f32.mrf.mxu3 }
 0xa9b   :  { %v4878_v14 = vadd.f32 %v4859_v53, %v10396_v15  ;;  %v4835_v27 = vpop.f32.mrf.mxu0  ;;  %v4848_v26 = vpop.f32.mrf.mxu1  ;;  %v4879_v16 = vadd.f32 %v4872_v63, %v10403_v4  ;;  %v3582_v53 = vadd.f32 %v9378_v10, %v3493_v39 }
 0xa9d   :  { %v6813_v0 = vmul.f32 -1.442695, %v4878_v14 }
 0xa9e   :  { %v7371_v11 = vpop.eup %7370 }
 0xa9f   :  { %v7373_v47 = vpop.eup %7372  ;;  %v4953_v17 = vadd.f32 1.0, %v7371_v11  ;;  %7374 = vpow2.f32 %v6813_v0 }
 0xaa0   :  { %v4954_v30 = vadd.f32 1.0, %v7373_v47 }
 0xaa1   :  { %7376 = vrcp.f32 %v4953_v17  ;;  %v4965_v36 = vand.u32 2147483647, %v4953_v17  ;;  %v4967_v14 = vand.u32 2147483648, %v4953_v17  ;;  %vm4961_vm8 = vweird.f32 %v4953_v17 }
 0xaa2   :  { %7378 = vrcp.f32 %v4954_v30  ;;  %v4861_v42 = vpop.f32.mrf.mxu2  ;;  %v4874_v33 = vpop.f32.mrf.mxu3  ;;  %v4982_v26 = vand.u32 2147483648, %v4954_v30  ;;  %v4980_v11 = vand.u32 2147483647, %v4954_v30  ;;  %vm4976_vm7 = vweird.f32 %v4954_v30 }
 0xaa3   :  { %v4968_v46 = vor.u32 1.1754944e-38, %v4967_v14  ;;  %vm4966_vm11 = vcmp.eq.f32.partialorder %v4965_v36, 8.507059e+37 }
 0xaa4   :  { %v4983_v45 = vor.u32 1.1754944e-38, %v4982_v26  ;;  %vm4981_vm12 = vcmp.eq.f32.partialorder %v4980_v11, 8.507059e+37  ;;  %v10405_v26 = vld [vmem:[#allocation97_spill] sm:$0xff] }
 0xaa5   :  { %v7375_v2 = vpop.eup %7374 }
 0xaa6   :  { %v9800_v62 = vadd.f32 1.0, %v7375_v2 }
 0xaa7   :  { %v7377_v5 = vpop.eup %7376 }
 0xaa8   :  { %v7379_v54 = vpop.eup %7378  ;;  %v4957_v48 = vmul.f32 %v7377_v5, %v4953_v17  ;;  %7380 = vrcp.f32 %v9800_v62  ;;  %vm4962_vm4 = vweird.f32 %v7377_v5  ;;  %vm4991_vm14 = vweird.f32 %v9800_v62 }
 0xaa9   :  { %v4972_v52 = vmul.f32 %v7379_v54, %v4954_v30  ;;  %7382 = vtanh.f32 %v4879_v16  ;;  %vm4977_vm5 = vweird.f32 %v7379_v54  ;;  %vm4963_vm9 = vmor %vm4961_vm8, %vm4962_vm4  ;;  %v4995_v11 = vand.u32 2147483647, %v9800_v62 }
 0xaaa   :  { %v4958_v28 = vsub.f32 1.0, %v4957_v48  ;;  %v4897_v60 = vpop.f32.mrf.mxu0  ;;  %v4910_v35 = vpop.f32.mrf.mxu1  ;;  %vm4978_vm10 = vmor %vm4976_vm7, %vm4977_vm5 }
 0xaab   :  { %v4973_v15 = vsub.f32 1.0, %v4972_v52  ;;  %v4940_v63 = vadd.f32 %v4897_v60, %v3580_v40  ;;  %v4941_v27 = vadd.f32 %v4910_v35, %v3581_v37  ;;  %vm4996_vm0 = vcmp.eq.f32.partialorder %v4995_v11, 8.507059e+37 }
 0xaac   :  { %v4959_v0 = vmul.f32 %v7377_v5, %v4958_v28 }
 0xaad   :  { %v4974_v47 = vmul.f32 %v7379_v54, %v4973_v15  ;;  %v6814_v42 = vmul.f32 -1.442695, %v4940_v63  ;;  %v6815_v33 = vmul.f32 -1.442695, %v4941_v27 }
 0xaae   :  { %v7381_v2 = vpop.eup %7380  ;;  %v4960_v20 = vadd.f32 %v7377_v5, %v4959_v0 }
 0xaaf   :  { %v4987_v43 = vmul.f32 %v7381_v2, %v9800_v62  ;;  %v4975_v59 = vadd.f32 %v7379_v54, %v4974_v47  ;;  %7384 = vpow2.f32 %v6814_v42  ;;  %v7383_v55 = vpop.eup %7382  ;;  %vm4992_vm13 = vweird.f32 %v7381_v2 }
 0xab0   :  { %v4964_v18 = vsel %vm4963_vm9, %v7377_v5, %v4960_v20  ;;  %7386 = vpow2.f32 %v6815_v33  ;;  %vm4993_vm15 = vmor %vm4991_vm14, %vm4992_vm13 }
 0xab1   :  { %v4988_v39 = vsub.f32 1.0, %v4987_v43  ;;  %v4969_v4 = vsel %vm4966_vm11, %v4968_v46, %v4964_v18  ;;  %v4979_v16 = vsel %vm4978_vm10, %v7379_v54, %v4975_v59  ;;  %v4923_v12 = vpop.f32.mrf.mxu2  ;;  %v4936_v30 = vpop.f32.mrf.mxu3  ;;  %v4997_v54 = vand.u32 2147483648, %v9800_v62 }
 0xab2   :  { %v4984_v48 = vsel %vm4981_vm12, %v4983_v45, %v4979_v16  ;;  %v5003_v17 = vmul.f32 %v7383_v55, %v4969_v4  ;;  %v4942_v52 = vadd.f32 %v4923_v12, %v3582_v53  ;;  %v4899_v40 = vpop.f32.mrf.mxu0  ;;  %v4912_v37 = vpop.f32.mrf.mxu1  ;;  %v10404_v53 = vld [vmem:[#allocation47_spill] sm:$0xff] }
 0xab3   :  { %v4989_v28 = vmul.f32 %v7381_v2, %v4988_v39  ;;  %v5002_v60 = vmul.f32 %v4984_v48, %v4811_v9  ;;  %v3522_v0 = vadd.f32 %v10405_v26, %v10404_v53  ;;  %v4998_v9 = vor.u32 1.1754944e-38, %v4997_v54 }
 0xab4   :  { %v6816_v35 = vmul.f32 -1.442695, %v4942_v52  ;;  %v4813_v53 = vmul.f32 %v9775_v19, %v9766_v50 }
 0xab5   :  { %v7385_v15 = vpop.eup %7384  ;;  %v9810_v14 = vadd.f32 %v5003_v17, %v5002_v60  ;;  %v4990_v36 = vadd.f32 %v7381_v2, %v4989_v28  ;;  %v3583_v43 = vadd.f32 %v9381_v41, %v3522_v0 }
 0xab6   :  { %v7387_v5 = vpop.eup %7386  ;;  %v5016_v63 = vadd.f32 1.0, %v7385_v15  ;;  %7388 = vpow2.f32 %v6816_v35 }
 0xab7   :  { %7390 = vtanh.f32 %v9810_v14  ;;  %v9814_v27 = vadd.f32 1.0, %v7387_v5  ;;  %v4994_v33 = vsel %vm4993_vm15, %v7381_v2, %v4990_v36  ;;  %v4943_v39 = vadd.f32 %v4936_v30, %v3583_v43 }
 0xab8   :  { %7392 = vrcp.f32 %v5016_v63  ;;  %v4999_v59 = vsel %vm4996_vm0, %v4998_v9, %v4994_v33  ;;  %v5030_v52 = vand.u32 2147483648, %v5016_v63  ;;  %v5028_v30 = vand.u32 2147483647, %v5016_v63 }
 0xab9   :  { %7394 = vrcp.f32 %v9814_v27  ;;  %v4925_v47 = vpop.f32.mrf.mxu2  ;;  %v4938_v42 = vpop.f32.mrf.mxu3  ;;  %v5045_v40 = vand.u32 2147483648, %v9814_v27  ;;  %v5043_v60 = vand.u32 2147483647, %v9814_v27  ;;  %vm5024_vm3 = vweird.f32 %v5016_v63 }
 0xaba   :  { %vm5039_vm4 = vweird.f32 %v9814_v27  ;;  %v5031_v36 = vor.u32 1.1754944e-38, %v5030_v52  ;;  %vm5029_vm8 = vcmp.eq.f32.partialorder %v5028_v30, 8.507059e+37  ;;  %v10409_v52 = vld [vmem:[#allocation69_spill] sm:$0xff] }
 0xabb   :  { %vm5044_vm9 = vcmp.eq.f32.partialorder %v5043_v60, 8.507059e+37 }
 0xabc   :  { %v7389_v20 = vpop.eup %7388 }
 0xabd   :  { %v7391_v46 = vpop.eup %7390  ;;  %v9822_v55 = vadd.f32 1.0, %v7389_v20 }
 0xabe   :  { %v7393_v45 = vpop.eup %7392  ;;  %v5006_v18 = vmul.f32 %v7391_v46, %v4999_v59 }
 0xabf   :  { %v7395_v62 = vpop.eup %7394  ;;  %v5020_v4 = vmul.f32 %v7393_v45, %v5016_v63  ;;  %7396 = vrcp.f32 %v9822_v55  ;;  %vm5025_vm1 = vweird.f32 %v7393_v45  ;;  %v5046_v63 = vor.u32 1.1754944e-38, %v5045_v40 }
 0xac0   :  { %v5072_v16 = vmul.f32 %v9775_v19, %v5006_v18  ;;  %v5035_v2 = vmul.f32 %v7395_v62, %v9814_v27  ;;  %7398 = vtanh.f32 %v4943_v39  ;;  %vm5040_vm2 = vweird.f32 %v7395_v62  ;;  %vm5026_vm5 = vmor %vm5024_vm3, %vm5025_vm1 }
 0xac1   :  { %v5021_v12 = vsub.f32 1.0, %v5020_v4  ;;  %vm5041_vm7 = vmor %vm5039_vm4, %vm5040_vm2  ;;  %v5060_v46 = vand.u32 2147483648, %v9822_v55  ;;  %vm5054_vm11 = vweird.f32 %v9822_v55  ;;  %v5058_v59 = vand.u32 2147483647, %v9822_v55 }
 0xac2   :  { %5076 = vst.msk [vmem:[#allocation3 + $0x20] sm:$0xff] %vm662_vm6, %v5072_v16  ;;  %v5082_v48 = vpack.c.bf16 %v5072_v16, %v5072_v16  ;;  %v5036_v17 = vsub.f32 1.0, %v5035_v2 }
 0xac3   :  { %v5022_v37 = vmul.f32 %v7393_v45, %v5021_v12  ;;  %v5061_v18 = vor.u32 1.1754944e-38, %v5060_v46  ;;  %vm5059_vm13 = vcmp.eq.f32.partialorder %v5058_v59, 8.507059e+37  ;;  %v10407_v12 = vld [vmem:[#allocation63_spill] sm:$0xff]  ;;  %v10413_v59 = vld [vmem:[#allocation73_spill] sm:$0xff] }
 0xac4   :  { %v5037_v28 = vmul.f32 %v7395_v62, %v5036_v17  ;;  %6819 = vmatmul.msk.bf16.vlgmr.msra.gmra.mxu0 %vm662_vm6, %v5082_v48  ;;  %6820 = vmatmul.msk.bf16.vlgmr.msra.gmra.mxu1 %vm662_vm6, %v5082_v48  ;;  %v10408_v17 = vld [vmem:[#allocation52_spill] sm:$0xff]  ;;  %v10412_v46 = vld [vmem:[#allocation55_spill] sm:$0xff] }
 0xac5   :  { %v7397_v35 = vpop.eup %7396  ;;  %v5023_v15 = vadd.f32 %v7393_v45, %v5022_v37  ;;  %6821 = vmatmul.msk.bf16.vlgmr.msra.gmra.mxu2 %vm662_vm6, %v5082_v48  ;;  %6822 = vmatmul.msk.bf16.vlgmr.msrb.gmra.mxu3 %vm662_vm6, %v5082_v48  ;;  %v3353_v40 = vadd.f32 %v10409_v52, %v10408_v17 }
 0xac6   :  { %v5050_v5 = vmul.f32 %v7397_v35, %v9822_v55  ;;  %v5038_v54 = vadd.f32 %v7395_v62, %v5037_v28  ;;  %5354 = vmatpush.bf16.msra.mxu0 %v9052_v61  ;;  %5367 = vmatpush.bf16.msra.mxu1 %v9054_v21  ;;  %v7399_v27 = vpop.eup %7398  ;;  %vm5055_vm10 = vweird.f32 %v7397_v35  ;;  %v10406_v55 = vld [vmem:[#allocation25_spill] sm:$0xff] }
 0xac7   :  { %v5027_v26 = vsel %vm5026_vm5, %v7393_v45, %v5023_v15  ;;  %5380 = vmatpush.bf16.msra.mxu2 %v9066_v22  ;;  %5393 = vmatpush.bf16.msrb.mxu3 %v9079_v57  ;;  %vm5056_vm12 = vmor %vm5054_vm11, %vm5055_vm10  ;;  %v3324_v48 = vadd.f32 %v10407_v12, %v10406_v55  ;;  %v3593_v30 = vadd.f32 %v9273_v44, %v3353_v40 }
 0xac8   :  { %v5051_v0 = vsub.f32 1.0, %v5050_v5  ;;  %v5032_v11 = vsel %vm5029_vm8, %v5031_v36, %v5027_v26  ;;  %v5042_v47 = vsel %vm5041_vm7, %v7395_v62, %v5038_v54  ;;  %v10410_v5 = vld [vmem:[#allocation54_spill] sm:$0xff]  ;;  %v10411_v36 = vld [vmem:[#allocation72_spill] sm:$0xff] }
 0xac9   :  { %v5047_v42 = vsel %vm5044_vm9, %v5046_v63, %v5042_v47  ;;  %v5066_v33 = vmul.f32 %v7399_v27, %v5032_v11  ;;  %v3592_v37 = vadd.f32 %v9269_v23, %v3324_v48  ;;  %v3382_v54 = vadd.f32 %v10411_v36, %v10410_v5  ;;  %v10415_v36 = vld [vmem:[#allocation91_spill] sm:$0xff] }
 0xaca   :  { %v5052_v9 = vmul.f32 %v7397_v35, %v5051_v0  ;;  %v5065_v20 = vmul.f32 %v5047_v42, %v4813_v53  ;;  %5355 = vmatpush.bf16.msra.mxu0 %v10367_v51  ;;  %5368 = vmatpush.bf16.msra.mxu1 %v10368_v3 }
 0xacb   :  { %5381 = vmatpush.bf16.msra.mxu2 %v10369_v6  ;;  %5394 = vmatpush.bf16.msrb.mxu3 %v10370_v25  ;;  %v3594_v26 = vadd.f32 %v9291_v29, %v3382_v54 }
 0xacc   :  { %v9847_v50 = vadd.f32 %v5066_v33, %v5065_v20  ;;  %v5053_v43 = vadd.f32 %v7397_v35, %v5052_v9 }
 0xace   :  { %7400 = vtanh.f32 %v9847_v50  ;;  %v5057_v45 = vsel %vm5056_vm12, %v7397_v35, %v5053_v43 }
 0xacf   :  { %v5062_v62 = vsel %vm5059_vm13, %v5061_v18, %v5057_v45  ;;  %v3411_v45 = vadd.f32 %v10413_v59, %v10412_v46 }
 0xad4   :  { %v7401_v39 = vpop.eup %7400 }
 0xad5   :  { %v5069_v4 = vmul.f32 %v7401_v39, %v5062_v62 }
 0xad7   :  { %v5074_v16 = vmul.f32 %v9741_v24, %v5069_v4  ;;  %v3595_v4 = vadd.f32 %v9299_v38, %v3411_v45 }
 0xad9   :  { %5077 = vst.msk [vmem:[#allocation4 + $0x18] sm:$0xff] %vm662_vm6, %v5074_v16  ;;  %v5146_v2 = vpack.c.bf16 %v5074_v16, %v5074_v16 }
 0xadb   :  { %6823 = vmatmul.msk.bf16.vlgmr.msrb.gmra.mxu0 %vm662_vm6, %v5146_v2  ;;  %6824 = vmatmul.msk.bf16.vlgmr.msrb.gmra.mxu1 %vm662_vm6, %v5146_v2 }
 0xadc   :  { %6825 = vmatmul.msk.bf16.vlgmr.msrb.gmra.mxu2 %vm662_vm6, %v5146_v2  ;;  %6826 = vmatmul.msk.bf16.vlgmr.msra.gmra.mxu3 %vm662_vm6, %v5146_v2 }
 0xadd   :  { %5418 = vmatpush.bf16.msrb.mxu0 %v9174_v8  ;;  %5431 = vmatpush.bf16.msrb.mxu1 %v9176_v32 }
 0xade   :  { %5444 = vmatpush.bf16.msrb.mxu2 %v9188_v13  ;;  %5457 = vmatpush.bf16.msra.mxu3 %v9195_v7 }
 0xae1   :  { %5419 = vmatpush.bf16.msrb.mxu0 %v9190_v49  ;;  %5432 = vmatpush.bf16.msrb.mxu1 %v9192_v56 }
 0xae2   :  { %5445 = vmatpush.bf16.msrb.mxu2 %v9204_v58  ;;  %5458 = vmatpush.bf16.msra.mxu3 %v10371_v34 }
 0xb41   :  { %v5095_v28 = vpop.f32.mrf.mxu0  ;;  %v5108_v60 = vpop.f32.mrf.mxu1 }
 0xb42   :  { %v5138_v35 = vadd.f32 %v5095_v28, %v3592_v37  ;;  %v5139_v15 = vadd.f32 %v5108_v60, %v3593_v30 }
 0xb44   :  { %v6827_v53 = vmul.f32 -1.442695, %v5138_v35  ;;  %v6828_v63 = vmul.f32 -1.442695, %v5139_v15  ;;  %v10414_v15 = vld [vmem:[#allocation90_spill] sm:$0xff] }
 0xb46   :  { %7402 = vpow2.f32 %v6827_v53 }
 0xb47   :  { %7404 = vpow2.f32 %v6828_v63 }
 0xb48   :  { %v5121_v27 = vpop.f32.mrf.mxu2  ;;  %v5134_v0 = vpop.f32.mrf.mxu3 }
 0xb49   :  { %v5140_v11 = vadd.f32 %v5121_v27, %v3594_v26  ;;  %v5097_v47 = vpop.f32.mrf.mxu0  ;;  %v5110_v42 = vpop.f32.mrf.mxu1  ;;  %v5141_v55 = vadd.f32 %v5134_v0, %v3595_v4 }
 0xb4a   :  { %v5073_v42 = vmul.f32 %v9775_v19, %v9810_v14 }
 0xb4b   :  { %v6829_v33 = vmul.f32 -1.442695, %v5140_v11 }
 0xb4c   :  { %v7403_v9 = vpop.eup %7402 }
 0xb4d   :  { %v7405_v20 = vpop.eup %7404  ;;  %v5215_v43 = vadd.f32 1.0, %v7403_v9  ;;  %7406 = vpow2.f32 %v6829_v33 }
 0xb4e   :  { %v5216_v18 = vadd.f32 1.0, %v7405_v20 }
 0xb4f   :  { %7408 = vrcp.f32 %v5215_v43  ;;  %v5227_v37 = vand.u32 2147483647, %v5215_v43  ;;  %v5229_v35 = vand.u32 2147483648, %v5215_v43  ;;  %vm5223_vm1 = vweird.f32 %v5215_v43 }
 0xb50   :  { %7410 = vrcp.f32 %v5216_v18  ;;  %v5123_v39 = vpop.f32.mrf.mxu2  ;;  %v5136_v62 = vpop.f32.mrf.mxu3  ;;  %v5244_v53 = vand.u32 2147483648, %v5216_v18  ;;  %v5242_v26 = vand.u32 2147483647, %v5216_v18  ;;  %vm5238_vm0 = vweird.f32 %v5216_v18 }
 0xb51   :  { %v5230_v20 = vor.u32 1.1754944e-38, %v5229_v35  ;;  %vm5228_vm4 = vcmp.eq.f32.partialorder %v5227_v37, 8.507059e+37 }
 0xb52   :  { %v5245_v45 = vor.u32 1.1754944e-38, %v5244_v53  ;;  %vm5243_vm5 = vcmp.eq.f32.partialorder %v5242_v26, 8.507059e+37 }
 0xb53   :  { %v7407_v16 = vpop.eup %7406 }
 0xb54   :  { %v9879_v2 = vadd.f32 1.0, %v7407_v16 }
 0xb55   :  { %v7409_v12 = vpop.eup %7408 }
 0xb56   :  { %v7411_v48 = vpop.eup %7410  ;;  %v5219_v17 = vmul.f32 %v7409_v12, %v5215_v43  ;;  %7412 = vrcp.f32 %v9879_v2  ;;  %vm5224_vm14 = vweird.f32 %v7409_v12  ;;  %vm5253_vm8 = vweird.f32 %v9879_v2 }
 0xb57   :  { %v5234_v52 = vmul.f32 %v7411_v48, %v5216_v18  ;;  %7414 = vtanh.f32 %v5141_v55  ;;  %vm5239_vm15 = vweird.f32 %v7411_v48  ;;  %vm5225_vm2 = vmor %vm5223_vm1, %vm5224_vm14  ;;  %v10416_v55 = vld [vmem:[#allocation94_spill] sm:$0xff] }
 0xb58   :  { %v5220_v40 = vsub.f32 1.0, %v5219_v17  ;;  %v5159_v30 = vpop.f32.mrf.mxu0  ;;  %v5172_v28 = vpop.f32.mrf.mxu1  ;;  %vm5240_vm3 = vmor %vm5238_vm0, %vm5239_vm15 }
 0xb59   :  { %v5235_v60 = vsub.f32 1.0, %v5234_v52  ;;  %v5202_v5 = vadd.f32 %v5159_v30, %v10414_v15  ;;  %v5203_v54 = vadd.f32 %v5172_v28, %v10415_v36 }
 0xb5a   :  { %v5221_v63 = vmul.f32 %v7409_v12, %v5220_v40 }
 0xb5b   :  { %v5236_v27 = vmul.f32 %v7411_v48, %v5235_v60  ;;  %v6830_v0 = vmul.f32 -1.442695, %v5202_v5  ;;  %v6831_v11 = vmul.f32 -1.442695, %v5203_v54  ;;  %v5257_v54 = vand.u32 2147483647, %v9879_v2 }
 0xb5c   :  { %v7413_v47 = vpop.eup %7412  ;;  %v5222_v33 = vadd.f32 %v7409_v12, %v5221_v63 }
 0xb5d   :  { %v5249_v9 = vmul.f32 %v7413_v47, %v9879_v2  ;;  %v5237_v46 = vadd.f32 %v7411_v48, %v5236_v27  ;;  %7416 = vpow2.f32 %v6830_v0  ;;  %v7415_v59 = vpop.eup %7414  ;;  %vm5254_vm7 = vweird.f32 %v7413_v47 }
 0xb5e   :  { %v5226_v39 = vsel %vm5225_vm2, %v7409_v12, %v5222_v33  ;;  %7418 = vpow2.f32 %v6831_v11  ;;  %vm5255_vm9 = vmor %vm5253_vm8, %vm5254_vm7  ;;  %vm5258_vm10 = vcmp.eq.f32.partialorder %v5257_v54, 8.507059e+37 }
 0xb5f   :  { %v5250_v62 = vsub.f32 1.0, %v5249_v9  ;;  %v5231_v4 = vsel %vm5228_vm4, %v5230_v20, %v5226_v39  ;;  %v5241_v16 = vsel %vm5240_vm3, %v7411_v48, %v5237_v46  ;;  %v5185_v19 = vpop.f32.mrf.mxu2  ;;  %v5198_v14 = vpop.f32.mrf.mxu3  ;;  %v5259_v48 = vand.u32 2147483648, %v9879_v2  ;;  %v10417_v46 = vld [vmem:[#allocation95_spill] sm:$0xff]  ;;  %v9904_v39 = vld [vmem:[%s10151_s1 + $0x28] sm:$0xff] }
 0xb60   :  { %v5246_v18 = vsel %vm5243_vm5, %v5245_v45, %v5241_v16  ;;  %v5265_v43 = vmul.f32 %v7415_v59, %v5231_v4  ;;  %v5204_v17 = vadd.f32 %v5185_v19, %v10416_v55  ;;  %v5161_v52 = vpop.f32.mrf.mxu0  ;;  %v5174_v40 = vpop.f32.mrf.mxu1  ;;  %v5205_v59 = vadd.f32 %v5198_v14, %v10417_v46  ;;  %v10418_v46 = vld [vmem:[#allocation74_spill] sm:$0xff] }
 0xb61   :  { %v5251_v30 = vmul.f32 %v7413_v47, %v5250_v62  ;;  %v5264_v28 = vmul.f32 %v5246_v18, %v5073_v42  ;;  %v5260_v27 = vor.u32 1.1754944e-38, %v5259_v48 }
 0xb62   :  { %v6832_v60 = vmul.f32 -1.442695, %v5204_v17 }
 0xb63   :  { %v7417_v35 = vpop.eup %7416  ;;  %v9888_v15 = vadd.f32 %v5265_v43, %v5264_v28  ;;  %v5252_v37 = vadd.f32 %v7413_v47, %v5251_v30 }
 0xb64   :  { %v7419_v12 = vpop.eup %7418  ;;  %v5278_v5 = vadd.f32 1.0, %v7417_v35  ;;  %7420 = vpow2.f32 %v6832_v60 }
 0xb65   :  { %7422 = vtanh.f32 %v9888_v15  ;;  %v9892_v36 = vadd.f32 1.0, %v7419_v12  ;;  %v5256_v26 = vsel %vm5255_vm9, %v7413_v47, %v5252_v37  ;;  %v5075_v12 = vmul.f32 %v9741_v24, %v9847_v50  ;;  %v6834_v24 = vld [vmem:[%s10151_s1 + $0x10] sm:$0xff] }
 0xb66   :  { %7424 = vrcp.f32 %v5278_v5  ;;  %v5261_v42 = vsel %vm5258_vm10, %v5260_v27, %v5256_v26  ;;  %v5292_v18 = vand.u32 2147483648, %v5278_v5  ;;  %v5290_v55 = vand.u32 2147483647, %v5278_v5 }
 0xb67   :  { %7426 = vrcp.f32 %v9892_v36  ;;  %v5187_v53 = vpop.f32.mrf.mxu2  ;;  %v5200_v63 = vpop.f32.mrf.mxu3  ;;  %v5307_v14 = vand.u32 2147483648, %v9892_v36  ;;  %v5305_v52 = vand.u32 2147483647, %v9892_v36  ;;  %vm5286_vm13 = vweird.f32 %v5278_v5 }
 0xb68   :  { %vm5301_vm14 = vweird.f32 %v9892_v36  ;;  %v5293_v60 = vor.u32 1.1754944e-38, %v5292_v18  ;;  %vm5291_vm1 = vcmp.eq.f32.partialorder %v5290_v55, 8.507059e+37  ;;  %v10421_v55 = vld [vmem:[#allocation50_spill] sm:$0xff] }
 0xb69   :  { %v5308_v37 = vor.u32 1.1754944e-38, %v5307_v14  ;;  %vm5306_vm2 = vcmp.eq.f32.partialorder %v5305_v52, 8.507059e+37 }
 0xb6a   :  { %v7421_v0 = vpop.eup %7420 }
 0xb6b   :  { %v7423_v11 = vpop.eup %7422  ;;  %v9897_v33 = vadd.f32 1.0, %v7421_v0 }
 0xb6c   :  { %v7425_v9 = vpop.eup %7424  ;;  %v5268_v20 = vmul.f32 %v7423_v11, %v5261_v42 }
 0xb6d   :  { %v7427_v45 = vpop.eup %7426  ;;  %v5282_v2 = vmul.f32 %v7425_v9, %v5278_v5  ;;  %7428 = vrcp.f32 %v9897_v33  ;;  %vm5287_vm11 = vweird.f32 %v7425_v9  ;;  %v5322_v50 = vand.u32 2147483648, %v9897_v33 }
 0xb6e   :  { %v5334_v47 = vmul.f32 %v9904_v39, %v5268_v20  ;;  %v5297_v62 = vmul.f32 %v7427_v45, %v9892_v36  ;;  %7430 = vtanh.f32 %v5205_v59  ;;  %vm5302_vm12 = vweird.f32 %v7427_v45  ;;  %vm5288_vm15 = vmor %vm5286_vm13, %vm5287_vm11 }
 0xb6f   :  { %v5283_v4 = vsub.f32 1.0, %v5282_v2  ;;  %vm5303_vm0 = vmor %vm5301_vm14, %vm5302_vm12  ;;  %vm5316_vm4 = vweird.f32 %v9897_v33  ;;  %v5323_v0 = vor.u32 1.1754944e-38, %v5322_v50 }
 0xb70   :  { %5338 = vst.msk [vmem:[#allocation3 + $0x28] sm:$0xff] %vm662_vm6, %v5334_v47  ;;  %v5344_v16 = vpack.c.bf16 %v5334_v47, %v5334_v47  ;;  %v5298_v19 = vsub.f32 1.0, %v5297_v62  ;;  %v10420_v47 = vld [vmem:[#allocation78_spill] sm:$0xff] }
 0xb71   :  { %v5284_v43 = vmul.f32 %v7425_v9, %v5283_v4 }
 0xb72   :  { %v5299_v17 = vmul.f32 %v7427_v45, %v5298_v19  ;;  %6835 = vmatmul.msk.bf16.vlgmr.msra.gmra.mxu0 %vm662_vm6, %v5344_v16  ;;  %6836 = vmatmul.msk.bf16.vlgmr.msra.gmra.mxu1 %vm662_vm6, %v5344_v16 }
 0xb73   :  { %v7429_v40 = vpop.eup %7428  ;;  %v5285_v30 = vadd.f32 %v7425_v9, %v5284_v43  ;;  %6837 = vmatmul.msk.bf16.vlgmr.msra.gmra.mxu2 %vm662_vm6, %v5344_v16  ;;  %6838 = vmatmul.msk.bf16.vlgmr.msrb.gmra.mxu3 %vm662_vm6, %v5344_v16 }
 0xb74   :  { %v5312_v28 = vmul.f32 %v7429_v40, %v9897_v33  ;;  %v5300_v35 = vadd.f32 %v7427_v45, %v5299_v17  ;;  %5616 = vmatpush.bf16.msra.mxu0 %v9052_v61  ;;  %5629 = vmatpush.bf16.msra.mxu1 %v9054_v21  ;;  %v7431_v48 = vpop.eup %7430  ;;  %vm5317_vm3 = vweird.f32 %v7429_v40  ;;  %v10422_v17 = vld [vmem:[#allocation84_spill] sm:$0xff] }
 0xb75   :  { %v5289_v5 = vsel %vm5288_vm15, %v7425_v9, %v5285_v30  ;;  %5642 = vmatpush.bf16.msra.mxu2 %v9066_v22  ;;  %5655 = vmatpush.bf16.msrb.mxu3 %v9079_v57  ;;  %vm5318_vm5 = vmor %vm5316_vm4, %vm5317_vm3  ;;  %v3430_v52 = vadd.f32 %v10422_v17, %v10421_v55  ;;  %v10424_v30 = vld [vmem:[#allocation85_spill] sm:$0xff] }
 0xb76   :  { %v5313_v36 = vsub.f32 1.0, %v5312_v28  ;;  %v5294_v54 = vsel %vm5291_vm1, %v5293_v60, %v5289_v5  ;;  %v5304_v53 = vsel %vm5303_vm0, %v7427_v45, %v5300_v35  ;;  %v10419_v45 = vld [vmem:[#allocation75_spill] sm:$0xff]  ;;  %v10425_v60 = vld [vmem:[#allocation66_spill] sm:$0xff]  ;;  %v10426_v35 = vld [vmem:[#allocation88_spill] sm:$0xff] }
 0xb77   :  { %v5309_v61 = vsel %vm5306_vm2, %v5308_v37, %v5304_v53  ;;  %v5328_v63 = vmul.f32 %v7431_v48, %v5294_v54  ;;  %v10427_v5 = vld [vmem:[#allocation79_spill] sm:$0xff] }
 0xb78   :  { %v5314_v21 = vmul.f32 %v7429_v40, %v5313_v36  ;;  %v5327_v26 = vmul.f32 %v5309_v61, %v5075_v12  ;;  %5617 = vmatpush.bf16.msra.mxu0 %v10367_v51  ;;  %5630 = vmatpush.bf16.msra.mxu1 %v10368_v3  ;;  %v5320_v51 = vand.u32 2147483647, %v9897_v33  ;;  %v3488_v12 = vadd.f32 %v10426_v35, %v10425_v60  ;;  %v10428_v60 = vld [vmem:[#allocation29_spill] sm:$0xff] }
 0xb79   :  { %5643 = vmatpush.bf16.msra.mxu2 %v10369_v6  ;;  %5656 = vmatpush.bf16.msrb.mxu3 %v10370_v25  ;;  %v10429_v35 = vld [vmem:[#allocation89_spill] sm:$0xff] }
 0xb7a   :  { %v5329_v22 = vadd.f32 %v5328_v63, %v5327_v26  ;;  %v5315_v57 = vadd.f32 %v7429_v40, %v5314_v21  ;;  %vm5321_vm7 = vcmp.eq.f32.partialorder %v5320_v51, 8.507059e+37  ;;  %v3564_v63 = vadd.f32 %v9364_v31, %v3430_v52 }
 0xb7b   :  { %v3566_v50 = vadd.f32 %v9378_v10, %v3488_v12  ;;  %v3517_v12 = vadd.f32 %v10429_v35, %v10428_v60 }
 0xb7c   :  { %7432 = vtanh.f32 %v5329_v22  ;;  %v9932_v27 = vmul.f32 %v6834_v24, %v5329_v22  ;;  %v5319_v3 = vsel %vm5318_vm5, %v7429_v40, %v5315_v57  ;;  %v10423_v40 = vld [vmem:[#allocation51_spill] sm:$0xff] }
 0xb7d   :  { %v5324_v6 = vsel %vm5321_vm7, %v5323_v0, %v5319_v3  ;;  %v3459_v28 = vadd.f32 %v10424_v30, %v10423_v40 }
 0xb7f   :  { %v3565_v21 = vadd.f32 %v9367_v1, %v3459_v28 }
 0xb82   :  { %v7433_v11 = vpop.eup %7432 }
 0xb83   :  { %v5331_v42 = vmul.f32 %v7433_v11, %v5324_v6 }
 0xb85   :  { %v5336_v25 = vmul.f32 %v6834_v24, %v5331_v42 }
 0xb87   :  { %5339 = vst.msk [vmem:[#allocation4 + $0x10] sm:$0xff] %vm662_vm6, %v5336_v25  ;;  %v5408_v9 = vpack.c.bf16 %v5336_v25, %v5336_v25 }
 0xb89   :  { %6839 = vmatmul.msk.bf16.vlgmr.msrb.gmra.mxu0 %vm662_vm6, %v5408_v9  ;;  %6840 = vmatmul.msk.bf16.vlgmr.msrb.gmra.mxu1 %vm662_vm6, %v5408_v9 }
 0xb8a   :  { %6841 = vmatmul.msk.bf16.vlgmr.msrb.gmra.mxu2 %vm662_vm6, %v5408_v9  ;;  %6842 = vmatmul.msk.bf16.vlgmr.msra.gmra.mxu3 %vm662_vm6, %v5408_v9 }
 0xb8b   :  { %5680 = vmatpush.bf16.msrb.mxu0 %v9174_v8  ;;  %5693 = vmatpush.bf16.msrb.mxu1 %v9176_v32 }
 0xb8c   :  { %5706 = vmatpush.bf16.msrb.mxu2 %v9188_v13  ;;  %5719 = vmatpush.bf16.msra.mxu3 %v9195_v7 }
 0xb8f   :  { %5681 = vmatpush.bf16.msrb.mxu0 %v9190_v49  ;;  %5694 = vmatpush.bf16.msrb.mxu1 %v9192_v56 }
 0xb90   :  { %5707 = vmatpush.bf16.msrb.mxu2 %v9204_v58  ;;  %5720 = vmatpush.bf16.msra.mxu3 %v10371_v34 }
 0xbef   :  { %v5357_v33 = vpop.f32.mrf.mxu0  ;;  %v5370_v20 = vpop.f32.mrf.mxu1 }
 0xbf0   :  { %v5400_v59 = vadd.f32 %v5357_v33, %v10418_v46  ;;  %v5401_v8 = vadd.f32 %v5370_v20, %v10419_v45  ;;  %v5335_v20 = vmul.f32 %v9904_v39, %v9888_v15 }
 0xbf2   :  { %v6843_v2 = vmul.f32 -1.442695, %v5400_v59  ;;  %v6844_v32 = vmul.f32 -1.442695, %v5401_v8 }
 0xbf4   :  { %7434 = vpow2.f32 %v6843_v2 }
 0xbf5   :  { %7436 = vpow2.f32 %v6844_v32 }
 0xbf6   :  { %v5383_v13 = vpop.f32.mrf.mxu2  ;;  %v5396_v7 = vpop.f32.mrf.mxu3 }
 0xbf7   :  { %v5402_v49 = vadd.f32 %v5383_v13, %v10420_v47  ;;  %v5359_v62 = vpop.f32.mrf.mxu0  ;;  %v5372_v56 = vpop.f32.mrf.mxu1  ;;  %v5403_v48 = vadd.f32 %v5396_v7, %v10427_v5 }
 0xbf9   :  { %v6845_v4 = vmul.f32 -1.442695, %v5402_v49 }
 0xbfa   :  { %v7435_v58 = vpop.eup %7434 }
 0xbfb   :  { %v7437_v16 = vpop.eup %7436  ;;  %v5477_v34 = vadd.f32 1.0, %v7435_v58  ;;  %7438 = vpow2.f32 %v6845_v4 }
 0xbfc   :  { %v5478_v19 = vadd.f32 1.0, %v7437_v16 }
 0xbfd   :  { %7440 = vrcp.f32 %v5477_v34  ;;  %v5489_v24 = vand.u32 2147483647, %v5477_v34  ;;  %v5491_v3 = vand.u32 2147483648, %v5477_v34  ;;  %vm5485_vm11 = vweird.f32 %v5477_v34 }
 0xbfe   :  { %7442 = vrcp.f32 %v5478_v19  ;;  %v5385_v18 = vpop.f32.mrf.mxu2  ;;  %v5398_v14 = vpop.f32.mrf.mxu3  ;;  %v5506_v6 = vand.u32 2147483648, %v5478_v19  ;;  %v5504_v25 = vand.u32 2147483647, %v5478_v19  ;;  %vm5500_vm10 = vweird.f32 %v5478_v19 }
 0xbff   :  { %v5492_v59 = vor.u32 1.1754944e-38, %v5491_v3  ;;  %vm5490_vm14 = vcmp.eq.f32.partialorder %v5489_v24, 8.507059e+37 }
 0xc00   :  { %v5507_v2 = vor.u32 1.1754944e-38, %v5506_v6  ;;  %vm5505_vm15 = vcmp.eq.f32.partialorder %v5504_v25, 8.507059e+37 }
 0xc01   :  { %v7439_v43 = vpop.eup %7438 }
 0xc02   :  { %v9958_v37 = vadd.f32 1.0, %v7439_v43 }
 0xc03   :  { %v7441_v36 = vpop.eup %7440 }
 0xc04   :  { %v7443_v54 = vpop.eup %7442  ;;  %v5481_v53 = vmul.f32 %v7441_v36, %v5477_v34  ;;  %7444 = vrcp.f32 %v9958_v37  ;;  %vm5486_vm8 = vweird.f32 %v7441_v36  ;;  %v5521_v40 = vand.u32 2147483648, %v9958_v37 }
 0xc05   :  { %v5496_v61 = vmul.f32 %v7443_v54, %v5478_v19  ;;  %7446 = vtanh.f32 %v5403_v48  ;;  %vm5501_vm9 = vweird.f32 %v7443_v54  ;;  %vm5487_vm12 = vmor %vm5485_vm11, %vm5486_vm8  ;;  %v6849_v19 = vld [vmem:[%s10151_s1 + $0x30] sm:$0xff]  ;;  %vm5515_vm1 = vweird.f32 %v9958_v37 }
 0xc06   :  { %v5482_v26 = vsub.f32 1.0, %v5481_v53  ;;  %v5421_v22 = vpop.f32.mrf.mxu0  ;;  %v5434_v57 = vpop.f32.mrf.mxu1  ;;  %vm5502_vm13 = vmor %vm5500_vm10, %vm5501_vm9  ;;  %v5519_v5 = vand.u32 2147483647, %v9958_v37  ;;  %v5522_v53 = vor.u32 1.1754944e-38, %v5521_v40 }
 0xc07   :  { %v5497_v51 = vsub.f32 1.0, %v5496_v61  ;;  %v5464_v0 = vadd.f32 %v5421_v22, %v3564_v63  ;;  %v5465_v11 = vadd.f32 %v5434_v57, %v3565_v21  ;;  %v3567_v63 = vadd.f32 %v9381_v41, %v3517_v12  ;;  %v5862_v12 = vld [vmem:[#allocation3] sm:$0xff] }
 0xc08   :  { %v5483_v42 = vmul.f32 %v7441_v36, %v5482_v26  ;;  %vm5520_vm3 = vcmp.eq.f32.partialorder %v5519_v5, 8.507059e+37  ;;  %v5863_v5 = vld [vmem:[#allocation3 + $0x8] sm:$0xff] }
 0xc09   :  { %v5498_v9 = vmul.f32 %v7443_v54, %v5497_v51  ;;  %v6846_v31 = vmul.f32 -1.442695, %v5464_v0  ;;  %v6847_v33 = vmul.f32 -1.442695, %v5465_v11 }
 0xc0a   :  { %v7445_v1 = vpop.eup %7444  ;;  %v5484_v46 = vadd.f32 %v7441_v36, %v5483_v42 }
 0xc0b   :  { %v5511_v10 = vmul.f32 %v7445_v1, %v9958_v37  ;;  %v5499_v45 = vadd.f32 %v7443_v54, %v5498_v9  ;;  %7448 = vpow2.f32 %v6846_v31  ;;  %v7447_v8 = vpop.eup %7446  ;;  %vm5516_vm0 = vweird.f32 %v7445_v1 }
 0xc0c   :  { %v5488_v32 = vsel %vm5487_vm12, %v7441_v36, %v5484_v46  ;;  %7450 = vpow2.f32 %v6847_v33  ;;  %vm5517_vm2 = vmor %vm5515_vm1, %vm5516_vm0  ;;  %v5873_v33 = vld [vmem:[#allocation15 + $0x18] sm:$0xff] }
 0xc0d   :  { %v5512_v13 = vsub.f32 1.0, %v5511_v10  ;;  %v5493_v7 = vsel %vm5490_vm14, %v5492_v59, %v5488_v32  ;;  %v5503_v47 = vsel %vm5502_vm13, %v7443_v54, %v5499_v45  ;;  %v5447_v15 = vpop.f32.mrf.mxu2  ;;  %v5460_v39 = vpop.f32.mrf.mxu3  ;;  %v5872_v59 = vld [vmem:[#allocation15 + $0x10] sm:$0xff] }
 0xc0e   :  { %v5508_v49 = vsel %vm5505_vm15, %v5507_v2, %v5503_v47  ;;  %v5527_v62 = vmul.f32 %v7447_v8, %v5493_v7  ;;  %v5466_v56 = vadd.f32 %v5447_v15, %v3566_v50  ;;  %v5423_v4 = vpop.f32.mrf.mxu0  ;;  %v5436_v58 = vpop.f32.mrf.mxu1  ;;  %v5467_v50 = vadd.f32 %v5460_v39, %v3567_v63  ;;  %v5871_v7 = vld [vmem:[#allocation15 + $0x8] sm:$0xff]  ;;  %v10430_v63 = vld [vmem:[#allocation57_spill] sm:$0xff] }
 0xc0f   :  { %v5513_v16 = vmul.f32 %v7445_v1, %v5512_v13  ;;  %v5526_v34 = vmul.f32 %v5508_v49, %v5335_v20  ;;  %v5870_v4 = vld [vmem:[#allocation15] sm:$0xff] }
 0xc10   :  { %v6848_v18 = vmul.f32 -1.442695, %v5466_v56 }
 0xc11   :  { %v7449_v14 = vpop.eup %7448  ;;  %v5528_v43 = vadd.f32 %v5527_v62, %v5526_v34  ;;  %v5514_v17 = vadd.f32 %v7445_v1, %v5513_v16  ;;  %v6850_v34 = vld [vmem:[%s10151_s1 + $0x8] sm:$0xff] }
 0xc12   :  { %v7451_v55 = vpop.eup %7450  ;;  %v5540_v52 = vadd.f32 1.0, %v7449_v14  ;;  %7452 = vpow2.f32 %v6848_v18 }
 0xc13   :  { %7454 = vtanh.f32 %v5528_v43  ;;  %v9972_v30 = vmul.f32 %v6849_v19, %v5528_v43  ;;  %v9974_v28 = vadd.f32 1.0, %v7451_v55  ;;  %v5518_v54 = vsel %vm5517_vm2, %v7445_v1, %v5514_v17 }
 0xc14   :  { %7456 = vrcp.f32 %v5540_v52  ;;  %v5523_v26 = vsel %vm5520_vm3, %v5522_v53, %v5518_v54  ;;  %v5554_v41 = vand.u32 2147483648, %v5540_v52  ;;  %v5552_v31 = vand.u32 2147483647, %v5540_v52  ;;  %v5866_v54 = vld [vmem:[#allocation3 + $0x20] sm:$0xff]  ;;  %v5867_v53 = vld [vmem:[#allocation3 + $0x28] sm:$0xff] }
 0xc15   :  { %7458 = vrcp.f32 %v9974_v28  ;;  %v5449_v48 = vpop.f32.mrf.mxu2  ;;  %v5462_v36 = vpop.f32.mrf.mxu3  ;;  %v5569_v25 = vand.u32 2147483648, %v9974_v28  ;;  %v5567_v20 = vand.u32 2147483647, %v9974_v28  ;;  %vm5548_vm7 = vweird.f32 %v5540_v52 }
 0xc16   :  { %vm5563_vm8 = vweird.f32 %v9974_v28  ;;  %v5555_v8 = vor.u32 1.1754944e-38, %v5554_v41  ;;  %vm5553_vm11 = vcmp.eq.f32.partialorder %v5552_v31, 8.507059e+37  ;;  %v5864_v48 = vld [vmem:[#allocation3 + $0x10] sm:$0xff]  ;;  %v5865_v36 = vld [vmem:[#allocation3 + $0x18] sm:$0xff] }
 0xc17   :  { %v5570_v32 = vor.u32 1.1754944e-38, %v5569_v25  ;;  %vm5568_vm12 = vcmp.eq.f32.partialorder %v5567_v20, 8.507059e+37 }
 0xc18   :  { %v7453_v61 = vpop.eup %7452 }
 0xc19   :  { %v7455_v21 = vpop.eup %7454  ;;  %v9982_v24 = vadd.f32 1.0, %v7453_v61 }
 0xc1a   :  { %v7457_v22 = vpop.eup %7456  ;;  %v5530_v57 = vmul.f32 %v7455_v21, %v5523_v26  ;;  %v10431_v21 = vld [vmem:[#allocation76_spill] sm:$0xff] }
 0xc1b   :  { %v7459_v37 = vpop.eup %7458  ;;  %v5544_v51 = vmul.f32 %v7457_v22, %v5540_v52  ;;  %7460 = vrcp.f32 %v9982_v24  ;;  %vm5549_vm4 = vweird.f32 %v7457_v22  ;;  %v5584_v14 = vand.u32 2147483648, %v9982_v24 }
 0xc1c   :  { %v5596_v3 = vmul.f32 %v6849_v19, %v5530_v57  ;;  %v5559_v0 = vmul.f32 %v7459_v37, %v9974_v28  ;;  %7462 = vtanh.f32 %v5467_v50  ;;  %vm5564_vm5 = vweird.f32 %v7459_v37  ;;  %vm5550_vm9 = vmor %vm5548_vm7, %vm5549_vm4 }
 0xc1d   :  { %v5545_v11 = vsub.f32 1.0, %v5544_v51  ;;  %vm5565_vm10 = vmor %vm5563_vm8, %vm5564_vm5  ;;  %vm5578_vm14 = vweird.f32 %v9982_v24  ;;  %v5582_v55 = vand.u32 2147483647, %v9982_v24  ;;  %v5585_v17 = vor.u32 1.1754944e-38, %v5584_v14 }
 0xc1e   :  { %5600 = vst.msk [vmem:[#allocation3 + $0x30] sm:$0xff] %vm662_vm6, %v5596_v3  ;;  %v5606_v6 = vpack.c.bf16 %v5596_v3, %v5596_v3  ;;  %v5560_v42 = vsub.f32 1.0, %v5559_v0  ;;  %v3329_v26 = vadd.f32 %v10431_v21, %v10430_v63 }
 0xc1f   :  { %v5546_v9 = vmul.f32 %v7457_v22, %v5545_v11  ;;  %vm5583_vm0 = vcmp.eq.f32.partialorder %v5582_v55, 8.507059e+37 }
 0xc20   :  { %v5561_v1 = vmul.f32 %v7459_v37, %v5560_v42  ;;  %6851 = vmatmul.msk.bf16.vlgmr.msra.gmra.mxu0 %vm662_vm6, %v5606_v6  ;;  %6852 = vmatmul.msk.bf16.vlgmr.msra.gmra.mxu1 %vm662_vm6, %v5606_v6  ;;  %v3608_v50 = vadd.f32 %v9269_v23, %v3329_v26  ;;  %v10435_v42 = vld [vmem:[#allocation80_spill] sm:$0xff] }
 0xc21   :  { %v7461_v46 = vpop.eup %7460  ;;  %v5547_v10 = vadd.f32 %v7457_v22, %v5546_v9  ;;  %6853 = vmatmul.msk.bf16.vlgmr.msra.gmra.mxu2 %vm662_vm6, %v5606_v6  ;;  %6854 = vmatmul.msk.bf16.vlgmr.msrb.gmra.mxu3 %vm662_vm6, %v5606_v6  ;;  %v10434_v6 = vld [vmem:[#allocation27_spill] sm:$0xff] }
 0xc22   :  { %v5574_v45 = vmul.f32 %v7461_v46, %v9982_v24  ;;  %v5562_v2 = vadd.f32 %v7459_v37, %v5561_v1  ;;  %5987 = vmatpush.msra.mxu1 %v5873_v33  ;;  %v7463_v47 = vpop.eup %7462  ;;  %vm5579_vm13 = vweird.f32 %v7461_v46  ;;  %v10432_v24 = vld [vmem:[#allocation67_spill] sm:$0xff]  ;;  %v3387_v41 = vadd.f32 %v10435_v42, %v10434_v6 }
 0xc23   :  { %v5551_v13 = vsel %vm5550_vm9, %v7457_v22, %v5547_v10  ;;  %vm5580_vm15 = vmor %vm5578_vm14, %vm5579_vm13  ;;  %v10433_v22 = vld [vmem:[#allocation77_spill] sm:$0xff] }
 0xc24   :  { %v5575_v15 = vsub.f32 1.0, %v5574_v45  ;;  %v5556_v39 = vsel %vm5553_vm11, %v5555_v8, %v5551_v13  ;;  %v5566_v49 = vsel %vm5565_vm10, %v7459_v37, %v5562_v2  ;;  %5988 = vmatpush.msra.mxu1 %v5872_v59  ;;  %v3358_v57 = vadd.f32 %v10433_v22, %v10432_v24  ;;  %v10436_v8 = vld [vmem:[#allocation26_spill] sm:$0xff]  ;;  %v10437_v2 = vld [vmem:[#allocation81_spill] sm:$0xff] }
 0xc25   :  { %v5571_v62 = vsel %vm5568_vm12, %v5570_v32, %v5566_v49  ;;  %v5590_v56 = vmul.f32 %v7463_v47, %v5556_v39  ;;  %v5868_v61 = vld [vmem:[#allocation3 + $0x30] sm:$0xff]  ;;  %v3610_v31 = vadd.f32 %v9291_v29, %v3387_v41  ;;  %v3416_v32 = vadd.f32 %v10437_v2, %v10436_v8 }
 0xc26   :  { %v5576_v58 = vmul.f32 %v7461_v46, %v5575_v15  ;;  %v5589_v16 = vmul.f32 %v5571_v62, %v9932_v27  ;;  %5989 = vmatpush.msra.mxu1 %v5871_v7  ;;  %v3609_v37 = vadd.f32 %v9273_v44, %v3358_v57  ;;  %v5884_v8 = vld [vmem:[#allocation16 + $0x10] sm:$0xff] }
 0xc27   :  { %v3611_v29 = vadd.f32 %v9299_v38, %v3416_v32  ;;  %v10439_v38 = vld [vmem:[#allocation83_spill] sm:$0xff] }
 0xc28   :  { %v5591_v19 = vadd.f32 %v5590_v56, %v5589_v16  ;;  %5990 = vmatpush.msra.mxu1 %v5870_v4  ;;  %v5577_v18 = vadd.f32 %v7461_v46, %v5576_v58 }
 0xc2a   :  { %7464 = vtanh.f32 %v5591_v19  ;;  %v10002_v43 = vmul.f32 %v6850_v34, %v5591_v19  ;;  %v5581_v27 = vsel %vm5580_vm15, %v7461_v46, %v5577_v18 }
 0xc2b   :  { %v5586_v40 = vsel %vm5583_vm0, %v5585_v17, %v5581_v27  ;;  %v10438_v27 = vld [vmem:[#allocation82_spill] sm:$0xff] }
 0xc30   :  { %v7465_v52 = vpop.eup %7464 }
 0xc31   :  { %v5593_v28 = vmul.f32 %v7465_v52, %v5586_v40 }
 0xc33   :  { %v5598_v60 = vmul.f32 %v6850_v34, %v5593_v28 }
 0xc35   :  { %5601 = vst.msk [vmem:[#allocation4 + $0x8] sm:$0xff] %vm662_vm6, %v5598_v60  ;;  %v5670_v35 = vpack.c.bf16 %v5598_v60, %v5598_v60 }
 0xc37   :  { %6855 = vmatmul.msk.bf16.vlgmr.msrb.gmra.mxu0 %vm662_vm6, %v5670_v35  ;;  %6856 = vmatmul.msk.bf16.vlgmr.msrb.gmra.mxu1 %vm662_vm6, %v5670_v35 }
 0xc38   :  { %6857 = vmatmul.msk.bf16.vlgmr.msrb.gmra.mxu2 %vm662_vm6, %v5670_v35  ;;  %6858 = vmatmul.msk.bf16.vlgmr.msra.gmra.mxu3 %vm662_vm6, %v5670_v35 }
 0xc47   :  { %6874 = vmatmul.msk.f32.vlgmr.msra.gmra.mxu1 %vm662_vm6, %v5862_v12 }
 0xc4f   :  { %6875 = vmatmul.msk.f32.gmra.mxu1 %vm662_vm6, %v5863_v5 }
 0xc57   :  { %6876 = vmatmul.msk.f32.gmra.mxu1 %vm662_vm6, %v5864_v48 }
 0xc5f   :  { %6877 = vmatmul.msk.f32.gmra.mxu1 %vm662_vm6, %v5865_v36 }
 0xc67   :  { %6878 = vmatmul.msk.f32.gmra.mxu1 %vm662_vm6, %v5866_v54 }
 0xc6f   :  { %6879 = vmatmul.msk.f32.gmra.mxu1 %vm662_vm6, %v5867_v53 }
 0xc77   :  { %6880 = vmatmul.msk.f32.gmra.mxu1 %vm662_vm6, %v5868_v61 }
 0xc9d   :  { %v5619_v51 = vpop.f32.mrf.mxu0  ;;  %v5632_v3 = vpop.f32.mrf.mxu1 }
 0xc9e   :  { %v5662_v0 = vadd.f32 %v5619_v51, %v3608_v50  ;;  %v5663_v11 = vadd.f32 %v5632_v3, %v3609_v37 }
 0xca0   :  { %v6859_v25 = vmul.f32 -1.442695, %v5662_v0  ;;  %v6860_v9 = vmul.f32 -1.442695, %v5663_v11  ;;  %v10440_v0 = vld [vmem:[#allocation86_spill] sm:$0xff] }
 0xca2   :  { %7466 = vpow2.f32 %v6859_v25 }
 0xca3   :  { %7468 = vpow2.f32 %v6860_v9 }
 0xca4   :  { %v5645_v33 = vpop.f32.mrf.mxu2  ;;  %v5658_v1 = vpop.f32.mrf.mxu3 }
 0xca5   :  { %v5664_v20 = vadd.f32 %v5645_v33, %v3610_v31  ;;  %v5621_v46 = vpop.f32.mrf.mxu0  ;;  %v5634_v23 = vpop.f32.mrf.mxu1  ;;  %v5665_v49 = vadd.f32 %v5658_v1, %v3611_v29 }
 0xca7   :  { %v6861_v10 = vmul.f32 -1.442695, %v5664_v20 }
 0xca8   :  { %v7467_v44 = vpop.eup %7466 }
 0xca9   :  { %v7469_v59 = vpop.eup %7468  ;;  %v5739_v45 = vadd.f32 1.0, %v7467_v44  ;;  %7470 = vpow2.f32 %v6861_v10 }
 0xcaa   :  { %v5740_v13 = vadd.f32 1.0, %v7469_v59 }
 0xcab   :  { %7472 = vrcp.f32 %v5739_v45  ;;  %v5751_v34 = vand.u32 2147483647, %v5739_v45  ;;  %v5753_v55 = vand.u32 2147483648, %v5739_v45  ;;  %vm5747_vm4 = vweird.f32 %v5739_v45 }
 0xcac   :  { %7474 = vrcp.f32 %v5740_v13  ;;  %v5647_v7 = vpop.f32.mrf.mxu2  ;;  %v5660_v47 = vpop.f32.mrf.mxu3  ;;  %v5768_v40 = vand.u32 2147483648, %v5740_v13  ;;  %v5766_v60 = vand.u32 2147483647, %v5740_v13  ;;  %vm5762_vm3 = vweird.f32 %v5740_v13 }
 0xcad   :  { %v5754_v53 = vor.u32 1.1754944e-38, %v5753_v55  ;;  %vm5752_vm8 = vcmp.eq.f32.partialorder %v5751_v34, 8.507059e+37 }
 0xcae   :  { %v5769_v21 = vor.u32 1.1754944e-38, %v5768_v40  ;;  %vm5767_vm9 = vcmp.eq.f32.partialorder %v5766_v60, 8.507059e+37 }
 0xcaf   :  { %v7471_v15 = vpop.eup %7470 }
 0xcb0   :  { %v10030_v39 = vadd.f32 1.0, %v7471_v15  ;;  %v6865_v15 = vld [vmem:[%s10151_s1 + $0x38] sm:$0xff] }
 0xcb1   :  { %v7473_v62 = vpop.eup %7472 }
 0xcb2   :  { %v7475_v56 = vpop.eup %7474  ;;  %v5743_v4 = vmul.f32 %v7473_v62, %v5739_v45  ;;  %7476 = vrcp.f32 %v10030_v39  ;;  %vm5748_vm1 = vweird.f32 %v7473_v62  ;;  %v5783_v23 = vand.u32 2147483648, %v10030_v39  ;;  %v5885_v45 = vld [vmem:[#allocation16 + $0x18] sm:$0xff] }
 0xcb3   :  { %v5758_v58 = vmul.f32 %v7475_v56, %v5740_v13  ;;  %7478 = vtanh.f32 %v5665_v49  ;;  %vm5763_vm2 = vweird.f32 %v7475_v56  ;;  %vm5749_vm5 = vmor %vm5747_vm4, %vm5748_vm1  ;;  %vm5777_vm11 = vweird.f32 %v10030_v39  ;;  %5922 = vmatpush.msra.mxu0 %v5885_v45  ;;  %v5883_v13 = vld [vmem:[#allocation16 + $0x8] sm:$0xff]  ;;  %v5882_v49 = vld [vmem:[#allocation16] sm:$0xff] }
 0xcb4   :  { %v5744_v16 = vsub.f32 1.0, %v5743_v4  ;;  %v5683_v19 = vpop.f32.mrf.mxu0  ;;  %v5696_v18 = vpop.f32.mrf.mxu1  ;;  %vm5764_vm7 = vmor %vm5762_vm3, %vm5763_vm2  ;;  %v5781_v44 = vand.u32 2147483647, %v10030_v39  ;;  %v5784_v32 = vor.u32 1.1754944e-38, %v5783_v23  ;;  %v10441_v4 = vld [vmem:[#allocation87_spill] sm:$0xff]  ;;  %v5879_v23 = vld [vmem:[#allocation4 + $0x28] sm:$0xff] }
 0xcb5   :  { %v5759_v14 = vsub.f32 1.0, %v5758_v58  ;;  %v5726_v17 = vadd.f32 %v5683_v19, %v10438_v27  ;;  %v5727_v52 = vadd.f32 %v5696_v18, %v10439_v38  ;;  %5923 = vmatpush.msra.mxu0 %v5884_v8  ;;  %v6037_v45 = vld [vmem:[%s10164_s14 + $0x8] sm:$0xff]  ;;  %v6036_v8 = vld [vmem:[%s10164_s14] sm:$0xff] }
 0xcb6   :  { %v5745_v28 = vmul.f32 %v7473_v62, %v5744_v16  ;;  %vm5782_vm13 = vcmp.eq.f32.partialorder %v5781_v44, 8.507059e+37  ;;  %v5881_v44 = vld [vmem:[#allocation4 + $0x38] sm:$0xff] }
 0xcb7   :  { %v5760_v35 = vmul.f32 %v7475_v56, %v5759_v14  ;;  %v6862_v12 = vmul.f32 -1.442695, %v5726_v17  ;;  %v6863_v5 = vmul.f32 -1.442695, %v5727_v52  ;;  %5924 = vmatpush.msra.mxu0 %v5883_v13  ;;  %v6984_v13 = vld [vmem:[%s10163_s13] ss:$0 sm:$0xff] }
 0xcb8   :  { %v7477_v48 = vpop.eup %7476  ;;  %v5746_v36 = vadd.f32 %v7473_v62, %v5745_v28 }
 0xcb9   :  { %v5773_v54 = vmul.f32 %v7477_v48, %v10030_v39  ;;  %v5761_v61 = vadd.f32 %v7475_v56, %v5760_v35  ;;  %7480 = vpow2.f32 %v6862_v12  ;;  %v7479_v63 = vpop.eup %7478  ;;  %vm5778_vm10 = vweird.f32 %v7477_v48  ;;  %5925 = vmatpush.msra.mxu0 %v5882_v49 }
 0xcba   :  { %v5750_v26 = vsel %vm5749_vm5, %v7473_v62, %v5746_v36  ;;  %7482 = vpow2.f32 %v6863_v5  ;;  %vm5779_vm12 = vmor %vm5777_vm11, %vm5778_vm10  ;;  %vm6109_vm11 = vcmask 39936  }
 0xcbb   :  { %v5774_v24 = vsub.f32 1.0, %v5773_v54  ;;  %v5755_v22 = vsel %vm5752_vm8, %v5754_v53, %v5750_v26  ;;  %v5765_v57 = vsel %vm5764_vm7, %v7475_v56, %v5761_v61  ;;  %v5709_v50 = vpop.f32.mrf.mxu2  ;;  %v5722_v37 = vpop.f32.mrf.mxu3 }
 0xcbc   :  { %v5770_v51 = vsel %vm5767_vm9, %v5769_v21, %v5765_v57  ;;  %v5789_v3 = vmul.f32 %v7479_v63, %v5755_v22  ;;  %v5728_v11 = vadd.f32 %v5709_v50, %v10440_v0  ;;  %v5685_v6 = vpop.f32.mrf.mxu0  ;;  %v5698_v42 = vpop.f32.mrf.mxu1  ;;  %v5729_v58 = vadd.f32 %v5722_v37, %v10441_v4 }
 0xcbd   :  { %v5775_v41 = vmul.f32 %v7477_v48, %v5774_v24  ;;  %v5788_v25 = vmul.f32 %v5770_v51, %v9972_v30 }
 0xcbe   :  { %v6864_v9 = vmul.f32 -1.442695, %v5728_v11 }
 0xcbf   :  { %v7481_v31 = vpop.eup %7480  ;;  %v5790_v33 = vadd.f32 %v5789_v3, %v5788_v25  ;;  %v5776_v20 = vadd.f32 %v7477_v48, %v5775_v41  ;;  %v5857_v25 = vld [vmem:[%s10151_s1] sm:$0xff] }
 0xcc0   :  { %v7483_v1 = vpop.eup %7482  ;;  %v5802_v46 = vadd.f32 1.0, %v7481_v31  ;;  %7484 = vpow2.f32 %v6864_v9 }
 0xcc1   :  { %7486 = vtanh.f32 %v5790_v33  ;;  %v5803_v10 = vadd.f32 1.0, %v7483_v1  ;;  %v5780_v2 = vsel %vm5779_vm12, %v7477_v48, %v5776_v20  ;;  %v5875_v33 = vld [vmem:[#allocation4 + $0x8] sm:$0xff]  ;;  %v5876_v1 = vld [vmem:[#allocation4 + $0x10] sm:$0xff]  ;;  %v5877_v20 = vld [vmem:[#allocation4 + $0x18] sm:$0xff] }
 0xcc2   :  { %7488 = vrcp.f32 %v5802_v46  ;;  %v5785_v29 = vsel %vm5782_vm13, %v5784_v32, %v5780_v2  ;;  %v5816_v27 = vand.u32 2147483648, %v5802_v46  ;;  %v5814_v52 = vand.u32 2147483647, %v5802_v46 }
 0xcc3   :  { %7490 = vrcp.f32 %v5803_v10  ;;  %v5711_v30 = vpop.f32.mrf.mxu2  ;;  %v5724_v59 = vpop.f32.mrf.mxu3  ;;  %v5831_v17 = vand.u32 2147483648, %v5803_v10  ;;  %v5829_v28 = vand.u32 2147483647, %v5803_v10  ;;  %vm5810_vm0 = vweird.f32 %v5802_v46 }
 0xcc4   :  { %vm5825_vm1 = vweird.f32 %v5803_v10  ;;  %v5817_v5 = vor.u32 1.1754944e-38, %v5816_v27  ;;  %vm5815_vm4 = vcmp.eq.f32.partialorder %v5814_v52, 8.507059e+37  ;;  %v6039_v30 = vld [vmem:[%s10164_s14 + $0x18] sm:$0xff]  ;;  %v6038_v59 = vld [vmem:[%s10164_s14 + $0x10] sm:$0xff]  ;;  %v5992_v2 = vpop.f32.mrf.mxu1 }
 0xcc5   :  { %v5832_v36 = vor.u32 1.1754944e-38, %v5831_v17  ;;  %vm5830_vm5 = vcmp.eq.f32.partialorder %v5829_v28, 8.507059e+37  ;;  %6080 = vmatpush.msra.mxu2 %v6039_v30 }
 0xcc6   :  { %v7485_v7 = vpop.eup %7484 }
 0xcc7   :  { %v7487_v47 = vpop.eup %7486  ;;  %v5804_v39 = vadd.f32 1.0, %v7485_v7  ;;  %6081 = vmatpush.msra.mxu2 %v6038_v59 }
 0xcc8   :  { %v7489_v62 = vpop.eup %7488  ;;  %v5792_v56 = vmul.f32 %v7487_v47, %v5785_v29 }
 0xcc9   :  { %v7491_v16 = vpop.eup %7490  ;;  %v5806_v34 = vmul.f32 %v7489_v62, %v5802_v46  ;;  %7492 = vrcp.f32 %v5804_v39  ;;  %vm5811_vm14 = vweird.f32 %v7489_v62  ;;  %v5846_v3 = vand.u32 2147483648, %v5804_v39  ;;  %v5878_v46 = vld [vmem:[#allocation4 + $0x20] sm:$0xff]  ;;  %6082 = vmatpush.msra.mxu2 %v6037_v45 }
 0xcca   :  { %v5858_v19 = vmul.f32 %v6865_v15, %v5792_v56  ;;  %v5821_v18 = vmul.f32 %v7491_v16, %v5803_v10  ;;  %7494 = vtanh.f32 %v5729_v58  ;;  %vm5826_vm15 = vweird.f32 %v7491_v16  ;;  %vm5812_vm2 = vmor %vm5810_vm0, %vm5811_vm14  ;;  %v5880_v10 = vld [vmem:[#allocation4 + $0x30] sm:$0xff] }
 0xccb   :  { %v5807_v14 = vsub.f32 1.0, %v5806_v34  ;;  %vm5827_vm3 = vmor %vm5825_vm1, %vm5826_vm15  ;;  %vm5840_vm8 = vweird.f32 %v5804_v39  ;;  %v5844_v0 = vand.u32 2147483647, %v5804_v39  ;;  %v5847_v6 = vor.u32 1.1754944e-38, %v5846_v3  ;;  %6083 = vmatpush.msra.mxu2 %v6036_v8 }
 0xccc   :  { %5860 = vst.msk [vmem:[#allocation3 + $0x38] sm:$0xff] %vm662_vm6, %v5858_v19  ;;  %v5822_v55 = vsub.f32 1.0, %v5821_v18  ;;  %v5995_v32 = vpop.f32.mrf.mxu1 }
 0xccd   :  { %v5808_v38 = vmul.f32 %v7489_v62, %v5807_v14  ;;  %vm5845_vm10 = vcmp.eq.f32.partialorder %v5844_v0, 8.507059e+37 }
 0xcce   :  { %v5823_v40 = vmul.f32 %v7491_v16, %v5822_v55 }
 0xccf   :  { %v7493_v60 = vpop.eup %7492  ;;  %v5809_v35 = vadd.f32 %v7489_v62, %v5808_v38 }
 0xcd0   :  { %v5836_v12 = vmul.f32 %v7493_v60, %v5804_v39  ;;  %v5824_v48 = vadd.f32 %v7491_v16, %v5823_v40  ;;  %v7495_v53 = vpop.eup %7494  ;;  %vm5841_vm7 = vweird.f32 %v7493_v60 }
 0xcd1   :  { %v5813_v54 = vsel %vm5812_vm2, %v7489_v62, %v5809_v35  ;;  %vm5842_vm9 = vmor %vm5840_vm8, %vm5841_vm7 }
 0xcd2   :  { %v5837_v61 = vsub.f32 1.0, %v5836_v12  ;;  %v5818_v63 = vsel %vm5815_vm4, %v5817_v5, %v5813_v54  ;;  %v5828_v21 = vsel %vm5827_vm3, %v7491_v16, %v5824_v48 }
 0xcd3   :  { %v5833_v26 = vsel %vm5830_vm5, %v5832_v36, %v5828_v21  ;;  %v5852_v24 = vmul.f32 %v7495_v53, %v5818_v63  ;;  %v5869_v22 = vld [vmem:[#allocation3 + $0x38] sm:$0xff] }
 0xcd4   :  { %v5838_v57 = vmul.f32 %v7493_v60, %v5837_v61  ;;  %v5851_v50 = vmul.f32 %v5833_v26, %v10002_v43  ;;  %6881 = vmatmul.msk.f32.gmra.mxu1 %vm662_vm6, %v5869_v22  ;;  %v5998_v15 = vpop.f32.mrf.mxu1 }
 0xcd6   :  { %v5853_v37 = vadd.f32 %v5852_v24, %v5851_v50  ;;  %v5839_v51 = vadd.f32 %v7493_v60, %v5838_v57 }
 0xcd8   :  { %7496 = vtanh.f32 %v5853_v37  ;;  %v5843_v11 = vsel %vm5842_vm9, %v7493_v60, %v5839_v51  ;;  %v6985_v37 = vld [vmem:[%s10165_s15] ss:$0 sm:$0xff] }
 0xcd9   :  { %v5848_v41 = vsel %vm5845_vm10, %v5847_v6, %v5843_v11 }
 0xcdc   :  { %v6001_v16 = vpop.f32.mrf.mxu1 }
 0xcde   :  { %v7497_v42 = vpop.eup %7496 }
 0xcdf   :  { %v5855_v43 = vmul.f32 %v7497_v42, %v5848_v41 }
 0xce1   :  { %v5859_v9 = vmul.f32 %v5857_v25, %v5855_v43 }
 0xce3   :  { %5861 = vst.msk [vmem:[#allocation4] sm:$0xff] %vm662_vm6, %v5859_v9 }
 0xce4   :  { %v6004_v17 = vpop.f32.mrf.mxu1 }
 0xcea   :  { %v5874_v31 = vld [vmem:[#allocation4] sm:$0xff] }
 0xceb   :  { %6866 = vmatmul.msk.f32.vlgmr.msra.gmra.mxu0 %vm662_vm6, %v5874_v31 }
 0xcec   :  { %v6007_v60 = vpop.f32.mrf.mxu1 }
 0xcf3   :  { %6867 = vmatmul.msk.f32.gmra.mxu0 %vm662_vm6, %v5875_v33 }
 0xcf4   :  { %v6010_v36 = vpop.f32.mrf.mxu1 }
 0xcfb   :  { %6868 = vmatmul.msk.f32.gmra.mxu0 %vm662_vm6, %v5876_v1 }
 0xd03   :  { %6869 = vmatmul.msk.f32.gmra.mxu0 %vm662_vm6, %v5877_v20 }
 0xd0b   :  { %6870 = vmatmul.msk.f32.gmra.mxu0 %vm662_vm6, %v5878_v46 }
 0xd13   :  { %6871 = vmatmul.msk.f32.gmra.mxu0 %vm662_vm6, %v5879_v23 }
 0xd1b   :  { %6872 = vmatmul.msk.f32.gmra.mxu0 %vm662_vm6, %v5880_v10 }
 0xd23   :  { %6873 = vmatmul.msk.f32.gmra.mxu0 %vm662_vm6, %v5881_v44 }
 0xd51   :  { %v6013_v21 = vpop.f32.mrf.mxu1 }
 0xd68   :  { %v5927_v7 = vpop.f32.mrf.mxu0 }
 0xd69   :  { %v5993_v47 = vadd.f32 %v5992_v2, %v5927_v7 }
 0xd6b   :  { %v6020_v29 = vadd.f32 %v6984_v13, %v5993_v47 }
 0xd6d   :  { %7498 = vtanh.f32 %v6020_v29 }
 0xd70   :  { %v5930_v39 = vpop.f32.mrf.mxu0 }
 0xd71   :  { %v5996_v49 = vadd.f32 %v5995_v32, %v5930_v39 }
 0xd73   :  { %v7499_v62 = vpop.eup %7498  ;;  %v6021_v56 = vadd.f32 %v6984_v13, %v5996_v49 }
 0xd74   :  { %6882 = vmatmul.msk.f32.vlgmr.msra.gmra.mxu2 %vm662_vm6, %v7499_v62 }
 0xd75   :  { %7500 = vtanh.f32 %v6021_v56 }
 0xd78   :  { %v5933_v4 = vpop.f32.mrf.mxu0 }
 0xd79   :  { %v5999_v58 = vadd.f32 %v5998_v15, %v5933_v4 }
 0xd7b   :  { %v7501_v34 = vpop.eup %7500  ;;  %v6022_v19 = vadd.f32 %v6984_v13, %v5999_v58 }
 0xd7c   :  { %6883 = vmatmul.msk.f32.gmra.mxu2 %vm662_vm6, %v7501_v34 }
 0xd7d   :  { %7502 = vtanh.f32 %v6022_v19 }
 0xd80   :  { %v5936_v18 = vpop.f32.mrf.mxu0 }
 0xd81   :  { %v6002_v14 = vadd.f32 %v6001_v16, %v5936_v18 }
 0xd83   :  { %v7503_v55 = vpop.eup %7502  ;;  %v6023_v27 = vadd.f32 %v6984_v13, %v6002_v14 }
 0xd84   :  { %6884 = vmatmul.msk.f32.gmra.mxu2 %vm662_vm6, %v7503_v55 }
 0xd85   :  { %7504 = vtanh.f32 %v6023_v27 }
 0xd88   :  { %v5939_v38 = vpop.f32.mrf.mxu0 }
 0xd89   :  { %v6005_v52 = vadd.f32 %v6004_v17, %v5939_v38 }
 0xd8b   :  { %v7505_v40 = vpop.eup %7504  ;;  %v6024_v28 = vadd.f32 %v6984_v13, %v6005_v52 }
 0xd8c   :  { %6885 = vmatmul.msk.f32.gmra.mxu2 %vm662_vm6, %v7505_v40 }
 0xd8d   :  { %7506 = vtanh.f32 %v6024_v28 }
 0xd90   :  { %v5942_v35 = vpop.f32.mrf.mxu0 }
 0xd91   :  { %v6008_v12 = vadd.f32 %v6007_v60, %v5942_v35 }
 0xd93   :  { %v7507_v5 = vpop.eup %7506  ;;  %v6025_v48 = vadd.f32 %v6984_v13, %v6008_v12 }
 0xd94   :  { %6886 = vmatmul.msk.f32.gmra.mxu2 %vm662_vm6, %v7507_v5 }
 0xd95   :  { %7508 = vtanh.f32 %v6025_v48 }
 0xd98   :  { %v5945_v54 = vpop.f32.mrf.mxu0 }
 0xd99   :  { %v6011_v53 = vadd.f32 %v6010_v36, %v5945_v54 }
 0xd9b   :  { %v7509_v61 = vpop.eup %7508  ;;  %v6026_v63 = vadd.f32 %v6984_v13, %v6011_v53 }
 0xd9c   :  { %6887 = vmatmul.msk.f32.gmra.mxu2 %vm662_vm6, %v7509_v61 }
 0xd9d   :  { %7510 = vtanh.f32 %v6026_v63 }
 0xda0   :  { %v5948_v26 = vpop.f32.mrf.mxu0 }
 0xda1   :  { %v6014_v24 = vadd.f32 %v6013_v21, %v5948_v26 }
 0xda3   :  { %v7511_v22 = vpop.eup %7510  ;;  %v6027_v57 = vadd.f32 %v6984_v13, %v6014_v24 }
 0xda4   :  { %6888 = vmatmul.msk.f32.gmra.mxu2 %vm662_vm6, %v7511_v22 }
 0xda5   :  { %7512 = vtanh.f32 %v6027_v57 }
 0xdab   :  { %v7513_v50 = vpop.eup %7512 }
 0xdac   :  { %6889 = vmatmul.msk.f32.gmra.mxu2 %vm662_vm6, %v7513_v50 }
 0xdf7   :  { %v6085_v51 = vpop.f32.mrf.mxu2 }
 0xdf8   :  { %v6086_v3 = vadd.f32 %v6985_v37, %v6085_v51 }
 0xdfa   :  { %v6110_v0 = vsel %vm6109_vm11, %v6086_v3, -inf }
 0xdfb   :  { %6111 = vmax.xlane.f32.xlu0 %v6110_v0 }
 0xdff   :  { %v6088_v11 = vpop.f32.mrf.mxu2 }
 0xe00   :  { %v6089_v6 = vadd.f32 %v6985_v37, %v6088_v11 }
 0xe02   :  { %v6113_v42 = vsel %vm6109_vm11, %v6089_v6, -inf }
 0xe03   :  { %6114 = vmax.xlane.f32.xlu0 %v6113_v42 }
 0xe07   :  { %v6091_v41 = vpop.f32.mrf.mxu2 }
 0xe08   :  { %v6092_v25 = vadd.f32 %v6985_v37, %v6091_v41 }
 0xe0a   :  { %v6116_v43 = vsel %vm6109_vm11, %v6092_v25, -inf }
 0xe0b   :  { %6117 = vmax.xlane.f32.xlu1 %v6116_v43 }
 0xe0f   :  { %v6094_v9 = vpop.f32.mrf.mxu2 }
 0xe10   :  { %v6095_v31 = vadd.f32 %v6985_v37, %v6094_v9 }
 0xe12   :  { %v6119_v33 = vsel %vm6109_vm11, %v6095_v31, -inf }
 0xe13   :  { %6120 = vmax.xlane.f32.xlu1 %v6119_v33 }
 0xe17   :  { %v6097_v1 = vpop.f32.mrf.mxu2 }
 0xe18   :  { %v6098_v20 = vadd.f32 %v6985_v37, %v6097_v1 }
 0xe1a   :  { %v6122_v46 = vsel %vm6109_vm11, %v6098_v20, -inf }
 0xe1b   :  { %6123 = vmax.xlane.f32.xlu2 %v6122_v46 }
 0xe1f   :  { %v6100_v23 = vpop.f32.mrf.mxu2 }
 0xe20   :  { %v6101_v10 = vadd.f32 %v6985_v37, %v6100_v23 }
 0xe22   :  { %v6125_v44 = vsel %vm6109_vm11, %v6101_v10, -inf }
 0xe23   :  { %6126 = vmax.xlane.f32.xlu2 %v6125_v44 }
 0xe27   :  { %v6103_v30 = vpop.f32.mrf.mxu2 }
 0xe28   :  { %v6104_v59 = vadd.f32 %v6985_v37, %v6103_v30 }
 0xe2a   :  { %v6128_v45 = vsel %vm6109_vm11, %v6104_v59, -inf }
 0xe2b   :  { %6129 = vmax.xlane.f32.xlu0 %v6128_v45 }
 0xe2f   :  { %v6106_v8 = vpop.f32.mrf.mxu2 }
 0xe30   :  { %v6107_v2 = vadd.f32 %v6985_v37, %v6106_v8 }
 0xe32   :  { %v6131_v32 = vsel %vm6109_vm11, %v6107_v2, -inf }
 0xe33   :  { %6132 = vmax.xlane.f32.xlu1 %v6131_v32 }
 0xe6e   :  { %v6112_v13 = vpop.xlane.xlu0 %6111 }
 0xe6f   :  { %v10094_v7 = vsub.f32 %v6086_v3, %v6112_v13 }
 0xe71   :  { %v6142_v47 = vmul.f32 1.442695, %v10094_v7 }
 0xe73   :  { %7514 = vpow2.f32 %v6142_v47 }
 0xe76   :  { %v6115_v29 = vpop.xlane.xlu0 %6114 }
 0xe77   :  { %v10097_v15 = vsub.f32 %v6089_v6, %v6115_v29 }
 0xe79   :  { %v7515_v39 = vpop.eup %7514  ;;  %v6144_v49 = vmul.f32 1.442695, %v10097_v15 }
 0xe7a   :  { %v6158_v62 = vsel %vm6109_vm11, %v7515_v39, 0.0 }
 0xe7b   :  { %7516 = vpow2.f32 %v6144_v49  ;;  %6159 = vadd.xlane.f32.xlu2 %v6158_v62 }
 0xe7e   :  { %v6118_v56 = vpop.xlane.xlu1 %6117 }
 0xe7f   :  { %v10101_v4 = vsub.f32 %v6092_v25, %v6118_v56 }
 0xe81   :  { %v7517_v58 = vpop.eup %7516  ;;  %v6146_v16 = vmul.f32 1.442695, %v10101_v4 }
 0xe82   :  { %v6161_v34 = vsel %vm6109_vm11, %v7517_v58, 0.0 }
 0xe83   :  { %7518 = vpow2.f32 %v6146_v16  ;;  %6162 = vadd.xlane.f32.xlu0 %v6161_v34 }
 0xe86   :  { %v6121_v19 = vpop.xlane.xlu1 %6120 }
 0xe87   :  { %v10105_v18 = vsub.f32 %v6095_v31, %v6121_v19 }
 0xe89   :  { %v7519_v14 = vpop.eup %7518  ;;  %v6148_v55 = vmul.f32 1.442695, %v10105_v18 }
 0xe8a   :  { %v6164_v27 = vsel %vm6109_vm11, %v7519_v14, 0.0 }
 0xe8b   :  { %7520 = vpow2.f32 %v6148_v55  ;;  %6165 = vadd.xlane.f32.xlu1 %v6164_v27 }
 0xe8e   :  { %v6124_v17 = vpop.xlane.xlu2 %6123 }
 0xe8f   :  { %v6138_v38 = vsub.f32 %v6098_v20, %v6124_v17 }
 0xe91   :  { %v7521_v52 = vpop.eup %7520  ;;  %v6150_v40 = vmul.f32 1.442695, %v6138_v38 }
 0xe92   :  { %v6167_v28 = vsel %vm6109_vm11, %v7521_v52, 0.0 }
 0xe93   :  { %7522 = vpow2.f32 %v6150_v40  ;;  %6168 = vadd.xlane.f32.xlu2 %v6167_v28 }
 0xe96   :  { %v6127_v60 = vpop.xlane.xlu2 %6126 }
 0xe97   :  { %v6139_v35 = vsub.f32 %v6101_v10, %v6127_v60 }
 0xe99   :  { %v7523_v12 = vpop.eup %7522  ;;  %v6152_v5 = vmul.f32 1.442695, %v6139_v35 }
 0xe9a   :  { %v6170_v48 = vsel %vm6109_vm11, %v7523_v12, 0.0 }
 0xe9b   :  { %7524 = vpow2.f32 %v6152_v5  ;;  %6171 = vadd.xlane.f32.xlu0 %v6170_v48 }
 0xe9e   :  { %v6130_v36 = vpop.xlane.xlu0 %6129 }
 0xe9f   :  { %v6140_v54 = vsub.f32 %v6104_v59, %v6130_v36 }
 0xea1   :  { %v7525_v53 = vpop.eup %7524  ;;  %v6154_v61 = vmul.f32 1.442695, %v6140_v54 }
 0xea2   :  { %v6173_v63 = vsel %vm6109_vm11, %v7525_v53, 0.0 }
 0xea3   :  { %7526 = vpow2.f32 %v6154_v61  ;;  %6174 = vadd.xlane.f32.xlu1 %v6173_v63 }
 0xea6   :  { %v6133_v21 = vpop.xlane.xlu1 %6132 }
 0xea7   :  { %v6141_v26 = vsub.f32 %v6107_v2, %v6133_v21 }
 0xea9   :  { %v7527_v24 = vpop.eup %7526  ;;  %v6156_v22 = vmul.f32 1.442695, %v6141_v26 }
 0xeaa   :  { %v6176_v57 = vsel %vm6109_vm11, %v7527_v24, 0.0 }
 0xeab   :  { %7528 = vpow2.f32 %v6156_v22  ;;  %6177 = vadd.xlane.f32.xlu2 %v6176_v57 }
 0xeb1   :  { %v7529_v50 = vpop.eup %7528 }
 0xeb2   :  { %v6179_v37 = vsel %vm6109_vm11, %v7529_v50, 0.0 }
 0xeb3   :  { %6180 = vadd.xlane.f32.xlu0 %v6179_v37 }
 0xeee   :  { %v6160_v51 = vpop.xlane.xlu2 %6159 }
 0xeef   :  { %7530 = vlog2.f32 %v6160_v51 }
 0xef5   :  { %v7531_v3 = vpop.eup %7530 }
 0xef6   :  { %v6183_v0 = vmul.f32 0.6931472, %v7531_v3  ;;  %v6163_v11 = vpop.xlane.xlu0 %6162 }
 0xef7   :  { %7532 = vlog2.f32 %v6163_v11 }
 0xef8   :  { %v6198_v6 = vsub.f32 %v10094_v7, %v6183_v0 }
 0xefa   :  { %6206 = vst.msk [vmem:[%s10166_s16] sm:$0xff] %vm6109_vm11, %v6198_v6 }
 0xefd   :  { %v7533_v42 = vpop.eup %7532 }
 0xefe   :  { %v6185_v41 = vmul.f32 0.6931472, %v7533_v42  ;;  %v6166_v25 = vpop.xlane.xlu1 %6165 }
 0xeff   :  { %7534 = vlog2.f32 %v6166_v25 }
 0xf00   :  { %v6199_v43 = vsub.f32 %v10097_v15, %v6185_v41 }
 0xf02   :  { %6207 = vst.msk [vmem:[%s10166_s16 + $0x8] sm:$0xff] %vm6109_vm11, %v6199_v43 }
 0xf05   :  { %v7535_v9 = vpop.eup %7534 }
 0xf06   :  { %v6187_v31 = vmul.f32 0.6931472, %v7535_v9  ;;  %v6169_v33 = vpop.xlane.xlu2 %6168 }
 0xf07   :  { %7536 = vlog2.f32 %v6169_v33 }
 0xf08   :  { %v6200_v1 = vsub.f32 %v10101_v4, %v6187_v31 }
 0xf0a   :  { %6208 = vst.msk [vmem:[%s10166_s16 + $0x10] sm:$0xff] %vm6109_vm11, %v6200_v1 }
 0xf0d   :  { %v7537_v20 = vpop.eup %7536 }
 0xf0e   :  { %v6189_v46 = vmul.f32 0.6931472, %v7537_v20  ;;  %v6172_v23 = vpop.xlane.xlu0 %6171 }
 0xf0f   :  { %7538 = vlog2.f32 %v6172_v23 }
 0xf10   :  { %v6201_v10 = vsub.f32 %v10105_v18, %v6189_v46 }
 0xf12   :  { %6209 = vst.msk [vmem:[%s10166_s16 + $0x18] sm:$0xff] %vm6109_vm11, %v6201_v10 }
 0xf15   :  { %v7539_v44 = vpop.eup %7538 }
 0xf16   :  { %v6191_v30 = vmul.f32 0.6931472, %v7539_v44  ;;  %v6175_v59 = vpop.xlane.xlu1 %6174 }
 0xf17   :  { %7540 = vlog2.f32 %v6175_v59 }
 0xf18   :  { %v6202_v45 = vsub.f32 %v6138_v38, %v6191_v30 }
 0xf1a   :  { %6210 = vst.msk [vmem:[%s10166_s16 + $0x20] sm:$0xff] %vm6109_vm11, %v6202_v45 }
 0xf1d   :  { %v7541_v8 = vpop.eup %7540 }
 0xf1e   :  { %v6193_v2 = vmul.f32 0.6931472, %v7541_v8  ;;  %v6178_v32 = vpop.xlane.xlu2 %6177 }
 0xf1f   :  { %7542 = vlog2.f32 %v6178_v32 }
 0xf20   :  { %v6203_v13 = vsub.f32 %v6139_v35, %v6193_v2 }
 0xf22   :  { %6211 = vst.msk [vmem:[%s10166_s16 + $0x28] sm:$0xff] %vm6109_vm11, %v6203_v13 }
 0xf25   :  { %v7543_v7 = vpop.eup %7542 }
 0xf26   :  { %v6195_v47 = vmul.f32 0.6931472, %v7543_v7  ;;  %v6181_v29 = vpop.xlane.xlu0 %6180 }
 0xf27   :  { %7544 = vlog2.f32 %v6181_v29 }
 0xf28   :  { %v6204_v15 = vsub.f32 %v6140_v54, %v6195_v47 }
 0xf2a   :  { %6212 = vst.msk [vmem:[%s10166_s16 + $0x30] sm:$0xff] %vm6109_vm11, %v6204_v15 }
 0xf2d   :  { %v7545_v39 = vpop.eup %7544 }
 0xf2e   :  { %v6197_v49 = vmul.f32 0.6931472, %v7545_v39 }
 0xf30   :  { %v6205_v62 = vsub.f32 %v6141_v26, %v6197_v49 }
 0xf32   :  { %6213 = vst.msk [vmem:[%s10166_s16 + $0x38] sm:$0xff] %vm6109_vm11, %v6205_v62 }
 0xf33   :  { %6218 = vsyncpa [#allocation6], 1 }
 0xf34   :  { %6219 = vsyncpa [#allocation8], 1 }
 0xf35   :  { %6220 = vsyncpa [#allocation11], 1 }
 0xf36   :  { %6221 = vsyncpa [#allocation14], 1 }
 0xf37   :  { %6222 = vsyncpa [#allocation17], 1 }

</bundles_post_ra>
